<compile_context>
chip_gen: v5e
topology: v5e:2x2
jax: 0.10.0
libtpu: 0.0.40
codegen_flags: <defaults>
</compile_context>

<pallas_src>
import functools

import jax
import jax.numpy as jnp
from jax import lax
from jax.experimental import pallas as pl
from jax.experimental.pallas import tpu as pltpu


# ----------------------------------------------------------------------------
# helpers
# ----------------------------------------------------------------------------
def _pick_tile(dim, cap, align):
    """Largest multiple of `align` that divides `dim` and is <= cap, else dim."""
    if dim <= cap:
        return dim
    t = (cap // align) * align
    while t >= align:
        if dim % t == 0:
            return t
        t -= align
    return dim  # full extent is always a legal block


def _vmem_limit(tile_bytes):
    """Scoped-VMEM request: double-buffered tiles + headroom, < v7x 64 MiB."""
    return int(min(max(2 * tile_bytes + (8 << 20), 32 << 20), 56 << 20))


# ----------------------------------------------------------------------------
# tiled linear (optional bias in the K-final epilogue)
# ----------------------------------------------------------------------------
def _matmul_kernel(x_ref, w_ref, o_ref, acc_ref):
    @pl.when(pl.program_id(2) == 0)
    def _():
        acc_ref[...] = jnp.zeros(acc_ref.shape, jnp.float32)

    acc_ref[...] += jnp.dot(x_ref[...].astype(jnp.bfloat16), w_ref[...],
                            preferred_element_type=jnp.float32)

    @pl.when(pl.program_id(2) == pl.num_programs(2) - 1)
    def _():
        o_ref[...] = acc_ref[...].astype(o_ref.dtype)


def _matmul_bias_kernel(x_ref, w_ref, b_ref, o_ref, acc_ref):
    @pl.when(pl.program_id(2) == 0)
    def _():
        acc_ref[...] = jnp.zeros(acc_ref.shape, jnp.float32)

    acc_ref[...] += jnp.dot(x_ref[...].astype(jnp.bfloat16), w_ref[...],
                            preferred_element_type=jnp.float32)

    @pl.when(pl.program_id(2) == pl.num_programs(2) - 1)
    def _():
        o_ref[...] = (acc_ref[...] + b_ref[...]).astype(o_ref.dtype)


def pallas_linear(x, w, b=None, *, tm_cap=256, tn_cap=512, tk_cap=512):
    S, K = x.shape
    _, N = w.shape
    tm = _pick_tile(S, tm_cap, 8)
    tn = _pick_tile(N, tn_cap, 128)
    tk = _pick_tile(K, tk_cap, 128)
    grid = (S // tm, N // tn, K // tk)

    tile_bytes = (tm * tk * x.dtype.itemsize + tk * tn * w.dtype.itemsize
                  + 2 * tm * tn * 4 + tn * 4)
    cparams = pltpu.CompilerParams(
        dimension_semantics=("parallel", "parallel", "arbitrary"),
        vmem_limit_bytes=_vmem_limit(tile_bytes))

    x_spec = pl.BlockSpec((tm, tk), lambda i, j, k: (i, k))
    w_spec = pl.BlockSpec((tk, tn), lambda i, j, k: (k, j))
    o_spec = pl.BlockSpec((tm, tn), lambda i, j, k: (i, j))
    scratch = [pltpu.VMEM((tm, tn), jnp.float32)]
    out_shape = jax.ShapeDtypeStruct((S, N), x.dtype)

    if b is None:
        return pl.pallas_call(
            _matmul_kernel, out_shape=out_shape, grid=grid,
            in_specs=[x_spec, w_spec], out_specs=o_spec,
            scratch_shapes=scratch, compiler_params=cparams,
        )(x, w)

    b2 = b.reshape(1, N).astype(jnp.float32)
    b_spec = pl.BlockSpec((1, tn), lambda i, j, k: (0, j))
    return pl.pallas_call(
        _matmul_bias_kernel, out_shape=out_shape, grid=grid,
        in_specs=[x_spec, w_spec, b_spec], out_specs=o_spec,
        scratch_shapes=scratch, compiler_params=cparams,
    )(x, w, b2)


# ----------------------------------------------------------------------------
# fused gate_up matmul + SiluAndMul epilogue
# ----------------------------------------------------------------------------
def _gate_up_silu_kernel(x_ref, wg_ref, wu_ref, o_ref, accg_ref, accu_ref):
    @pl.when(pl.program_id(2) == 0)
    def _():
        accg_ref[...] = jnp.zeros(accg_ref.shape, jnp.float32)
        accu_ref[...] = jnp.zeros(accu_ref.shape, jnp.float32)

    xb = x_ref[...].astype(jnp.bfloat16)
    accg_ref[...] += jnp.dot(xb, wg_ref[...], preferred_element_type=jnp.float32)
    accu_ref[...] += jnp.dot(xb, wu_ref[...], preferred_element_type=jnp.float32)

    @pl.when(pl.program_id(2) == pl.num_programs(2) - 1)
    def _():
        g = accg_ref[...]
        o_ref[...] = (g * jax.nn.sigmoid(g) * accu_ref[...]).astype(o_ref.dtype)


def pallas_gate_up_silu(x, wg, wu):
    S, K = x.shape
    N = wg.shape[1]
    tm = _pick_tile(S, 256, 8)
    tn = _pick_tile(N, 512, 128)
    tk = _pick_tile(K, 512, 128)
    grid = (S // tm, N // tn, K // tk)
    tile_bytes = tm * tk * 4 + 2 * tk * tn * wg.dtype.itemsize + 3 * tm * tn * 4
    cparams = pltpu.CompilerParams(
        dimension_semantics=("parallel", "parallel", "arbitrary"),
        vmem_limit_bytes=_vmem_limit(tile_bytes))
    return pl.pallas_call(
        _gate_up_silu_kernel,
        out_shape=jax.ShapeDtypeStruct((S, N), x.dtype),
        grid=grid,
        in_specs=[pl.BlockSpec((tm, tk), lambda i, j, k: (i, k)),
                  pl.BlockSpec((tk, tn), lambda i, j, k: (k, j)),
                  pl.BlockSpec((tk, tn), lambda i, j, k: (k, j))],
        out_specs=pl.BlockSpec((tm, tn), lambda i, j, k: (i, j)),
        scratch_shapes=[pltpu.VMEM((tm, tn), jnp.float32),
                        pltpu.VMEM((tm, tn), jnp.float32)],
        compiler_params=cparams,
    )(x, wg, wu)


# ----------------------------------------------------------------------------
# fused add + RMSNorm (token-tiled, residual aliased to residual_out)
# ----------------------------------------------------------------------------
def _add_rmsnorm_kernel(x_ref, res_ref, w_ref, o_ref, newres_ref, *, eps):
    # vLLM fused_add_rms_norm: x = x + residual; residual_out = x;
    #                          out = rmsnorm(x) * w        (all f32)
    x = x_ref[...] + res_ref[...]
    newres_ref[...] = x.astype(newres_ref.dtype)
    var = jnp.mean(x * x, axis=-1, keepdims=True)
    inv = lax.rsqrt(var + eps)
    o_ref[...] = (x * inv * w_ref[...]).astype(o_ref.dtype)


def pallas_add_rmsnorm(x, residual, weight, eps):
    S, H = x.shape
    ts = _pick_tile(S, 512, 8)
    w2 = weight.reshape(1, H)
    tile_bytes = 4 * ts * H * 4 + H * 4
    cparams = pltpu.CompilerParams(
        dimension_semantics=("parallel",),
        vmem_limit_bytes=_vmem_limit(tile_bytes))
    row_spec = pl.BlockSpec((ts, H), lambda i: (i, 0))
    out, new_res = pl.pallas_call(
        functools.partial(_add_rmsnorm_kernel, eps=eps),
        out_shape=(jax.ShapeDtypeStruct((S, H), x.dtype),
                   jax.ShapeDtypeStruct((S, H), x.dtype)),
        grid=(S // ts,),
        in_specs=[row_spec, row_spec, pl.BlockSpec((1, H), lambda i: (0, 0))],
        out_specs=(row_spec, row_spec),
        input_output_aliases={1: 1},   # residual buffer reused for residual_out
        compiler_params=cparams,
    )(x, residual, w2)
    return out, new_res


# ----------------------------------------------------------------------------
# flash attention with fused NeoX RoPE, heads sliced out of fused QKV lanes
# ----------------------------------------------------------------------------
def _rotate_half(x, half):
    # concat([x2, x1]); combined with sin_signed = concat(-sin, sin) this
    # equals the NeoX rotate_half * sin term.
    return jnp.concatenate([x[:, half:], x[:, :half]], axis=-1)


def _flash_attn_kernel(q_ref, k_ref, v_ref, cq_ref, sq_ref, ck_ref, sk_ref,
                       o_ref, m_ref, l_ref, acc_ref, qrot_ref, *, scale):
    qi = pl.program_id(1)
    ki = pl.program_id(2)
    tq = q_ref.shape[0]
    tkv = k_ref.shape[0]
    half = q_ref.shape[1] // 2

    q_start = qi * tq
    kv_start = ki * tkv

    @pl.when(ki == 0)
    def _():
        m_ref[...] = jnp.full(m_ref.shape, -jnp.inf, jnp.float32)
        l_ref[...] = jnp.zeros(l_ref.shape, jnp.float32)
        acc_ref[...] = jnp.zeros(acc_ref.shape, jnp.float32)
        # Rotate + scale q ONCE per q tile; reuse across all kv tiles.
        q = q_ref[...].astype(jnp.float32)
        qrot_ref[...] = (q * cq_ref[...]
                         + _rotate_half(q, half) * sq_ref[...]) * scale

    # Skip KV tiles that are entirely in the causal future of this q tile.
    @pl.when(kv_start < q_start + tq)
    def _():
        # NeoX RoPE on the resident k tile (VPU work, hides under the MXU).
        k = k_ref[...].astype(jnp.float32)
        k = k * ck_ref[...] + _rotate_half(k, half) * sk_ref[...]

        # scores = (q*scale) @ k^T, bf16 in / f32 out on the MXU
        s = lax.dot_general(qrot_ref[...].astype(jnp.bfloat16),
                            k.astype(jnp.bfloat16),
                            (((1,), (1,)), ((), ())),
                            preferred_element_type=jnp.float32)

        row = q_start + lax.broadcasted_iota(jnp.int32, (tq, tkv), 0)
        col = kv_start + lax.broadcasted_iota(jnp.int32, (tq, tkv), 1)
        s = jnp.where(col <= row, s, -1e30)

        m_prev = m_ref[...]
        m_new = jnp.maximum(m_prev, jnp.max(s, axis=-1, keepdims=True))
        alpha = jnp.exp(m_prev - m_new)
        p = jnp.exp(s - m_new)
        l_ref[...] = alpha * l_ref[...] + jnp.sum(p, axis=-1, keepdims=True)
        acc_ref[...] = alpha * acc_ref[...] + jnp.dot(
            p.astype(jnp.bfloat16), v_ref[...].astype(jnp.bfloat16),
            preferred_element_type=jnp.float32)
        m_ref[...] = m_new

    @pl.when(ki == pl.num_programs(2) - 1)
    def _():
        o_ref[...] = (acc_ref[...] / l_ref[...]).astype(o_ref.dtype)


def pallas_flash_attention(qkv, cos, sin, num_heads, head_dim, scale):
    # qkv: (S, 3 * num_heads * head_dim) — heads are picked via the lane
    # block index, so no split / transpose ever touches HBM.
    S = qkv.shape[0]
    NH, D = num_heads, head_dim
    assert D % 128 == 0, "head_dim must be a multiple of 128 (Qwen uses 128)"
    tq = _pick_tile(S, 256, 8)
    tkv = _pick_tile(S, 256, 8)
    grid = (NH, S // tq, S // tkv)   # heads leading & parallel -> megacore split

    q_spec = pl.BlockSpec((tq, D), lambda h, qi, ki: (qi, h))
    k_spec = pl.BlockSpec((tkv, D), lambda h, qi, ki: (ki, NH + h))
    v_spec = pl.BlockSpec((tkv, D), lambda h, qi, ki: (ki, 2 * NH + h))
    cq_spec = pl.BlockSpec((tq, D), lambda h, qi, ki: (qi, 0))
    ck_spec = pl.BlockSpec((tkv, D), lambda h, qi, ki: (ki, 0))
    out_spec = pl.BlockSpec((tq, D), lambda h, qi, ki: (qi, h))

    tile_bytes = (tq * D * 4 + 2 * tkv * D * 4 + 4 * max(tq, tkv) * D * 4
                  + 2 * tq * D * 4 + tq * tkv * 4 + tq * 2 * 4)
    cparams = pltpu.CompilerParams(
        dimension_semantics=("parallel", "parallel", "arbitrary"),
        vmem_limit_bytes=_vmem_limit(tile_bytes))

    return pl.pallas_call(
        functools.partial(_flash_attn_kernel, scale=scale),
        out_shape=jax.ShapeDtypeStruct((S, NH * D), qkv.dtype),
        grid=grid,
        in_specs=[q_spec, k_spec, v_spec, cq_spec, cq_spec, ck_spec, ck_spec],
        out_specs=out_spec,
        scratch_shapes=[pltpu.VMEM((tq, 1), jnp.float32),
                        pltpu.VMEM((tq, 1), jnp.float32),
                        pltpu.VMEM((tq, D), jnp.float32),
                        pltpu.VMEM((tq, D), jnp.float32)],
        compiler_params=cparams,
    )(qkv, qkv, qkv, cos, sin, cos, sin)


# ----------------------------------------------------------------------------
# JAX glue: NeoX RoPE tables (tiny; consumed inside the attention kernel)
# ----------------------------------------------------------------------------
def rope_tables(positions, head_dim, theta):
    half = head_dim // 2
    exponent = jnp.arange(0, head_dim, 2, dtype=jnp.float32) / head_dim
    inv_freq = 1.0 / (theta ** exponent)                                # (D/2,)
    freqs = positions.astype(jnp.float32)[:, None] * inv_freq[None, :]  # (S, D/2)
    cos = jnp.cos(freqs)
    sin = jnp.sin(freqs)
    # out = x * cos_full + rotate(x) * sin_signed  ==  NeoX rotation
    cos_full = jnp.concatenate([cos, cos], axis=-1)                     # (S, D)
    sin_signed = jnp.concatenate([-sin, sin], axis=-1)                  # (S, D)
    return cos_full, sin_signed


# ----------------------------------------------------------------------------
# Model (QWenLMHeadModel.forward -> transformer hidden states)
# ----------------------------------------------------------------------------
def qwen_forward(params, input_ids, positions, cfg):
    H = cfg["hidden_size"]
    NH = cfg["num_heads"]
    D = H // NH
    eps = cfg["eps"]
    scale = D ** -0.5

    # wte embedding gather — JAX glue.
    hidden = params["wte"][input_ids]                # (S, H) f32
    residual = jnp.zeros_like(hidden)                # residual=None case

    cos, sin = rope_tables(positions, D, cfg["rope_theta"])  # (S, D)

    for layer in params["layers"]:
        # ln_1 (+ residual accumulation)
        normed, residual = pallas_add_rmsnorm(hidden, residual, layer["ln1_w"], eps)

        # attention: fused QKV projection (with bias)
        qkv = pallas_linear(normed, layer["c_attn_w"], layer["c_attn_b"])  # (S, 3H)

        # TODO(synk): paged kv_cache / AttentionMetadata not modeled; plain
        # causal prefill attention over the full sequence instead.
        attn = pallas_flash_attention(qkv, cos, sin, NH, D, scale)        # (S, H)

        # c_proj (no bias)
        hidden = pallas_linear(attn, layer["c_proj_w"])

        # ln_2 (+ residual accumulation)
        normed, residual = pallas_add_rmsnorm(hidden, residual, layer["ln2_w"], eps)

        # MLP: fused gate_up + SiluAndMul, then c_proj
        act = pallas_gate_up_silu(normed, layer["gate_w"], layer["up_w"])
        hidden = pallas_linear(act, layer["mlp_c_proj_w"])

    # final ln_f (fused with residual)
    hidden, _ = pallas_add_rmsnorm(hidden, residual, params["ln_f_w"], eps)
    return hidden


# ----------------------------------------------------------------------------
# Deterministic parameter init (weights bf16 for the MXU, norms/bias f32)
# ----------------------------------------------------------------------------
def init_params(key, cfg):
    H = cfg["hidden_size"]
    I = cfg["mlp_intermediate"]     # == config.intermediate_size // 2
    V = cfg["vocab_size"]
    L = cfg["num_layers"]

    def nrm(k, shape, scale=0.05, dtype=jnp.float32):
        return (scale * jax.random.normal(k, shape, dtype=jnp.float32)).astype(dtype)

    keys = jax.random.split(key, 1 + 6 * L)
    params = {"wte": nrm(keys[0], (V, H)),
              "ln_f_w": jnp.ones((H,), jnp.float32)}
    layers = []
    for li in range(L):
        k = keys[1 + 6 * li: 1 + 6 * (li + 1)]
        layers.append({
            "ln1_w": jnp.ones((H,), jnp.float32),
            "c_attn_w": nrm(k[0], (H, 3 * H), dtype=jnp.bfloat16),
            "c_attn_b": nrm(k[1], (3 * H,)),
            "c_proj_w": nrm(k[2], (H, H), dtype=jnp.bfloat16),
            "ln2_w": jnp.ones((H,), jnp.float32),
            "gate_w": nrm(k[3], (H, I), dtype=jnp.bfloat16),
            "up_w": nrm(k[4], (H, I), dtype=jnp.bfloat16),
            "mlp_c_proj_w": nrm(k[5], (I, H), dtype=jnp.bfloat16),
        })
    params["layers"] = layers
    return params


# ----------------------------------------------------------------------------
if __name__ == "__main__":
    cfg = {
        "hidden_size": 256,
        "num_heads": 2,            # head_dim = 128 (matches real Qwen head_dim)
        "mlp_intermediate": 256,   # config.intermediate_size = 512 -> //2 = 256
        "vocab_size": 512,
        "num_layers": 2,
        "eps": 1e-6,
        "rope_theta": 10000.0,
    }
    seq_len = 128

    key = jax.random.PRNGKey(0)
    pkey, ikey = jax.random.split(key)
    params = init_params(pkey, cfg)

    input_ids = jax.random.randint(ikey, (seq_len,), 0, cfg["vocab_size"],
                                   dtype=jnp.int32)
    positions = jnp.arange(seq_len, dtype=jnp.int32)

    fwd = jax.jit(lambda p, ids, pos: qwen_forward(p, ids, pos, cfg))
    hidden_states = fwd(params, input_ids, positions)
    jax.block_until_ready(hidden_states)

    assert hidden_states.shape == (seq_len, cfg["hidden_size"])
    assert bool(jnp.all(jnp.isfinite(hidden_states)))
    print("KERNEL_OK")
</pallas_src>

<mosaic_0001>
module attributes {stable_mosaic.version = 11 : i64} {
  func.func @_matmul_bias_kernel(%arg0: i32, %arg1: i32, %arg2: i32, %arg3: memref<128x256xf32, #tpu.memory_space<vmem>>, %arg4: memref<256x384xbf16, #tpu.memory_space<vmem>>, %arg5: memref<1x384xf32, #tpu.memory_space<vmem>>, %arg6: memref<128x384xf32, #tpu.memory_space<vmem>>, %arg7: memref<128x384xf32, #tpu.memory_space<vmem>>) attributes {dimension_semantics = [#tpu.dimension_semantics<parallel>, #tpu.dimension_semantics<parallel>, #tpu.dimension_semantics<arbitrary>], iteration_bounds = array<i64: 1, 2, 1>, scalar_prefetch = 0 : i64, scratch_operands = 1 : i64, tpu.core_type = #tpu.core_type<tc>, window_params = [{transform_indices = @transform_0, window_bounds = array<i64: 128, 256>}, {transform_indices = @transform_1, window_bounds = array<i64: 256, 384>}, {transform_indices = @transform_2, window_bounds = array<i64: 1, 384>}, {transform_indices = @transform_3, window_bounds = array<i64: 128, 384>}]} {
    %c0_i32 = arith.constant 0 : i32
    %0 = arith.cmpi eq, %arg2, %c0_i32 : i32
    %1 = arith.extui %0 : i1 to i32
    %c0_i32_0 = arith.constant 0 : i32
    %2 = arith.cmpi ne, %1, %c0_i32_0 : i32
    scf.if %2 {
      %cst_10 = arith.constant 0.000000e+00 : f32
      %13 = vector.broadcast %cst_10 : f32 to vector<128x384xf32>
      %c0_11 = arith.constant 0 : index
      %c0_12 = arith.constant 0 : index
      %14 = vector.load %arg7[%c0_11, %c0_12] : memref<128x384xf32, #tpu.memory_space<vmem>>, vector<128x384xf32>
      tpu.vector_store %arg7[%c0_11, %c0_12], %13 {strides = array<i32>} : memref<128x384xf32, #tpu.memory_space<vmem>>, vector<128x384xf32>,
    } else {
    }
    %c0 = arith.constant 0 : index
    %c0_1 = arith.constant 0 : index
    %3 = vector.load %arg7[%c0, %c0_1] : memref<128x384xf32, #tpu.memory_space<vmem>>, vector<128x384xf32>
    %c0_2 = arith.constant 0 : index
    %c0_3 = arith.constant 0 : index
    %4 = vector.load %arg3[%c0_2, %c0_3] : memref<128x256xf32, #tpu.memory_space<vmem>>, vector<128x256xf32>
    %5 = arith.truncf %4 : vector<128x256xf32> to vector<128x256xbf16>
    %c0_4 = arith.constant 0 : index
    %c0_5 = arith.constant 0 : index
    %6 = vector.load %arg4[%c0_4, %c0_5] : memref<256x384xbf16, #tpu.memory_space<vmem>>, vector<256x384xbf16>
    %cst = arith.constant dense<0.000000e+00> : vector<128x384xf32>
    %7 = tpu.matmul %5, %6, %cst {dimension_numbers = #tpu.dot_dimension_numbers<[1], [0], [0], [1], [0, 0, 1, 1], [], []>} : vector<128x256xbf16>, vector<256x384xbf16>, vector<128x384xf32> -> vector<128x384xf32>
    %8 = arith.addf %3, %7 : vector<128x384xf32>
    %c0_6 = arith.constant 0 : index
    %c0_7 = arith.constant 0 : index
    %9 = vector.load %arg7[%c0_6, %c0_7] : memref<128x384xf32, #tpu.memory_space<vmem>>, vector<128x384xf32>
    tpu.vector_store %arg7[%c0_6, %c0_7], %8 {strides = array<i32>} : memref<128x384xf32, #tpu.memory_space<vmem>>, vector<128x384xf32>,
    %c0_i32_8 = arith.constant 0 : i32
    %10 = arith.cmpi eq, %arg2, %c0_i32_8 : i32
    %11 = arith.extui %10 : i1 to i32
    %c0_i32_9 = arith.constant 0 : i32
    %12 = arith.cmpi ne, %11, %c0_i32_9 : i32
    scf.if %12 {
      %c0_10 = arith.constant 0 : index
      %c0_11 = arith.constant 0 : index
      %13 = vector.load %arg7[%c0_10, %c0_11] : memref<128x384xf32, #tpu.memory_space<vmem>>, vector<128x384xf32>
      %c0_12 = arith.constant 0 : index
      %c0_13 = arith.constant 0 : index
      %14 = vector.load %arg5[%c0_12, %c0_13] : memref<1x384xf32, #tpu.memory_space<vmem>>, vector<1x384xf32>
      %15 = vector.broadcast %14 : vector<1x384xf32> to vector<128x384xf32>
      %16 = arith.addf %13, %15 : vector<128x384xf32>
      %c0_14 = arith.constant 0 : index
      %c0_15 = arith.constant 0 : index
      %17 = vector.load %arg6[%c0_14, %c0_15] : memref<128x384xf32, #tpu.memory_space<vmem>>, vector<128x384xf32>
      tpu.vector_store %arg6[%c0_14, %c0_15], %16 {strides = array<i32>} : memref<128x384xf32, #tpu.memory_space<vmem>>, vector<128x384xf32>,
    } else {
    }
    return
  }
  func.func @transform_0(%arg0: i32, %arg1: i32, %arg2: i32) -> (i32, i32) {
    %c0_i32 = arith.constant 0 : i32
    return %arg0, %arg2 : i32, i32
  }
  func.func @transform_1(%arg0: i32, %arg1: i32, %arg2: i32) -> (i32, i32) {
    %c0_i32 = arith.constant 0 : i32
    return %arg2, %arg1 : i32, i32
  }
  func.func @transform_2(%arg0: i32, %arg1: i32, %arg2: i32) -> (i32, i32) {
    %c0_i32 = arith.constant 0 : i32
    %c0_i32_0 = arith.constant 0 : i32
    return %c0_i32, %arg1 : i32, i32
  }
  func.func @transform_3(%arg0: i32, %arg1: i32, %arg2: i32) -> (i32, i32) {
    %c0_i32 = arith.constant 0 : i32
    return %arg0, %arg1 : i32, i32
  }
}

module attributes {stable_mosaic.version = 11 : i64} {
  func.func @_add_rmsnorm_kernel(%arg0: i32, %arg1: memref<128x256xf32, #tpu.memory_space<vmem>>, %arg2: memref<128x256xf32, #tpu.memory_space<vmem>>, %arg3: memref<1x256xf32, #tpu.memory_space<vmem>>, %arg4: memref<128x256xf32, #tpu.memory_space<vmem>>, %arg5: memref<128x256xf32, #tpu.memory_space<vmem>>) attributes {dimension_semantics = [#tpu.dimension_semantics<parallel>], iteration_bounds = array<i64: 1>, scalar_prefetch = 0 : i64, scratch_operands = 0 : i64, tpu.core_type = #tpu.core_type<tc>, window_params = [{transform_indices = @transform_0, window_bounds = array<i64: 128, 256>}, {transform_indices = @transform_1, window_bounds = array<i64: 128, 256>}, {pipeline_mode = #tpu.pipeline_mode<synchronous>, transform_indices = @transform_2, window_bounds = array<i64: 1, 256>}, {transform_indices = @transform_3, window_bounds = array<i64: 128, 256>}, {transform_indices = @transform_4, window_bounds = array<i64: 128, 256>}]} {
    %c0 = arith.constant 0 : index
    %c0_0 = arith.constant 0 : index
    %0 = vector.load %arg1[%c0, %c0_0] : memref<128x256xf32, #tpu.memory_space<vmem>>, vector<128x256xf32>
    %c0_1 = arith.constant 0 : index
    %c0_2 = arith.constant 0 : index
    %1 = vector.load %arg2[%c0_1, %c0_2] : memref<128x256xf32, #tpu.memory_space<vmem>>, vector<128x256xf32>
    %2 = arith.addf %0, %1 : vector<128x256xf32>
    %c0_3 = arith.constant 0 : index
    %c0_4 = arith.constant 0 : index
    %3 = vector.load %arg5[%c0_3, %c0_4] : memref<128x256xf32, #tpu.memory_space<vmem>>, vector<128x256xf32>
    tpu.vector_store %arg5[%c0_3, %c0_4], %2 {strides = array<i32>} : memref<128x256xf32, #tpu.memory_space<vmem>>, vector<128x256xf32>,
    %4 = arith.mulf %2, %2 : vector<128x256xf32>
    %cst = arith.constant dense<0.000000e+00> : vector<128xf32>
    %5 = vector.multi_reduction <add>, %4, %cst [1] : vector<128x256xf32> to vector<128xf32>
    %6 = vector.shape_cast %5 : vector<128xf32> to vector<128x1xf32>
    %cst_5 = arith.constant 2.560000e+02 : f32
    %7 = vector.broadcast %cst_5 : f32 to vector<128x1xf32>
    %8 = arith.divf %6, %7 : vector<128x1xf32>
    %cst_6 = arith.constant 9.99999997E-7 : f32
    %9 = vector.broadcast %cst_6 : f32 to vector<128x1xf32>
    %10 = arith.addf %8, %9 : vector<128x1xf32>
    %11 = math.rsqrt %10 : vector<128x1xf32>
    %12 = vector.broadcast %11 : vector<128x1xf32> to vector<128x256xf32>
    %13 = arith.mulf %2, %12 : vector<128x256xf32>
    %c0_7 = arith.constant 0 : index
    %c0_8 = arith.constant 0 : index
    %14 = vector.load %arg3[%c0_7, %c0_8] : memref<1x256xf32, #tpu.memory_space<vmem>>, vector<1x256xf32>
    %15 = vector.broadcast %14 : vector<1x256xf32> to vector<128x256xf32>
    %16 = arith.mulf %13, %15 : vector<128x256xf32>
    %c0_9 = arith.constant 0 : index
    %c0_10 = arith.constant 0 : index
    %17 = vector.load %arg4[%c0_9, %c0_10] : memref<128x256xf32, #tpu.memory_space<vmem>>, vector<128x256xf32>
    tpu.vector_store %arg4[%c0_9, %c0_10], %16 {strides = array<i32>} : memref<128x256xf32, #tpu.memory_space<vmem>>, vector<128x256xf32>,
    return
  }
  func.func @transform_0(%arg0: i32) -> (i32, i32) {
    %c0_i32 = arith.constant 0 : i32
    %c0_i32_0 = arith.constant 0 : i32
    return %arg0, %c0_i32 : i32, i32
  }
  func.func @transform_1(%arg0: i32) -> (i32, i32) {
    %c0_i32 = arith.constant 0 : i32
    %c0_i32_0 = arith.constant 0 : i32
    return %arg0, %c0_i32 : i32, i32
  }
  func.func @transform_2(%arg0: i32) -> (i32, i32) {
    %c0_i32 = arith.constant 0 : i32
    %c0_i32_0 = arith.constant 0 : i32
    %c0_i32_1 = arith.constant 0 : i32
    return %c0_i32, %c0_i32_0 : i32, i32
  }
  func.func @transform_3(%arg0: i32) -> (i32, i32) {
    %c0_i32 = arith.constant 0 : i32
    %c0_i32_0 = arith.constant 0 : i32
    return %arg0, %c0_i32 : i32, i32
  }
  func.func @transform_4(%arg0: i32) -> (i32, i32) {
    %c0_i32 = arith.constant 0 : i32
    %c0_i32_0 = arith.constant 0 : i32
    return %arg0, %c0_i32 : i32, i32
  }
}

module attributes {stable_mosaic.version = 11 : i64} {
  func.func @_flash_attn_kernel(%arg0: i32, %arg1: i32, %arg2: i32, %arg3: memref<128x128xf32, #tpu.memory_space<vmem>>, %arg4: memref<128x128xf32, #tpu.memory_space<vmem>>, %arg5: memref<128x128xf32, #tpu.memory_space<vmem>>, %arg6: memref<128x128xf32, #tpu.memory_space<vmem>>, %arg7: memref<128x128xf32, #tpu.memory_space<vmem>>, %arg8: memref<128x128xf32, #tpu.memory_space<vmem>>, %arg9: memref<128x128xf32, #tpu.memory_space<vmem>>, %arg10: memref<128x128xf32, #tpu.memory_space<vmem>>, %arg11: memref<128x1xf32, #tpu.memory_space<vmem>>, %arg12: memref<128x1xf32, #tpu.memory_space<vmem>>, %arg13: memref<128x128xf32, #tpu.memory_space<vmem>>, %arg14: memref<128x128xf32, #tpu.memory_space<vmem>>) attributes {dimension_semantics = [#tpu.dimension_semantics<parallel>, #tpu.dimension_semantics<parallel>, #tpu.dimension_semantics<arbitrary>], iteration_bounds = array<i64: 2, 1, 1>, scalar_prefetch = 0 : i64, scratch_operands = 4 : i64, tpu.core_type = #tpu.core_type<tc>, window_params = [{transform_indices = @transform_0, window_bounds = array<i64: 128, 128>}, {transform_indices = @transform_1, window_bounds = array<i64: 128, 128>}, {transform_indices = @transform_2, window_bounds = array<i64: 128, 128>}, {transform_indices = @transform_3, window_bounds = array<i64: 128, 128>}, {transform_indices = @transform_4, window_bounds = array<i64: 128, 128>}, {transform_indices = @transform_5, window_bounds = array<i64: 128, 128>}, {transform_indices = @transform_6, window_bounds = array<i64: 128, 128>}, {transform_indices = @transform_7, window_bounds = array<i64: 128, 128>}]} {
    %c128_i32 = arith.constant 128 : i32
    %0 = arith.muli %arg1, %c128_i32 : i32
    %c128_i32_0 = arith.constant 128 : i32
    %1 = arith.muli %arg2, %c128_i32_0 : i32
    %c0_i32 = arith.constant 0 : i32
    %2 = arith.cmpi eq, %arg2, %c0_i32 : i32
    %3 = arith.extui %2 : i1 to i32
    %c0_i32_1 = arith.constant 0 : i32
    %4 = arith.cmpi ne, %3, %c0_i32_1 : i32
    scf.if %4 {
      %cst = arith.constant 0xFF800000 : f32
      %12 = vector.broadcast %cst : f32 to vector<128x1xf32>
      %c0 = arith.constant 0 : index
      %c0_6 = arith.constant 0 : index
      %13 = vector.load %arg11[%c0, %c0_6] : memref<128x1xf32, #tpu.memory_space<vmem>>, vector<128x1xf32>
      tpu.vector_store %arg11[%c0, %c0_6], %12 {strides = array<i32>} : memref<128x1xf32, #tpu.memory_space<vmem>>, vector<128x1xf32>,
      %cst_7 = arith.constant 0.000000e+00 : f32
      %14 = vector.broadcast %cst_7 : f32 to vector<128x1xf32>
      %c0_8 = arith.constant 0 : index
      %c0_9 = arith.constant 0 : index
      %15 = vector.load %arg12[%c0_8, %c0_9] : memref<128x1xf32, #tpu.memory_space<vmem>>, vector<128x1xf32>
      tpu.vector_store %arg12[%c0_8, %c0_9], %14 {strides = array<i32>} : memref<128x1xf32, #tpu.memory_space<vmem>>, vector<128x1xf32>,
      %cst_10 = arith.constant 0.000000e+00 : f32
      %16 = vector.broadcast %cst_10 : f32 to vector<128x128xf32>
      %c0_11 = arith.constant 0 : index
      %c0_12 = arith.constant 0 : index
      %17 = vector.load %arg13[%c0_11, %c0_12] : memref<128x128xf32, #tpu.memory_space<vmem>>, vector<128x128xf32>
      tpu.vector_store %arg13[%c0_11, %c0_12], %16 {strides = array<i32>} : memref<128x128xf32, #tpu.memory_space<vmem>>, vector<128x128xf32>,
      %c0_13 = arith.constant 0 : index
      %c0_14 = arith.constant 0 : index
      %18 = vector.load %arg3[%c0_13, %c0_14] : memref<128x128xf32, #tpu.memory_space<vmem>>, vector<128x128xf32>
      %c0_15 = arith.constant 0 : index
      %c0_16 = arith.constant 0 : index
      %19 = vector.load %arg6[%c0_15, %c0_16] : memref<128x128xf32, #tpu.memory_space<vmem>>, vector<128x128xf32>
      %20 = arith.mulf %18, %19 : vector<128x128xf32>
      %21 = vector.extract_strided_slice %18 {offsets = [0, 64], sizes = [128, 64], strides = [1, 1]} : vector<128x128xf32> to vector<128x64xf32>
      %22 = vector.extract_strided_slice %18 {offsets = [0, 0], sizes = [128, 64], strides = [1, 1]} : vector<128x128xf32> to vector<128x64xf32>
      %23 = tpu.concatenate %21, %22 in 1 : vector<128x64xf32>, vector<128x64xf32> -> vector<128x128xf32>
      %c0_17 = arith.constant 0 : index
      %c0_18 = arith.constant 0 : index
      %24 = vector.load %arg7[%c0_17, %c0_18] : memref<128x128xf32, #tpu.memory_space<vmem>>, vector<128x128xf32>
      %25 = arith.mulf %23, %24 : vector<128x128xf32>
      %26 = arith.addf %20, %25 : vector<128x128xf32>
      %cst_19 = arith.constant 0.0883883461 : f32
      %27 = vector.broadcast %cst_19 : f32 to vector<128x128xf32>
      %28 = arith.mulf %26, %27 : vector<128x128xf32>
      %c0_20 = arith.constant 0 : index
      %c0_21 = arith.constant 0 : index
      %29 = vector.load %arg14[%c0_20, %c0_21] : memref<128x128xf32, #tpu.memory_space<vmem>>, vector<128x128xf32>
      tpu.vector_store %arg14[%c0_20, %c0_21], %28 {strides = array<i32>} : memref<128x128xf32, #tpu.memory_space<vmem>>, vector<128x128xf32>,
    } else {
    }
    %c128_i32_2 = arith.constant 128 : i32
    %5 = arith.addi %0, %c128_i32_2 : i32
    %6 = arith.cmpi slt, %1, %5 : i32
    %7 = arith.extui %6 : i1 to i32
    %c0_i32_3 = arith.constant 0 : i32
    %8 = arith.cmpi ne, %7, %c0_i32_3 : i32
    scf.if %8 {
      %c0 = arith.constant 0 : index
      %c0_6 = arith.constant 0 : index
      %12 = vector.load %arg4[%c0, %c0_6] : memref<128x128xf32, #tpu.memory_space<vmem>>, vector<128x128xf32>
      %c0_7 = arith.constant 0 : index
      %c0_8 = arith.constant 0 : index
      %13 = vector.load %arg8[%c0_7, %c0_8] : memref<128x128xf32, #tpu.memory_space<vmem>>, vector<128x128xf32>
      %14 = arith.mulf %12, %13 : vector<128x128xf32>
      %15 = vector.extract_strided_slice %12 {offsets = [0, 64], sizes = [128, 64], strides = [1, 1]} : vector<128x128xf32> to vector<128x64xf32>
      %16 = vector.extract_strided_slice %12 {offsets = [0, 0], sizes = [128, 64], strides = [1, 1]} : vector<128x128xf32> to vector<128x64xf32>
      %17 = tpu.concatenate %15, %16 in 1 : vector<128x64xf32>, vector<128x64xf32> -> vector<128x128xf32>
      %c0_9 = arith.constant 0 : index
      %c0_10 = arith.constant 0 : index
      %18 = vector.load %arg9[%c0_9, %c0_10] : memref<128x128xf32, #tpu.memory_space<vmem>>, vector<128x128xf32>
      %19 = arith.mulf %17, %18 : vector<128x128xf32>
      %20 = arith.addf %14, %19 : vector<128x128xf32>
      %c0_11 = arith.constant 0 : index
      %c0_12 = arith.constant 0 : index
      %21 = vector.load %arg14[%c0_11, %c0_12] : memref<128x128xf32, #tpu.memory_space<vmem>>, vector<128x128xf32>
      %22 = arith.truncf %21 : vector<128x128xf32> to vector<128x128xbf16>
      %23 = arith.truncf %20 : vector<128x128xf32> to vector<128x128xbf16>
      %cst = arith.constant dense<0.000000e+00> : vector<128x128xf32>
      %24 = tpu.matmul %22, %23, %cst {dimension_numbers = #tpu.dot_dimension_numbers<[1], [1], [0], [0], [0, 0, 1, 0], [], []>} : vector<128x128xbf16>, vector<128x128xbf16>, vector<128x128xf32> -> vector<128x128xf32>
      %25 = tpu.iota {dimensions = array<i32: 0>} : vector<128x128xi32>
      %26 = vector.broadcast %0 : i32 to vector<128x128xi32>
      %27 = arith.addi %26, %25 : vector<128x128xi32>
      %28 = tpu.iota {dimensions = array<i32: 1>} : vector<128x128xi32>
      %29 = vector.broadcast %1 : i32 to vector<128x128xi32>
      %30 = arith.addi %29, %28 : vector<128x128xi32>
      %31 = arith.cmpi sle, %30, %27 : vector<128x128xi32>
      %cst_13 = arith.constant -1.000000e+30 : f32
      %32 = vector.broadcast %cst_13 : f32 to vector<128x128xf32>
      %33 = arith.select %31, %24, %32 : vector<128x128xi1>, vector<128x128xf32>
      %c0_14 = arith.constant 0 : index
      %c0_15 = arith.constant 0 : index
      %34 = vector.load %arg11[%c0_14, %c0_15] : memref<128x1xf32, #tpu.memory_space<vmem>>, vector<128x1xf32>
      %cst_16 = arith.constant dense<0xFF800000> : vector<128xf32>
      %35 = vector.multi_reduction <maximumf>, %33, %cst_16 [1] : vector<128x128xf32> to vector<128xf32>
      %36 = vector.shape_cast %35 : vector<128xf32> to vector<128x1xf32>
      %37 = arith.maximumf %34, %36 : vector<128x1xf32>
      %38 = arith.subf %34, %37 : vector<128x1xf32>
      %39 = math.exp %38 : vector<128x1xf32>
      %40 = vector.broadcast %37 : vector<128x1xf32> to vector<128x128xf32>
      %41 = arith.subf %33, %40 : vector<128x128xf32>
      %42 = math.exp %41 : vector<128x128xf32>
      %c0_17 = arith.constant 0 : index
      %c0_18 = arith.constant 0 : index
      %43 = vector.load %arg12[%c0_17, %c0_18] : memref<128x1xf32, #tpu.memory_space<vmem>>, vector<128x1xf32>
      %44 = arith.mulf %39, %43 : vector<128x1xf32>
      %cst_19 = arith.constant dense<0.000000e+00> : vector<128xf32>
      %45 = vector.multi_reduction <add>, %42, %cst_19 [1] : vector<128x128xf32> to vector<128xf32>
      %46 = vector.shape_cast %45 : vector<128xf32> to vector<128x1xf32>
      %47 = arith.addf %44, %46 : vector<128x1xf32>
      %c0_20 = arith.constant 0 : index
      %c0_21 = arith.constant 0 : index
      %48 = vector.load %arg12[%c0_20, %c0_21] : memref<128x1xf32, #tpu.memory_space<vmem>>, vector<128x1xf32>
      tpu.vector_store %arg12[%c0_20, %c0_21], %47 {strides = array<i32>} : memref<128x1xf32, #tpu.memory_space<vmem>>, vector<128x1xf32>,
      %c0_22 = arith.constant 0 : index
      %c0_23 = arith.constant 0 : index
      %49 = vector.load %arg13[%c0_22, %c0_23] : memref<128x128xf32, #tpu.memory_space<vmem>>, vector<128x128xf32>
      %50 = vector.broadcast %39 : vector<128x1xf32> to vector<128x128xf32>
      %51 = arith.mulf %50, %49 : vector<128x128xf32>
      %52 = arith.truncf %42 : vector<128x128xf32> to vector<128x128xbf16>
      %c0_24 = arith.constant 0 : index
      %c0_25 = arith.constant 0 : index
      %53 = vector.load %arg5[%c0_24, %c0_25] : memref<128x128xf32, #tpu.memory_space<vmem>>, vector<128x128xf32>
      %54 = arith.truncf %53 : vector<128x128xf32> to vector<128x128xbf16>
      %cst_26 = arith.constant dense<0.000000e+00> : vector<128x128xf32>
      %55 = tpu.matmul %52, %54, %cst_26 {dimension_numbers = #tpu.dot_dimension_numbers<[1], [0], [0], [1], [0, 0, 1, 1], [], []>} : vector<128x128xbf16>, vector<128x128xbf16>, vector<128x128xf32> -> vector<128x128xf32>
      %56 = arith.addf %51, %55 : vector<128x128xf32>
      %c0_27 = arith.constant 0 : index
      %c0_28 = arith.constant 0 : index
      %57 = vector.load %arg13[%c0_27, %c0_28] : memref<128x128xf32, #tpu.memory_space<vmem>>, vector<128x128xf32>
      tpu.vector_store %arg13[%c0_27, %c0_28], %56 {strides = array<i32>} : memref<128x128xf32, #tpu.memory_space<vmem>>, vector<128x128xf32>,
      %c0_29 = arith.constant 0 : index
      %c0_30 = arith.constant 0 : index
      %58 = vector.load %arg11[%c0_29, %c0_30] : memref<128x1xf32, #tpu.memory_space<vmem>>, vector<128x1xf32>
      tpu.vector_store %arg11[%c0_29, %c0_30], %37 {strides = array<i32>} : memref<128x1xf32, #tpu.memory_space<vmem>>, vector<128x1xf32>,
    } else {
    }
    %c0_i32_4 = arith.constant 0 : i32
    %9 = arith.cmpi eq, %arg2, %c0_i32_4 : i32
    %10 = arith.extui %9 : i1 to i32
    %c0_i32_5 = arith.constant 0 : i32
    %11 = arith.cmpi ne, %10, %c0_i32_5 : i32
    scf.if %11 {
      %c0 = arith.constant 0 : index
      %c0_6 = arith.constant 0 : index
      %12 = vector.load %arg13[%c0, %c0_6] : memref<128x128xf32, #tpu.memory_space<vmem>>, vector<128x128xf32>
      %c0_7 = arith.constant 0 : index
      %c0_8 = arith.constant 0 : index
      %13 = vector.load %arg12[%c0_7, %c0_8] : memref<128x1xf32, #tpu.memory_space<vmem>>, vector<128x1xf32>
      %14 = vector.broadcast %13 : vector<128x1xf32> to vector<128x128xf32>
      %15 = arith.divf %12, %14 : vector<128x128xf32>
      %c0_9 = arith.constant 0 : index
      %c0_10 = arith.constant 0 : index
      %16 = vector.load %arg10[%c0_9, %c0_10] : memref<128x128xf32, #tpu.memory_space<vmem>>, vector<128x128xf32>
      tpu.vector_store %arg10[%c0_9, %c0_10], %15 {strides = array<i32>} : memref<128x128xf32, #tpu.memory_space<vmem>>, vector<128x128xf32>,
    } else {
    }
    return
  }
  func.func @transform_0(%arg0: i32, %arg1: i32, %arg2: i32) -> (i32, i32) {
    %c0_i32 = arith.constant 0 : i32
    return %arg1, %arg0 : i32, i32
  }
  func.func @transform_1(%arg0: i32, %arg1: i32, %arg2: i32) -> (i32, i32) {
    %c2_i32 = arith.constant 2 : i32
    %0 = arith.addi %c2_i32, %arg0 : i32
    %c0_i32 = arith.constant 0 : i32
    return %arg2, %0 : i32, i32
  }
  func.func @transform_2(%arg0: i32, %arg1: i32, %arg2: i32) -> (i32, i32) {
    %c4_i32 = arith.constant 4 : i32
    %0 = arith.addi %c4_i32, %arg0 : i32
    %c0_i32 = arith.constant 0 : i32
    return %arg2, %0 : i32, i32
  }
  func.func @transform_3(%arg0: i32, %arg1: i32, %arg2: i32) -> (i32, i32) {
    %c0_i32 = arith.constant 0 : i32
    %c0_i32_0 = arith.constant 0 : i32
    return %arg1, %c0_i32 : i32, i32
  }
  func.func @transform_4(%arg0: i32, %arg1: i32, %arg2: i32) -> (i32, i32) {
    %c0_i32 = arith.constant 0 : i32
    %c0_i32_0 = arith.constant 0 : i32
    return %arg1, %c0_i32 : i32, i32
  }
  func.func @transform_5(%arg0: i32, %arg1: i32, %arg2: i32) -> (i32, i32) {
    %c0_i32 = arith.constant 0 : i32
    %c0_i32_0 = arith.constant 0 : i32
    return %arg2, %c0_i32 : i32, i32
  }
  func.func @transform_6(%arg0: i32, %arg1: i32, %arg2: i32) -> (i32, i32) {
    %c0_i32 = arith.constant 0 : i32
    %c0_i32_0 = arith.constant 0 : i32
    return %arg2, %c0_i32 : i32, i32
  }
  func.func @transform_7(%arg0: i32, %arg1: i32, %arg2: i32) -> (i32, i32) {
    %c0_i32 = arith.constant 0 : i32
    return %arg1, %arg0 : i32, i32
  }
}

module attributes {stable_mosaic.version = 11 : i64} {
  func.func @_matmul_kernel(%arg0: i32, %arg1: i32, %arg2: i32, %arg3: memref<128x256xf32, #tpu.memory_space<vmem>>, %arg4: memref<256x256xbf16, #tpu.memory_space<vmem>>, %arg5: memref<128x256xf32, #tpu.memory_space<vmem>>, %arg6: memref<128x256xf32, #tpu.memory_space<vmem>>) attributes {dimension_semantics = [#tpu.dimension_semantics<parallel>, #tpu.dimension_semantics<parallel>, #tpu.dimension_semantics<arbitrary>], iteration_bounds = array<i64: 1, 1, 1>, scalar_prefetch = 0 : i64, scratch_operands = 1 : i64, tpu.core_type = #tpu.core_type<tc>, window_params = [{transform_indices = @transform_0, window_bounds = array<i64: 128, 256>}, {transform_indices = @transform_1, window_bounds = array<i64: 256, 256>}, {transform_indices = @transform_2, window_bounds = array<i64: 128, 256>}]} {
    %c0_i32 = arith.constant 0 : i32
    %0 = arith.cmpi eq, %arg2, %c0_i32 : i32
    %1 = arith.extui %0 : i1 to i32
    %c0_i32_0 = arith.constant 0 : i32
    %2 = arith.cmpi ne, %1, %c0_i32_0 : i32
    scf.if %2 {
      %cst_10 = arith.constant 0.000000e+00 : f32
      %13 = vector.broadcast %cst_10 : f32 to vector<128x256xf32>
      %c0_11 = arith.constant 0 : index
      %c0_12 = arith.constant 0 : index
      %14 = vector.load %arg6[%c0_11, %c0_12] : memref<128x256xf32, #tpu.memory_space<vmem>>, vector<128x256xf32>
      tpu.vector_store %arg6[%c0_11, %c0_12], %13 {strides = array<i32>} : memref<128x256xf32, #tpu.memory_space<vmem>>, vector<128x256xf32>,
    } else {
    }
    %c0 = arith.constant 0 : index
    %c0_1 = arith.constant 0 : index
    %3 = vector.load %arg6[%c0, %c0_1] : memref<128x256xf32, #tpu.memory_space<vmem>>, vector<128x256xf32>
    %c0_2 = arith.constant 0 : index
    %c0_3 = arith.constant 0 : index
    %4 = vector.load %arg3[%c0_2, %c0_3] : memref<128x256xf32, #tpu.memory_space<vmem>>, vector<128x256xf32>
    %5 = arith.truncf %4 : vector<128x256xf32> to vector<128x256xbf16>
    %c0_4 = arith.constant 0 : index
    %c0_5 = arith.constant 0 : index
    %6 = vector.load %arg4[%c0_4, %c0_5] : memref<256x256xbf16, #tpu.memory_space<vmem>>, vector<256x256xbf16>
    %cst = arith.constant dense<0.000000e+00> : vector<128x256xf32>
    %7 = tpu.matmul %5, %6, %cst {dimension_numbers = #tpu.dot_dimension_numbers<[1], [0], [0], [1], [0, 0, 1, 1], [], []>} : vector<128x256xbf16>, vector<256x256xbf16>, vector<128x256xf32> -> vector<128x256xf32>
    %8 = arith.addf %3, %7 : vector<128x256xf32>
    %c0_6 = arith.constant 0 : index
    %c0_7 = arith.constant 0 : index
    %9 = vector.load %arg6[%c0_6, %c0_7] : memref<128x256xf32, #tpu.memory_space<vmem>>, vector<128x256xf32>
    tpu.vector_store %arg6[%c0_6, %c0_7], %8 {strides = array<i32>} : memref<128x256xf32, #tpu.memory_space<vmem>>, vector<128x256xf32>,
    %c0_i32_8 = arith.constant 0 : i32
    %10 = arith.cmpi eq, %arg2, %c0_i32_8 : i32
    %11 = arith.extui %10 : i1 to i32
    %c0_i32_9 = arith.constant 0 : i32
    %12 = arith.cmpi ne, %11, %c0_i32_9 : i32
    scf.if %12 {
      %c0_10 = arith.constant 0 : index
      %c0_11 = arith.constant 0 : index
      %13 = vector.load %arg6[%c0_10, %c0_11] : memref<128x256xf32, #tpu.memory_space<vmem>>, vector<128x256xf32>
      %c0_12 = arith.constant 0 : index
      %c0_13 = arith.constant 0 : index
      %14 = vector.load %arg5[%c0_12, %c0_13] : memref<128x256xf32, #tpu.memory_space<vmem>>, vector<128x256xf32>
      tpu.vector_store %arg5[%c0_12, %c0_13], %13 {strides = array<i32>} : memref<128x256xf32, #tpu.memory_space<vmem>>, vector<128x256xf32>,
    } else {
    }
    return
  }
  func.func @transform_0(%arg0: i32, %arg1: i32, %arg2: i32) -> (i32, i32) {
    %c0_i32 = arith.constant 0 : i32
    return %arg0, %arg2 : i32, i32
  }
  func.func @transform_1(%arg0: i32, %arg1: i32, %arg2: i32) -> (i32, i32) {
    %c0_i32 = arith.constant 0 : i32
    return %arg2, %arg1 : i32, i32
  }
  func.func @transform_2(%arg0: i32, %arg1: i32, %arg2: i32) -> (i32, i32) {
    %c0_i32 = arith.constant 0 : i32
    return %arg0, %arg1 : i32, i32
  }
}

module attributes {stable_mosaic.version = 11 : i64} {
  func.func @_gate_up_silu_kernel(%arg0: i32, %arg1: i32, %arg2: i32, %arg3: memref<128x256xf32, #tpu.memory_space<vmem>>, %arg4: memref<256x256xbf16, #tpu.memory_space<vmem>>, %arg5: memref<256x256xbf16, #tpu.memory_space<vmem>>, %arg6: memref<128x256xf32, #tpu.memory_space<vmem>>, %arg7: memref<128x256xf32, #tpu.memory_space<vmem>>, %arg8: memref<128x256xf32, #tpu.memory_space<vmem>>) attributes {dimension_semantics = [#tpu.dimension_semantics<parallel>, #tpu.dimension_semantics<parallel>, #tpu.dimension_semantics<arbitrary>], iteration_bounds = array<i64: 1, 1, 1>, scalar_prefetch = 0 : i64, scratch_operands = 2 : i64, tpu.core_type = #tpu.core_type<tc>, window_params = [{transform_indices = @transform_0, window_bounds = array<i64: 128, 256>}, {transform_indices = @transform_1, window_bounds = array<i64: 256, 256>}, {transform_indices = @transform_2, window_bounds = array<i64: 256, 256>}, {transform_indices = @transform_3, window_bounds = array<i64: 128, 256>}]} {
    %c0_i32 = arith.constant 0 : i32
    %0 = arith.cmpi eq, %arg2, %c0_i32 : i32
    %1 = arith.extui %0 : i1 to i32
    %c0_i32_0 = arith.constant 0 : i32
    %2 = arith.cmpi ne, %1, %c0_i32_0 : i32
    scf.if %2 {
      %cst_17 = arith.constant 0.000000e+00 : f32
      %18 = vector.broadcast %cst_17 : f32 to vector<128x256xf32>
      %c0_18 = arith.constant 0 : index
      %c0_19 = arith.constant 0 : index
      %19 = vector.load %arg7[%c0_18, %c0_19] : memref<128x256xf32, #tpu.memory_space<vmem>>, vector<128x256xf32>
      tpu.vector_store %arg7[%c0_18, %c0_19], %18 {strides = array<i32>} : memref<128x256xf32, #tpu.memory_space<vmem>>, vector<128x256xf32>,
      %cst_20 = arith.constant 0.000000e+00 : f32
      %20 = vector.broadcast %cst_20 : f32 to vector<128x256xf32>
      %c0_21 = arith.constant 0 : index
      %c0_22 = arith.constant 0 : index
      %21 = vector.load %arg8[%c0_21, %c0_22] : memref<128x256xf32, #tpu.memory_space<vmem>>, vector<128x256xf32>
      tpu.vector_store %arg8[%c0_21, %c0_22], %20 {strides = array<i32>} : memref<128x256xf32, #tpu.memory_space<vmem>>, vector<128x256xf32>,
    } else {
    }
    %c0 = arith.constant 0 : index
    %c0_1 = arith.constant 0 : index
    %3 = vector.load %arg3[%c0, %c0_1] : memref<128x256xf32, #tpu.memory_space<vmem>>, vector<128x256xf32>
    %4 = arith.truncf %3 : vector<128x256xf32> to vector<128x256xbf16>
    %c0_2 = arith.constant 0 : index
    %c0_3 = arith.constant 0 : index
    %5 = vector.load %arg7[%c0_2, %c0_3] : memref<128x256xf32, #tpu.memory_space<vmem>>, vector<128x256xf32>
    %c0_4 = arith.constant 0 : index
    %c0_5 = arith.constant 0 : index
    %6 = vector.load %arg4[%c0_4, %c0_5] : memref<256x256xbf16, #tpu.memory_space<vmem>>, vector<256x256xbf16>
    %cst = arith.constant dense<0.000000e+00> : vector<128x256xf32>
    %7 = tpu.matmul %4, %6, %cst {dimension_numbers = #tpu.dot_dimension_numbers<[1], [0], [0], [1], [0, 0, 1, 1], [], []>} : vector<128x256xbf16>, vector<256x256xbf16>, vector<128x256xf32> -> vector<128x256xf32>
    %8 = arith.addf %5, %7 : vector<128x256xf32>
    %c0_6 = arith.constant 0 : index
    %c0_7 = arith.constant 0 : index
    %9 = vector.load %arg7[%c0_6, %c0_7] : memref<128x256xf32, #tpu.memory_space<vmem>>, vector<128x256xf32>
    tpu.vector_store %arg7[%c0_6, %c0_7], %8 {strides = array<i32>} : memref<128x256xf32, #tpu.memory_space<vmem>>, vector<128x256xf32>,
    %c0_8 = arith.constant 0 : index
    %c0_9 = arith.constant 0 : index
    %10 = vector.load %arg8[%c0_8, %c0_9] : memref<128x256xf32, #tpu.memory_space<vmem>>, vector<128x256xf32>
    %c0_10 = arith.constant 0 : index
    %c0_11 = arith.constant 0 : index
    %11 = vector.load %arg5[%c0_10, %c0_11] : memref<256x256xbf16, #tpu.memory_space<vmem>>, vector<256x256xbf16>
    %cst_12 = arith.constant dense<0.000000e+00> : vector<128x256xf32>
    %12 = tpu.matmul %4, %11, %cst_12 {dimension_numbers = #tpu.dot_dimension_numbers<[1], [0], [0], [1], [0, 0, 1, 1], [], []>} : vector<128x256xbf16>, vector<256x256xbf16>, vector<128x256xf32> -> vector<128x256xf32>
    %13 = arith.addf %10, %12 : vector<128x256xf32>
    %c0_13 = arith.constant 0 : index
    %c0_14 = arith.constant 0 : index
    %14 = vector.load %arg8[%c0_13, %c0_14] : memref<128x256xf32, #tpu.memory_space<vmem>>, vector<128x256xf32>
    tpu.vector_store %arg8[%c0_13, %c0_14], %13 {strides = array<i32>} : memref<128x256xf32, #tpu.memory_space<vmem>>, vector<128x256xf32>,
    %c0_i32_15 = arith.constant 0 : i32
    %15 = arith.cmpi eq, %arg2, %c0_i32_15 : i32
    %16 = arith.extui %15 : i1 to i32
    %c0_i32_16 = arith.constant 0 : i32
    %17 = arith.cmpi ne, %16, %c0_i32_16 : i32
    scf.if %17 {
      %c0_17 = arith.constant 0 : index
      %c0_18 = arith.constant 0 : index
      %18 = vector.load %arg7[%c0_17, %c0_18] : memref<128x256xf32, #tpu.memory_space<vmem>>, vector<128x256xf32>
      %19 = arith.negf %18 : vector<128x256xf32>
      %20 = math.exp %19 : vector<128x256xf32>
      %cst_19 = arith.constant 1.000000e+00 : f32
      %21 = vector.broadcast %cst_19 : f32 to vector<128x256xf32>
      %22 = arith.addf %21, %20 : vector<128x256xf32>
      %23 = arith.divf %21, %22 : vector<128x256xf32>
      %24 = arith.mulf %18, %23 : vector<128x256xf32>
      %c0_20 = arith.constant 0 : index
      %c0_21 = arith.constant 0 : index
      %25 = vector.load %arg8[%c0_20, %c0_21] : memref<128x256xf32, #tpu.memory_space<vmem>>, vector<128x256xf32>
      %26 = arith.mulf %24, %25 : vector<128x256xf32>
      %c0_22 = arith.constant 0 : index
      %c0_23 = arith.constant 0 : index
      %27 = vector.load %arg6[%c0_22, %c0_23] : memref<128x256xf32, #tpu.memory_space<vmem>>, vector<128x256xf32>
      tpu.vector_store %arg6[%c0_22, %c0_23], %26 {strides = array<i32>} : memref<128x256xf32, #tpu.memory_space<vmem>>, vector<128x256xf32>,
    } else {
    }
    return
  }
  func.func @transform_0(%arg0: i32, %arg1: i32, %arg2: i32) -> (i32, i32) {
    %c0_i32 = arith.constant 0 : i32
    return %arg0, %arg2 : i32, i32
  }
  func.func @transform_1(%arg0: i32, %arg1: i32, %arg2: i32) -> (i32, i32) {
    %c0_i32 = arith.constant 0 : i32
    return %arg2, %arg1 : i32, i32
  }
  func.func @transform_2(%arg0: i32, %arg1: i32, %arg2: i32) -> (i32, i32) {
    %c0_i32 = arith.constant 0 : i32
    return %arg2, %arg1 : i32, i32
  }
  func.func @transform_3(%arg0: i32, %arg1: i32, %arg2: i32) -> (i32, i32) {
    %c0_i32 = arith.constant 0 : i32
    return %arg0, %arg1 : i32, i32
  }
}

module attributes {stable_mosaic.version = 11 : i64} {
  func.func @_add_rmsnorm_kernel(%arg0: i32, %arg1: memref<128x256xf32, #tpu.memory_space<vmem>>, %arg2: memref<128x256xf32, #tpu.memory_space<vmem>>, %arg3: memref<1x256xf32, #tpu.memory_space<vmem>>, %arg4: memref<128x256xf32, #tpu.memory_space<vmem>>, %arg5: memref<128x256xf32, #tpu.memory_space<vmem>>) attributes {dimension_semantics = [#tpu.dimension_semantics<parallel>], iteration_bounds = array<i64: 1>, scalar_prefetch = 0 : i64, scratch_operands = 0 : i64, tpu.core_type = #tpu.core_type<tc>, window_params = [{transform_indices = @transform_0, window_bounds = array<i64: 128, 256>}, {transform_indices = @transform_1, window_bounds = array<i64: 128, 256>}, {pipeline_mode = #tpu.pipeline_mode<synchronous>, transform_indices = @transform_2, window_bounds = array<i64: 1, 256>}, {transform_indices = @transform_3, window_bounds = array<i64: 128, 256>}, {transform_indices = @transform_4, window_bounds = array<i64: 128, 256>}]} {
    %c0 = arith.constant 0 : index
    %c0_0 = arith.constant 0 : index
    %0 = vector.load %arg1[%c0, %c0_0] : memref<128x256xf32, #tpu.memory_space<vmem>>, vector<128x256xf32>
    %c0_1 = arith.constant 0 : index
    %c0_2 = arith.constant 0 : index
    %1 = vector.load %arg2[%c0_1, %c0_2] : memref<128x256xf32, #tpu.memory_space<vmem>>, vector<128x256xf32>
    %2 = arith.addf %0, %1 : vector<128x256xf32>
    %c0_3 = arith.constant 0 : index
    %c0_4 = arith.constant 0 : index
    %3 = vector.load %arg5[%c0_3, %c0_4] : memref<128x256xf32, #tpu.memory_space<vmem>>, vector<128x256xf32>
    tpu.vector_store %arg5[%c0_3, %c0_4], %2 {strides = array<i32>} : memref<128x256xf32, #tpu.memory_space<vmem>>, vector<128x256xf32>,
    %4 = arith.mulf %2, %2 : vector<128x256xf32>
    %cst = arith.constant dense<0.000000e+00> : vector<128xf32>
    %5 = vector.multi_reduction <add>, %4, %cst [1] : vector<128x256xf32> to vector<128xf32>
    %6 = vector.shape_cast %5 : vector<128xf32> to vector<128x1xf32>
    %cst_5 = arith.constant 2.560000e+02 : f32
    %7 = vector.broadcast %cst_5 : f32 to vector<128x1xf32>
    %8 = arith.divf %6, %7 : vector<128x1xf32>
    %cst_6 = arith.constant 9.99999997E-7 : f32
    %9 = vector.broadcast %cst_6 : f32 to vector<128x1xf32>
    %10 = arith.addf %8, %9 : vector<128x1xf32>
    %11 = math.rsqrt %10 : vector<128x1xf32>
    %12 = vector.broadcast %11 : vector<128x1xf32> to vector<128x256xf32>
    %13 = arith.mulf %2, %12 : vector<128x256xf32>
    %c0_7 = arith.constant 0 : index
    %c0_8 = arith.constant 0 : index
    %14 = vector.load %arg3[%c0_7, %c0_8] : memref<1x256xf32, #tpu.memory_space<vmem>>, vector<1x256xf32>
    %15 = vector.broadcast %14 : vector<1x256xf32> to vector<128x256xf32>
    %16 = arith.mulf %13, %15 : vector<128x256xf32>
    %c0_9 = arith.constant 0 : index
    %c0_10 = arith.constant 0 : index
    %17 = vector.load %arg4[%c0_9, %c0_10] : memref<128x256xf32, #tpu.memory_space<vmem>>, vector<128x256xf32>
    tpu.vector_store %arg4[%c0_9, %c0_10], %16 {strides = array<i32>} : memref<128x256xf32, #tpu.memory_space<vmem>>, vector<128x256xf32>,
    return
  }
  func.func @transform_0(%arg0: i32) -> (i32, i32) {
    %c0_i32 = arith.constant 0 : i32
    %c0_i32_0 = arith.constant 0 : i32
    return %arg0, %c0_i32 : i32, i32
  }
  func.func @transform_1(%arg0: i32) -> (i32, i32) {
    %c0_i32 = arith.constant 0 : i32
    %c0_i32_0 = arith.constant 0 : i32
    return %arg0, %c0_i32 : i32, i32
  }
  func.func @transform_2(%arg0: i32) -> (i32, i32) {
    %c0_i32 = arith.constant 0 : i32
    %c0_i32_0 = arith.constant 0 : i32
    %c0_i32_1 = arith.constant 0 : i32
    return %c0_i32, %c0_i32_0 : i32, i32
  }
  func.func @transform_3(%arg0: i32) -> (i32, i32) {
    %c0_i32 = arith.constant 0 : i32
    %c0_i32_0 = arith.constant 0 : i32
    return %arg0, %c0_i32 : i32, i32
  }
  func.func @transform_4(%arg0: i32) -> (i32, i32) {
    %c0_i32 = arith.constant 0 : i32
    %c0_i32_0 = arith.constant 0 : i32
    return %arg0, %c0_i32 : i32, i32
  }
}

</mosaic_0001>

<bundles_post_ra>
// kernel: _lambda_.15
= control target key start
LH: loop header
LB: loop body
LE: loop exit
PB: predicated region body
PF: predicated region fallthrough
CT: control target
= control target key end

     0   :  { %s1378_s0 = inlined_call_operand.vmem [shape: f32[128,256], index: 0, kind: input, shape index: {}]   ;;  %s1379_s1 = inlined_call_operand.vmem [shape: f32[128,256], index: 1, kind: input, shape index: {}, may-alias: {1,4}]   ;;  %s1380_s4 = inlined_call_operand.vmem [shape: f32[128,256], index: 4, kind: output, shape index: {1}, may-alias: {1,4}]   ;;  %s1381_s2 = inlined_call_operand.vmem [shape: f32[1,256], index: 2, kind: input, shape index: {}]   ;;  %s1382_s3 = inlined_call_operand.vmem [shape: f32[128,256], index: 3, kind: output, shape index: {0}]  }
   0x1   :  { %v24_v0 = vld [vmem:[%s1378_s0 + $0x40] sm:$0xff]  ;;  %v25_v1 = vld [vmem:[%s1378_s0 + $0x48] sm:$0xff]  ;;  %v26_v20 = vld [vmem:[%s1378_s0 + $0x50] sm:$0xff] }
   0x2   :  { %v56_v2 = vld [vmem:[%s1379_s1 + $0x40] sm:$0xff]  ;;  %v57_v3 = vld [vmem:[%s1379_s1 + $0x48] sm:$0xff]  ;;  %v27_v21 = vld [vmem:[%s1378_s0 + $0x58] sm:$0xff] }
   0x3   :  { %v606_v4 = vadd.f32 %v56_v2, %v24_v0  ;;  %v20_v5 = vld [vmem:[%s1378_s0 + $0x20] sm:$0xff]  ;;  %v21_v6 = vld [vmem:[%s1378_s0 + $0x28] sm:$0xff]  ;;  %v614_v7 = vadd.f32 %v57_v3, %v25_v1  ;;  %v22_v27 = vld [vmem:[%s1378_s0 + $0x30] sm:$0xff] }
   0x4   :  { %v52_v8 = vld [vmem:[%s1379_s1 + $0x20] sm:$0xff]  ;;  %v53_v9 = vld [vmem:[%s1379_s1 + $0x28] sm:$0xff]  ;;  %v23_v28 = vld [vmem:[%s1378_s0 + $0x38] sm:$0xff] }
   0x5   :  { %v16_v10 = vld [vmem:[%s1378_s0] sm:$0xff]  ;;  %v152_v11 = vmul.f32 %v606_v4, %v606_v4  ;;  %120 = vst [vmem:[%s1380_s4 + $0x40] sm:$0xff] %v606_v4  ;;  %v631_v12 = vadd.f32 %v52_v8, %v20_v5  ;;  %v633_v13 = vadd.f32 %v53_v9, %v21_v6  ;;  %v17_v14 = vld [vmem:[%s1378_s0 + $0x8] sm:$0xff]  ;;  %v153_v17 = vmul.f32 %v614_v7, %v614_v7  ;;  %v18_v35 = vld [vmem:[%s1378_s0 + $0x10] sm:$0xff] }
   0x6   :  { %v19_v40 = vld [vmem:[%s1378_s0 + $0x18] sm:$0xff]  ;;  %v32_v46 = vld [vmem:[%s1378_s0 + $0x80] sm:$0xff]  ;;  %v33_v47 = vld [vmem:[%s1378_s0 + $0x88] sm:$0xff] }
   0x7   :  { %v148_v23 = vmul.f32 %v631_v12, %v631_v12  ;;  %v149_v24 = vmul.f32 %v633_v13, %v633_v13  ;;  %v188_v29 = vadd.f32 %v153_v17, %v152_v11  ;;  %v30_v53 = vld [vmem:[%s1378_s0 + $0x70] sm:$0xff]  ;;  %v31_v54 = vld [vmem:[%s1378_s0 + $0x78] sm:$0xff]  ;;  %v28_v58 = vld [vmem:[%s1378_s0 + $0x60] sm:$0xff] }
   0x8   :  { %v29_v60 = vld [vmem:[%s1378_s0 + $0x68] sm:$0xff] }
   0x9   :  { %v182_v36 = vadd.f32 %v149_v24, %v148_v23  ;;  %189 = vadd.xlane.f32.xlu2 %v188_v29  ;;  %v37_v23 = vld [vmem:[%s1378_s0 + $0xa8] sm:$0xff]  ;;  %v34_v29 = vld [vmem:[%s1378_s0 + $0x90] sm:$0xff] }
   0xb   :  { %183 = vadd.xlane.f32.xlu1 %v182_v36 }
   0xc   :  { %v48_v15 = vld [vmem:[%s1379_s1] sm:$0xff]  ;;  %v49_v16 = vld [vmem:[%s1379_s1 + $0x8] sm:$0xff] }
   0xd   :  { %121 = vst [vmem:[%s1380_s4 + $0x48] sm:$0xff] %v614_v7  ;;  %v650_v18 = vadd.f32 %v48_v15, %v16_v10  ;;  %v652_v19 = vadd.f32 %v49_v16, %v17_v14  ;;  %v38_v14 = vld [vmem:[%s1378_s0 + $0xb0] sm:$0xff]  ;;  %v39_v15 = vld [vmem:[%s1378_s0 + $0xb8] sm:$0xff] }
   0xf   :  { %v144_v30 = vmul.f32 %v650_v18, %v650_v18  ;;  %v145_v31 = vmul.f32 %v652_v19, %v652_v19 }
  0x11   :  { %v176_v43 = vadd.f32 %v145_v31, %v144_v30  ;;  %v35_v31 = vld [vmem:[%s1378_s0 + $0x98] sm:$0xff] }
  0x13   :  { %177 = vadd.xlane.f32.xlu0 %v176_v43 }
  0x14   :  { %v58_v22 = vld [vmem:[%s1379_s1 + $0x50] sm:$0xff] }
  0x15   :  { %117 = vst [vmem:[%s1380_s4 + $0x28] sm:$0xff] %v633_v13  ;;  %v674_v26 = vadd.f32 %v58_v22, %v26_v20  ;;  %v36_v22 = vld [vmem:[%s1378_s0 + $0xa0] sm:$0xff] }
  0x17   :  { %v154_v37 = vmul.f32 %v674_v26, %v674_v26 }
  0x1c   :  { %v59_v25 = vld [vmem:[%s1379_s1 + $0x58] sm:$0xff] }
  0x1d   :  { %116 = vst [vmem:[%s1380_s4 + $0x20] sm:$0xff] %v631_v12  ;;  %v690_v32 = vadd.f32 %v59_v25, %v27_v21 }
  0x1f   :  { %v155_v44 = vmul.f32 %v690_v32, %v690_v32 }
  0x21   :  { %v191_v63 = vadd.f32 %v155_v44, %v154_v37 }
  0x23   :  { %192 = vadd.xlane.f32.xlu2 %v191_v63  ;;  %v40_v63 = vld [vmem:[%s1378_s0 + $0xc0] sm:$0xff] }
  0x24   :  { %v54_v33 = vld [vmem:[%s1379_s1 + $0x30] sm:$0xff]  ;;  %v55_v34 = vld [vmem:[%s1379_s1 + $0x38] sm:$0xff] }
  0x25   :  { %113 = vst [vmem:[%s1380_s4 + $0x8] sm:$0xff] %v652_v19  ;;  %v707_v38 = vadd.f32 %v54_v33, %v22_v27  ;;  %v709_v39 = vadd.f32 %v55_v34, %v23_v28 }
  0x27   :  { %v150_v49 = vmul.f32 %v707_v38, %v707_v38  ;;  %v151_v50 = vmul.f32 %v709_v39, %v709_v39 }
  0x29   :  { %v185_v2 = vadd.f32 %v151_v50, %v150_v49 }
  0x2b   :  { %186 = vadd.xlane.f32.xlu1 %v185_v2 }
  0x2c   :  { %v50_v41 = vld [vmem:[%s1379_s1 + $0x10] sm:$0xff]  ;;  %v51_v42 = vld [vmem:[%s1379_s1 + $0x18] sm:$0xff] }
  0x2d   :  { %112 = vst [vmem:[%s1380_s4] sm:$0xff] %v650_v18  ;;  %v726_v45 = vadd.f32 %v50_v41, %v18_v35  ;;  %v745_v51 = vadd.f32 %v51_v42, %v19_v40 }
  0x2f   :  { %v146_v55 = vmul.f32 %v726_v45, %v726_v45  ;;  %v147_v59 = vmul.f32 %v745_v51, %v745_v51 }
  0x31   :  { %v179_v6 = vadd.f32 %v147_v59, %v146_v55 }
  0x33   :  { %180 = vadd.xlane.f32.xlu0 %v179_v6 }
  0x34   :  { %v64_v48 = vld [vmem:[%s1379_s1 + $0x80] sm:$0xff] }
  0x35   :  { %122 = vst [vmem:[%s1380_s4 + $0x50] sm:$0xff] %v674_v26  ;;  %v790_v0 = vadd.f32 %v64_v48, %v32_v46  ;;  %v44_v46 = vld [vmem:[%s1378_s0 + $0xe0] sm:$0xff]  ;;  %v45_v48 = vld [vmem:[%s1378_s0 + $0xe8] sm:$0xff] }
  0x37   :  { %v160_v10 = vmul.f32 %v790_v0, %v790_v0 }
  0x3c   :  { %v65_v52 = vld [vmem:[%s1379_s1 + $0x88] sm:$0xff] }
  0x3d   :  { %123 = vst [vmem:[%s1380_s4 + $0x58] sm:$0xff] %v690_v32  ;;  %v792_v1 = vadd.f32 %v65_v52, %v33_v47 }
  0x3f   :  { %v161_v11 = vmul.f32 %v792_v1, %v792_v1 }
  0x41   :  { %v200_v35 = vadd.f32 %v161_v11, %v160_v10  ;;  %v41_v10 = vld [vmem:[%s1378_s0 + $0xc8] sm:$0xff] }
  0x43   :  { %201 = vadd.xlane.f32.xlu2 %v200_v35 }
  0x44   :  { %v62_v56 = vld [vmem:[%s1379_s1 + $0x70] sm:$0xff]  ;;  %v63_v57 = vld [vmem:[%s1379_s1 + $0x78] sm:$0xff] }
  0x45   :  { %118 = vst [vmem:[%s1380_s4 + $0x30] sm:$0xff] %v707_v38  ;;  %v798_v3 = vadd.f32 %v62_v56, %v30_v53  ;;  %v800_v5 = vadd.f32 %v63_v57, %v31_v54  ;;  %v42_v53 = vld [vmem:[%s1378_s0 + $0xd0] sm:$0xff] }
  0x47   :  { %v158_v17 = vmul.f32 %v798_v3, %v798_v3  ;;  %v159_v20 = vmul.f32 %v800_v5, %v800_v5 }
  0x49   :  { %v197_v37 = vadd.f32 %v159_v20, %v158_v17 }
  0x4b   :  { %198 = vadd.xlane.f32.xlu1 %v197_v37 }
  0x4c   :  { %v60_v61 = vld [vmem:[%s1379_s1 + $0x60] sm:$0xff]  ;;  %v61_v62 = vld [vmem:[%s1379_s1 + $0x68] sm:$0xff] }
  0x4d   :  { %119 = vst [vmem:[%s1380_s4 + $0x38] sm:$0xff] %v709_v39  ;;  %v806_v8 = vadd.f32 %v60_v61, %v28_v58  ;;  %v808_v9 = vadd.f32 %v61_v62, %v29_v60  ;;  %v43_v58 = vld [vmem:[%s1378_s0 + $0xd8] sm:$0xff] }
  0x4e   :  { %114 = vst [vmem:[%s1380_s4 + $0x10] sm:$0xff] %v726_v45 }
  0x4f   :  { %115 = vst [vmem:[%s1380_s4 + $0x18] sm:$0xff] %v745_v51  ;;  %v156_v24 = vmul.f32 %v806_v8, %v806_v8  ;;  %v157_v25 = vmul.f32 %v808_v9, %v808_v9 }
  0x50   :  { %128 = vst [vmem:[%s1380_s4 + $0x80] sm:$0xff] %v790_v0 }
  0x51   :  { %129 = vst [vmem:[%s1380_s4 + $0x88] sm:$0xff] %v792_v1  ;;  %v194_v42 = vadd.f32 %v157_v25, %v156_v24 }
  0x53   :  { %195 = vadd.xlane.f32.xlu0 %v194_v42 }
  0x58   :  { %v70_v16 = vld [vmem:[%s1379_s1 + $0xb0] sm:$0xff] }
  0x59   :  { %126 = vst [vmem:[%s1380_s4 + $0x70] sm:$0xff] %v798_v3  ;;  %v869_v30 = vadd.f32 %v70_v16, %v38_v14  ;;  %v46_v16 = vld [vmem:[%s1378_s0 + $0xf0] sm:$0xff] }
  0x5b   :  { %v166_v50 = vmul.f32 %v869_v30, %v869_v30 }
  0x60   :  { %v71_v21 = vld [vmem:[%s1379_s1 + $0xb8] sm:$0xff] }
  0x61   :  { %127 = vst [vmem:[%s1380_s4 + $0x78] sm:$0xff] %v800_v5  ;;  %v884_v36 = vadd.f32 %v71_v21, %v39_v15 }
  0x63   :  { %v167_v52 = vmul.f32 %v884_v36, %v884_v36 }
  0x65   :  { %v209_v14 = vadd.f32 %v167_v52, %v166_v50  ;;  %v568_v52 = vmov 256.0  }
  0x66   :  { %534 = vrcp.f32 %v568_v52 }
  0x67   :  { %210 = vadd.xlane.f32.xlu2 %v209_v14 }
  0x68   :  { %v68_v27 = vld [vmem:[%s1379_s1 + $0xa0] sm:$0xff]  ;;  %v69_v28 = vld [vmem:[%s1379_s1 + $0xa8] sm:$0xff] }
  0x69   :  { %124 = vst [vmem:[%s1380_s4 + $0x60] sm:$0xff] %v806_v8  ;;  %v890_v40 = vadd.f32 %v68_v27, %v36_v22  ;;  %v892_v41 = vadd.f32 %v69_v28, %v37_v23  ;;  %v47_v22 = vld [vmem:[%s1378_s0 + $0xf8] sm:$0xff] }
  0x6b   :  { %v164_v55 = vmul.f32 %v890_v40, %v890_v40  ;;  %v165_v56 = vmul.f32 %v892_v41, %v892_v41 }
  0x6d   :  { %v206_v20 = vadd.f32 %v165_v56, %v164_v55 }
  0x6f   :  { %207 = vadd.xlane.f32.xlu1 %v206_v20 }
  0x70   :  { %v66_v33 = vld [vmem:[%s1379_s1 + $0x90] sm:$0xff]  ;;  %v67_v34 = vld [vmem:[%s1379_s1 + $0x98] sm:$0xff] }
  0x71   :  { %125 = vst [vmem:[%s1380_s4 + $0x68] sm:$0xff] %v808_v9  ;;  %v898_v43 = vadd.f32 %v66_v33, %v34_v29  ;;  %v900_v44 = vadd.f32 %v67_v34, %v35_v31 }
  0x72   :  { %134 = vst [vmem:[%s1380_s4 + $0xb0] sm:$0xff] %v869_v30 }
  0x73   :  { %135 = vst [vmem:[%s1380_s4 + $0xb8] sm:$0xff] %v884_v36  ;;  %v162_v60 = vmul.f32 %v898_v43, %v898_v43  ;;  %v163_v61 = vmul.f32 %v900_v44, %v900_v44 }
  0x75   :  { %v203_v24 = vadd.f32 %v163_v61, %v162_v60 }
  0x77   :  { %204 = vadd.xlane.f32.xlu0 %v203_v24 }
  0x7a   :  { %v76_v47 = vld [vmem:[%s1379_s1 + $0xe0] sm:$0xff] }
  0x7b   :  { %132 = vst [vmem:[%s1380_s4 + $0xa0] sm:$0xff] %v890_v40  ;;  %v940_v57 = vadd.f32 %v76_v47, %v44_v46 }
  0x7c   :  { %v190_v60 = vpop.xlane.xlu2 %189 }
  0x7d   :  { %v172_v28 = vmul.f32 %v940_v57, %v940_v57 }
  0x82   :  { %v77_v49 = vld [vmem:[%s1379_s1 + $0xe8] sm:$0xff] }
  0x83   :  { %133 = vst [vmem:[%s1380_s4 + $0xa8] sm:$0xff] %v892_v41  ;;  %v956_v62 = vadd.f32 %v77_v49, %v45_v48 }
  0x85   :  { %v173_v29 = vmul.f32 %v956_v62, %v956_v62 }
  0x87   :  { %v218_v42 = vadd.f32 %v173_v29, %v172_v28 }
  0x89   :  { %219 = vadd.xlane.f32.xlu2 %v218_v42 }
  0x8a   :  { %v74_v54 = vld [vmem:[%s1379_s1 + $0xd0] sm:$0xff] }
  0x8b   :  { %130 = vst [vmem:[%s1380_s4 + $0x90] sm:$0xff] %v898_v43  ;;  %v968_v6 = vadd.f32 %v74_v54, %v42_v53  ;;  %v535_v53 = vpop.eup %534 }
  0x8c   :  { %v225_v54 = vmul.f32 256.0, %v535_v53  ;;  %vm229_vm0 = vweird.f32 %v535_v53 }
  0x8d   :  { %v170_v33 = vmul.f32 %v968_v6, %v968_v6 }
  0x8e   :  { %v226_v55 = vsub.f32 1.0, %v225_v54 }
  0x90   :  { %v227_v56 = vmul.f32 %v535_v53, %v226_v55 }
  0x92   :  { %v75_v59 = vld [vmem:[%s1379_s1 + $0xd8] sm:$0xff] }
  0x93   :  { %131 = vst [vmem:[%s1380_s4 + $0x98] sm:$0xff] %v900_v44  ;;  %v980_v15 = vadd.f32 %v75_v59, %v43_v58  ;;  %v228_v58 = vadd.f32 %v535_v53, %v227_v56 }
  0x95   :  { %v171_v34 = vmul.f32 %v980_v15, %v980_v15  ;;  %v1042_v59 = vsel %vm229_vm0, %v535_v53, %v228_v58 }
  0x96   :  { %v235_v61 = vmul.f32 %v1042_v59, %v190_v60  ;;  %v193_v20 = vpop.xlane.xlu2 %192 }
  0x97   :  { %v215_v46 = vadd.f32 %v171_v34, %v170_v33 }
  0x99   :  { %216 = vadd.xlane.f32.xlu1 %v215_v46 }
  0x9a   :  { %v72_v2 = vld [vmem:[%s1379_s1 + $0xc0] sm:$0xff] }
  0x9b   :  { %140 = vst [vmem:[%s1380_s4 + $0xe0] sm:$0xff] %v940_v57  ;;  %v992_v21 = vadd.f32 %v72_v2, %v40_v63  ;;  %v184_v63 = vpop.xlane.xlu1 %183 }
  0x9c   :  { %v233_v2 = vmul.f32 %v1042_v59, %v184_v63 }
  0x9d   :  { %v168_v35 = vmul.f32 %v992_v21, %v992_v21 }
  0xa2   :  { %v73_v11 = vld [vmem:[%s1379_s1 + $0xc8] sm:$0xff] }
  0xa3   :  { %141 = vst [vmem:[%s1380_s4 + $0xe8] sm:$0xff] %v956_v62  ;;  %v1004_v25 = vadd.f32 %v73_v11, %v41_v10  ;;  %v178_v10 = vpop.xlane.xlu0 %177  ;;  %v251_v11 = vadd.f32 1e-06, %v235_v61 }
  0xa4   :  { %v231_v14 = vmul.f32 %v1042_v59, %v178_v10 }
  0xa5   :  { %v169_v37 = vmul.f32 %v1004_v25, %v1004_v25  ;;  %536 = vrsqrt.f32 %v251_v11  ;;  %vm309_vm1 = vweird.f32 %v251_v11 }
  0xa7   :  { %v212_v47 = vadd.f32 %v169_v37, %v168_v35  ;;  %v455_v37 = vld [vmem:[%s1381_s2] sm:$0x3] }
  0xa8   :  { %v1063_v52 = vperm.slane %v455_v37, 0  ;;  %v1065_v53 = vperm.slane %v455_v37, 1 }
  0xa9   :  { %213 = vadd.xlane.f32.xlu0 %v212_v47 }
  0xaa   :  { %v78_v17 = vld [vmem:[%s1379_s1 + $0xf0] sm:$0xff] }
  0xab   :  { %138 = vst [vmem:[%s1380_s4 + $0xd0] sm:$0xff] %v968_v6  ;;  %v1010_v27 = vadd.f32 %v78_v17, %v46_v16  ;;  %v249_v16 = vadd.f32 1e-06, %v233_v2  ;;  %v1047_v17 = vadd.f32 1e-06, %v231_v14  ;;  %v181_v28 = vpop.xlane.xlu0 %180  ;;  %v537_v29 = vpop.eup %536 }
  0xac   :  { %v232_v34 = vmul.f32 %v1042_v59, %v181_v28  ;;  %v304_v42 = vmul.f32 %v537_v29, %v251_v11  ;;  %vm310_vm3 = vweird.f32 %v537_v29 }
  0xad   :  { %v174_v48 = vmul.f32 %v1010_v27, %v1010_v27  ;;  %538 = vrsqrt.f32 %v249_v16  ;;  %vm289_vm2 = vweird.f32 %v249_v16  ;;  %vm269_vm4 = vweird.f32 %v1047_v17  ;;  %vm311_vm9 = vmor %vm309_vm1, %vm310_vm3 }
  0xae   :  { %540 = vrsqrt.f32 %v1047_v17  ;;  %v1067_v55 = vadd.f32 1e-06, %v232_v34 }
  0xb0   :  { %vm279_vm14 = vweird.f32 %v1067_v55 }
  0xb2   :  { %v79_v23 = vld [vmem:[%s1379_s1 + $0xf8] sm:$0xff] }
  0xb3   :  { %139 = vst [vmem:[%s1380_s4 + $0xd8] sm:$0xff] %v980_v15  ;;  %v1020_v31 = vadd.f32 %v79_v23, %v47_v22  ;;  %v236_v22 = vmul.f32 %v1042_v59, %v193_v20  ;;  %v187_v23 = vpop.xlane.xlu1 %186  ;;  %v539_v35 = vpop.eup %538 }
  0xb4   :  { %136 = vst [vmem:[%s1380_s4 + $0xc0] sm:$0xff] %v992_v21  ;;  %v234_v24 = vmul.f32 %v1042_v59, %v187_v23  ;;  %v541_v47 = vpop.eup %540  ;;  %vm290_vm5 = vweird.f32 %v539_v35 }
  0xb5   :  { %137 = vst [vmem:[%s1380_s4 + $0xc8] sm:$0xff] %v1004_v25  ;;  %v175_v49 = vmul.f32 %v1020_v31, %v1020_v31  ;;  %v1052_v33 = vadd.f32 1e-06, %v236_v22  ;;  %vm270_vm6 = vweird.f32 %v541_v47  ;;  %vm291_vm10 = vmor %vm289_vm2, %vm290_vm5 }
  0xb6   :  { %142 = vst [vmem:[%s1380_s4 + $0xf0] sm:$0xff] %v1010_v27  ;;  %v1058_v46 = vadd.f32 1e-06, %v234_v24  ;;  %v202_v60 = vpop.xlane.xlu2 %201  ;;  %vm271_vm12 = vmor %vm269_vm4, %vm270_vm6 }
  0xb7   :  { %143 = vst [vmem:[%s1380_s4 + $0xf8] sm:$0xff] %v1020_v31  ;;  %v221_v50 = vadd.f32 %v175_v49, %v174_v48  ;;  %v284_v48 = vmul.f32 %v539_v35, %v249_v16  ;;  %542 = vrsqrt.f32 %v1052_v33  ;;  %v305_v49 = vmul.f32 %v537_v29, %v304_v42 }
  0xb8   :  { %544 = vrsqrt.f32 %v1058_v46  ;;  %v239_v63 = vmul.f32 %v1042_v59, %v202_v60  ;;  %vm319_vm7 = vweird.f32 %v1052_v33  ;;  %vm299_vm8 = vweird.f32 %v1058_v46 }
  0xb9   :  { %222 = vadd.xlane.f32.xlu0 %v221_v50  ;;  %v264_v50 = vmul.f32 %v541_v47, %v1047_v17  ;;  %v285_v54 = vmul.f32 %v539_v35, %v284_v48  ;;  %v306_v56 = vmul.f32 0.5, %v305_v49  ;;  %546 = vrsqrt.f32 %v1067_v55 }
  0xba   :  { %v1073_v24 = vadd.f32 1e-06, %v239_v63 }
  0xbb   :  { %v265_v58 = vmul.f32 %v541_v47, %v264_v50  ;;  %v286_v61 = vmul.f32 0.5, %v285_v54  ;;  %v307_v10 = vsub.f32 1.5, %v306_v56 }
  0xbc   :  { %548 = vrsqrt.f32 %v1073_v24  ;;  %vm349_vm15 = vweird.f32 %v1073_v24 }
  0xbd   :  { %v266_v14 = vmul.f32 0.5, %v265_v58  ;;  %v543_v22 = vpop.eup %542  ;;  %v287_v23 = vsub.f32 1.5, %v286_v61  ;;  %v308_v34 = vmul.f32 %v537_v29, %v307_v10 }
  0xbe   :  { %v199_v2 = vpop.xlane.xlu1 %198  ;;  %v1075_v28 = vpop.eup %544  ;;  %v314_v42 = vmul.f32 %v543_v22, %v1052_v33  ;;  %vm320_vm11 = vweird.f32 %v543_v22 }
  0xbf   :  { %v267_v37 = vsub.f32 1.5, %v266_v14  ;;  %v238_v48 = vmul.f32 %v1042_v59, %v199_v2  ;;  %v288_v49 = vmul.f32 %v539_v35, %v287_v23  ;;  %v294_v50 = vmul.f32 %v1075_v28, %v1058_v46  ;;  %v1094_v10 = vpop.eup %546  ;;  %vm321_vm0 = vmor %vm319_vm7, %vm320_vm11 }
  0xc0   :  { %v312_v56 = vsel %vm311_vm9, %v537_v29, %v308_v34  ;;  %v315_v60 = vmul.f32 %v543_v22, %v314_v42  ;;  %vm300_vm13 = vweird.f32 %v1075_v28  ;;  %vm280_vm2 = vweird.f32 %v1094_v10 }
  0xc1   :  { %v268_v58 = vmul.f32 %v541_v47, %v267_v37  ;;  %v431_v61 = vmul.f32 %v312_v56, %v606_v4  ;;  %v432_v11 = vmul.f32 %v312_v56, %v614_v7  ;;  %v292_v63 = vsel %vm291_vm10, %v539_v35, %v288_v49  ;;  %vm301_vm1 = vmor %vm299_vm8, %vm300_vm13 }
  0xc2   :  { %v295_v2 = vmul.f32 %v1075_v28, %v294_v50  ;;  %v427_v29 = vmul.f32 %v292_v63, %v631_v12  ;;  %v428_v16 = vmul.f32 %v292_v63, %v633_v13  ;;  %v1104_v12 = vpop.eup %548  ;;  %vm281_vm4 = vmor %vm279_vm14, %vm280_vm2 }
  0xc3   :  { %v272_v14 = vsel %vm271_vm12, %v541_v47, %v268_v58  ;;  %v469_v23 = vmul.f32 %v1063_v52, %v431_v61  ;;  %v470_v4 = vmul.f32 %v1065_v53, %v432_v11  ;;  %v344_v58 = vmul.f32 %v1104_v12, %v1073_v24 }
  0xc4   :  { %v423_v7 = vmul.f32 %v272_v14, %v650_v18  ;;  %v424_v35 = vmul.f32 %v272_v14, %v652_v19  ;;  %v465_v34 = vmul.f32 %v1063_v52, %v427_v29  ;;  %v466_v37 = vmul.f32 %v1065_v53, %v428_v16 }
  0xc5   :  { %v296_v49 = vmul.f32 0.5, %v295_v2  ;;  %501 = vst [vmem:[%s1382_s3 + $0x40] sm:$0xff] %v469_v23  ;;  %v274_v18 = vmul.f32 %v1094_v10, %v1067_v55  ;;  %v1128_v61 = vadd.f32 1e-06, %v238_v48  ;;  %v345_v16 = vmul.f32 %v1104_v12, %v344_v58 }
  0xc6   :  { %v196_v20 = vpop.xlane.xlu0 %195  ;;  %v461_v13 = vmul.f32 %v1063_v52, %v423_v7  ;;  %502 = vst [vmem:[%s1382_s3 + $0x48] sm:$0xff] %v470_v4  ;;  %v462_v47 = vmul.f32 %v1065_v53, %v424_v35  ;;  %vm350_vm3 = vweird.f32 %v1104_v12 }
  0xc7   :  { %v237_v54 = vmul.f32 %v1042_v59, %v196_v20  ;;  %v316_v20 = vmul.f32 0.5, %v315_v60  ;;  %v297_v56 = vsub.f32 1.5, %v296_v49  ;;  %497 = vst [vmem:[%s1382_s3 + $0x20] sm:$0xff] %v465_v34  ;;  %v275_v60 = vmul.f32 %v1094_v10, %v274_v18  ;;  %vm351_vm5 = vmor %vm349_vm15, %vm350_vm3 }
  0xc8   :  { %498 = vst [vmem:[%s1382_s3 + $0x28] sm:$0xff] %v466_v37  ;;  %550 = vrsqrt.f32 %v1128_v61  ;;  %v346_v23 = vmul.f32 0.5, %v345_v16  ;;  %vm339_vm6 = vweird.f32 %v1128_v61 }
  0xc9   :  { %v317_v42 = vsub.f32 1.5, %v316_v20  ;;  %v1130_v11 = vadd.f32 1e-06, %v237_v54  ;;  %v298_v29 = vmul.f32 %v1075_v28, %v297_v56  ;;  %493 = vst [vmem:[%s1382_s3] sm:$0xff] %v461_v13 }
  0xca   :  { %494 = vst [vmem:[%s1382_s3 + $0x8] sm:$0xff] %v462_v47  ;;  %v347_v35 = vsub.f32 1.5, %v346_v23 }
  0xcb   :  { %v318_v50 = vmul.f32 %v543_v22, %v317_v42  ;;  %v302_v20 = vsel %vm301_vm1, %v1075_v28, %v298_v29  ;;  %552 = vrsqrt.f32 %v1130_v11  ;;  %vm329_vm7 = vweird.f32 %v1130_v11 }
  0xcc   :  { %v429_v46 = vmul.f32 %v302_v20, %v707_v38  ;;  %v430_v4 = vmul.f32 %v302_v20, %v709_v39  ;;  %v348_v49 = vmul.f32 %v1104_v12, %v347_v35 }
  0xcd   :  { %v322_v2 = vsel %vm321_vm0, %v543_v22, %v318_v50  ;;  %v276_v22 = vmul.f32 0.5, %v275_v60 }
  0xce   :  { %v433_v48 = vmul.f32 %v322_v2, %v674_v26  ;;  %v434_v54 = vmul.f32 %v322_v2, %v690_v32  ;;  %v467_v28 = vmul.f32 %v1063_v52, %v429_v46  ;;  %v468_v34 = vmul.f32 %v1065_v53, %v430_v4  ;;  %v551_v13 = vpop.eup %550 }
  0xcf   :  { %v277_v7 = vsub.f32 1.5, %v276_v22  ;;  %v352_v47 = vsel %vm351_vm5, %v1104_v12, %v348_v49  ;;  %v334_v50 = vmul.f32 %v551_v13, %v1128_v61  ;;  %vm340_vm10 = vweird.f32 %v551_v13 }
  0xd0   :  { %v471_v26 = vmul.f32 %v1063_v52, %v433_v48  ;;  %v472_v32 = vmul.f32 %v1065_v53, %v434_v54  ;;  %499 = vst [vmem:[%s1382_s3 + $0x30] sm:$0xff] %v467_v28  ;;  %v439_v60 = vmul.f32 %v352_v47, %v790_v0  ;;  %vm341_vm12 = vmor %vm339_vm6, %vm340_vm10 }
  0xd1   :  { %v278_v39 = vmul.f32 %v1094_v10, %v277_v7  ;;  %v1191_v18 = vpop.eup %552  ;;  %500 = vst [vmem:[%s1382_s3 + $0x38] sm:$0xff] %v468_v34  ;;  %v335_v2 = vmul.f32 %v551_v13, %v334_v50 }
  0xd2   :  { %503 = vst [vmem:[%s1382_s3 + $0x50] sm:$0xff] %v471_v26  ;;  %v324_v29 = vmul.f32 %v1191_v18, %v1130_v11  ;;  %vm330_vm11 = vweird.f32 %v1191_v18 }
  0xd3   :  { %504 = vst [vmem:[%s1382_s3 + $0x58] sm:$0xff] %v472_v32  ;;  %vm331_vm0 = vmor %vm329_vm7, %vm330_vm11 }
  0xda   :  { %v211_v17 = vpop.xlane.xlu2 %210 }
  0xdb   :  { %v242_v63 = vmul.f32 %v1042_v59, %v211_v17 }
  0xdd   :  { %v1160_v17 = vadd.f32 1e-06, %v242_v63  ;;  %v440_v63 = vmul.f32 %v352_v47, %v792_v1 }
  0xdf   :  { %554 = vrsqrt.f32 %v1160_v17  ;;  %vm379_vm8 = vweird.f32 %v1160_v17  ;;  %v478_v1 = vmul.f32 %v1065_v53, %v440_v63 }
  0xe1   :  { %510 = vst [vmem:[%s1382_s3 + $0x88] sm:$0xff] %v478_v1 }
  0xe2   :  { %v208_v19 = vpop.xlane.xlu1 %207 }
  0xe3   :  { %v241_v33 = vmul.f32 %v1042_v59, %v208_v19  ;;  %v282_v19 = vsel %vm281_vm4, %v1094_v10, %v278_v39 }
  0xe4   :  { %v425_v56 = vmul.f32 %v282_v19, %v726_v45  ;;  %v426_v58 = vmul.f32 %v282_v19, %v745_v51  ;;  %v477_v51 = vmul.f32 %v1063_v52, %v439_v60 }
  0xe5   :  { %v1167_v37 = vadd.f32 1e-06, %v241_v33  ;;  %v1212_v0 = vpop.eup %554  ;;  %v336_v33 = vmul.f32 0.5, %v335_v2 }
  0xe6   :  { %v463_v16 = vmul.f32 %v1063_v52, %v425_v56  ;;  %v464_v45 = vmul.f32 %v1065_v53, %v426_v58  ;;  %v374_v22 = vmul.f32 %v1212_v0, %v1160_v17  ;;  %509 = vst [vmem:[%s1382_s3 + $0x80] sm:$0xff] %v477_v51  ;;  %vm380_vm13 = vweird.f32 %v1212_v0 }
  0xe7   :  { %556 = vrsqrt.f32 %v1167_v37  ;;  %vm369_vm9 = vweird.f32 %v1167_v37  ;;  %v337_v26 = vsub.f32 1.5, %v336_v33  ;;  %vm381_vm2 = vmor %vm379_vm8, %vm380_vm13 }
  0xe8   :  { %495 = vst [vmem:[%s1382_s3 + $0x10] sm:$0xff] %v463_v16  ;;  %v375_v4 = vmul.f32 %v1212_v0, %v374_v22 }
  0xe9   :  { %496 = vst [vmem:[%s1382_s3 + $0x18] sm:$0xff] %v464_v45  ;;  %v338_v28 = vmul.f32 %v551_v13, %v337_v26 }
  0xea   :  { %v205_v14 = vpop.xlane.xlu0 %204  ;;  %v376_v39 = vmul.f32 0.5, %v375_v4 }
  0xeb   :  { %v240_v38 = vmul.f32 %v1042_v59, %v205_v14  ;;  %v325_v14 = vmul.f32 %v1191_v18, %v324_v29  ;;  %v342_v19 = vsel %vm341_vm12, %v551_v13, %v338_v28 }
  0xec   :  { %v438_v61 = vmul.f32 %v342_v19, %v800_v5  ;;  %v377_v56 = vsub.f32 1.5, %v376_v39 }
  0xed   :  { %v1189_v55 = vadd.f32 1e-06, %v240_v38  ;;  %v557_v54 = vpop.eup %556  ;;  %v326_v32 = vmul.f32 0.5, %v325_v14 }
  0xee   :  { %v364_v46 = vmul.f32 %v557_v54, %v1167_v37  ;;  %vm370_vm14 = vweird.f32 %v557_v54  ;;  %v476_v5 = vmul.f32 %v1065_v53, %v438_v61 }
  0xef   :  { %558 = vrsqrt.f32 %v1189_v55  ;;  %v327_v34 = vsub.f32 1.5, %v326_v32  ;;  %vm359_vm15 = vweird.f32 %v1189_v55  ;;  %vm371_vm3 = vmor %vm369_vm9, %vm370_vm14 }
  0xf0   :  { %v365_v38 = vmul.f32 %v557_v54, %v364_v46  ;;  %508 = vst [vmem:[%s1382_s3 + $0x78] sm:$0xff] %v476_v5 }
  0xf1   :  { %v328_v47 = vmul.f32 %v1191_v18, %v327_v34 }
  0xf2   :  { %v366_v50 = vmul.f32 0.5, %v365_v38 }
  0xf3   :  { %v332_v13 = vsel %vm331_vm0, %v1191_v18, %v328_v47 }
  0xf4   :  { %v367_v60 = vsub.f32 1.5, %v366_v50  ;;  %v435_v29 = vmul.f32 %v332_v13, %v806_v8  ;;  %v436_v11 = vmul.f32 %v332_v13, %v808_v9 }
  0xf5   :  { %v1238_v35 = vpop.eup %558 }
  0xf6   :  { %v354_v49 = vmul.f32 %v1238_v35, %v1189_v55  ;;  %v368_v18 = vmul.f32 %v557_v54, %v367_v60  ;;  %v473_v8 = vmul.f32 %v1063_v52, %v435_v29  ;;  %v474_v9 = vmul.f32 %v1065_v53, %v436_v11 }
  0xf7   :  { %vm360_vm4 = vweird.f32 %v1238_v35 }
  0xf8   :  { %v355_v58 = vmul.f32 %v1238_v35, %v354_v49  ;;  %v372_v1 = vsel %vm371_vm3, %v557_v54, %v368_v18  ;;  %505 = vst [vmem:[%s1382_s3 + $0x60] sm:$0xff] %v473_v8  ;;  %vm361_vm6 = vmor %vm359_vm15, %vm360_vm4 }
  0xf9   :  { %506 = vst [vmem:[%s1382_s3 + $0x68] sm:$0xff] %v474_v9 }
  0xfc   :  { %v220_v42 = vpop.xlane.xlu2 %219 }
  0xfd   :  { %v245_v24 = vmul.f32 %v1042_v59, %v220_v42 }
  0xff   :  { %v1216_v48 = vadd.f32 1e-06, %v245_v24  ;;  %v437_v24 = vmul.f32 %v342_v19, %v798_v3 }
 0x101   :  { %560 = vrsqrt.f32 %v1216_v48  ;;  %vm409_vm1 = vweird.f32 %v1216_v48  ;;  %v475_v3 = vmul.f32 %v1063_v52, %v437_v24 }
 0x103   :  { %507 = vst [vmem:[%s1382_s3 + $0x70] sm:$0xff] %v475_v3 }
 0x107   :  { %v561_v2 = vpop.eup %560 }
 0x108   :  { %v404_v16 = vmul.f32 %v561_v2, %v1216_v48  ;;  %vm410_vm5 = vweird.f32 %v561_v2 }
 0x109   :  { %vm411_vm7 = vmor %vm409_vm1, %vm410_vm5 }
 0x10a   :  { %v405_v14 = vmul.f32 %v561_v2, %v404_v16 }
 0x10c   :  { %v217_v10 = vpop.xlane.xlu1 %216  ;;  %v406_v54 = vmul.f32 0.5, %v405_v14 }
 0x10d   :  { %v244_v20 = vmul.f32 %v1042_v59, %v217_v10  ;;  %v378_v10 = vmul.f32 %v1212_v0, %v377_v56 }
 0x10e   :  { %v407_v46 = vsub.f32 1.5, %v406_v54 }
 0x10f   :  { %v1236_v7 = vadd.f32 1e-06, %v244_v20  ;;  %v382_v51 = vsel %vm381_vm2, %v1212_v0, %v378_v10  ;;  %v443_v20 = vmul.f32 %v372_v1, %v890_v40 }
 0x110   :  { %v445_v37 = vmul.f32 %v382_v51, %v869_v30  ;;  %v446_v22 = vmul.f32 %v382_v51, %v884_v36  ;;  %v408_v55 = vmul.f32 %v561_v2, %v407_v46 }
 0x111   :  { %562 = vrsqrt.f32 %v1236_v7  ;;  %v481_v36 = vmul.f32 %v1063_v52, %v443_v20  ;;  %vm399_vm8 = vweird.f32 %v1236_v7 }
 0x112   :  { %v483_v32 = vmul.f32 %v1063_v52, %v445_v37  ;;  %v484_v30 = vmul.f32 %v1065_v53, %v446_v22 }
 0x113   :  { %513 = vst [vmem:[%s1382_s3 + $0xa0] sm:$0xff] %v481_v36 }
 0x114   :  { %515 = vst [vmem:[%s1382_s3 + $0xb0] sm:$0xff] %v483_v32 }
 0x115   :  { %516 = vst [vmem:[%s1382_s3 + $0xb8] sm:$0xff] %v484_v30 }
 0x117   :  { %v563_v45 = vpop.eup %562 }
 0x118   :  { %v394_v26 = vmul.f32 %v563_v45, %v1236_v7  ;;  %vm400_vm9 = vweird.f32 %v563_v45 }
 0x119   :  { %vm401_vm11 = vmor %vm399_vm8, %vm400_vm9 }
 0x11a   :  { %v395_v4 = vmul.f32 %v563_v45, %v394_v26 }
 0x11c   :  { %v214_v12 = vpop.xlane.xlu0 %213  ;;  %v396_v49 = vmul.f32 0.5, %v395_v4 }
 0x11d   :  { %v243_v23 = vmul.f32 %v1042_v59, %v214_v12  ;;  %v356_v12 = vmul.f32 0.5, %v355_v58 }
 0x11f   :  { %v1243_v42 = vadd.f32 1e-06, %v243_v23  ;;  %v357_v33 = vsub.f32 1.5, %v356_v12 }
 0x121   :  { %564 = vrsqrt.f32 %v1243_v42  ;;  %v358_v0 = vmul.f32 %v1238_v35, %v357_v33  ;;  %vm389_vm12 = vweird.f32 %v1243_v42 }
 0x127   :  { %v565_v23 = vpop.eup %564 }
 0x128   :  { %v384_v28 = vmul.f32 %v565_v23, %v1243_v42  ;;  %vm390_vm10 = vweird.f32 %v565_v23 }
 0x129   :  { %vm391_vm13 = vmor %vm389_vm12, %vm390_vm10 }
 0x12c   :  { %v223_v63 = vpop.xlane.xlu0 %222 }
 0x12d   :  { %v246_v17 = vmul.f32 %v1042_v59, %v223_v63  ;;  %v444_v59 = vmul.f32 %v372_v1, %v892_v41  ;;  %v362_v41 = vsel %vm361_vm6, %v1238_v35, %v358_v0  ;;  %v385_v35 = vmul.f32 %v565_v23, %v384_v28 }
 0x12e   :  { %v441_v34 = vmul.f32 %v362_v41, %v898_v43  ;;  %v442_v38 = vmul.f32 %v362_v41, %v900_v44  ;;  %v412_v43 = vsel %vm411_vm7, %v561_v2, %v408_v55  ;;  %v397_v44 = vsub.f32 1.5, %v396_v49 }
 0x12f   :  { %v482_v40 = vmul.f32 %v1065_v53, %v444_v59  ;;  %v262_v39 = vadd.f32 1e-06, %v246_v17  ;;  %v386_v50 = vmul.f32 0.5, %v385_v35  ;;  %v451_v24 = vmul.f32 %v412_v43, %v940_v57 }
 0x130   :  { %v479_v19 = vmul.f32 %v1063_v52, %v441_v34  ;;  %v480_v47 = vmul.f32 %v1065_v53, %v442_v38  ;;  %v452_v48 = vmul.f32 %v412_v43, %v956_v62  ;;  %v398_v61 = vmul.f32 %v563_v45, %v397_v44 }
 0x131   :  { %566 = vrsqrt.f32 %v262_v39  ;;  %514 = vst [vmem:[%s1382_s3 + $0xa8] sm:$0xff] %v482_v40  ;;  %v387_v56 = vsub.f32 1.5, %v386_v50  ;;  %v489_v58 = vmul.f32 %v1063_v52, %v451_v24  ;;  %vm419_vm15 = vweird.f32 %v262_v39 }
 0x132   :  { %511 = vst [vmem:[%s1382_s3 + $0x90] sm:$0xff] %v479_v19  ;;  %v490_v13 = vmul.f32 %v1065_v53, %v452_v48  ;;  %v402_v60 = vsel %vm401_vm11, %v563_v45, %v398_v61 }
 0x133   :  { %512 = vst [vmem:[%s1382_s3 + $0x98] sm:$0xff] %v480_v47  ;;  %v388_v63 = vmul.f32 %v565_v23, %v387_v56  ;;  %v449_v62 = vmul.f32 %v402_v60, %v968_v6  ;;  %v450_v2 = vmul.f32 %v402_v60, %v980_v15 }
 0x134   :  { %521 = vst [vmem:[%s1382_s3 + $0xe0] sm:$0xff] %v489_v58 }
 0x135   :  { %522 = vst [vmem:[%s1382_s3 + $0xe8] sm:$0xff] %v490_v13  ;;  %v392_v7 = vsel %vm391_vm13, %v565_v23, %v388_v63  ;;  %v487_v5 = vmul.f32 %v1063_v52, %v449_v62  ;;  %v488_v42 = vmul.f32 %v1065_v53, %v450_v2 }
 0x136   :  { %v447_v29 = vmul.f32 %v392_v7, %v992_v21  ;;  %v448_v11 = vmul.f32 %v392_v7, %v1004_v25 }
 0x137   :  { %v567_v57 = vpop.eup %566  ;;  %519 = vst [vmem:[%s1382_s3 + $0xd0] sm:$0xff] %v487_v5 }
 0x138   :  { %v414_v3 = vmul.f32 %v567_v57, %v262_v39  ;;  %v485_v6 = vmul.f32 %v1063_v52, %v447_v29  ;;  %v486_v15 = vmul.f32 %v1065_v53, %v448_v11  ;;  %520 = vst [vmem:[%s1382_s3 + $0xd8] sm:$0xff] %v488_v42  ;;  %vm420_vm14 = vweird.f32 %v567_v57 }
 0x139   :  { %vm421_vm0 = vmor %vm419_vm15, %vm420_vm14 }
 0x13a   :  { %v415_v10 = vmul.f32 %v567_v57, %v414_v3  ;;  %517 = vst [vmem:[%s1382_s3 + $0xc0] sm:$0xff] %v485_v6 }
 0x13b   :  { %518 = vst [vmem:[%s1382_s3 + $0xc8] sm:$0xff] %v486_v15 }
 0x13c   :  { %v416_v18 = vmul.f32 0.5, %v415_v10 }
 0x13e   :  { %v417_v21 = vsub.f32 1.5, %v416_v18 }
 0x140   :  { %v418_v25 = vmul.f32 %v567_v57, %v417_v21 }
 0x142   :  { %v422_v12 = vsel %vm421_vm0, %v567_v57, %v418_v25 }
 0x143   :  { %v453_v16 = vmul.f32 %v422_v12, %v1010_v27  ;;  %v454_v45 = vmul.f32 %v422_v12, %v1020_v31 }
 0x145   :  { %v491_v8 = vmul.f32 %v1063_v52, %v453_v16  ;;  %v492_v9 = vmul.f32 %v1065_v53, %v454_v45 }
 0x147   :  { %523 = vst [vmem:[%s1382_s3 + $0xf0] sm:$0xff] %v491_v8 }
 0x148   :  { %524 = vst [vmem:[%s1382_s3 + $0xf8] sm:$0xff] %v492_v9 }

// kernel: _lambda_.16
= control target key start
LH: loop header
LB: loop body
LE: loop exit
PB: predicated region body
PF: predicated region fallthrough
CT: control target
= control target key end

     0   :  { %s2090_s12 = smov 0   ;;  %s2092_s13 = smov 0   ;;  %s2763_s0 = inlined_call_operand.vmem [shape: f32[128,256], index: 0, kind: input, shape index: {}]   ;;  %s2764_s1 = inlined_call_operand.vmem [shape: bf16[256,768], index: 1, kind: input, shape index: {}]   ;;  %s2765_s2 = inlined_call_operand.vmem [shape: f32[1,768], index: 2, kind: input, shape index: {}]   ;;  %s2766_s3 = inlined_call_operand.vmem [shape: f32[128,768], index: 3, kind: output, shape index: {}]  }
   0x1   :  { %s2094_s14 = smov 0   ;;  %s2096_s15 = smov 0  }
   0x2   :  { %s2098_s16 = smov 0  }
   0x3 LB: > { %s28_s17 = sadd.s32 1, %s2064_s15  ;;  %s1656_s18 = sadd.s32 4294967295, %s2068_s16   ;;  %s2068_s16 = sphi %s2098_s16, %s13_s16   ;;  %s2064_s15 = sphi %s2096_s15, %s2771_s15   ;;  %s2060_s14 = sphi %s2094_s14, %s2770_s14   ;;  %s2056_s13 = sphi %s2092_s13, %s2769_s13   ;;  %s2052_s12 = sphi %s2090_s12, %s2768_s12  }
   0x4   : > { %p30_p0 = scmp.ge.s32.totalorder %s28_s17, 2  ;;  %p76_p1 = scmp.ne.s32.totalorder %s2056_s13, %s2052_s12 }
   0x5   : > { %p77_p2 = scmp.eq.s32.totalorder %s2068_s16, 0  ;;  %p134_p4 = scmp.eq.s32.totalorder %s1656_s18, 1 }
   0x6   : > { %s2773_s17 = smov (%p30_p0, %s28_s17), 0  ;;  %s69_s20 = sadd.s32 1, %s2056_s13 }
   0x7   : > { %p78_p3 = por %p77_p2, %p76_p1  ;;  %s65_s19 = ssub.s32 %s2064_s15, %s2773_s17 }
   0x8   : > { %p67_p5 = scmp.eq.s32.totalorder %s65_s19, 0  ;;  %p2125_p6 = por %p134_p4, %p76_p1 }
   0x9   : > { %p1660_p7 = scmp.ge.s32.totalorder %s2068_s16, 2 }
   0xa   : > { %s2130_s22 = scalar_select %p67_p5, %s2056_s13, %s69_s20  }
   0xb   : > { %171 = sbr.rel (%p1660_p7) target bundleno = 85 (0x55), region = 20 }
  0x10   : > { %174 = sbr.rel (!%p78_p3) target bundleno = 85 (0x55), region = 24  ;;  %s176_s23 = sand.u32 (%p78_p3), 1, %s2056_s13  }
  0x11   : > { %s1922_s24 = smul.u32 (%p78_p3), 12, %s2064_s15 }
  0x12   : > { %s1988_s25 = smul.u32 (%p78_p3), 384, %s176_s23 }
  0x13   : > { %s2138_s28 = scalar_lea.vmem (%p78_p3), %s2764_s1, %s1922_s24 }
  0x14   : > { %v199_v0 = vld [vmem:[%s2138_s28] sm:$0xff] (%p78_p3)  ;;  %v201_v1 = vld [vmem:[%s2138_s28 + $0x18] sm:$0xff] (%p78_p3)  ;;  %v203_v2 = vld [vmem:[%s2138_s28 + $0x30] sm:$0xff] (%p78_p3)  ;;  %s2143_s29 = scalar_lea.vmem (%p78_p3), [#allocation3], %s1988_s25 }
  0x15   : > { %200 = vst [vmem:[%s2143_s29] sm:$0xff] %v199_v0  ;;  %v205_v3 = vld [vmem:[%s2138_s28 + $0x48] sm:$0xff]  ;;  %v207_v4 = vld [vmem:[%s2138_s28 + $0x60] sm:$0xff]  ;;  %v209_v5 = vld [vmem:[%s2138_s28 + $0x78] sm:$0xff] }
  0x16   : > { %202 = vst [vmem:[%s2143_s29 + $0xc] sm:$0xff] %v201_v1  ;;  %v211_v6 = vld [vmem:[%s2138_s28 + $0x90] sm:$0xff]  ;;  %v213_v7 = vld [vmem:[%s2138_s28 + $0xa8] sm:$0xff]  ;;  %v215_v8 = vld [vmem:[%s2138_s28 + $0xc0] sm:$0xff] }
  0x17   : > { %204 = vst [vmem:[%s2143_s29 + $0x18] sm:$0xff] %v203_v2  ;;  %v217_v9 = vld [vmem:[%s2138_s28 + $0xd8] sm:$0xff]  ;;  %v219_v10 = vld [vmem:[%s2138_s28 + $0xf0] sm:$0xff]  ;;  %v221_v11 = vld [vmem:[%s2138_s28 + $0x108] sm:$0xff] }
  0x18   : > { %206 = vst [vmem:[%s2143_s29 + $0x24] sm:$0xff] %v205_v3  ;;  %v223_v12 = vld [vmem:[%s2138_s28 + $0x120] sm:$0xff]  ;;  %v225_v13 = vld [vmem:[%s2138_s28 + $0x138] sm:$0xff]  ;;  %v227_v14 = vld [vmem:[%s2138_s28 + $0x150] sm:$0xff] }
  0x19   : > { %208 = vst [vmem:[%s2143_s29 + $0x30] sm:$0xff] %v207_v4  ;;  %v229_v15 = vld [vmem:[%s2138_s28 + $0x168] sm:$0xff]  ;;  %v231_v16 = vld [vmem:[%s2138_s28 + $0x180] sm:$0xff]  ;;  %v233_v17 = vld [vmem:[%s2138_s28 + $0x198] sm:$0xff] }
  0x1a   : > { %210 = vst [vmem:[%s2143_s29 + $0x3c] sm:$0xff] %v209_v5  ;;  %v235_v18 = vld [vmem:[%s2138_s28 + $0x1b0] sm:$0xff]  ;;  %v237_v19 = vld [vmem:[%s2138_s28 + $0x1c8] sm:$0xff]  ;;  %v239_v20 = vld [vmem:[%s2138_s28 + $0x1e0] sm:$0xff] }
  0x1b   : > { %212 = vst [vmem:[%s2143_s29 + $0x48] sm:$0xff] %v211_v6  ;;  %v241_v21 = vld [vmem:[%s2138_s28 + $0x1f8] sm:$0xff]  ;;  %v243_v22 = vld [vmem:[%s2138_s28 + $0x210] sm:$0xff]  ;;  %v245_v23 = vld [vmem:[%s2138_s28 + $0x228] sm:$0xff] }
  0x1c   : > { %214 = vst [vmem:[%s2143_s29 + $0x54] sm:$0xff] %v213_v7  ;;  %v247_v24 = vld [vmem:[%s2138_s28 + $0x240] sm:$0xff]  ;;  %v249_v25 = vld [vmem:[%s2138_s28 + $0x258] sm:$0xff]  ;;  %v251_v26 = vld [vmem:[%s2138_s28 + $0x270] sm:$0xff] }
  0x1d   : > { %216 = vst [vmem:[%s2143_s29 + $0x60] sm:$0xff] %v215_v8  ;;  %v253_v27 = vld [vmem:[%s2138_s28 + $0x288] sm:$0xff]  ;;  %v255_v28 = vld [vmem:[%s2138_s28 + $0x2a0] sm:$0xff]  ;;  %v257_v29 = vld [vmem:[%s2138_s28 + $0x2b8] sm:$0xff] }
  0x1e   : > { %218 = vst [vmem:[%s2143_s29 + $0x6c] sm:$0xff] %v217_v9  ;;  %v259_v30 = vld [vmem:[%s2138_s28 + $0x2d0] sm:$0xff]  ;;  %v261_v31 = vld [vmem:[%s2138_s28 + $0x2e8] sm:$0xff]  ;;  %v1664_v33 = vld [vmem:[%s2138_s28 + $0x20] sm:$0xf] }
  0x1f   : > { %220 = vst [vmem:[%s2143_s29 + $0x78] sm:$0xff] %v219_v10  ;;  %v1662_v32 = vld [vmem:[%s2138_s28 + $0x8] sm:$0xf]  ;;  %v1666_v34 = vld [vmem:[%s2138_s28 + $0x38] sm:$0xf] }
  0x20   : > { %222 = vst [vmem:[%s2143_s29 + $0x84] sm:$0xff] %v221_v11  ;;  %v1668_v35 = vld [vmem:[%s2138_s28 + $0x50] sm:$0xf]  ;;  %v1670_v36 = vld [vmem:[%s2138_s28 + $0x68] sm:$0xf] }
  0x21   : > { %224 = vst [vmem:[%s2143_s29 + $0x90] sm:$0xff] %v223_v12  ;;  %v1672_v37 = vld [vmem:[%s2138_s28 + $0x80] sm:$0xf]  ;;  %v1674_v38 = vld [vmem:[%s2138_s28 + $0x98] sm:$0xf] }
  0x22   : > { %226 = vst [vmem:[%s2143_s29 + $0x9c] sm:$0xff] %v225_v13  ;;  %v1676_v39 = vld [vmem:[%s2138_s28 + $0xb0] sm:$0xf]  ;;  %v1678_v40 = vld [vmem:[%s2138_s28 + $0xc8] sm:$0xf] }
  0x23   : > { %228 = vst [vmem:[%s2143_s29 + $0xa8] sm:$0xff] %v227_v14  ;;  %v1680_v41 = vld [vmem:[%s2138_s28 + $0xe0] sm:$0xf]  ;;  %v1682_v42 = vld [vmem:[%s2138_s28 + $0xf8] sm:$0xf] }
  0x24   : > { %230 = vst [vmem:[%s2143_s29 + $0xb4] sm:$0xff] %v229_v15  ;;  %v1684_v43 = vld [vmem:[%s2138_s28 + $0x110] sm:$0xf]  ;;  %v1686_v44 = vld [vmem:[%s2138_s28 + $0x128] sm:$0xf] }
  0x25   : > { %232 = vst [vmem:[%s2143_s29 + $0xc0] sm:$0xff] %v231_v16  ;;  %v1688_v45 = vld [vmem:[%s2138_s28 + $0x140] sm:$0xf]  ;;  %v1690_v46 = vld [vmem:[%s2138_s28 + $0x158] sm:$0xf] }
  0x26   : > { %234 = vst [vmem:[%s2143_s29 + $0xcc] sm:$0xff] %v233_v17  ;;  %v1692_v47 = vld [vmem:[%s2138_s28 + $0x170] sm:$0xf]  ;;  %v1694_v48 = vld [vmem:[%s2138_s28 + $0x188] sm:$0xf] }
  0x27   : > { %236 = vst [vmem:[%s2143_s29 + $0xd8] sm:$0xff] %v235_v18  ;;  %v1696_v49 = vld [vmem:[%s2138_s28 + $0x1a0] sm:$0xf]  ;;  %v1698_v50 = vld [vmem:[%s2138_s28 + $0x1b8] sm:$0xf] }
  0x28   : > { %238 = vst [vmem:[%s2143_s29 + $0xe4] sm:$0xff] %v237_v19  ;;  %v1700_v51 = vld [vmem:[%s2138_s28 + $0x1d0] sm:$0xf]  ;;  %v1702_v52 = vld [vmem:[%s2138_s28 + $0x1e8] sm:$0xf] }
  0x29   : > { %240 = vst [vmem:[%s2143_s29 + $0xf0] sm:$0xff] %v239_v20  ;;  %v1704_v53 = vld [vmem:[%s2138_s28 + $0x200] sm:$0xf]  ;;  %v1706_v54 = vld [vmem:[%s2138_s28 + $0x218] sm:$0xf] }
  0x2a   : > { %242 = vst [vmem:[%s2143_s29 + $0xfc] sm:$0xff] %v241_v21  ;;  %v1708_v55 = vld [vmem:[%s2138_s28 + $0x230] sm:$0xf]  ;;  %v1710_v56 = vld [vmem:[%s2138_s28 + $0x248] sm:$0xf] }
  0x2b   : > { %244 = vst [vmem:[%s2143_s29 + $0x108] sm:$0xff] %v243_v22  ;;  %v1712_v57 = vld [vmem:[%s2138_s28 + $0x260] sm:$0xf]  ;;  %v1714_v58 = vld [vmem:[%s2138_s28 + $0x278] sm:$0xf] }
  0x2c   : > { %246 = vst [vmem:[%s2143_s29 + $0x114] sm:$0xff] %v245_v23  ;;  %v1716_v59 = vld [vmem:[%s2138_s28 + $0x290] sm:$0xf]  ;;  %v1718_v60 = vld [vmem:[%s2138_s28 + $0x2a8] sm:$0xf] }
  0x2d   : > { %248 = vst [vmem:[%s2143_s29 + $0x120] sm:$0xff] %v247_v24  ;;  %v1720_v61 = vld [vmem:[%s2138_s28 + $0x2c0] sm:$0xf]  ;;  %v1722_v62 = vld [vmem:[%s2138_s28 + $0x2d8] sm:$0xf] }
  0x2e   : > { %250 = vst [vmem:[%s2143_s29 + $0x12c] sm:$0xff] %v249_v25  ;;  %v1724_v63 = vld [vmem:[%s2138_s28 + $0x2f0] sm:$0xf] }
  0x2f   : > { %252 = vst [vmem:[%s2143_s29 + $0x138] sm:$0xff] %v251_v26 }
  0x30   : > { %254 = vst [vmem:[%s2143_s29 + $0x144] sm:$0xff] %v253_v27 }
  0x31   : > { %256 = vst [vmem:[%s2143_s29 + $0x150] sm:$0xff] %v255_v28 }
  0x32   : > { %258 = vst [vmem:[%s2143_s29 + $0x15c] sm:$0xff] %v257_v29 }
  0x33   : > { %260 = vst [vmem:[%s2143_s29 + $0x168] sm:$0xff] %v259_v30 }
  0x34   : > { %262 = vst [vmem:[%s2143_s29 + $0x174] sm:$0xff] %v261_v31 }
  0x35   : > { %1663 = vst [vmem:[%s2143_s29 + $0x8] sm:$0xf] %v1662_v32 }
  0x36   : > { %1665 = vst [vmem:[%s2143_s29 + $0x14] sm:$0xf] %v1664_v33 }
  0x37   : > { %1667 = vst [vmem:[%s2143_s29 + $0x20] sm:$0xf] %v1666_v34 }
  0x38   : > { %1669 = vst [vmem:[%s2143_s29 + $0x2c] sm:$0xf] %v1668_v35 }
  0x39   : > { %1671 = vst [vmem:[%s2143_s29 + $0x38] sm:$0xf] %v1670_v36 }
  0x3a   : > { %1673 = vst [vmem:[%s2143_s29 + $0x44] sm:$0xf] %v1672_v37 }
  0x3b   : > { %1675 = vst [vmem:[%s2143_s29 + $0x50] sm:$0xf] %v1674_v38 }
  0x3c   : > { %1677 = vst [vmem:[%s2143_s29 + $0x5c] sm:$0xf] %v1676_v39 }
  0x3d   : > { %1679 = vst [vmem:[%s2143_s29 + $0x68] sm:$0xf] %v1678_v40 }
  0x3e   : > { %1681 = vst [vmem:[%s2143_s29 + $0x74] sm:$0xf] %v1680_v41 }
  0x3f   : > { %1683 = vst [vmem:[%s2143_s29 + $0x80] sm:$0xf] %v1682_v42 }
  0x40   : > { %1685 = vst [vmem:[%s2143_s29 + $0x8c] sm:$0xf] %v1684_v43 }
  0x41   : > { %1687 = vst [vmem:[%s2143_s29 + $0x98] sm:$0xf] %v1686_v44 }
  0x42   : > { %1689 = vst [vmem:[%s2143_s29 + $0xa4] sm:$0xf] %v1688_v45 }
  0x43   : > { %1691 = vst [vmem:[%s2143_s29 + $0xb0] sm:$0xf] %v1690_v46 }
  0x44   : > { %1693 = vst [vmem:[%s2143_s29 + $0xbc] sm:$0xf] %v1692_v47 }
  0x45   : > { %1695 = vst [vmem:[%s2143_s29 + $0xc8] sm:$0xf] %v1694_v48 }
  0x46   : > { %1697 = vst [vmem:[%s2143_s29 + $0xd4] sm:$0xf] %v1696_v49 }
  0x47   : > { %1699 = vst [vmem:[%s2143_s29 + $0xe0] sm:$0xf] %v1698_v50 }
  0x48   : > { %1701 = vst [vmem:[%s2143_s29 + $0xec] sm:$0xf] %v1700_v51 }
  0x49   : > { %1703 = vst [vmem:[%s2143_s29 + $0xf8] sm:$0xf] %v1702_v52 }
  0x4a   : > { %1705 = vst [vmem:[%s2143_s29 + $0x104] sm:$0xf] %v1704_v53 }
  0x4b   : > { %1707 = vst [vmem:[%s2143_s29 + $0x110] sm:$0xf] %v1706_v54 }
  0x4c   : > { %1709 = vst [vmem:[%s2143_s29 + $0x11c] sm:$0xf] %v1708_v55 }
  0x4d   : > { %1711 = vst [vmem:[%s2143_s29 + $0x128] sm:$0xf] %v1710_v56 }
  0x4e   : > { %1713 = vst [vmem:[%s2143_s29 + $0x134] sm:$0xf] %v1712_v57 }
  0x4f   : > { %1715 = vst [vmem:[%s2143_s29 + $0x140] sm:$0xf] %v1714_v58 }
  0x50   : > { %1717 = vst [vmem:[%s2143_s29 + $0x14c] sm:$0xf] %v1716_v59 }
  0x51   : > { %1719 = vst [vmem:[%s2143_s29 + $0x158] sm:$0xf] %v1718_v60 }
  0x52   : > { %1721 = vst [vmem:[%s2143_s29 + $0x164] sm:$0xf] %v1720_v61 }
  0x53   : > { %1723 = vst [vmem:[%s2143_s29 + $0x170] sm:$0xf] %v1722_v62 }
  0x54   : > { %1725 = vst [vmem:[%s2143_s29 + $0x17c] sm:$0xf] %v1724_v63 }
  0x55 PF: > { %p1726_p8 = scmp.ge.s32.totalorder %s2068_s16, 1  ;;  %p347_p9 = scmp.lt.s32.totalorder %s2068_s16, 3 }
  0x57   : > { %p348_p10 = pnand %p1726_p8, %p347_p9 }
  0x58   : > { %s354_s30 = sand.u32 (!%p348_p10), 1, %s2052_s12   ;;  %s404_s19 = smul.u32 (!%p348_p10), 3, %s2060_s14 }
  0x59   : > { %351 = sbr.rel (%p348_p10) target bundleno = 460 (0x1cc), region = 54 }
  0x5a   : > { %s2273_s4 = smul.u32 (!%p348_p10), 384, %s354_s30  ;;  %p405_p11 = scmp.lt.s32.totalorder (!%p348_p10), %s404_s19, 5 }
  0x5c   : > { %s2276_s5 = scalar_lea.vmem (!%p348_p10), [#allocation3], %s2273_s4  ;;  %s2529_s25 = scalar_lea.vmem (!%p348_p10), [#allocation4], %s2273_s4 }
  0x5e   : > { %v1813_v0 = vld [vmem:[%s2276_s5 + $0xa8] sm:$0xf]  ;;  %v1945_v1 = vld [vmem:[%s2276_s5 + $0xb0] sm:$0xf0]  ;;  %v1801_v5 = vld [vmem:[%s2276_s5 + $0x90] sm:$0xf] }
  0x5f   : > { %v1909_v2 = vld [vmem:[%s2276_s5 + $0x168] sm:$0xf]  ;;  %v1814_v3 = vor.u32 %v1945_v1, %v1813_v0  ;;  %v1969_v4 = vld [vmem:[%s2276_s5 + $0x170] sm:$0xf0]  ;;  %v1942_v6 = vld [vmem:[%s2276_s5 + $0x98] sm:$0xf0] }
  0x60   : > { %v1910_v7 = vor.u32 %v1969_v4, %v1909_v2  ;;  %v1897_v8 = vld [vmem:[%s2276_s5 + $0x150] sm:$0xf]  ;;  %v1966_v9 = vld [vmem:[%s2276_s5 + $0x158] sm:$0xf0]  ;;  %v1802_v10 = vor.u32 %v1942_v6, %v1801_v5  ;;  %v1789_v12 = vld [vmem:[%s2276_s5 + $0x78] sm:$0xf] }
  0x61   : > { %879 = vmatpush.bf16.msra.mxu0 %v1814_v3  ;;  %1972 = vmatpush.bf16.msra.mxu2 %v1814_v3  ;;  %v1898_v11 = vor.u32 %v1966_v9, %v1897_v8  ;;  %v1939_v13 = vld [vmem:[%s2276_s5 + $0x80] sm:$0xf0]  ;;  %v1885_v14 = vld [vmem:[%s2276_s5 + $0x138] sm:$0xf]  ;;  %v1777_v18 = vld [vmem:[%s2276_s5 + $0x60] sm:$0xf] }
  0x62   : > { %928 = vmatpush.bf16.msra.mxu1 %v1910_v7  ;;  %1980 = vmatpush.bf16.msra.mxu3 %v1910_v7  ;;  %v1963_v15 = vld [vmem:[%s2276_s5 + $0x140] sm:$0xf0]  ;;  %v1790_v16 = vor.u32 %v1939_v13, %v1789_v12  ;;  %v1936_v19 = vld [vmem:[%s2276_s5 + $0x68] sm:$0xf0]  ;;  %v1873_v20 = vld [vmem:[%s2276_s5 + $0x120] sm:$0xf] }
  0x63   : > { %v1886_v17 = vor.u32 %v1963_v15, %v1885_v14  ;;  %v1960_v21 = vld [vmem:[%s2276_s5 + $0x128] sm:$0xf0]  ;;  %v1778_v22 = vor.u32 %v1936_v19, %v1777_v18  ;;  %v1765_v24 = vld [vmem:[%s2276_s5 + $0x48] sm:$0xf]  ;;  %v1933_v25 = vld [vmem:[%s2276_s5 + $0x50] sm:$0xf0] }
  0x64   : > { %v1874_v23 = vor.u32 %v1960_v21, %v1873_v20  ;;  %v1861_v26 = vld [vmem:[%s2276_s5 + $0x108] sm:$0xf]  ;;  %v1957_v27 = vld [vmem:[%s2276_s5 + $0x110] sm:$0xf0]  ;;  %v1766_v28 = vor.u32 %v1933_v25, %v1765_v24  ;;  %v1753_v30 = vld [vmem:[%s2276_s5 + $0x30] sm:$0xf] }
  0x65   : > { %880 = vmatpush.bf16.msra.mxu0 %v1802_v10  ;;  %1973 = vmatpush.bf16.msra.mxu2 %v1802_v10  ;;  %v1862_v29 = vor.u32 %v1957_v27, %v1861_v26  ;;  %v1930_v31 = vld [vmem:[%s2276_s5 + $0x38] sm:$0xf0]  ;;  %v1849_v32 = vld [vmem:[%s2276_s5 + $0xf0] sm:$0xf]  ;;  %v1741_v36 = vld [vmem:[%s2276_s5 + $0x18] sm:$0xf] }
  0x66   : > { %929 = vmatpush.bf16.msra.mxu1 %v1898_v11  ;;  %1981 = vmatpush.bf16.msra.mxu3 %v1898_v11  ;;  %v1954_v33 = vld [vmem:[%s2276_s5 + $0xf8] sm:$0xf0]  ;;  %v1754_v34 = vor.u32 %v1930_v31, %v1753_v30  ;;  %v1927_v37 = vld [vmem:[%s2276_s5 + $0x20] sm:$0xf0]  ;;  %v1837_v38 = vld [vmem:[%s2276_s5 + $0xd8] sm:$0xf] }
  0x67   : > { %v1850_v35 = vor.u32 %v1954_v33, %v1849_v32  ;;  %v1951_v39 = vld [vmem:[%s2276_s5 + $0xe0] sm:$0xf0]  ;;  %v1742_v40 = vor.u32 %v1927_v37, %v1741_v36  ;;  %v1729_v41 = vld [vmem:[%s2276_s5] sm:$0xf]  ;;  %v1924_v43 = vld [vmem:[%s2276_s5 + $0x8] sm:$0xf0] }
  0x68   : > { %v1838_v42 = vor.u32 %v1951_v39, %v1837_v38  ;;  %v1825_v44 = vld [vmem:[%s2276_s5 + $0xc0] sm:$0xf]  ;;  %v1948_v45 = vld [vmem:[%s2276_s5 + $0xc8] sm:$0xf0]  ;;  %v513_v47 = vld [vmem:[%s2763_s0 + $0x10] sm:$0xff]  ;;  %v1730_v54 = vor.u32 %v1924_v43, %v1729_v41  ;;  %s2775_s19 = smov (!%p405_p11, %s404_s19), 5 }
  0x69   : > { %881 = vmatpush.bf16.msra.mxu0 %v1790_v16  ;;  %1974 = vmatpush.bf16.msra.mxu2 %v1790_v16  ;;  %v511_v46 = vld [vmem:[%s2763_s0] sm:$0xff]  ;;  %v529_v49 = vld [vmem:[%s2763_s0 + $0x90] sm:$0xff]  ;;  %v1944_v50 = vld [vmem:[%s2276_s5 + $0xac] sm:$0xf]  ;;  %v1826_v58 = vor.u32 %v1948_v45, %v1825_v44  ;;  %s407_s24 = scalar_lea.vmem %s2765_s2, %s2775_s19  ;;  %s1971_s4 = smul.u32 (%p2125_p6), 24, %s2060_s14 }
  0x6a   : > { %930 = vmatpush.bf16.msra.mxu1 %v1886_v17  ;;  %1982 = vmatpush.bf16.msra.mxu3 %v1886_v17  ;;  %v527_v48 = vld [vmem:[%s2763_s0 + $0x80] sm:$0xff]  ;;  %v1815_v51 = vld [vmem:[%s2276_s5 + $0xb4] sm:$0xf0]  ;;  %v1968_v52 = vld [vmem:[%s2276_s5 + $0x16c] sm:$0xf]  ;;  %v2343_v3 = vpack.c.bf16 %v513_v47, %v511_v46 }
  0x6b   : > { %v1911_v53 = vld [vmem:[%s2276_s5 + $0x174] sm:$0xf0]  ;;  %v512_v55 = vld [vmem:[%s2763_s0 + $0x8] sm:$0xff]  ;;  %v1821_v60 = vld [vmem:[%s2276_s5 + $0xb0] sm:$0xf]  ;;  %v1818_v62 = vor.u32 %v1944_v50, %v1815_v51  ;;  %v2345_v4 = vpack.c.bf16 %v529_v49, %v527_v48  ;;  %s2652_s28 = scalar_lea.vmem (%p2125_p6), %s2766_s3, %s1971_s4 }
  0x6c   : > { %v514_v56 = vld [vmem:[%s2763_s0 + $0x18] sm:$0xff]  ;;  %v528_v57 = vld [vmem:[%s2763_s0 + $0x88] sm:$0xff]  ;;  %v1914_v63 = vor.u32 %v1968_v52, %v1911_v53  ;;  %v1917_v0 = vld [vmem:[%s2276_s5 + $0x170] sm:$0xf] }
  0x6d   : > { %882 = vmatpush.bf16.msra.mxu0 %v1778_v22  ;;  %1975 = vmatpush.bf16.msra.mxu2 %v1778_v22  ;;  %v530_v59 = vld [vmem:[%s2763_s0 + $0x98] sm:$0xff]  ;;  %v1941_v2 = vld [vmem:[%s2276_s5 + $0x94] sm:$0xf]  ;;  %v1803_v5 = vld [vmem:[%s2276_s5 + $0x9c] sm:$0xf0]  ;;  %v2350_v8 = vpack.c.bf16 %v514_v56, %v512_v55 }
  0x6e   : > { %931 = vmatpush.bf16.msra.mxu1 %v1874_v23  ;;  %1983 = vmatpush.bf16.msra.mxu3 %v1874_v23  ;;  %v1946_v61 = vld [vmem:[%s2276_s5 + $0xb8] sm:$0xf0]  ;;  %v1965_v6 = vld [vmem:[%s2276_s5 + $0x154] sm:$0xf]  ;;  %v1899_v7 = vld [vmem:[%s2276_s5 + $0x15c] sm:$0xf0]  ;;  %v2352_v9 = vpack.c.bf16 %v530_v59, %v528_v57  ;;  %v1806_v14 = vor.u32 %v1941_v2, %v1803_v5 }
  0x6f   : > { %v1970_v1 = vld [vmem:[%s2276_s5 + $0x178] sm:$0xf0]  ;;  %v1822_v10 = vor.u32 %v1946_v61, %v1821_v60  ;;  %v1809_v12 = vld [vmem:[%s2276_s5 + $0x98] sm:$0xf]  ;;  %v1943_v13 = vld [vmem:[%s2276_s5 + $0xa0] sm:$0xf0]  ;;  %v1902_v15 = vor.u32 %v1965_v6, %v1899_v7 }
  0x70   : > { %v1918_v11 = vor.u32 %v1970_v1, %v1917_v0  ;;  %v1905_v16 = vld [vmem:[%s2276_s5 + $0x158] sm:$0xf]  ;;  %v1967_v17 = vld [vmem:[%s2276_s5 + $0x160] sm:$0xf0]  ;;  %v1938_v18 = vld [vmem:[%s2276_s5 + $0x7c] sm:$0xf]  ;;  %v1810_v22 = vor.u32 %v1943_v13, %v1809_v12 }
  0x71   : > { %883 = vmatpush.bf16.msra.mxu0 %v1766_v28  ;;  %1976 = vmatpush.bf16.msra.mxu2 %v1766_v28  ;;  %v1791_v19 = vld [vmem:[%s2276_s5 + $0x84] sm:$0xf0]  ;;  %v1962_v20 = vld [vmem:[%s2276_s5 + $0x13c] sm:$0xf]  ;;  %v1906_v23 = vor.u32 %v1967_v17, %v1905_v16  ;;  %v1797_v24 = vld [vmem:[%s2276_s5 + $0x80] sm:$0xf] }
  0x72   : > { %932 = vmatpush.bf16.msra.mxu1 %v1862_v29  ;;  %1984 = vmatpush.bf16.msra.mxu3 %v1862_v29  ;;  %v1887_v21 = vld [vmem:[%s2276_s5 + $0x144] sm:$0xf0]  ;;  %v1940_v25 = vld [vmem:[%s2276_s5 + $0x88] sm:$0xf0]  ;;  %v1794_v26 = vor.u32 %v1938_v18, %v1791_v19  ;;  %v1893_v28 = vld [vmem:[%s2276_s5 + $0x140] sm:$0xf] }
  0x73   : > { %v1890_v27 = vor.u32 %v1962_v20, %v1887_v21  ;;  %v1964_v29 = vld [vmem:[%s2276_s5 + $0x148] sm:$0xf0]  ;;  %v1935_v30 = vld [vmem:[%s2276_s5 + $0x64] sm:$0xf]  ;;  %v1779_v31 = vld [vmem:[%s2276_s5 + $0x6c] sm:$0xf0] }
  0x74   : > { %v1959_v32 = vld [vmem:[%s2276_s5 + $0x124] sm:$0xf]  ;;  %v1875_v33 = vld [vmem:[%s2276_s5 + $0x12c] sm:$0xf0]  ;;  %v1785_v36 = vld [vmem:[%s2276_s5 + $0x68] sm:$0xf] }
  0x75   : > { %884 = vmatpush.bf16.msra.mxu0 %v1754_v34  ;;  %1977 = vmatpush.bf16.msra.mxu2 %v1754_v34  ;;  %v1798_v34 = vor.u32 %v1940_v25, %v1797_v24  ;;  %v1937_v37 = vld [vmem:[%s2276_s5 + $0x70] sm:$0xf0]  ;;  %v515_v38 = vld [vmem:[%s2763_s0 + $0x20] sm:$0xff]  ;;  %v1878_v43 = vor.u32 %v1959_v32, %v1875_v33  ;;  %v1881_v44 = vld [vmem:[%s2276_s5 + $0x128] sm:$0xf] }
  0x76   : > { %933 = vmatpush.bf16.msra.mxu1 %v1850_v35  ;;  %1985 = vmatpush.bf16.msra.mxu3 %v1850_v35  ;;  %v1894_v35 = vor.u32 %v1964_v29, %v1893_v28  ;;  %v517_v39 = vld [vmem:[%s2763_s0 + $0x30] sm:$0xff]  ;;  %v1932_v46 = vld [vmem:[%s2276_s5 + $0x4c] sm:$0xf]  ;;  %v1767_v47 = vld [vmem:[%s2276_s5 + $0x54] sm:$0xf0] }
  0x77   : > { %v533_v41 = vld [vmem:[%s2763_s0 + $0xb0] sm:$0xff]  ;;  %v1956_v48 = vld [vmem:[%s2276_s5 + $0x10c] sm:$0xf]  ;;  %v1863_v49 = vld [vmem:[%s2276_s5 + $0x114] sm:$0xf0] }
  0x78   : > { %v1961_v45 = vld [vmem:[%s2276_s5 + $0x130] sm:$0xf0]  ;;  %v516_v50 = vld [vmem:[%s2763_s0 + $0x28] sm:$0xff]  ;;  %v518_v51 = vld [vmem:[%s2763_s0 + $0x38] sm:$0xff]  ;;  %v1866_v59 = vor.u32 %v1956_v48, %v1863_v49 }
  0x79   : > { %885 = vmatpush.bf16.msra.mxu0 %v1742_v40  ;;  %1978 = vmatpush.bf16.msra.mxu2 %v1742_v40  ;;  %v531_v40 = vld [vmem:[%s2763_s0 + $0xa0] sm:$0xff]  ;;  %v532_v52 = vld [vmem:[%s2763_s0 + $0xa8] sm:$0xff]  ;;  %v534_v53 = vld [vmem:[%s2763_s0 + $0xb8] sm:$0xff]  ;;  %v1882_v55 = vor.u32 %v1961_v45, %v1881_v44  ;;  %v2418_v6 = vpack.c.bf16 %v518_v51, %v516_v50 }
  0x7a   : > { %934 = vmatpush.bf16.msra.mxu1 %v1838_v42  ;;  %1986 = vmatpush.bf16.msra.mxu3 %v1838_v42  ;;  %v1782_v42 = vor.u32 %v1935_v30, %v1779_v31  ;;  %v1773_v56 = vld [vmem:[%s2276_s5 + $0x50] sm:$0xf]  ;;  %v1934_v57 = vld [vmem:[%s2276_s5 + $0x58] sm:$0xf0]  ;;  %v2413_v0 = vpack.c.bf16 %v533_v41, %v531_v40  ;;  %v1755_v1 = vld [vmem:[%s2276_s5 + $0x3c] sm:$0xf0]  ;;  %v2420_v7 = vpack.c.bf16 %v534_v53, %v532_v52 }
  0x7b   : > { %v1869_v60 = vld [vmem:[%s2276_s5 + $0x110] sm:$0xf]  ;;  %v1958_v61 = vld [vmem:[%s2276_s5 + $0x118] sm:$0xf0]  ;;  %v1953_v2 = vld [vmem:[%s2276_s5 + $0xf4] sm:$0xf] }
  0x7c   : > { %v1851_v5 = vld [vmem:[%s2276_s5 + $0xfc] sm:$0xf0]  ;;  %v1761_v12 = vld [vmem:[%s2276_s5 + $0x38] sm:$0xf]  ;;  %v1955_v17 = vld [vmem:[%s2276_s5 + $0x100] sm:$0xf0] }
  0x7d   : > { %886 = vmatpush.bf16.msra.mxu0 %v1730_v54  ;;  %1979 = vmatpush.bf16.msra.mxu2 %v1730_v54  ;;  %v1786_v54 = vor.u32 %v1937_v37, %v1785_v36  ;;  %v1857_v16 = vld [vmem:[%s2276_s5 + $0xf8] sm:$0xf]  ;;  %v1926_v18 = vld [vmem:[%s2276_s5 + $0x1c] sm:$0xf]  ;;  %v1743_v19 = vld [vmem:[%s2276_s5 + $0x24] sm:$0xf0] }
  0x7e   : > { %935 = vmatpush.bf16.msra.mxu1 %v1826_v58  ;;  %1987 = vmatpush.bf16.msra.mxu3 %v1826_v58  ;;  %v1770_v58 = vor.u32 %v1932_v46, %v1767_v47  ;;  %v1950_v20 = vld [vmem:[%s2276_s5 + $0xdc] sm:$0xf]  ;;  %v1749_v24 = vld [vmem:[%s2276_s5 + $0x20] sm:$0xf]  ;;  %v1928_v25 = vld [vmem:[%s2276_s5 + $0x28] sm:$0xf0] }
  0x7f   : > { %v1845_v28 = vld [vmem:[%s2276_s5 + $0xe0] sm:$0xf]  ;;  %v1952_v29 = vld [vmem:[%s2276_s5 + $0xe8] sm:$0xf0]  ;;  %v1923_v30 = vld [vmem:[%s2276_s5 + $0x4] sm:$0xf] }
  0x80   : > { %887 = vmatmul.bf16.vlgmr.msra.gmra.mxu0 %v2343_v3  ;;  %907 = vmatmul.bf16.vlgmr.msra.gmra.mxu2 %v2345_v4  ;;  %v1731_v31 = vld [vmem:[%s2276_s5 + $0xc] sm:$0xf0]  ;;  %v1947_v32 = vld [vmem:[%s2276_s5 + $0xc4] sm:$0xf]  ;;  %v1737_v36 = vld [vmem:[%s2276_s5 + $0x8] sm:$0xf] }
  0x81   : > { %977 = vmatpush.bf16.msrb.mxu2 %v1818_v62  ;;  %936 = vmatmul.bf16.vlgmr.msra.gmra.mxu1 %v2350_v8  ;;  %v1929_v62 = vld [vmem:[%s2276_s5 + $0x34] sm:$0xf]  ;;  %v1827_v33 = vld [vmem:[%s2276_s5 + $0xcc] sm:$0xf0]  ;;  %v1734_v37 = vor.u32 %v1923_v30, %v1731_v31  ;;  %v1833_v40 = vld [vmem:[%s2276_s5 + $0xc8] sm:$0xf] }
  0x82   : > { %1026 = vmatpush.bf16.msrb.mxu3 %v1914_v63  ;;  %1075 = vmatpush.bf16.msrb.mxu0 %v1822_v10  ;;  %v2411_v63 = vpack.c.bf16 %v517_v39, %v515_v38  ;;  %v1774_v10 = vor.u32 %v1934_v57, %v1773_v56  ;;  %v1758_v13 = vor.u32 %v1929_v62, %v1755_v1  ;;  %v1925_v39 = vld [vmem:[%s2276_s5 + $0x10] sm:$0xf0]  ;;  %v535_v44 = vld [vmem:[%s2763_s0 + $0xc0] sm:$0xff]  ;;  %v520_v46 = vld [vmem:[%s2763_s0 + $0x48] sm:$0xff] }
  0x83   : > { %956 = vmatmul.bf16.vlgmr.msra.gmra.mxu3 %v2352_v9  ;;  %1124 = vmatpush.bf16.msrb.mxu1 %v1918_v11  ;;  %v1870_v11 = vor.u32 %v1958_v61, %v1869_v60  ;;  %v1830_v38 = vor.u32 %v1947_v32, %v1827_v33  ;;  %v1949_v41 = vld [vmem:[%s2276_s5 + $0xd0] sm:$0xf0]  ;;  %v522_v47 = vld [vmem:[%s2763_s0 + $0x58] sm:$0xff]  ;;  %v536_v48 = vld [vmem:[%s2763_s0 + $0xc8] sm:$0xff]  ;;  %v1738_v50 = vor.u32 %v1925_v39, %v1737_v36 }
  0x84   : > { %v537_v45 = vld [vmem:[%s2763_s0 + $0xd0] sm:$0xff]  ;;  %v538_v49 = vld [vmem:[%s2763_s0 + $0xd8] sm:$0xff]  ;;  %v1834_v51 = vor.u32 %v1949_v41, %v1833_v40  ;;  %v523_v56 = vld [vmem:[%s2763_s0 + $0x60] sm:$0xff] }
  0x85   : > { %978 = vmatpush.bf16.msrb.mxu2 %v1806_v14  ;;  %v1854_v14 = vor.u32 %v1953_v2, %v1851_v5  ;;  %v2470_v53 = vpack.c.bf16 %v537_v45, %v535_v44  ;;  %v525_v57 = vld [vmem:[%s2763_s0 + $0x70] sm:$0xff]  ;;  %v524_v60 = vld [vmem:[%s2763_s0 + $0x68] sm:$0xff]  ;;  %v526_v61 = vld [vmem:[%s2763_s0 + $0x78] sm:$0xff] }
  0x86   : > { %1027 = vmatpush.bf16.msrb.mxu3 %v1902_v15  ;;  %1076 = vmatpush.bf16.msrb.mxu0 %v1810_v22  ;;  %v1931_v15 = vld [vmem:[%s2276_s5 + $0x40] sm:$0xf0]  ;;  %v1858_v22 = vor.u32 %v1955_v17, %v1857_v16  ;;  %v540_v62 = vld [vmem:[%s2763_s0 + $0xe8] sm:$0xff]  ;;  %v542_v1 = vld [vmem:[%s2763_s0 + $0xf8] sm:$0xff]  ;;  %v549_v2 = vpack.c.bf16 %v525_v57, %v523_v56 }
  0x87   : > { %1125 = vmatpush.bf16.msrb.mxu1 %v1906_v23  ;;  %v1762_v21 = vor.u32 %v1931_v15, %v1761_v12  ;;  %v1839_v23 = vld [vmem:[%s2276_s5 + $0xe4] sm:$0xf0] }
  0x89   : > { %979 = vmatpush.bf16.msrb.mxu2 %v1794_v26  ;;  %v1746_v26 = vor.u32 %v1926_v18, %v1743_v19 }
  0x8a   : > { %1028 = vmatpush.bf16.msrb.mxu3 %v1890_v27  ;;  %1077 = vmatpush.bf16.msrb.mxu0 %v1798_v34  ;;  %v1842_v27 = vor.u32 %v1950_v20, %v1839_v23  ;;  %v1750_v34 = vor.u32 %v1928_v25, %v1749_v24 }
  0x8b   : > { %1126 = vmatpush.bf16.msrb.mxu1 %v1894_v35  ;;  %v1846_v35 = vor.u32 %v1952_v29, %v1845_v28 }
  0x8d   : > { %980 = vmatpush.bf16.msrb.mxu2 %v1782_v42  ;;  %v519_v42 = vld [vmem:[%s2763_s0 + $0x40] sm:$0xff] }
  0x8e   : > { %1029 = vmatpush.bf16.msrb.mxu3 %v1878_v43  ;;  %1078 = vmatpush.bf16.msrb.mxu0 %v1786_v54  ;;  %v521_v43 = vld [vmem:[%s2763_s0 + $0x50] sm:$0xff]  ;;  %v548_v54 = vpack.c.bf16 %v522_v47, %v520_v46 }
  0x8f   : > { %1127 = vmatpush.bf16.msrb.mxu1 %v1882_v55  ;;  %v547_v52 = vpack.c.bf16 %v521_v43, %v519_v42  ;;  %v2472_v55 = vpack.c.bf16 %v538_v49, %v536_v48 }
  0x90   : > { %892 = vmatmul.bf16.gmra.mxu0 %v2411_v63  ;;  %912 = vmatmul.bf16.gmra.mxu2 %v2413_v0 }
  0x91   : > { %981 = vmatpush.bf16.msrb.mxu2 %v1770_v58  ;;  %941 = vmatmul.bf16.gmra.mxu1 %v2418_v6  ;;  %v539_v58 = vld [vmem:[%s2763_s0 + $0xe0] sm:$0xff] }
  0x92   : > { %1030 = vmatpush.bf16.msrb.mxu3 %v1866_v59  ;;  %1079 = vmatpush.bf16.msrb.mxu0 %v1774_v10  ;;  %v541_v59 = vld [vmem:[%s2763_s0 + $0xf0] sm:$0xff]  ;;  %v550_v10 = vpack.c.bf16 %v526_v61, %v524_v60 }
  0x93   : > { %961 = vmatmul.bf16.gmra.mxu3 %v2420_v7  ;;  %1128 = vmatpush.bf16.msrb.mxu1 %v1870_v11  ;;  %v2500_v5 = vpack.c.bf16 %v541_v59, %v539_v58  ;;  %v2502_v11 = vpack.c.bf16 %v542_v1, %v540_v62 }
  0x95   : > { %982 = vmatpush.bf16.msrb.mxu2 %v1758_v13 }
  0x96   : > { %1031 = vmatpush.bf16.msrb.mxu3 %v1854_v14  ;;  %1080 = vmatpush.bf16.msrb.mxu0 %v1762_v21 }
  0x97   : > { %1129 = vmatpush.bf16.msrb.mxu1 %v1858_v22 }
  0x99   : > { %983 = vmatpush.bf16.msrb.mxu2 %v1746_v26 }
  0x9a   : > { %1032 = vmatpush.bf16.msrb.mxu3 %v1842_v27  ;;  %1081 = vmatpush.bf16.msrb.mxu0 %v1750_v34 }
  0x9b   : > { %1130 = vmatpush.bf16.msrb.mxu1 %v1846_v35 }
  0x9d   : > { %984 = vmatpush.bf16.msrb.mxu2 %v1734_v37 }
  0x9e   : > { %1033 = vmatpush.bf16.msrb.mxu3 %v1830_v38  ;;  %1082 = vmatpush.bf16.msrb.mxu0 %v1738_v50 }
  0x9f   : > { %1131 = vmatpush.bf16.msrb.mxu1 %v1834_v51 }
  0xa0   : > { %897 = vmatmul.bf16.gmra.mxu0 %v547_v52  ;;  %917 = vmatmul.bf16.gmra.mxu2 %v2470_v53 }
  0xa1   : > { %946 = vmatmul.bf16.gmra.mxu1 %v548_v54 }
  0xa3   : > { %966 = vmatmul.bf16.gmra.mxu3 %v2472_v55 }
  0xb0   : > { %902 = vmatmul.bf16.gmra.mxu0 %v549_v2  ;;  %922 = vmatmul.bf16.gmra.mxu2 %v2500_v5 }
  0xb1   : > { %951 = vmatmul.bf16.gmra.mxu1 %v550_v10 }
  0xb3   : > { %971 = vmatmul.bf16.gmra.mxu3 %v2502_v11 }
  0xc0   : > { %985 = vmatmul.bf16.vlgmr.msrb.gmra.mxu2 %v2343_v3  ;;  %1083 = vmatmul.bf16.vlgmr.msrb.gmra.mxu0 %v2343_v3  ;;  %v2518_v3 = vld [vmem:[%s407_s24] sm:$0x7] }
  0xc1   : > { %1132 = vmatmul.bf16.vlgmr.msrb.gmra.mxu1 %v2350_v8 }
  0xc3   : > { %1034 = vmatmul.bf16.vlgmr.msrb.gmra.mxu3 %v2350_v8 }
  0xd0   : > { %990 = vmatmul.bf16.gmra.mxu2 %v2411_v63  ;;  %1088 = vmatmul.bf16.gmra.mxu0 %v2411_v63  ;;  %v2521_v63 = vperm.slane %v2518_v3, 0 }
  0xd1   : > { %1137 = vmatmul.bf16.gmra.mxu1 %v2418_v6 }
  0xd3   : > { %1039 = vmatmul.bf16.gmra.mxu3 %v2418_v6 }
  0xe0   : > { %995 = vmatmul.bf16.gmra.mxu2 %v547_v52  ;;  %1093 = vmatmul.bf16.gmra.mxu0 %v547_v52 }
  0xe1   : > { %1142 = vmatmul.bf16.gmra.mxu1 %v548_v54 }
  0xe3   : > { %1044 = vmatmul.bf16.gmra.mxu3 %v548_v54 }
  0xf0   : > { %1000 = vmatmul.bf16.gmra.mxu2 %v549_v2  ;;  %1098 = vmatmul.bf16.gmra.mxu0 %v549_v2 }
  0xf1   : > { %1147 = vmatmul.bf16.gmra.mxu1 %v550_v10 }
  0xf3   : > { %1049 = vmatmul.bf16.gmra.mxu3 %v550_v10 }
  0xfd   : > { %v888_v8 = vpop.f32.mrf.mxu0 }
  0xfe   : > { %v937_v6 = vpop.f32.mrf.mxu1 }
  0xff   : > { %v938_v12 = vadd.f32 %v937_v6, %v888_v8 }
 0x100   : > { %1005 = vmatmul.bf16.gmra.mxu2 %v2345_v4  ;;  %1103 = vmatmul.bf16.gmra.mxu0 %v2345_v4 }
 0x101   : > { %v1328_v13 = vadd.f32 %v2521_v63, %v938_v12  ;;  %1152 = vmatmul.bf16.gmra.mxu1 %v2352_v9 }
 0x103   : > { %1054 = vmatmul.bf16.gmra.mxu3 %v2352_v9  ;;  %1376 = vst [vmem:[%s2529_s25] sm:$0xff] %v1328_v13  ;;  %v908_v14 = vpop.f32.mrf.mxu2 }
 0x105   : > { %v890_v17 = vpop.f32.mrf.mxu0 }
 0x106   : > { %v957_v15 = vpop.f32.mrf.mxu3  ;;  %v939_v18 = vpop.f32.mrf.mxu1 }
 0x107   : > { %v958_v16 = vadd.f32 %v957_v15, %v908_v14  ;;  %v940_v19 = vadd.f32 %v939_v18, %v890_v17  ;;  %v2580_v18 = vperm.slane %v2518_v3, 1 }
 0x109   : > { %v1352_v4 = vadd.f32 %v2521_v63, %v958_v16  ;;  %v1331_v20 = vadd.f32 %v2521_v63, %v940_v19 }
 0x10b   : > { %1400 = vst [vmem:[%s2529_s25 + $0xc0] sm:$0xff] %v1352_v4  ;;  %v910_v9 = vpop.f32.mrf.mxu2 }
 0x10c   : > { %1379 = vst [vmem:[%s2529_s25 + $0x18] sm:$0xff] %v1331_v20 }
 0x10d   : > { %v893_v23 = vpop.f32.mrf.mxu0 }
 0x10e   : > { %v959_v21 = vpop.f32.mrf.mxu3  ;;  %v942_v24 = vpop.f32.mrf.mxu1 }
 0x10f   : > { %v960_v22 = vadd.f32 %v959_v21, %v910_v9  ;;  %v943_v26 = vadd.f32 %v942_v24, %v893_v23 }
 0x110   : > { %1010 = vmatmul.bf16.gmra.mxu2 %v2413_v0  ;;  %1108 = vmatmul.bf16.gmra.mxu0 %v2413_v0 }
 0x111   : > { %v1355_v25 = vadd.f32 %v2521_v63, %v960_v22  ;;  %v1334_v27 = vadd.f32 %v2521_v63, %v943_v26  ;;  %1157 = vmatmul.bf16.gmra.mxu1 %v2420_v7 }
 0x113   : > { %1403 = vst [vmem:[%s2529_s25 + $0xd8] sm:$0xff] %v1355_v25  ;;  %1059 = vmatmul.bf16.gmra.mxu3 %v2420_v7  ;;  %v913_v28 = vpop.f32.mrf.mxu2 }
 0x114   : > { %1382 = vst [vmem:[%s2529_s25 + $0x30] sm:$0xff] %v1334_v27 }
 0x115   : > { %v895_v31 = vpop.f32.mrf.mxu0 }
 0x116   : > { %v962_v29 = vpop.f32.mrf.mxu3  ;;  %v944_v32 = vpop.f32.mrf.mxu1 }
 0x117   : > { %v963_v30 = vadd.f32 %v962_v29, %v913_v28  ;;  %v945_v34 = vadd.f32 %v944_v32, %v895_v31 }
 0x119   : > { %v1358_v33 = vadd.f32 %v2521_v63, %v963_v30  ;;  %v1337_v0 = vadd.f32 %v2521_v63, %v945_v34 }
 0x11b   : > { %1406 = vst [vmem:[%s2529_s25 + $0xf0] sm:$0xff] %v1358_v33  ;;  %v915_v35 = vpop.f32.mrf.mxu2 }
 0x11c   : > { %1385 = vst [vmem:[%s2529_s25 + $0x48] sm:$0xff] %v1337_v0 }
 0x11d   : > { %v898_v38 = vpop.f32.mrf.mxu0 }
 0x11e   : > { %v964_v36 = vpop.f32.mrf.mxu3  ;;  %v947_v7 = vpop.f32.mrf.mxu1 }
 0x11f   : > { %v965_v37 = vadd.f32 %v964_v36, %v915_v35  ;;  %v948_v40 = vadd.f32 %v947_v7, %v898_v38 }
 0x120   : > { %1015 = vmatmul.bf16.gmra.mxu2 %v2470_v53  ;;  %1113 = vmatmul.bf16.gmra.mxu0 %v2470_v53 }
 0x121   : > { %v1361_v39 = vadd.f32 %v2521_v63, %v965_v37  ;;  %v1340_v41 = vadd.f32 %v2521_v63, %v948_v40  ;;  %1162 = vmatmul.bf16.gmra.mxu1 %v2472_v55 }
 0x123   : > { %1409 = vst [vmem:[%s2529_s25 + $0x108] sm:$0xff] %v1361_v39  ;;  %1064 = vmatmul.bf16.gmra.mxu3 %v2472_v55  ;;  %v918_v42 = vpop.f32.mrf.mxu2 }
 0x124   : > { %1388 = vst [vmem:[%s2529_s25 + $0x60] sm:$0xff] %v1340_v41 }
 0x125   : > { %v900_v45 = vpop.f32.mrf.mxu0 }
 0x126   : > { %v967_v43 = vpop.f32.mrf.mxu3  ;;  %v949_v46 = vpop.f32.mrf.mxu1 }
 0x127   : > { %v968_v44 = vadd.f32 %v967_v43, %v918_v42  ;;  %v950_v48 = vadd.f32 %v949_v46, %v900_v45 }
 0x129   : > { %v1364_v47 = vadd.f32 %v2521_v63, %v968_v44  ;;  %v1343_v49 = vadd.f32 %v2521_v63, %v950_v48 }
 0x12b   : > { %1412 = vst [vmem:[%s2529_s25 + $0x120] sm:$0xff] %v1364_v47  ;;  %v920_v50 = vpop.f32.mrf.mxu2 }
 0x12c   : > { %1391 = vst [vmem:[%s2529_s25 + $0x78] sm:$0xff] %v1343_v49 }
 0x12d   : > { %v903_v53 = vpop.f32.mrf.mxu0 }
 0x12e   : > { %v969_v51 = vpop.f32.mrf.mxu3  ;;  %v952_v54 = vpop.f32.mrf.mxu1 }
 0x12f   : > { %v970_v52 = vadd.f32 %v969_v51, %v920_v50  ;;  %v953_v56 = vadd.f32 %v952_v54, %v903_v53 }
 0x130   : > { %1020 = vmatmul.bf16.gmra.mxu2 %v2500_v5  ;;  %1118 = vmatmul.bf16.gmra.mxu0 %v2500_v5 }
 0x131   : > { %v1367_v55 = vadd.f32 %v2521_v63, %v970_v52  ;;  %v1346_v57 = vadd.f32 %v2521_v63, %v953_v56  ;;  %1167 = vmatmul.bf16.gmra.mxu1 %v2502_v11 }
 0x133   : > { %1415 = vst [vmem:[%s2529_s25 + $0x138] sm:$0xff] %v1367_v55  ;;  %1069 = vmatmul.bf16.gmra.mxu3 %v2502_v11  ;;  %v923_v58 = vpop.f32.mrf.mxu2  ;;  %v2573_v11 = vperm.slane %v2518_v3, 2 }
 0x134   : > { %1394 = vst [vmem:[%s2529_s25 + $0x90] sm:$0xff] %v1346_v57 }
 0x135   : > { %v905_v61 = vpop.f32.mrf.mxu0 }
 0x136   : > { %v972_v59 = vpop.f32.mrf.mxu3  ;;  %v954_v62 = vpop.f32.mrf.mxu1 }
 0x137   : > { %v973_v60 = vadd.f32 %v972_v59, %v923_v58  ;;  %v955_v2 = vadd.f32 %v954_v62, %v905_v61 }
 0x139   : > { %v1370_v1 = vadd.f32 %v2521_v63, %v973_v60  ;;  %v1349_v5 = vadd.f32 %v2521_v63, %v955_v2 }
 0x13b   : > { %1418 = vst [vmem:[%s2529_s25 + $0x150] sm:$0xff] %v1370_v1  ;;  %v925_v10 = vpop.f32.mrf.mxu2 }
 0x13c   : > { %1397 = vst [vmem:[%s2529_s25 + $0xa8] sm:$0xff] %v1349_v5 }
 0x13d   : > { %v1084_v12 = vpop.f32.mrf.mxu0 }
 0x13e   : > { %v974_v8 = vpop.f32.mrf.mxu3  ;;  %v1133_v13 = vpop.f32.mrf.mxu1 }
 0x13f   : > { %v975_v6 = vadd.f32 %v974_v8, %v925_v10  ;;  %v1134_v15 = vadd.f32 %v1133_v13, %v1084_v12 }
 0x141   : > { %v1373_v14 = vadd.f32 %v2521_v63, %v975_v6  ;;  %v1330_v16 = vadd.f32 %v2573_v11, %v1134_v15 }
 0x143   : > { %1421 = vst [vmem:[%s2529_s25 + $0x168] sm:$0xff] %v1373_v14  ;;  %v986_v17 = vpop.f32.mrf.mxu2 }
 0x144   : > { %1378 = vst [vmem:[%s2529_s25 + $0x10] sm:$0xff] %v1330_v16 }
 0x145   : > { %v1086_v20 = vpop.f32.mrf.mxu0 }
 0x146   : > { %v1035_v4 = vpop.f32.mrf.mxu3  ;;  %v1135_v9 = vpop.f32.mrf.mxu1 }
 0x147   : > { %v1036_v19 = vadd.f32 %v1035_v4, %v986_v17  ;;  %v1136_v22 = vadd.f32 %v1135_v9, %v1086_v20 }
 0x149   : > { %v1329_v21 = vadd.f32 %v2580_v18, %v1036_v19  ;;  %v1333_v63 = vadd.f32 %v2573_v11, %v1136_v22 }
 0x14b   : > { %1377 = vst [vmem:[%s2529_s25 + $0x8] sm:$0xff] %v1329_v21  ;;  %v988_v23 = vpop.f32.mrf.mxu2 }
 0x14c   : > { %1381 = vst [vmem:[%s2529_s25 + $0x28] sm:$0xff] %v1333_v63 }
 0x14d   : > { %v1089_v26 = vpop.f32.mrf.mxu0 }
 0x14e   : > { %v1037_v24 = vpop.f32.mrf.mxu3  ;;  %v1138_v3 = vpop.f32.mrf.mxu1 }
 0x14f   : > { %v1038_v25 = vadd.f32 %v1037_v24, %v988_v23  ;;  %v1139_v28 = vadd.f32 %v1138_v3, %v1089_v26 }
 0x151   : > { %v1332_v27 = vadd.f32 %v2580_v18, %v1038_v25  ;;  %v1336_v29 = vadd.f32 %v2573_v11, %v1139_v28 }
 0x153   : > { %1380 = vst [vmem:[%s2529_s25 + $0x20] sm:$0xff] %v1332_v27  ;;  %v991_v30 = vpop.f32.mrf.mxu2 }
 0x154   : > { %1384 = vst [vmem:[%s2529_s25 + $0x40] sm:$0xff] %v1336_v29 }
 0x155   : > { %v1091_v33 = vpop.f32.mrf.mxu0 }
 0x156   : > { %v1040_v31 = vpop.f32.mrf.mxu3  ;;  %v1140_v34 = vpop.f32.mrf.mxu1 }
 0x157   : > { %v1041_v32 = vadd.f32 %v1040_v31, %v991_v30  ;;  %v1141_v35 = vadd.f32 %v1140_v34, %v1091_v33 }
 0x159   : > { %v1335_v0 = vadd.f32 %v2580_v18, %v1041_v32  ;;  %v1339_v36 = vadd.f32 %v2573_v11, %v1141_v35 }
 0x15b   : > { %1383 = vst [vmem:[%s2529_s25 + $0x38] sm:$0xff] %v1335_v0  ;;  %v993_v37 = vpop.f32.mrf.mxu2 }
 0x15c   : > { %1387 = vst [vmem:[%s2529_s25 + $0x58] sm:$0xff] %v1339_v36 }
 0x15d   : > { %v1094_v39 = vpop.f32.mrf.mxu0 }
 0x15e   : > { %v1042_v38 = vpop.f32.mrf.mxu3  ;;  %v1143_v40 = vpop.f32.mrf.mxu1 }
 0x15f   : > { %v1043_v7 = vadd.f32 %v1042_v38, %v993_v37  ;;  %v1144_v42 = vadd.f32 %v1143_v40, %v1094_v39 }
 0x161   : > { %v1338_v41 = vadd.f32 %v2580_v18, %v1043_v7  ;;  %v1342_v43 = vadd.f32 %v2573_v11, %v1144_v42 }
 0x163   : > { %1386 = vst [vmem:[%s2529_s25 + $0x50] sm:$0xff] %v1338_v41  ;;  %v996_v44 = vpop.f32.mrf.mxu2 }
 0x164   : > { %1390 = vst [vmem:[%s2529_s25 + $0x70] sm:$0xff] %v1342_v43 }
 0x165   : > { %v1096_v47 = vpop.f32.mrf.mxu0 }
 0x166   : > { %v1045_v45 = vpop.f32.mrf.mxu3  ;;  %v1145_v48 = vpop.f32.mrf.mxu1 }
 0x167   : > { %v1046_v46 = vadd.f32 %v1045_v45, %v996_v44  ;;  %v1146_v50 = vadd.f32 %v1145_v48, %v1096_v47 }
 0x169   : > { %v1341_v49 = vadd.f32 %v2580_v18, %v1046_v46  ;;  %v1345_v51 = vadd.f32 %v2573_v11, %v1146_v50 }
 0x16b   : > { %1389 = vst [vmem:[%s2529_s25 + $0x68] sm:$0xff] %v1341_v49  ;;  %v998_v52 = vpop.f32.mrf.mxu2 }
 0x16c   : > { %1393 = vst [vmem:[%s2529_s25 + $0x88] sm:$0xff] %v1345_v51 }
 0x16d   : > { %v1099_v55 = vpop.f32.mrf.mxu0 }
 0x16e   : > { %v1047_v53 = vpop.f32.mrf.mxu3  ;;  %v1148_v56 = vpop.f32.mrf.mxu1 }
 0x16f   : > { %v1048_v54 = vadd.f32 %v1047_v53, %v998_v52  ;;  %v1149_v58 = vadd.f32 %v1148_v56, %v1099_v55 }
 0x171   : > { %v1344_v57 = vadd.f32 %v2580_v18, %v1048_v54  ;;  %v1348_v59 = vadd.f32 %v2573_v11, %v1149_v58 }
 0x173   : > { %1392 = vst [vmem:[%s2529_s25 + $0x80] sm:$0xff] %v1344_v57  ;;  %v1001_v60 = vpop.f32.mrf.mxu2 }
 0x174   : > { %1396 = vst [vmem:[%s2529_s25 + $0xa0] sm:$0xff] %v1348_v59 }
 0x175   : > { %v1101_v1 = vpop.f32.mrf.mxu0 }
 0x176   : > { %v1050_v61 = vpop.f32.mrf.mxu3  ;;  %v1150_v2 = vpop.f32.mrf.mxu1 }
 0x177   : > { %v1051_v62 = vadd.f32 %v1050_v61, %v1001_v60  ;;  %v1151_v10 = vadd.f32 %v1150_v2, %v1101_v1 }
 0x179   : > { %v1347_v5 = vadd.f32 %v2580_v18, %v1051_v62  ;;  %v1351_v8 = vadd.f32 %v2573_v11, %v1151_v10 }
 0x17b   : > { %1395 = vst [vmem:[%s2529_s25 + $0x98] sm:$0xff] %v1347_v5  ;;  %v1003_v6 = vpop.f32.mrf.mxu2 }
 0x17c   : > { %1399 = vst [vmem:[%s2529_s25 + $0xb8] sm:$0xff] %v1351_v8 }
 0x17d   : > { %v1104_v14 = vpop.f32.mrf.mxu0 }
 0x17e   : > { %v1052_v12 = vpop.f32.mrf.mxu3  ;;  %v1153_v15 = vpop.f32.mrf.mxu1 }
 0x17f   : > { %v1053_v13 = vadd.f32 %v1052_v12, %v1003_v6  ;;  %v1154_v17 = vadd.f32 %v1153_v15, %v1104_v14 }
 0x181   : > { %v1350_v16 = vadd.f32 %v2580_v18, %v1053_v13  ;;  %v1354_v4 = vadd.f32 %v2573_v11, %v1154_v17  ;;  %v1451_v17 = vld [vmem:[%s2529_s25 + $0x8] sm:$0xff] (%p2125_p6) }
 0x182   : > { %1452 = vst [vmem:[%s2652_s28 + $0x8] sm:$0xff] (%p2125_p6), %v1451_v17 }
 0x183   : > { %1398 = vst [vmem:[%s2529_s25 + $0xb0] sm:$0xff] %v1350_v16  ;;  %v1006_v19 = vpop.f32.mrf.mxu2 }
 0x184   : > { %1402 = vst [vmem:[%s2529_s25 + $0xd0] sm:$0xff] %v1354_v4  ;;  %v1455_v4 = vld [vmem:[%s2529_s25 + $0x18] sm:$0xff] (%p2125_p6) }
 0x185   : > { %v1106_v21 = vpop.f32.mrf.mxu0  ;;  %1456 = vst [vmem:[%s2652_s28 + $0x30] sm:$0xff] (%p2125_p6), %v1455_v4 }
 0x186   : > { %v1055_v20 = vpop.f32.mrf.mxu3  ;;  %v1155_v22 = vpop.f32.mrf.mxu1 }
 0x187   : > { %v1056_v9 = vadd.f32 %v1055_v20, %v1006_v19  ;;  %v1156_v23 = vadd.f32 %v1155_v22, %v1106_v21  ;;  %v1457_v19 = vld [vmem:[%s2529_s25 + $0x20] sm:$0xff] (%p2125_p6)  ;;  %v1459_v20 = vld [vmem:[%s2529_s25 + $0x28] sm:$0xff] (%p2125_p6)  ;;  %v1463_v21 = vld [vmem:[%s2529_s25 + $0x38] sm:$0xff] (%p2125_p6) }
 0x188   : > { %1458 = vst [vmem:[%s2652_s28 + $0x38] sm:$0xff] (%p2125_p6), %v1457_v19  ;;  %v1465_v22 = vld [vmem:[%s2529_s25 + $0x40] sm:$0xff] (%p2125_p6) }
 0x189   : > { %v1353_v63 = vadd.f32 %v2580_v18, %v1056_v9  ;;  %v1357_v24 = vadd.f32 %v2573_v11, %v1156_v23  ;;  %v1461_v9 = vld [vmem:[%s2529_s25 + $0x30] sm:$0xff] (%p2125_p6)  ;;  %1460 = vst [vmem:[%s2652_s28 + $0x40] sm:$0xff] (%p2125_p6), %v1459_v20 }
 0x18a   : > { %1462 = vst [vmem:[%s2652_s28 + $0x60] sm:$0xff] (%p2125_p6), %v1461_v9  ;;  %v1469_v23 = vld [vmem:[%s2529_s25 + $0x50] sm:$0xff] (%p2125_p6) }
 0x18b   : > { %1401 = vst [vmem:[%s2529_s25 + $0xc8] sm:$0xff] %v1353_v63  ;;  %v1008_v25 = vpop.f32.mrf.mxu2  ;;  %v1467_v63 = vld [vmem:[%s2529_s25 + $0x48] sm:$0xff] (%p2125_p6) }
 0x18c   : > { %1405 = vst [vmem:[%s2529_s25 + $0xe8] sm:$0xff] %v1357_v24  ;;  %v1471_v24 = vld [vmem:[%s2529_s25 + $0x58] sm:$0xff] (%p2125_p6) }
 0x18d   : > { %v1109_v27 = vpop.f32.mrf.mxu0  ;;  %1464 = vst [vmem:[%s2652_s28 + $0x68] sm:$0xff] (%p2125_p6), %v1463_v21 }
 0x18e   : > { %v1057_v26 = vpop.f32.mrf.mxu3  ;;  %v1158_v28 = vpop.f32.mrf.mxu1  ;;  %1466 = vst [vmem:[%s2652_s28 + $0x70] sm:$0xff] (%p2125_p6), %v1465_v22 }
 0x18f   : > { %v1058_v3 = vadd.f32 %v1057_v26, %v1008_v25  ;;  %v1159_v30 = vadd.f32 %v1158_v28, %v1109_v27  ;;  %1468 = vst [vmem:[%s2652_s28 + $0x90] sm:$0xff] (%p2125_p6), %v1467_v63  ;;  %v1473_v25 = vld [vmem:[%s2529_s25 + $0x60] sm:$0xff] (%p2125_p6)  ;;  %v1475_v26 = vld [vmem:[%s2529_s25 + $0x68] sm:$0xff] (%p2125_p6)  ;;  %v1479_v27 = vld [vmem:[%s2529_s25 + $0x78] sm:$0xff] (%p2125_p6) }
 0x190   : > { %1470 = vst [vmem:[%s2652_s28 + $0x98] sm:$0xff] (%p2125_p6), %v1469_v23  ;;  %v1481_v28 = vld [vmem:[%s2529_s25 + $0x80] sm:$0xff] (%p2125_p6) }
 0x191   : > { %v1356_v29 = vadd.f32 %v2580_v18, %v1058_v3  ;;  %v1360_v31 = vadd.f32 %v2573_v11, %v1159_v30  ;;  %1472 = vst [vmem:[%s2652_s28 + $0xa0] sm:$0xff] (%p2125_p6), %v1471_v24  ;;  %v1477_v3 = vld [vmem:[%s2529_s25 + $0x70] sm:$0xff] (%p2125_p6) }
 0x192   : > { %1474 = vst [vmem:[%s2652_s28 + $0xc0] sm:$0xff] (%p2125_p6), %v1473_v25  ;;  %v1485_v30 = vld [vmem:[%s2529_s25 + $0x90] sm:$0xff] (%p2125_p6) }
 0x193   : > { %1404 = vst [vmem:[%s2529_s25 + $0xe0] sm:$0xff] %v1356_v29  ;;  %v1011_v32 = vpop.f32.mrf.mxu2  ;;  %v1483_v29 = vld [vmem:[%s2529_s25 + $0x88] sm:$0xff] (%p2125_p6) }
 0x194   : > { %1408 = vst [vmem:[%s2529_s25 + $0x100] sm:$0xff] %v1360_v31  ;;  %v1487_v31 = vld [vmem:[%s2529_s25 + $0x98] sm:$0xff] (%p2125_p6) }
 0x195   : > { %v1111_v0 = vpop.f32.mrf.mxu0  ;;  %1476 = vst [vmem:[%s2652_s28 + $0xc8] sm:$0xff] (%p2125_p6), %v1475_v26 }
 0x196   : > { %v1060_v33 = vpop.f32.mrf.mxu3  ;;  %v1160_v35 = vpop.f32.mrf.mxu1  ;;  %1478 = vst [vmem:[%s2652_s28 + $0xd0] sm:$0xff] (%p2125_p6), %v1477_v3 }
 0x197   : > { %v1061_v34 = vadd.f32 %v1060_v33, %v1011_v32  ;;  %v1161_v37 = vadd.f32 %v1160_v35, %v1111_v0  ;;  %1480 = vst [vmem:[%s2652_s28 + $0xf0] sm:$0xff] (%p2125_p6), %v1479_v27  ;;  %v1489_v32 = vld [vmem:[%s2529_s25 + $0xa0] sm:$0xff] (%p2125_p6)  ;;  %v1491_v33 = vld [vmem:[%s2529_s25 + $0xa8] sm:$0xff] (%p2125_p6)  ;;  %v1495_v0 = vld [vmem:[%s2529_s25 + $0xb8] sm:$0xff] (%p2125_p6) }
 0x198   : > { %1482 = vst [vmem:[%s2652_s28 + $0xf8] sm:$0xff] (%p2125_p6), %v1481_v28  ;;  %v1497_v35 = vld [vmem:[%s2529_s25 + $0xc0] sm:$0xff] (%p2125_p6) }
 0x199   : > { %v1359_v36 = vadd.f32 %v2580_v18, %v1061_v34  ;;  %v1363_v38 = vadd.f32 %v2573_v11, %v1161_v37  ;;  %1484 = vst [vmem:[%s2652_s28 + $0x100] sm:$0xff] (%p2125_p6), %v1483_v29  ;;  %v1493_v34 = vld [vmem:[%s2529_s25 + $0xb0] sm:$0xff] (%p2125_p6) }
 0x19a   : > { %1486 = vst [vmem:[%s2652_s28 + $0x120] sm:$0xff] (%p2125_p6), %v1485_v30  ;;  %v1501_v37 = vld [vmem:[%s2529_s25 + $0xd0] sm:$0xff] (%p2125_p6) }
 0x19b   : > { %1407 = vst [vmem:[%s2529_s25 + $0xf8] sm:$0xff] %v1359_v36  ;;  %v1013_v7 = vpop.f32.mrf.mxu2  ;;  %v1499_v36 = vld [vmem:[%s2529_s25 + $0xc8] sm:$0xff] (%p2125_p6) }
 0x19c   : > { %1411 = vst [vmem:[%s2529_s25 + $0x118] sm:$0xff] %v1363_v38  ;;  %v1503_v38 = vld [vmem:[%s2529_s25 + $0xd8] sm:$0xff] (%p2125_p6) }
 0x19d   : > { %v1114_v41 = vpop.f32.mrf.mxu0  ;;  %1488 = vst [vmem:[%s2652_s28 + $0x128] sm:$0xff] (%p2125_p6), %v1487_v31 }
 0x19e   : > { %v1062_v39 = vpop.f32.mrf.mxu3  ;;  %v1163_v42 = vpop.f32.mrf.mxu1  ;;  %1490 = vst [vmem:[%s2652_s28 + $0x130] sm:$0xff] (%p2125_p6), %v1489_v32 }
 0x19f   : > { %v1063_v40 = vadd.f32 %v1062_v39, %v1013_v7  ;;  %v1164_v44 = vadd.f32 %v1163_v42, %v1114_v41  ;;  %1492 = vst [vmem:[%s2652_s28 + $0x150] sm:$0xff] (%p2125_p6), %v1491_v33  ;;  %v1505_v7 = vld [vmem:[%s2529_s25 + $0xe0] sm:$0xff] (%p2125_p6)  ;;  %v1507_v39 = vld [vmem:[%s2529_s25 + $0xe8] sm:$0xff] (%p2125_p6) }
 0x1a0   : > { %1494 = vst [vmem:[%s2652_s28 + $0x158] sm:$0xff] (%p2125_p6), %v1493_v34  ;;  %v1513_v42 = vld [vmem:[%s2529_s25 + $0x100] sm:$0xff] (%p2125_p6) }
 0x1a1   : > { %v1362_v43 = vadd.f32 %v2580_v18, %v1063_v40  ;;  %v1366_v45 = vadd.f32 %v2573_v11, %v1164_v44  ;;  %1496 = vst [vmem:[%s2652_s28 + $0x160] sm:$0xff] (%p2125_p6), %v1495_v0  ;;  %v1509_v40 = vld [vmem:[%s2529_s25 + $0xf0] sm:$0xff] (%p2125_p6) }
 0x1a2   : > { %1498 = vst [vmem:[%s2652_s28 + $0x180] sm:$0xff] (%p2125_p6), %v1497_v35  ;;  %v1511_v41 = vld [vmem:[%s2529_s25 + $0xf8] sm:$0xff] (%p2125_p6) }
 0x1a3   : > { %1410 = vst [vmem:[%s2529_s25 + $0x110] sm:$0xff] %v1362_v43  ;;  %v1016_v46 = vpop.f32.mrf.mxu2  ;;  %v1515_v43 = vld [vmem:[%s2529_s25 + $0x108] sm:$0xff] (%p2125_p6) }
 0x1a4   : > { %1414 = vst [vmem:[%s2529_s25 + $0x130] sm:$0xff] %v1366_v45  ;;  %v1519_v45 = vld [vmem:[%s2529_s25 + $0x118] sm:$0xff] (%p2125_p6) }
 0x1a5   : > { %v1116_v49 = vpop.f32.mrf.mxu0  ;;  %1500 = vst [vmem:[%s2652_s28 + $0x188] sm:$0xff] (%p2125_p6), %v1499_v36 }
 0x1a6   : > { %v1065_v47 = vpop.f32.mrf.mxu3  ;;  %v1165_v50 = vpop.f32.mrf.mxu1  ;;  %1502 = vst [vmem:[%s2652_s28 + $0x190] sm:$0xff] (%p2125_p6), %v1501_v37 }
 0x1a7   : > { %v1066_v48 = vadd.f32 %v1065_v47, %v1016_v46  ;;  %v1166_v52 = vadd.f32 %v1165_v50, %v1116_v49  ;;  %1504 = vst [vmem:[%s2652_s28 + $0x1b0] sm:$0xff] (%p2125_p6), %v1503_v38  ;;  %v1521_v46 = vld [vmem:[%s2529_s25 + $0x120] sm:$0xff] (%p2125_p6)  ;;  %v1527_v49 = vld [vmem:[%s2529_s25 + $0x138] sm:$0xff] (%p2125_p6) }
 0x1a8   : > { %1506 = vst [vmem:[%s2652_s28 + $0x1b8] sm:$0xff] (%p2125_p6), %v1505_v7 }
 0x1a9   : > { %v1365_v51 = vadd.f32 %v2580_v18, %v1066_v48  ;;  %v1369_v53 = vadd.f32 %v2573_v11, %v1166_v52  ;;  %1508 = vst [vmem:[%s2652_s28 + $0x1c0] sm:$0xff] (%p2125_p6), %v1507_v39  ;;  %v1533_v52 = vld [vmem:[%s2529_s25 + $0x150] sm:$0xff] (%p2125_p6) }
 0x1aa   : > { %1510 = vst [vmem:[%s2652_s28 + $0x1e0] sm:$0xff] (%p2125_p6), %v1509_v40  ;;  %v1517_v44 = vld [vmem:[%s2529_s25 + $0x110] sm:$0xff] (%p2125_p6) }
 0x1ab   : > { %1413 = vst [vmem:[%s2529_s25 + $0x128] sm:$0xff] %v1365_v51  ;;  %v1018_v54 = vpop.f32.mrf.mxu2  ;;  %v1525_v48 = vld [vmem:[%s2529_s25 + $0x130] sm:$0xff] (%p2125_p6) }
 0x1ac   : > { %1417 = vst [vmem:[%s2529_s25 + $0x148] sm:$0xff] %v1369_v53 }
 0x1ad   : > { %v1119_v57 = vpop.f32.mrf.mxu0  ;;  %1512 = vst [vmem:[%s2652_s28 + $0x1e8] sm:$0xff] (%p2125_p6), %v1511_v41 }
 0x1ae   : > { %v1067_v55 = vpop.f32.mrf.mxu3  ;;  %v1168_v58 = vpop.f32.mrf.mxu1  ;;  %1514 = vst [vmem:[%s2652_s28 + $0x1f0] sm:$0xff] (%p2125_p6), %v1513_v42 }
 0x1af   : > { %v1068_v56 = vadd.f32 %v1067_v55, %v1018_v54  ;;  %v1169_v60 = vadd.f32 %v1168_v58, %v1119_v57  ;;  %1516 = vst [vmem:[%s2652_s28 + $0x210] sm:$0xff] (%p2125_p6), %v1515_v43  ;;  %v1539_v55 = vld [vmem:[%s2529_s25 + $0x168] sm:$0xff] (%p2125_p6) }
 0x1b0   : > { %1518 = vst [vmem:[%s2652_s28 + $0x218] sm:$0xff] (%p2125_p6), %v1517_v44 }
 0x1b1   : > { %v1368_v59 = vadd.f32 %v2580_v18, %v1068_v56  ;;  %v1372_v61 = vadd.f32 %v2573_v11, %v1169_v60  ;;  %1520 = vst [vmem:[%s2652_s28 + $0x220] sm:$0xff] (%p2125_p6), %v1519_v45 }
 0x1b2   : > { %v1523_v47 = vld [vmem:[%s2529_s25 + $0x128] sm:$0xff] (%p2125_p6)  ;;  %1522 = vst [vmem:[%s2652_s28 + $0x240] sm:$0xff] (%p2125_p6), %v1521_v46 }
 0x1b3   : > { %1416 = vst [vmem:[%s2529_s25 + $0x140] sm:$0xff] %v1368_v59  ;;  %v1021_v62 = vpop.f32.mrf.mxu2  ;;  %v1531_v51 = vld [vmem:[%s2529_s25 + $0x148] sm:$0xff] (%p2125_p6) }
 0x1b4   : > { %1420 = vst [vmem:[%s2529_s25 + $0x160] sm:$0xff] %v1372_v61 }
 0x1b5   : > { %v1121_v5 = vpop.f32.mrf.mxu0  ;;  %1524 = vst [vmem:[%s2652_s28 + $0x248] sm:$0xff] (%p2125_p6), %v1523_v47 }
 0x1b6   : > { %v1070_v1 = vpop.f32.mrf.mxu3  ;;  %v1170_v10 = vpop.f32.mrf.mxu1  ;;  %1526 = vst [vmem:[%s2652_s28 + $0x250] sm:$0xff] (%p2125_p6), %v1525_v48 }
 0x1b7   : > { %v1071_v2 = vadd.f32 %v1070_v1, %v1021_v62  ;;  %v1171_v6 = vadd.f32 %v1170_v10, %v1121_v5  ;;  %1528 = vst [vmem:[%s2652_s28 + $0x270] sm:$0xff] (%p2125_p6), %v1527_v49 }
 0x1b8   : > { %1532 = vst [vmem:[%s2652_s28 + $0x280] sm:$0xff] (%p2125_p6), %v1531_v51 }
 0x1b9   : > { %v1371_v8 = vadd.f32 %v2580_v18, %v1071_v2  ;;  %v1375_v12 = vadd.f32 %v2573_v11, %v1171_v6  ;;  %v1449_v11 = vld [vmem:[%s2529_s25] sm:$0xff] (%p2125_p6)  ;;  %1534 = vst [vmem:[%s2652_s28 + $0x2a0] sm:$0xff] (%p2125_p6), %v1533_v52 }
 0x1ba   : > { %1450 = vst [vmem:[%s2652_s28] sm:$0xff] (%p2125_p6), %v1449_v11  ;;  %v1529_v50 = vld [vmem:[%s2529_s25 + $0x140] sm:$0xff] (%p2125_p6) }
 0x1bb   : > { %1419 = vst [vmem:[%s2529_s25 + $0x158] sm:$0xff] %v1371_v8  ;;  %v1023_v13 = vpop.f32.mrf.mxu2  ;;  %v1537_v54 = vld [vmem:[%s2529_s25 + $0x160] sm:$0xff] (%p2125_p6) }
 0x1bc   : > { %1423 = vst [vmem:[%s2529_s25 + $0x178] sm:$0xff] %v1375_v12 }
 0x1bd   : > { %1530 = vst [vmem:[%s2652_s28 + $0x278] sm:$0xff] (%p2125_p6), %v1529_v50 }
 0x1be   : > { %v1072_v14 = vpop.f32.mrf.mxu3  ;;  %1538 = vst [vmem:[%s2652_s28 + $0x2b0] sm:$0xff] (%p2125_p6), %v1537_v54 }
 0x1bf   : > { %v1073_v15 = vadd.f32 %v1072_v14, %v1023_v13  ;;  %1430 = sbr.rel (!%p2125_p6) target bundleno = 460 (0x1cc), region = 70  ;;  %1540 = vst [vmem:[%s2652_s28 + $0x2d0] sm:$0xff] (%p2125_p6), %v1539_v55 }
 0x1c1   : > { %v1374_v16 = vadd.f32 %v2580_v18, %v1073_v15  ;;  %v1453_v18 = vld [vmem:[%s2529_s25 + $0x10] sm:$0xff] (%p2125_p6) }
 0x1c2   : > { %1454 = vst [vmem:[%s2652_s28 + $0x10] sm:$0xff] (%p2125_p6), %v1453_v18  ;;  %v1535_v53 = vld [vmem:[%s2529_s25 + $0x158] sm:$0xff] (%p2125_p6) }
 0x1c3   : > { %1422 = vst [vmem:[%s2529_s25 + $0x170] sm:$0xff] %v1374_v16  ;;  %v1543_v57 = vld [vmem:[%s2529_s25 + $0x178] sm:$0xff] (%p2125_p6) }
 0x1c4   : > { %1536 = vst [vmem:[%s2652_s28 + $0x2a8] sm:$0xff] %v1535_v53 }
 0x1c5   : > { %1544 = vst [vmem:[%s2652_s28 + $0x2e0] sm:$0xff] %v1543_v57 }
 0x1ca   : > { %v1541_v56 = vld [vmem:[%s2529_s25 + $0x170] sm:$0xff] }
 0x1cb   : > { %1542 = vst [vmem:[%s2652_s28 + $0x2d8] sm:$0xff] %v1541_v56 }
 0x1cc PF: > { %s13_s16 = sadd.s32 1, %s2068_s16   ;;  %s2768_s12 = smov %s2056_s13 }
 0x1cd   : > { %p10_p12 = scmp.ge.s32.totalorder %s13_s16, 4   ;;  %s2769_s13 = smov %s2130_s22 }
 0x1ce   : > { %s2770_s14 = smov %s2064_s15  ;;  %s2771_s15 = smov %s2773_s17 }
 0x1cf   :  { %12 = sbr.rel (!%p10_p12) target bundleno = 3 (0x3), region = 136 }

// kernel: _lambda_.18
= control target key start
LH: loop header
LB: loop body
LE: loop exit
PB: predicated region body
PF: predicated region fallthrough
CT: control target
= control target key end

     0   :  { %s1209_s1 = inlined_call_operand.vmem [shape: bf16[256,256], index: 1, kind: input, shape index: {}]   ;;  %s1210_s0 = inlined_call_operand.vmem [shape: f32[128,256], index: 0, kind: input, shape index: {}]   ;;  %s1211_s2 = inlined_call_operand.vmem [shape: f32[128,256], index: 2, kind: output, shape index: {}]  }
   0x1   :  { %v708_v0 = vld [vmem:[%s1209_s1 + $0x70] sm:$0xf]  ;;  %v793_v1 = vld [vmem:[%s1209_s1 + $0x74] sm:$0xf0]  ;;  %v792_v5 = vld [vmem:[%s1209_s1 + $0x74] sm:$0xf] }
   0x2   :  { %v772_v2 = vld [vmem:[%s1209_s1 + $0xf0] sm:$0xf]  ;;  %v709_v3 = vor.u32 %v793_v1, %v708_v0  ;;  %v809_v4 = vld [vmem:[%s1209_s1 + $0xf4] sm:$0xf0]  ;;  %v710_v6 = vld [vmem:[%s1209_s1 + $0x78] sm:$0xf0] }
   0x3   :  { %v773_v7 = vor.u32 %v809_v4, %v772_v2  ;;  %v713_v8 = vor.u32 %v792_v5, %v710_v6  ;;  %v808_v9 = vld [vmem:[%s1209_s1 + $0xf4] sm:$0xf]  ;;  %v774_v10 = vld [vmem:[%s1209_s1 + $0xf8] sm:$0xf0]  ;;  %v700_v11 = vld [vmem:[%s1209_s1 + $0x60] sm:$0xf] }
   0x4   :  { %319 = vmatpush.bf16.msra.mxu0 %v709_v3  ;;  %v777_v12 = vor.u32 %v808_v9, %v774_v10  ;;  %v791_v13 = vld [vmem:[%s1209_s1 + $0x64] sm:$0xf0]  ;;  %v764_v14 = vld [vmem:[%s1209_s1 + $0xe0] sm:$0xf]  ;;  %v790_v18 = vld [vmem:[%s1209_s1 + $0x64] sm:$0xf] }
   0x5   :  { %v807_v15 = vld [vmem:[%s1209_s1 + $0xe4] sm:$0xf0]  ;;  %368 = vmatpush.bf16.msra.mxu1 %v773_v7  ;;  %417 = vmatpush.bf16.msra.mxu2 %v713_v8  ;;  %v701_v16 = vor.u32 %v791_v13, %v700_v11  ;;  %v702_v19 = vld [vmem:[%s1209_s1 + $0x68] sm:$0xf0]  ;;  %v806_v20 = vld [vmem:[%s1209_s1 + $0xe4] sm:$0xf] }
   0x6   :  { %v765_v17 = vor.u32 %v807_v15, %v764_v14  ;;  %466 = vmatpush.bf16.msra.mxu3 %v777_v12  ;;  %v705_v21 = vor.u32 %v790_v18, %v702_v19  ;;  %v766_v22 = vld [vmem:[%s1209_s1 + $0xe8] sm:$0xf0]  ;;  %v692_v23 = vld [vmem:[%s1209_s1 + $0x50] sm:$0xf]  ;;  %v789_v24 = vld [vmem:[%s1209_s1 + $0x54] sm:$0xf0] }
   0x7   :  { %v769_v25 = vor.u32 %v806_v20, %v766_v22  ;;  %v756_v26 = vld [vmem:[%s1209_s1 + $0xd0] sm:$0xf]  ;;  %v805_v27 = vld [vmem:[%s1209_s1 + $0xd4] sm:$0xf0]  ;;  %v788_v28 = vld [vmem:[%s1209_s1 + $0x54] sm:$0xf]  ;;  %v693_v29 = vor.u32 %v789_v24, %v692_v23 }
   0x8   :  { %320 = vmatpush.bf16.msra.mxu0 %v701_v16  ;;  %v694_v30 = vld [vmem:[%s1209_s1 + $0x58] sm:$0xf0]  ;;  %v804_v31 = vld [vmem:[%s1209_s1 + $0xd4] sm:$0xf]  ;;  %v757_v33 = vor.u32 %v805_v27, %v756_v26  ;;  %v684_v35 = vld [vmem:[%s1209_s1 + $0x40] sm:$0xf] }
   0x9   :  { %v758_v32 = vld [vmem:[%s1209_s1 + $0xd8] sm:$0xf0]  ;;  %369 = vmatpush.bf16.msra.mxu1 %v765_v17  ;;  %418 = vmatpush.bf16.msra.mxu2 %v705_v21  ;;  %v697_v34 = vor.u32 %v788_v28, %v694_v30  ;;  %v787_v36 = vld [vmem:[%s1209_s1 + $0x44] sm:$0xf0]  ;;  %v748_v37 = vld [vmem:[%s1209_s1 + $0xc0] sm:$0xf] }
   0xa   :  { %467 = vmatpush.bf16.msra.mxu3 %v769_v25  ;;  %v761_v38 = vor.u32 %v804_v31, %v758_v32  ;;  %v803_v39 = vld [vmem:[%s1209_s1 + $0xc4] sm:$0xf0]  ;;  %v786_v40 = vld [vmem:[%s1209_s1 + $0x44] sm:$0xf]  ;;  %v686_v41 = vld [vmem:[%s1209_s1 + $0x48] sm:$0xf0]  ;;  %v685_v44 = vor.u32 %v787_v36, %v684_v35 }
   0xb   :  { %v802_v42 = vld [vmem:[%s1209_s1 + $0xc4] sm:$0xf]  ;;  %v750_v43 = vld [vmem:[%s1209_s1 + $0xc8] sm:$0xf0]  ;;  %v749_v45 = vor.u32 %v803_v39, %v748_v37  ;;  %v689_v46 = vor.u32 %v786_v40, %v686_v41  ;;  %v676_v47 = vld [vmem:[%s1209_s1 + $0x30] sm:$0xf] }
   0xc   :  { %321 = vmatpush.bf16.msra.mxu0 %v693_v29  ;;  %v785_v48 = vld [vmem:[%s1209_s1 + $0x34] sm:$0xf0]  ;;  %v740_v49 = vld [vmem:[%s1209_s1 + $0xb0] sm:$0xf]  ;;  %v753_v50 = vor.u32 %v802_v42, %v750_v43  ;;  %v784_v52 = vld [vmem:[%s1209_s1 + $0x34] sm:$0xf] }
   0xd   :  { %370 = vmatpush.bf16.msra.mxu1 %v757_v33  ;;  %419 = vmatpush.bf16.msra.mxu2 %v697_v34  ;;  %v801_v51 = vld [vmem:[%s1209_s1 + $0xb4] sm:$0xf0]  ;;  %v678_v53 = vld [vmem:[%s1209_s1 + $0x38] sm:$0xf0]  ;;  %v800_v54 = vld [vmem:[%s1209_s1 + $0xb4] sm:$0xf]  ;;  %v677_v56 = vor.u32 %v785_v48, %v676_v47 }
   0xe   :  { %468 = vmatpush.bf16.msra.mxu3 %v761_v38  ;;  %v742_v55 = vld [vmem:[%s1209_s1 + $0xb8] sm:$0xf0]  ;;  %v741_v57 = vor.u32 %v801_v51, %v740_v49  ;;  %v681_v58 = vor.u32 %v784_v52, %v678_v53  ;;  %v668_v59 = vld [vmem:[%s1209_s1 + $0x20] sm:$0xf]  ;;  %v783_v60 = vld [vmem:[%s1209_s1 + $0x24] sm:$0xf0] }
   0xf   :  { %v732_v61 = vld [vmem:[%s1209_s1 + $0xa0] sm:$0xf]  ;;  %v745_v62 = vor.u32 %v800_v54, %v742_v55  ;;  %v799_v63 = vld [vmem:[%s1209_s1 + $0xa4] sm:$0xf0]  ;;  %v782_v0 = vld [vmem:[%s1209_s1 + $0x24] sm:$0xf]  ;;  %v669_v4 = vor.u32 %v783_v60, %v668_v59 }
  0x10   :  { %322 = vmatpush.bf16.msra.mxu0 %v685_v44  ;;  %v670_v1 = vld [vmem:[%s1209_s1 + $0x28] sm:$0xf0]  ;;  %v798_v2 = vld [vmem:[%s1209_s1 + $0xa4] sm:$0xf]  ;;  %v733_v5 = vor.u32 %v799_v63, %v732_v61  ;;  %v660_v7 = vld [vmem:[%s1209_s1 + $0x10] sm:$0xf] }
  0x11   :  { %371 = vmatpush.bf16.msra.mxu1 %v749_v45  ;;  %420 = vmatpush.bf16.msra.mxu2 %v689_v46  ;;  %v734_v3 = vld [vmem:[%s1209_s1 + $0xa8] sm:$0xf0]  ;;  %v673_v6 = vor.u32 %v782_v0, %v670_v1  ;;  %v781_v8 = vld [vmem:[%s1209_s1 + $0x14] sm:$0xf0]  ;;  %v724_v9 = vld [vmem:[%s1209_s1 + $0x90] sm:$0xf] }
  0x12   :  { %469 = vmatpush.bf16.msra.mxu3 %v753_v50  ;;  %v737_v10 = vor.u32 %v798_v2, %v734_v3  ;;  %v797_v11 = vld [vmem:[%s1209_s1 + $0x94] sm:$0xf0]  ;;  %v780_v12 = vld [vmem:[%s1209_s1 + $0x14] sm:$0xf]  ;;  %v662_v13 = vld [vmem:[%s1209_s1 + $0x18] sm:$0xf0]  ;;  %v661_v16 = vor.u32 %v781_v8, %v660_v7 }
  0x13   :  { %v796_v14 = vld [vmem:[%s1209_s1 + $0x94] sm:$0xf]  ;;  %v726_v15 = vld [vmem:[%s1209_s1 + $0x98] sm:$0xf0]  ;;  %v725_v17 = vor.u32 %v797_v11, %v724_v9  ;;  %v665_v18 = vor.u32 %v780_v12, %v662_v13  ;;  %v652_v19 = vld [vmem:[%s1209_s1] sm:$0xf] }
  0x14   :  { %323 = vmatpush.bf16.msra.mxu0 %v677_v56  ;;  %v779_v20 = vld [vmem:[%s1209_s1 + $0x4] sm:$0xf0]  ;;  %v716_v21 = vld [vmem:[%s1209_s1 + $0x80] sm:$0xf]  ;;  %v729_v22 = vor.u32 %v796_v14, %v726_v15  ;;  %v778_v24 = vld [vmem:[%s1209_s1 + $0x4] sm:$0xf] }
  0x15   :  { %372 = vmatpush.bf16.msra.mxu1 %v741_v57  ;;  %421 = vmatpush.bf16.msra.mxu2 %v681_v58  ;;  %v795_v23 = vld [vmem:[%s1209_s1 + $0x84] sm:$0xf0]  ;;  %v654_v25 = vld [vmem:[%s1209_s1 + $0x8] sm:$0xf0]  ;;  %v794_v26 = vld [vmem:[%s1209_s1 + $0x84] sm:$0xf]  ;;  %v653_v28 = vor.u32 %v779_v20, %v652_v19 }
  0x16   :  { %470 = vmatpush.bf16.msra.mxu3 %v745_v62  ;;  %v718_v27 = vld [vmem:[%s1209_s1 + $0x88] sm:$0xf0]  ;;  %v79_v29 = vld [vmem:[%s1210_s0] sm:$0xff]  ;;  %v81_v30 = vld [vmem:[%s1210_s0 + $0x10] sm:$0xff]  ;;  %v717_v31 = vor.u32 %v795_v23, %v716_v21  ;;  %v657_v32 = vor.u32 %v778_v24, %v654_v25 }
  0x17   :  { %v80_v33 = vld [vmem:[%s1210_s0 + $0x8] sm:$0xff]  ;;  %v82_v34 = vld [vmem:[%s1210_s0 + $0x18] sm:$0xff]  ;;  %v721_v35 = vor.u32 %v794_v26, %v718_v27  ;;  %v111_v36 = vpack.c.bf16 %v81_v30, %v79_v29  ;;  %v83_v38 = vld [vmem:[%s1210_s0 + $0x20] sm:$0xff] }
  0x18   :  { %324 = vmatpush.bf16.msra.mxu0 %v669_v4  ;;  %v112_v37 = vpack.c.bf16 %v82_v34, %v80_v33  ;;  %v85_v39 = vld [vmem:[%s1210_s0 + $0x30] sm:$0xff]  ;;  %v84_v40 = vld [vmem:[%s1210_s0 + $0x28] sm:$0xff]  ;;  %v86_v41 = vld [vmem:[%s1210_s0 + $0x38] sm:$0xff] }
  0x19   :  { %373 = vmatpush.bf16.msra.mxu1 %v733_v5  ;;  %422 = vmatpush.bf16.msra.mxu2 %v673_v6  ;;  %v113_v42 = vpack.c.bf16 %v85_v39, %v83_v38  ;;  %v114_v43 = vpack.c.bf16 %v86_v41, %v84_v40  ;;  %v87_v44 = vld [vmem:[%s1210_s0 + $0x40] sm:$0xff]  ;;  %v89_v45 = vld [vmem:[%s1210_s0 + $0x50] sm:$0xff]  ;;  %v88_v46 = vld [vmem:[%s1210_s0 + $0x48] sm:$0xff] }
  0x1a   :  { %471 = vmatpush.bf16.msra.mxu3 %v737_v10  ;;  %v90_v47 = vld [vmem:[%s1210_s0 + $0x58] sm:$0xff]  ;;  %v115_v48 = vpack.c.bf16 %v89_v45, %v87_v44  ;;  %v91_v50 = vld [vmem:[%s1210_s0 + $0x60] sm:$0xff]  ;;  %v93_v51 = vld [vmem:[%s1210_s0 + $0x70] sm:$0xff] }
  0x1b   :  { %v116_v49 = vpack.c.bf16 %v90_v47, %v88_v46  ;;  %v92_v52 = vld [vmem:[%s1210_s0 + $0x68] sm:$0xff]  ;;  %v94_v53 = vld [vmem:[%s1210_s0 + $0x78] sm:$0xff]  ;;  %v117_v54 = vpack.c.bf16 %v93_v51, %v91_v50  ;;  %v95_v56 = vld [vmem:[%s1210_s0 + $0x80] sm:$0xff] }
  0x1c   :  { %325 = vmatpush.bf16.msra.mxu0 %v661_v16  ;;  %v118_v55 = vpack.c.bf16 %v94_v53, %v92_v52  ;;  %v97_v57 = vld [vmem:[%s1210_s0 + $0x90] sm:$0xff]  ;;  %v96_v58 = vld [vmem:[%s1210_s0 + $0x88] sm:$0xff]  ;;  %v98_v59 = vld [vmem:[%s1210_s0 + $0x98] sm:$0xff] }
  0x1d   :  { %374 = vmatpush.bf16.msra.mxu1 %v725_v17  ;;  %423 = vmatpush.bf16.msra.mxu2 %v665_v18  ;;  %v119_v60 = vpack.c.bf16 %v97_v57, %v95_v56  ;;  %v120_v61 = vpack.c.bf16 %v98_v59, %v96_v58  ;;  %v99_v62 = vld [vmem:[%s1210_s0 + $0xa0] sm:$0xff]  ;;  %v101_v63 = vld [vmem:[%s1210_s0 + $0xb0] sm:$0xff]  ;;  %v100_v0 = vld [vmem:[%s1210_s0 + $0xa8] sm:$0xff] }
  0x1e   :  { %472 = vmatpush.bf16.msra.mxu3 %v729_v22  ;;  %v102_v1 = vld [vmem:[%s1210_s0 + $0xb8] sm:$0xff]  ;;  %v121_v2 = vpack.c.bf16 %v101_v63, %v99_v62  ;;  %v103_v4 = vld [vmem:[%s1210_s0 + $0xc0] sm:$0xff]  ;;  %v105_v5 = vld [vmem:[%s1210_s0 + $0xd0] sm:$0xff] }
  0x1f   :  { %v122_v3 = vpack.c.bf16 %v102_v1, %v100_v0  ;;  %v104_v6 = vld [vmem:[%s1210_s0 + $0xc8] sm:$0xff]  ;;  %v106_v7 = vld [vmem:[%s1210_s0 + $0xd8] sm:$0xff]  ;;  %v123_v8 = vpack.c.bf16 %v105_v5, %v103_v4  ;;  %v107_v10 = vld [vmem:[%s1210_s0 + $0xe0] sm:$0xff] }
  0x20   :  { %326 = vmatpush.bf16.msra.mxu0 %v653_v28  ;;  %v124_v9 = vpack.c.bf16 %v106_v7, %v104_v6  ;;  %v109_v11 = vld [vmem:[%s1210_s0 + $0xf0] sm:$0xff]  ;;  %v108_v12 = vld [vmem:[%s1210_s0 + $0xe8] sm:$0xff]  ;;  %v110_v13 = vld [vmem:[%s1210_s0 + $0xf8] sm:$0xff] }
  0x21   :  { %375 = vmatpush.bf16.msra.mxu1 %v717_v31  ;;  %424 = vmatpush.bf16.msra.mxu2 %v657_v32  ;;  %v125_v14 = vpack.c.bf16 %v109_v11, %v107_v10  ;;  %v126_v15 = vpack.c.bf16 %v110_v13, %v108_v12 }
  0x22   :  { %473 = vmatpush.bf16.msra.mxu3 %v721_v35 }
  0x23   :  { %327 = vmatmul.bf16.vlgmr.msra.gmra.mxu0 %v111_v36 }
  0x24   :  { %376 = vmatmul.bf16.vlgmr.msra.gmra.mxu1 %v112_v37  ;;  %425 = vmatmul.bf16.vlgmr.msra.gmra.mxu2 %v111_v36 }
  0x25   :  { %474 = vmatmul.bf16.vlgmr.msra.gmra.mxu3 %v112_v37 }
  0x33   :  { %332 = vmatmul.bf16.gmra.mxu0 %v113_v42 }
  0x34   :  { %381 = vmatmul.bf16.gmra.mxu1 %v114_v43  ;;  %430 = vmatmul.bf16.gmra.mxu2 %v113_v42 }
  0x35   :  { %479 = vmatmul.bf16.gmra.mxu3 %v114_v43 }
  0x43   :  { %337 = vmatmul.bf16.gmra.mxu0 %v115_v48 }
  0x44   :  { %386 = vmatmul.bf16.gmra.mxu1 %v116_v49  ;;  %435 = vmatmul.bf16.gmra.mxu2 %v115_v48 }
  0x45   :  { %484 = vmatmul.bf16.gmra.mxu3 %v116_v49 }
  0x53   :  { %342 = vmatmul.bf16.gmra.mxu0 %v117_v54 }
  0x54   :  { %391 = vmatmul.bf16.gmra.mxu1 %v118_v55  ;;  %440 = vmatmul.bf16.gmra.mxu2 %v117_v54 }
  0x55   :  { %489 = vmatmul.bf16.gmra.mxu3 %v118_v55 }
  0x63   :  { %347 = vmatmul.bf16.gmra.mxu0 %v119_v60 }
  0x64   :  { %396 = vmatmul.bf16.gmra.mxu1 %v120_v61  ;;  %445 = vmatmul.bf16.gmra.mxu2 %v119_v60 }
  0x65   :  { %494 = vmatmul.bf16.gmra.mxu3 %v120_v61 }
  0x73   :  { %352 = vmatmul.bf16.gmra.mxu0 %v121_v2 }
  0x74   :  { %401 = vmatmul.bf16.gmra.mxu1 %v122_v3  ;;  %450 = vmatmul.bf16.gmra.mxu2 %v121_v2 }
  0x75   :  { %499 = vmatmul.bf16.gmra.mxu3 %v122_v3 }
  0x83   :  { %357 = vmatmul.bf16.gmra.mxu0 %v123_v8 }
  0x84   :  { %406 = vmatmul.bf16.gmra.mxu1 %v124_v9  ;;  %455 = vmatmul.bf16.gmra.mxu2 %v123_v8 }
  0x85   :  { %504 = vmatmul.bf16.gmra.mxu3 %v124_v9 }
  0x93   :  { %362 = vmatmul.bf16.gmra.mxu0 %v125_v14 }
  0x94   :  { %411 = vmatmul.bf16.gmra.mxu1 %v126_v15  ;;  %460 = vmatmul.bf16.gmra.mxu2 %v125_v14 }
  0x95   :  { %509 = vmatmul.bf16.gmra.mxu3 %v126_v15 }
  0xa0   :  { %v328_v16 = vpop.f32.mrf.mxu0 }
  0xa1   :  { %v377_v17 = vpop.f32.mrf.mxu1 }
  0xa2   :  { %v378_v18 = vadd.f32 %v377_v17, %v328_v16 }
  0xa4   :  { %614 = vst [vmem:[%s1211_s2] sm:$0xff] %v378_v18 }
  0xa7   :  { %v426_v19 = vpop.f32.mrf.mxu2 }
  0xa8   :  { %v475_v20 = vpop.f32.mrf.mxu3  ;;  %v330_v21 = vpop.f32.mrf.mxu0 }
  0xa9   :  { %v476_v22 = vadd.f32 %v475_v20, %v426_v19  ;;  %v379_v23 = vpop.f32.mrf.mxu1 }
  0xaa   :  { %v380_v24 = vadd.f32 %v379_v23, %v330_v21 }
  0xab   :  { %615 = vst [vmem:[%s1211_s2 + $0x8] sm:$0xff] %v476_v22 }
  0xac   :  { %616 = vst [vmem:[%s1211_s2 + $0x10] sm:$0xff] %v380_v24 }
  0xaf   :  { %v428_v25 = vpop.f32.mrf.mxu2 }
  0xb0   :  { %v477_v26 = vpop.f32.mrf.mxu3  ;;  %v333_v27 = vpop.f32.mrf.mxu0 }
  0xb1   :  { %v478_v28 = vadd.f32 %v477_v26, %v428_v25  ;;  %v382_v29 = vpop.f32.mrf.mxu1 }
  0xb2   :  { %v383_v30 = vadd.f32 %v382_v29, %v333_v27 }
  0xb3   :  { %617 = vst [vmem:[%s1211_s2 + $0x18] sm:$0xff] %v478_v28 }
  0xb4   :  { %618 = vst [vmem:[%s1211_s2 + $0x20] sm:$0xff] %v383_v30 }
  0xb7   :  { %v431_v31 = vpop.f32.mrf.mxu2 }
  0xb8   :  { %v480_v32 = vpop.f32.mrf.mxu3  ;;  %v335_v33 = vpop.f32.mrf.mxu0 }
  0xb9   :  { %v481_v34 = vadd.f32 %v480_v32, %v431_v31  ;;  %v384_v35 = vpop.f32.mrf.mxu1 }
  0xba   :  { %v385_v36 = vadd.f32 %v384_v35, %v335_v33 }
  0xbb   :  { %619 = vst [vmem:[%s1211_s2 + $0x28] sm:$0xff] %v481_v34 }
  0xbc   :  { %620 = vst [vmem:[%s1211_s2 + $0x30] sm:$0xff] %v385_v36 }
  0xbf   :  { %v433_v37 = vpop.f32.mrf.mxu2 }
  0xc0   :  { %v482_v38 = vpop.f32.mrf.mxu3  ;;  %v338_v39 = vpop.f32.mrf.mxu0 }
  0xc1   :  { %v483_v40 = vadd.f32 %v482_v38, %v433_v37  ;;  %v387_v41 = vpop.f32.mrf.mxu1 }
  0xc2   :  { %v388_v42 = vadd.f32 %v387_v41, %v338_v39 }
  0xc3   :  { %621 = vst [vmem:[%s1211_s2 + $0x38] sm:$0xff] %v483_v40 }
  0xc4   :  { %622 = vst [vmem:[%s1211_s2 + $0x40] sm:$0xff] %v388_v42 }
  0xc7   :  { %v436_v43 = vpop.f32.mrf.mxu2 }
  0xc8   :  { %v485_v44 = vpop.f32.mrf.mxu3  ;;  %v340_v45 = vpop.f32.mrf.mxu0 }
  0xc9   :  { %v486_v46 = vadd.f32 %v485_v44, %v436_v43  ;;  %v389_v47 = vpop.f32.mrf.mxu1 }
  0xca   :  { %v390_v48 = vadd.f32 %v389_v47, %v340_v45 }
  0xcb   :  { %623 = vst [vmem:[%s1211_s2 + $0x48] sm:$0xff] %v486_v46 }
  0xcc   :  { %624 = vst [vmem:[%s1211_s2 + $0x50] sm:$0xff] %v390_v48 }
  0xcf   :  { %v438_v49 = vpop.f32.mrf.mxu2 }
  0xd0   :  { %v487_v50 = vpop.f32.mrf.mxu3  ;;  %v343_v51 = vpop.f32.mrf.mxu0 }
  0xd1   :  { %v488_v52 = vadd.f32 %v487_v50, %v438_v49  ;;  %v392_v53 = vpop.f32.mrf.mxu1 }
  0xd2   :  { %v393_v54 = vadd.f32 %v392_v53, %v343_v51 }
  0xd3   :  { %625 = vst [vmem:[%s1211_s2 + $0x58] sm:$0xff] %v488_v52 }
  0xd4   :  { %626 = vst [vmem:[%s1211_s2 + $0x60] sm:$0xff] %v393_v54 }
  0xd7   :  { %v441_v55 = vpop.f32.mrf.mxu2 }
  0xd8   :  { %v490_v56 = vpop.f32.mrf.mxu3  ;;  %v345_v57 = vpop.f32.mrf.mxu0 }
  0xd9   :  { %v491_v58 = vadd.f32 %v490_v56, %v441_v55  ;;  %v394_v59 = vpop.f32.mrf.mxu1 }
  0xda   :  { %v395_v60 = vadd.f32 %v394_v59, %v345_v57 }
  0xdb   :  { %627 = vst [vmem:[%s1211_s2 + $0x68] sm:$0xff] %v491_v58 }
  0xdc   :  { %628 = vst [vmem:[%s1211_s2 + $0x70] sm:$0xff] %v395_v60 }
  0xdf   :  { %v443_v61 = vpop.f32.mrf.mxu2 }
  0xe0   :  { %v492_v62 = vpop.f32.mrf.mxu3  ;;  %v348_v63 = vpop.f32.mrf.mxu0 }
  0xe1   :  { %v493_v0 = vadd.f32 %v492_v62, %v443_v61  ;;  %v397_v1 = vpop.f32.mrf.mxu1 }
  0xe2   :  { %v398_v2 = vadd.f32 %v397_v1, %v348_v63 }
  0xe3   :  { %629 = vst [vmem:[%s1211_s2 + $0x78] sm:$0xff] %v493_v0 }
  0xe4   :  { %630 = vst [vmem:[%s1211_s2 + $0x80] sm:$0xff] %v398_v2 }
  0xe7   :  { %v446_v3 = vpop.f32.mrf.mxu2 }
  0xe8   :  { %v495_v4 = vpop.f32.mrf.mxu3  ;;  %v350_v5 = vpop.f32.mrf.mxu0 }
  0xe9   :  { %v496_v6 = vadd.f32 %v495_v4, %v446_v3  ;;  %v399_v7 = vpop.f32.mrf.mxu1 }
  0xea   :  { %v400_v8 = vadd.f32 %v399_v7, %v350_v5 }
  0xeb   :  { %631 = vst [vmem:[%s1211_s2 + $0x88] sm:$0xff] %v496_v6 }
  0xec   :  { %632 = vst [vmem:[%s1211_s2 + $0x90] sm:$0xff] %v400_v8 }
  0xef   :  { %v448_v9 = vpop.f32.mrf.mxu2 }
  0xf0   :  { %v497_v10 = vpop.f32.mrf.mxu3  ;;  %v353_v11 = vpop.f32.mrf.mxu0 }
  0xf1   :  { %v498_v12 = vadd.f32 %v497_v10, %v448_v9  ;;  %v402_v13 = vpop.f32.mrf.mxu1 }
  0xf2   :  { %v403_v14 = vadd.f32 %v402_v13, %v353_v11 }
  0xf3   :  { %633 = vst [vmem:[%s1211_s2 + $0x98] sm:$0xff] %v498_v12 }
  0xf4   :  { %634 = vst [vmem:[%s1211_s2 + $0xa0] sm:$0xff] %v403_v14 }
  0xf7   :  { %v451_v15 = vpop.f32.mrf.mxu2 }
  0xf8   :  { %v500_v16 = vpop.f32.mrf.mxu3  ;;  %v355_v17 = vpop.f32.mrf.mxu0 }
  0xf9   :  { %v501_v18 = vadd.f32 %v500_v16, %v451_v15  ;;  %v404_v19 = vpop.f32.mrf.mxu1 }
  0xfa   :  { %v405_v20 = vadd.f32 %v404_v19, %v355_v17 }
  0xfb   :  { %635 = vst [vmem:[%s1211_s2 + $0xa8] sm:$0xff] %v501_v18 }
  0xfc   :  { %636 = vst [vmem:[%s1211_s2 + $0xb0] sm:$0xff] %v405_v20 }
  0xff   :  { %v453_v21 = vpop.f32.mrf.mxu2 }
 0x100   :  { %v502_v22 = vpop.f32.mrf.mxu3  ;;  %v358_v23 = vpop.f32.mrf.mxu0 }
 0x101   :  { %v503_v24 = vadd.f32 %v502_v22, %v453_v21  ;;  %v407_v25 = vpop.f32.mrf.mxu1 }
 0x102   :  { %v408_v26 = vadd.f32 %v407_v25, %v358_v23 }
 0x103   :  { %637 = vst [vmem:[%s1211_s2 + $0xb8] sm:$0xff] %v503_v24 }
 0x104   :  { %638 = vst [vmem:[%s1211_s2 + $0xc0] sm:$0xff] %v408_v26 }
 0x107   :  { %v456_v27 = vpop.f32.mrf.mxu2 }
 0x108   :  { %v505_v28 = vpop.f32.mrf.mxu3  ;;  %v360_v29 = vpop.f32.mrf.mxu0 }
 0x109   :  { %v506_v30 = vadd.f32 %v505_v28, %v456_v27  ;;  %v409_v31 = vpop.f32.mrf.mxu1 }
 0x10a   :  { %v410_v32 = vadd.f32 %v409_v31, %v360_v29 }
 0x10b   :  { %639 = vst [vmem:[%s1211_s2 + $0xc8] sm:$0xff] %v506_v30 }
 0x10c   :  { %640 = vst [vmem:[%s1211_s2 + $0xd0] sm:$0xff] %v410_v32 }
 0x10f   :  { %v458_v33 = vpop.f32.mrf.mxu2 }
 0x110   :  { %v507_v34 = vpop.f32.mrf.mxu3  ;;  %v363_v35 = vpop.f32.mrf.mxu0 }
 0x111   :  { %v508_v36 = vadd.f32 %v507_v34, %v458_v33  ;;  %v412_v37 = vpop.f32.mrf.mxu1 }
 0x112   :  { %v413_v38 = vadd.f32 %v412_v37, %v363_v35 }
 0x113   :  { %641 = vst [vmem:[%s1211_s2 + $0xd8] sm:$0xff] %v508_v36 }
 0x114   :  { %642 = vst [vmem:[%s1211_s2 + $0xe0] sm:$0xff] %v413_v38 }
 0x117   :  { %v461_v39 = vpop.f32.mrf.mxu2 }
 0x118   :  { %v510_v40 = vpop.f32.mrf.mxu3  ;;  %v365_v41 = vpop.f32.mrf.mxu0 }
 0x119   :  { %v511_v42 = vadd.f32 %v510_v40, %v461_v39  ;;  %v414_v43 = vpop.f32.mrf.mxu1 }
 0x11a   :  { %v415_v44 = vadd.f32 %v414_v43, %v365_v41 }
 0x11b   :  { %643 = vst [vmem:[%s1211_s2 + $0xe8] sm:$0xff] %v511_v42 }
 0x11c   :  { %644 = vst [vmem:[%s1211_s2 + $0xf0] sm:$0xff] %v415_v44 }
 0x11f   :  { %v463_v45 = vpop.f32.mrf.mxu2 }
 0x120   :  { %v512_v46 = vpop.f32.mrf.mxu3 }
 0x121   :  { %v513_v47 = vadd.f32 %v512_v46, %v463_v45 }
 0x123   :  { %645 = vst [vmem:[%s1211_s2 + $0xf8] sm:$0xff] %v513_v47 }

// kernel: _lambda_.17
= control target key start
LH: loop header
LB: loop body
LE: loop exit
PB: predicated region body
PF: predicated region fallthrough
CT: control target
= control target key end

     0   :  { %s3954_s0 = inlined_call_operand.vmem [shape: f32[128,768], index: 0, kind: input, shape index: {}, may-alias: {0,1,2}]   ;;  %s3955_s1 = inlined_call_operand.vmem [shape: f32[128,768], index: 1, kind: input, shape index: {}, may-alias: {0,1,2}]   ;;  %s3956_s2 = inlined_call_operand.vmem [shape: f32[128,768], index: 2, kind: input, shape index: {}, may-alias: {0,1,2}]   ;;  %s3957_s3 = inlined_call_operand.vmem [shape: f32[128,128], index: 3, kind: input, shape index: {}, may-alias: {3,5}]   ;;  %s3958_s4 = inlined_call_operand.vmem [shape: f32[128,128], index: 4, kind: input, shape index: {}, may-alias: {4,6}]   ;;  %s3959_s5 = inlined_call_operand.vmem [shape: f32[128,128], index: 5, kind: input, shape index: {}, may-alias: {3,5}]   ;;  %s3960_s6 = inlined_call_operand.vmem [shape: f32[128,128], index: 6, kind: input, shape index: {}, may-alias: {4,6}]   ;;  %s3961_s7 = inlined_call_operand.vmem [shape: f32[128,256], index: 7, kind: output, shape index: {}]  }
   0x1   :  { %3962 = sst [smem:[#allocation10_spill]] %s3954_s0 }
   0x2   :  { %3963 = sst [smem:[#allocation11_spill]] %s3961_s7 }
   0x3   :  { %s2887_s24 = smov 0   ;;  %s2889_s25 = smov 0  }
   0x4   :  { %s2891_s26 = smov 0   ;;  %s2893_s27 = smov 0  }
   0x5   :  { %s2895_s28 = smov 0   ;;  %s2897_s29 = smov 0  }
   0x6   :  { %s2899_s30 = smov 0   ;;  %s2901_s8 = smov 0  }
   0x7   :  { %s2903_s9 = smov 0  }
   0x8 LB: > { %s2525_s10 = sadd.s32 4294967295, %s2841_s9   ;;  %s36_s11 = sadd.s32 1, %s2837_s8  ;;  %s2841_s9 = sphi %s2903_s9, %s17_s9   ;;  %s2837_s8 = sphi %s2901_s8, %s3979_s8   ;;  %s2833_s30 = sphi %s2899_s30, %s3978_s30   ;;  %s2829_s29 = sphi %s2897_s29, %s3977_s29   ;;  %s2825_s28 = sphi %s2895_s28, %s3976_s28   ;;  %s2821_s27 = sphi %s2893_s27, %s3975_s27   ;;  %s2817_s26 = sphi %s2891_s26, %s3974_s26   ;;  %s2813_s25 = sphi %s2889_s25, %s3973_s25   ;;  %s2809_s24 = sphi %s2887_s24, %s3972_s24  }
   0x9   : > { %p38_p0 = scmp.ge.s32.totalorder %s36_s11, 2  ;;  %s45_s12 = sadd.s32 1, %s2829_s29 }
   0xa   : > { %p52_p1 = scmp.ne.s32.totalorder %s2829_s29, %s2825_s28  ;;  %p53_p2 = scmp.eq.s32.totalorder %s2841_s9, 0 }
   0xb   : > { %s3981_s11 = smov (%p38_p0, %s36_s11), 0  ;;  %s68_s14 = sadd.s32 2, %s2837_s8 }
   0xc   : > { %p2945_p3 = por %p53_p2, %p52_p1  ;;  %s41_s15 = ssub.s32 %s2837_s8, %s3981_s11 }
   0xd   : > { %s69_s16 = sadd.s32 2, %s3981_s11  ;;  %p43_p4 = scmp.eq.s32.totalorder %s41_s15, 0 }
   0xe   : > { %s71_s17 = ssub.s32 %s68_s14, %s69_s16  ;;  %s75_s18 = sadd.s32 1, %s2821_s27 }
   0xf   : > { %p73_p5 = scmp.eq.s32.totalorder %s71_s17, 0  ;;  %p82_p6 = scmp.ne.s32.totalorder %s2821_s27, %s2817_s26 }
  0x10   : > { %s2955_s19 = scalar_select %p43_p4, %s2829_s29, %s45_s12  }
  0x11   : > { %s2958_s20 = scalar_select %p73_p5, %s2821_s27, %s75_s18  }
  0x12   : > { %s98_s21 = sadd.s32 4, %s2837_s8  ;;  %s99_s22 = sadd.s32 4, %s3981_s11 }
  0x13   : > { %s105_s23 = sadd.s32 1, %s2813_s25  ;;  %p2967_p7 = por %p82_p6, %p53_p2 }
  0x14   : > { %s101_s15 = ssub.s32 %s98_s21, %s99_s22  ;;  %p112_p9 = scmp.ne.s32.totalorder %s2813_s25, %s2809_s24 }
  0x15   : > { %p103_p8 = scmp.eq.s32.totalorder %s101_s15, 0  ;;  %p248_p10 = scmp.eq.s32.totalorder %s2525_s10, 1 }
  0x16   : > { %p2978_p11 = por %p112_p9, %p53_p2  ;;  %p2532_p13 = scmp.ge.s32.totalorder %s2841_s9, 2 }
  0x17   : > { %s2974_s14 = scalar_select %p103_p8, %s2813_s25, %s105_s23  }
  0x18   : > { %p2985_p12 = por %p248_p10, %p52_p1  ;;  %306 = sbr.rel (%p2532_p13) target bundleno = 95 (0x5f), region = 32 }
  0x1d   : > { %309 = sbr.rel (!%p2945_p3) target bundleno = 55 (0x37), region = 36  ;;  %s311_s10 = sand.u32 (%p2945_p3), 1, %s2829_s29  }
  0x1e   : > { %s2534_s17 = sshll.u32 (%p2945_p3), %s2837_s8, 3  ;;  %s2533_s18 = sshll.u32 (%p2945_p3), %s311_s10, 7 }
  0x1f   : > { %s3968_s0 = sld [smem:[#allocation10_spill]] (%p2945_p3)  ;;  %s313_s13 = scalar_lea.vmem (%p2945_p3), [#allocation6], %s2533_s18 }
  0x25   : > { %s2997_s23 = scalar_lea.vmem %s3968_s0, %s2534_s17 }
  0x26   : > { %v377_v0 = vld [vmem:[%s2997_s23] sm:$0xff]  ;;  %v379_v1 = vld [vmem:[%s2997_s23 + $0x30] sm:$0xff] }
  0x27   : > { %v381_v2 = vld [vmem:[%s2997_s23 + $0x60] sm:$0xff]  ;;  %378 = vst [vmem:[%s313_s13] sm:$0xff] %v377_v0  ;;  %v383_v3 = vld [vmem:[%s2997_s23 + $0x90] sm:$0xff] }
  0x28   : > { %380 = vst [vmem:[%s313_s13 + $0x8] sm:$0xff] %v379_v1  ;;  %v385_v4 = vld [vmem:[%s2997_s23 + $0xc0] sm:$0xff]  ;;  %v387_v5 = vld [vmem:[%s2997_s23 + $0xf0] sm:$0xff] }
  0x29   : > { %382 = vst [vmem:[%s313_s13 + $0x10] sm:$0xff] %v381_v2  ;;  %v389_v6 = vld [vmem:[%s2997_s23 + $0x120] sm:$0xff]  ;;  %v391_v7 = vld [vmem:[%s2997_s23 + $0x150] sm:$0xff] }
  0x2a   : > { %384 = vst [vmem:[%s313_s13 + $0x18] sm:$0xff] %v383_v3  ;;  %v393_v8 = vld [vmem:[%s2997_s23 + $0x180] sm:$0xff]  ;;  %v395_v9 = vld [vmem:[%s2997_s23 + $0x1b0] sm:$0xff] }
  0x2b   : > { %386 = vst [vmem:[%s313_s13 + $0x20] sm:$0xff] %v385_v4  ;;  %v397_v10 = vld [vmem:[%s2997_s23 + $0x1e0] sm:$0xff]  ;;  %v399_v11 = vld [vmem:[%s2997_s23 + $0x210] sm:$0xff] }
  0x2c   : > { %388 = vst [vmem:[%s313_s13 + $0x28] sm:$0xff] %v387_v5  ;;  %v401_v12 = vld [vmem:[%s2997_s23 + $0x240] sm:$0xff]  ;;  %v403_v13 = vld [vmem:[%s2997_s23 + $0x270] sm:$0xff] }
  0x2d   : > { %390 = vst [vmem:[%s313_s13 + $0x30] sm:$0xff] %v389_v6  ;;  %v405_v14 = vld [vmem:[%s2997_s23 + $0x2a0] sm:$0xff]  ;;  %v407_v15 = vld [vmem:[%s2997_s23 + $0x2d0] sm:$0xff] }
  0x2e   : > { %392 = vst [vmem:[%s313_s13 + $0x38] sm:$0xff] %v391_v7 }
  0x2f   : > { %394 = vst [vmem:[%s313_s13 + $0x40] sm:$0xff] %v393_v8 }
  0x30   : > { %396 = vst [vmem:[%s313_s13 + $0x48] sm:$0xff] %v395_v9 }
  0x31   : > { %398 = vst [vmem:[%s313_s13 + $0x50] sm:$0xff] %v397_v10 }
  0x32   : > { %400 = vst [vmem:[%s313_s13 + $0x58] sm:$0xff] %v399_v11 }
  0x33   : > { %402 = vst [vmem:[%s313_s13 + $0x60] sm:$0xff] %v401_v12 }
  0x34   : > { %404 = vst [vmem:[%s313_s13 + $0x68] sm:$0xff] %v403_v13 }
  0x35   : > { %406 = vst [vmem:[%s313_s13 + $0x70] sm:$0xff] %v405_v14 }
  0x36   : > { %408 = vst [vmem:[%s313_s13 + $0x78] sm:$0xff] %v407_v15 }
  0x37 PF: > { %414 = sbr.rel (!%p2967_p7) target bundleno = 75 (0x4b), region = 74  ;;  %s416_s15 = sand.u32 (%p2967_p7), 1, %s2821_s27  }
  0x38   : > { %s2536_s10 = sshll.u32 (%p2967_p7), %s2837_s8, 3  ;;  %s2535_s17 = sshll.u32 (%p2967_p7), %s416_s15, 7 }
  0x39   : > { %s3022_s22 = scalar_lea.vmem (%p2967_p7), %s3955_s1, %s2536_s10  ;;  %s418_s7 = scalar_lea.vmem (%p2967_p7), [#allocation7], %s2535_s17 }
  0x3a   : > { %v2537_v16 = vld [vmem:[%s3022_s22 + $0x10] sm:$0xff] (%p2967_p7)  ;;  %v2538_v17 = vld [vmem:[%s3022_s22 + $0x40] sm:$0xff] (%p2967_p7) }
  0x3b   : > { %v2539_v18 = vld [vmem:[%s3022_s22 + $0x70] sm:$0xff] (%p2967_p7)  ;;  %484 = vst [vmem:[%s418_s7] sm:$0xff] (%p2967_p7), %v2537_v16  ;;  %v2540_v19 = vld [vmem:[%s3022_s22 + $0xa0] sm:$0xff] (%p2967_p7) }
  0x3c   : > { %486 = vst [vmem:[%s418_s7 + $0x8] sm:$0xff] %v2538_v17  ;;  %v2541_v20 = vld [vmem:[%s3022_s22 + $0xd0] sm:$0xff]  ;;  %v2542_v21 = vld [vmem:[%s3022_s22 + $0x100] sm:$0xff] }
  0x3d   : > { %488 = vst [vmem:[%s418_s7 + $0x10] sm:$0xff] %v2539_v18  ;;  %v2543_v22 = vld [vmem:[%s3022_s22 + $0x130] sm:$0xff]  ;;  %v2544_v23 = vld [vmem:[%s3022_s22 + $0x160] sm:$0xff] }
  0x3e   : > { %490 = vst [vmem:[%s418_s7 + $0x18] sm:$0xff] %v2540_v19  ;;  %v2545_v24 = vld [vmem:[%s3022_s22 + $0x190] sm:$0xff]  ;;  %v2546_v25 = vld [vmem:[%s3022_s22 + $0x1c0] sm:$0xff] }
  0x3f   : > { %492 = vst [vmem:[%s418_s7 + $0x20] sm:$0xff] %v2541_v20  ;;  %v2547_v26 = vld [vmem:[%s3022_s22 + $0x1f0] sm:$0xff]  ;;  %v2548_v27 = vld [vmem:[%s3022_s22 + $0x220] sm:$0xff] }
  0x40   : > { %494 = vst [vmem:[%s418_s7 + $0x28] sm:$0xff] %v2542_v21  ;;  %v2549_v28 = vld [vmem:[%s3022_s22 + $0x250] sm:$0xff]  ;;  %v2550_v29 = vld [vmem:[%s3022_s22 + $0x280] sm:$0xff] }
  0x41   : > { %496 = vst [vmem:[%s418_s7 + $0x30] sm:$0xff] %v2543_v22  ;;  %v2551_v30 = vld [vmem:[%s3022_s22 + $0x2b0] sm:$0xff]  ;;  %v2552_v31 = vld [vmem:[%s3022_s22 + $0x2e0] sm:$0xff] }
  0x42   : > { %498 = vst [vmem:[%s418_s7 + $0x38] sm:$0xff] %v2544_v23 }
  0x43   : > { %500 = vst [vmem:[%s418_s7 + $0x40] sm:$0xff] %v2545_v24 }
  0x44   : > { %502 = vst [vmem:[%s418_s7 + $0x48] sm:$0xff] %v2546_v25 }
  0x45   : > { %504 = vst [vmem:[%s418_s7 + $0x50] sm:$0xff] %v2547_v26 }
  0x46   : > { %506 = vst [vmem:[%s418_s7 + $0x58] sm:$0xff] %v2548_v27 }
  0x47   : > { %508 = vst [vmem:[%s418_s7 + $0x60] sm:$0xff] %v2549_v28 }
  0x48   : > { %510 = vst [vmem:[%s418_s7 + $0x68] sm:$0xff] %v2550_v29 }
  0x49   : > { %512 = vst [vmem:[%s418_s7 + $0x70] sm:$0xff] %v2551_v30 }
  0x4a   : > { %514 = vst [vmem:[%s418_s7 + $0x78] sm:$0xff] %v2552_v31 }
  0x4b PF: > { %520 = sbr.rel (!%p2978_p11) target bundleno = 95 (0x5f), region = 112  ;;  %s522_s23 = sand.u32 (%p2978_p11), 1, %s2813_s25  }
  0x4c   : > { %s2554_s13 = sshll.u32 (%p2978_p11), %s2837_s8, 3  ;;  %s2553_s15 = sshll.u32 (%p2978_p11), %s522_s23, 7 }
  0x4d   : > { %s3047_s18 = scalar_lea.vmem (%p2978_p11), %s3956_s2, %s2554_s13  ;;  %s524_s12 = scalar_lea.vmem (%p2978_p11), [#allocation8], %s2553_s15 }
  0x4e   : > { %v2555_v32 = vld [vmem:[%s3047_s18 + $0x20] sm:$0xff] (%p2978_p11)  ;;  %v2556_v33 = vld [vmem:[%s3047_s18 + $0x50] sm:$0xff] (%p2978_p11) }
  0x4f   : > { %v2557_v34 = vld [vmem:[%s3047_s18 + $0x80] sm:$0xff] (%p2978_p11)  ;;  %590 = vst [vmem:[%s524_s12] sm:$0xff] (%p2978_p11), %v2555_v32  ;;  %v2558_v35 = vld [vmem:[%s3047_s18 + $0xb0] sm:$0xff] (%p2978_p11) }
  0x50   : > { %592 = vst [vmem:[%s524_s12 + $0x8] sm:$0xff] %v2556_v33  ;;  %v2559_v36 = vld [vmem:[%s3047_s18 + $0xe0] sm:$0xff]  ;;  %v2560_v37 = vld [vmem:[%s3047_s18 + $0x110] sm:$0xff] }
  0x51   : > { %594 = vst [vmem:[%s524_s12 + $0x10] sm:$0xff] %v2557_v34  ;;  %v2561_v38 = vld [vmem:[%s3047_s18 + $0x140] sm:$0xff]  ;;  %v2562_v39 = vld [vmem:[%s3047_s18 + $0x170] sm:$0xff] }
  0x52   : > { %596 = vst [vmem:[%s524_s12 + $0x18] sm:$0xff] %v2558_v35  ;;  %v2563_v40 = vld [vmem:[%s3047_s18 + $0x1a0] sm:$0xff]  ;;  %v2564_v41 = vld [vmem:[%s3047_s18 + $0x1d0] sm:$0xff] }
  0x53   : > { %598 = vst [vmem:[%s524_s12 + $0x20] sm:$0xff] %v2559_v36  ;;  %v2565_v42 = vld [vmem:[%s3047_s18 + $0x200] sm:$0xff]  ;;  %v2566_v43 = vld [vmem:[%s3047_s18 + $0x230] sm:$0xff] }
  0x54   : > { %600 = vst [vmem:[%s524_s12 + $0x28] sm:$0xff] %v2560_v37  ;;  %v2567_v44 = vld [vmem:[%s3047_s18 + $0x260] sm:$0xff]  ;;  %v2568_v45 = vld [vmem:[%s3047_s18 + $0x290] sm:$0xff] }
  0x55   : > { %602 = vst [vmem:[%s524_s12 + $0x30] sm:$0xff] %v2561_v38  ;;  %v2569_v46 = vld [vmem:[%s3047_s18 + $0x2c0] sm:$0xff]  ;;  %v2570_v47 = vld [vmem:[%s3047_s18 + $0x2f0] sm:$0xff] }
  0x56   : > { %604 = vst [vmem:[%s524_s12 + $0x38] sm:$0xff] %v2562_v39 }
  0x57   : > { %606 = vst [vmem:[%s524_s12 + $0x40] sm:$0xff] %v2563_v40 }
  0x58   : > { %608 = vst [vmem:[%s524_s12 + $0x48] sm:$0xff] %v2564_v41 }
  0x59   : > { %610 = vst [vmem:[%s524_s12 + $0x50] sm:$0xff] %v2565_v42 }
  0x5a   : > { %612 = vst [vmem:[%s524_s12 + $0x58] sm:$0xff] %v2566_v43 }
  0x5b   : > { %614 = vst [vmem:[%s524_s12 + $0x60] sm:$0xff] %v2567_v44 }
  0x5c   : > { %616 = vst [vmem:[%s524_s12 + $0x68] sm:$0xff] %v2568_v45 }
  0x5d   : > { %618 = vst [vmem:[%s524_s12 + $0x70] sm:$0xff] %v2569_v46 }
  0x5e   : > { %620 = vst [vmem:[%s524_s12 + $0x78] sm:$0xff] %v2570_v47 }
  0x5f PF: > { %p2571_p0 = scmp.ge.s32.totalorder %s2841_s9, 1  ;;  %p625_p1 = scmp.lt.s32.totalorder %s2841_s9, 3 }
  0x61   : > { %p626_p2 = pnand %p2571_p0, %p625_p1 }
  0x62   : > { %s639_s21 = sand.u32 (!%p626_p2), 1, %s2817_s26   ;;  %s2843_s23 = smov (!%p626_p2), 64  }
  0x63   : > { %629 = sbr.rel (%p626_p2) target bundleno = 1025 (0x401), region = 150  ;;  %s2573_s22 = sshll.u32 (!%p626_p2), %s639_s21, 7 }
  0x64   : > { %s3068_s7 = scalar_lea.vmem (!%p626_p2), [#allocation7], %s2573_s22  ;;  %s632_s26 = sand.u32 (!%p626_p2), 1, %s2825_s28  }
  0x65   : > { %s3134_s13 = sshll.u32 (!%p626_p2), %s632_s26, 7  ;;  %s646_s26 = sand.u32 (!%p626_p2), 1, %s2809_s24  }
  0x66   : > { %s3146_s28 = scalar_lea.vmem (!%p626_p2), [#allocation6], %s3134_s13  ;;  %s2574_s15 = sshll.u32 (!%p626_p2), %s646_s26, 7 }
  0x67   : > { %s3653_s24 = scalar_lea.vmem (!%p626_p2), [#allocation8], %s2574_s15  ;;  %s3805_s10 = scalar_lea.vmem (!%p626_p2), [#allocation9], %s3134_s13 }
  0x68   : > { %v3071_v48 = vld [vmem:[%s3068_s7 + $0x70] sm:$0xff]  ;;  %v3074_v49 = vld [vmem:[%s3068_s7 + $0x60] sm:$0xff]  ;;  %v3083_v51 = vld [vmem:[%s3068_s7 + $0x78] sm:$0xff]  ;;  %vm740_vm12 = vcmask 7168   ;;  %s2577_s13 = sshll.u32 (%p2985_p12), %s2833_s30, 3  ;;  %s3971_s18 = sld [smem:[#allocation11_spill]] (%p2985_p12) }
  0x69   : > { %1078 = vrot.lane.b32.xlu0 %v3071_v48, %s2843_s23  ;;  %1074 = vrot.lane.b32.xlu1 %v3074_v49, %s2843_s23  ;;  %v996_v50 = vld [vmem:[%s3068_s7 + $0x50] sm:$0xff]  ;;  %v3086_v52 = vld [vmem:[%s3068_s7 + $0x68] sm:$0xff] }
  0x6a   : > { %1070 = vrot.lane.b32.xlu2 %v996_v50, %s2843_s23  ;;  %v997_v53 = vld [vmem:[%s3068_s7 + $0x58] sm:$0xff]  ;;  %v3095_v54 = vld [vmem:[%s3068_s7 + $0x48] sm:$0xff]  ;;  %v3098_v55 = vld [vmem:[%s3068_s7 + $0x40] sm:$0xff] }
  0x6b   : > { %v3101_v56 = vld [vmem:[%s3068_s7 + $0x30] sm:$0xff]  ;;  %v3110_v57 = vld [vmem:[%s3068_s7 + $0x38] sm:$0xff]  ;;  %v3113_v58 = vld [vmem:[%s3068_s7 + $0x20] sm:$0xff] }
  0x6c   : > { %v3116_v59 = vld [vmem:[%s3068_s7 + $0x28] sm:$0xff]  ;;  %v3126_v60 = vld [vmem:[%s3068_s7 + $0x18] sm:$0xff]  ;;  %v3129_v61 = vld [vmem:[%s3068_s7 + $0x10] sm:$0xff] }
  0x6d   : > { %v3132_v62 = vld [vmem:[%s3068_s7] sm:$0xff]  ;;  %v3143_v63 = vld [vmem:[%s3068_s7 + $0x8] sm:$0xff]  ;;  %v3149_v0 = vld [vmem:[%s3146_s28 + $0x30] sm:$0xff] }
  0x6e   : > { %v3152_v1 = vld [vmem:[%s3146_s28 + $0x38] sm:$0xff]  ;;  %v3161_v2 = vld [vmem:[%s3146_s28 + $0x8] sm:$0xff]  ;;  %v3164_v3 = vld [vmem:[%s3146_s28] sm:$0xff]  ;;  %s2257_s12 = scalar_lea.vmem (%p2985_p12), %s3971_s18, %s2577_s13 }
  0x6f   : > { %v3167_v4 = vld [vmem:[%s3146_s28 + $0x40] sm:$0xff]  ;;  %v3176_v5 = vld [vmem:[%s3146_s28 + $0x48] sm:$0xff]  ;;  %v3179_v6 = vld [vmem:[%s3146_s28 + $0x10] sm:$0xff] }
  0x70   : > { %v3182_v7 = vld [vmem:[%s3146_s28 + $0x18] sm:$0xff]  ;;  %v3191_v8 = vld [vmem:[%s3146_s28 + $0x50] sm:$0xff]  ;;  %v3201_v10 = vld [vmem:[%s3146_s28 + $0x28] sm:$0xff] }
  0x71   : > { %1080 = vrot.lane.b32.xlu0 %v3083_v51, %s2843_s23  ;;  %1076 = vrot.lane.b32.xlu1 %v3086_v52, %s2843_s23  ;;  %v3194_v9 = vld [vmem:[%s3146_s28 + $0x58] sm:$0xff]  ;;  %v3206_v11 = vld [vmem:[%s3146_s28 + $0x60] sm:$0xff] }
  0x72   : > { %1072 = vrot.lane.b32.xlu2 %v997_v53, %s2843_s23  ;;  %v3211_v13 = vld [vmem:[%s3146_s28 + $0x20] sm:$0xff]  ;;  %v1012_v14 = vld [vmem:[%s3959_s5 + $0x50] sm:$0xff]  ;;  %v1013_v16 = vld [vmem:[%s3959_s5 + $0x58] sm:$0xff] }
  0x73   : > { %v1108_v15 = vld [vmem:[%s3960_s6 + $0x50] sm:$0xff]  ;;  %v1028_v17 = vmul.f32 %v1012_v14, %v996_v50  ;;  %v1109_v19 = vld [vmem:[%s3960_s6 + $0x58] sm:$0xff]  ;;  %v1029_v21 = vmul.f32 %v1013_v16, %v997_v53  ;;  %v3240_v28 = vld [vmem:[%s3146_s28 + $0x68] sm:$0xff] }
  0x74   : > { %v3228_v20 = vld [vmem:[%s3146_s28 + $0x78] sm:$0xff]  ;;  %v3233_v22 = vld [vmem:[%s3146_s28 + $0x70] sm:$0xff]  ;;  %v1014_v32 = vld [vmem:[%s3959_s5 + $0x60] sm:$0xff] }
  0x75   : > { %v1110_v33 = vld [vmem:[%s3960_s6 + $0x60] sm:$0xff]  ;;  %v1016_v34 = vld [vmem:[%s3959_s5 + $0x70] sm:$0xff]  ;;  %v1017_v35 = vld [vmem:[%s3959_s5 + $0x78] sm:$0xff]  ;;  %v1030_v38 = vmul.f32 %v1014_v32, %v3074_v49 }
  0x76   : > { %v1015_v36 = vld [vmem:[%s3959_s5 + $0x68] sm:$0xff]  ;;  %v1112_v37 = vld [vmem:[%s3960_s6 + $0x70] sm:$0xff]  ;;  %v1113_v40 = vld [vmem:[%s3960_s6 + $0x78] sm:$0xff]  ;;  %v1032_v42 = vmul.f32 %v1016_v34, %v3071_v48  ;;  %v1033_v43 = vmul.f32 %v1017_v35, %v3083_v51 }
  0x77   : > { %v1111_v41 = vld [vmem:[%s3960_s6 + $0x68] sm:$0xff]  ;;  %v1031_v44 = vmul.f32 %v1015_v36, %v3086_v52  ;;  %v1010_v48 = vld [vmem:[%s3959_s5 + $0x40] sm:$0xff]  ;;  %v1009_v35 = vld [vmem:[%s3959_s5 + $0x38] sm:$0xff] }
  0x78   : > { %v1007_v32 = vld [vmem:[%s3959_s5 + $0x28] sm:$0xff]  ;;  %v1006_v36 = vld [vmem:[%s3959_s5 + $0x20] sm:$0xff] }
  0x79   : > { %1068 = vrot.lane.b32.xlu1 %v3095_v54, %s2843_s23  ;;  %1066 = vrot.lane.b32.xlu0 %v3098_v55, %s2843_s23 }
  0x7a   : > { %1062 = vrot.lane.b32.xlu2 %v3101_v56, %s2843_s23 }
  0x81   : > { %1064 = vrot.lane.b32.xlu0 %v3110_v57, %s2843_s23  ;;  %1058 = vrot.lane.b32.xlu1 %v3113_v58, %s2843_s23 }
  0x82   : > { %1060 = vrot.lane.b32.xlu2 %v3116_v59, %s2843_s23 }
  0x89   : > { %1056 = vrot.lane.b32.xlu1 %v3126_v60, %s2843_s23  ;;  %1054 = vrot.lane.b32.xlu0 %v3129_v61, %s2843_s23 }
  0x8a   : > { %1050 = vrot.lane.b32.xlu2 %v3132_v62, %s2843_s23 }
  0x91   : > { %1052 = vrot.lane.b32.xlu0 %v3143_v63, %s2843_s23  ;;  %865 = vrot.lane.b32.xlu1 %v3149_v0, %s2843_s23 }
  0x92   : > { %867 = vrot.lane.b32.xlu2 %v3152_v1, %s2843_s23 }
  0x99   : > { %855 = vrot.lane.b32.xlu1 %v3161_v2, %s2843_s23  ;;  %853 = vrot.lane.b32.xlu0 %v3164_v3, %s2843_s23 }
  0x9a   : > { %869 = vrot.lane.b32.xlu2 %v3167_v4, %s2843_s23 }
  0xa1   : > { %871 = vrot.lane.b32.xlu0 %v3176_v5, %s2843_s23  ;;  %857 = vrot.lane.b32.xlu1 %v3179_v6, %s2843_s23 }
  0xa2   : > { %859 = vrot.lane.b32.xlu2 %v3182_v7, %s2843_s23 }
  0xa9   : > { %873 = vrot.lane.b32.xlu0 %v3191_v8, %s2843_s23  ;;  %875 = vrot.lane.b32.xlu1 %v3194_v9, %s2843_s23 }
  0xaa   : > { %861 = vrot.lane.b32.xlu2 %v3211_v13, %s2843_s23 }
  0xb1   : > { %863 = vrot.lane.b32.xlu0 %v3201_v10, %s2843_s23  ;;  %877 = vrot.lane.b32.xlu1 %v3206_v11, %s2843_s23 }
  0xb2   : > { %879 = vrot.lane.b32.xlu2 %v3240_v28, %s2843_s23 }
  0xb9   : > { %883 = vrot.lane.b32.xlu1 %v3228_v20, %s2843_s23  ;;  %881 = vrot.lane.b32.xlu0 %v3233_v22, %s2843_s23 }
  0xc4   : > { %v1071_v12 = vpop.permute.xlu2 %1070 }
  0xc5   : > { %v1124_v18 = vmul.f32 %v1108_v15, %v1071_v12 }
  0xc7   : > { %v1140_v24 = vadd.f32 %v1124_v18, %v1028_v17  ;;  %v1011_v17 = vld [vmem:[%s3959_s5 + $0x48] sm:$0xff] }
  0xc8   : > { %v1107_v18 = vld [vmem:[%s3960_s6 + $0x48] sm:$0xff] }
  0xcc   : > { %v1073_v23 = vpop.permute.xlu2 %1072 }
  0xcd   : > { %v1125_v25 = vmul.f32 %v1109_v19, %v1073_v23  ;;  %v1106_v19 = vld [vmem:[%s3960_s6 + $0x40] sm:$0xff]  ;;  %v1026_v23 = vmul.f32 %v1010_v48, %v3098_v55  ;;  %v1103_v55 = vld [vmem:[%s3960_s6 + $0x28] sm:$0xff] }
  0xcf   : > { %v1141_v26 = vadd.f32 %v1125_v25, %v1029_v21  ;;  %v1027_v21 = vmul.f32 %v1011_v17, %v3095_v54  ;;  %v1104_v54 = vld [vmem:[%s3960_s6 + $0x30] sm:$0xff] }
  0xd0   : > { %v1100_v17 = vld [vmem:[%s3960_s6 + $0x10] sm:$0xff] }
  0xd1   : > { %v3237_v27 = vpack.c.bf16 %v1141_v26, %v1140_v24  ;;  %v1008_v26 = vld [vmem:[%s3959_s5 + $0x30] sm:$0xff] }
  0xd4   : > { %v1063_v31 = vpop.permute.xlu2 %1062 }
  0xdb   : > { %v1079_v29 = vpop.permute.xlu0 %1078  ;;  %v1075_v30 = vpop.permute.xlu1 %1074 }
  0xdc   : > { %v1126_v39 = vmul.f32 %v1110_v33, %v1075_v30  ;;  %v1128_v45 = vmul.f32 %v1112_v37, %v1079_v29  ;;  %v1061_v16 = vpop.permute.xlu2 %1060  ;;  %v1024_v37 = vmul.f32 %v1008_v26, %v3101_v56 }
  0xde   : > { %v1142_v50 = vadd.f32 %v1126_v39, %v1030_v38  ;;  %v1144_v12 = vadd.f32 %v1128_v45, %v1032_v42  ;;  %v1023_v38 = vmul.f32 %v1007_v32, %v3116_v59  ;;  %v1120_v39 = vmul.f32 %v1104_v54, %v1063_v31  ;;  %v1003_v32 = vld [vmem:[%s3959_s5 + $0x8] sm:$0xff]  ;;  %v811_v54 = vld [vmem:[%s3957_s3 + $0x30] sm:$0xff] }
  0xdf   : > { %v1025_v45 = vmul.f32 %v1009_v35, %v3110_v57  ;;  %v1004_v57 = vld [vmem:[%s3959_s5 + $0x10] sm:$0xff] }
  0xe0   : > { %v1136_v31 = vadd.f32 %v1120_v39, %v1024_v37  ;;  %v907_v35 = vld [vmem:[%s3958_s4 + $0x30] sm:$0xff]  ;;  %v827_v37 = vmul.f32 %v811_v54, %v3149_v0 }
  0xe3   : > { %v1081_v46 = vpop.permute.xlu0 %1080  ;;  %v1077_v47 = vpop.permute.xlu1 %1076 }
  0xe4   : > { %v1129_v49 = vmul.f32 %v1113_v40, %v1081_v46  ;;  %v1127_v53 = vmul.f32 %v1111_v41, %v1077_v47  ;;  %v1119_v41 = vmul.f32 %v1103_v55, %v1061_v16  ;;  %v1051_v42 = vpop.permute.xlu2 %1050  ;;  %v1022_v46 = vmul.f32 %v1006_v36, %v3113_v58  ;;  %v1101_v16 = vld [vmem:[%s3960_s6 + $0x18] sm:$0xff] }
  0xe5   : > { %v1019_v36 = vmul.f32 %v1003_v32, %v3143_v63  ;;  %v805_v63 = vld [vmem:[%s3957_s3] sm:$0xff] }
  0xe6   : > { %v1145_v14 = vadd.f32 %v1129_v49, %v1033_v43  ;;  %v1143_v15 = vadd.f32 %v1127_v53, %v1031_v44  ;;  %v1105_v43 = vld [vmem:[%s3960_s6 + $0x38] sm:$0xff]  ;;  %v1102_v44 = vld [vmem:[%s3960_s6 + $0x20] sm:$0xff] }
  0xe8   : > { %v1177_v51 = vpack.c.bf16 %v1145_v14, %v1144_v12  ;;  %v1176_v52 = vpack.c.bf16 %v1143_v15, %v1142_v50  ;;  %v1135_v50 = vadd.f32 %v1119_v41, %v1023_v38  ;;  %v1005_v14 = vld [vmem:[%s3959_s5 + $0x18] sm:$0xff] }
  0xe9   : > { %v1021_v48 = vmul.f32 %v1005_v14, %v3126_v60  ;;  %v1002_v60 = vld [vmem:[%s3959_s5] sm:$0xff] }
  0xea   : > { %1178 = vmatpush.bf16.xpose.msra.mxu0 %v1177_v51  ;;  %2580 = vmatpush.bf16.xpose.msra.mxu2 %v1177_v51  ;;  %v1020_v51 = vmul.f32 %v1004_v57, %v3129_v61  ;;  %v1098_v61 = vld [vmem:[%s3960_s6] sm:$0xff]  ;;  %v1018_v55 = vmul.f32 %v1002_v60, %v3132_v62 }
  0xeb   : > { %v1069_v24 = vpop.permute.xlu1 %1068  ;;  %v1067_v25 = vpop.permute.xlu0 %1066 }
  0xec   : > { %v1123_v29 = vmul.f32 %v1107_v18, %v1069_v24  ;;  %v1122_v30 = vmul.f32 %v1106_v19, %v1067_v25  ;;  %v812_v18 = vld [vmem:[%s3957_s3 + $0x38] sm:$0xff] }
  0xee   : > { %v1139_v33 = vadd.f32 %v1123_v29, %v1027_v21  ;;  %v1138_v34 = vadd.f32 %v1122_v30, %v1026_v23  ;;  %v908_v23 = vld [vmem:[%s3958_s4 + $0x38] sm:$0xff] }
  0xf0   : > { %v1174_v40 = vpack.c.bf16 %v1139_v33, %v1138_v34  ;;  %v1114_v33 = vmul.f32 %v1098_v61, %v1051_v42 }
  0xf2   : > { %1179 = vmatpush.bf16.xpose.msra.mxu0 %v1176_v52  ;;  %2581 = vmatpush.bf16.xpose.msra.mxu2 %v1176_v52  ;;  %v868_v52 = vpop.permute.xlu2 %867  ;;  %v1130_v42 = vadd.f32 %v1114_v33, %v1018_v55 }
  0xf3   : > { %v1065_v56 = vpop.permute.xlu0 %1064  ;;  %v1059_v59 = vpop.permute.xlu1 %1058  ;;  %v924_v30 = vmul.f32 %v908_v23, %v868_v52 }
  0xf4   : > { %v1121_v47 = vmul.f32 %v1105_v43, %v1065_v56  ;;  %v1118_v49 = vmul.f32 %v1102_v44, %v1059_v59  ;;  %v806_v59 = vld [vmem:[%s3957_s3 + $0x8] sm:$0xff] }
  0xf6   : > { %v1137_v53 = vadd.f32 %v1121_v47, %v1025_v45  ;;  %v1134_v12 = vadd.f32 %v1118_v49, %v1022_v46  ;;  %v901_v47 = vld [vmem:[%s3958_s4] sm:$0xff]  ;;  %v821_v49 = vmul.f32 %v805_v63, %v3164_v3  ;;  %v904_v3 = vld [vmem:[%s3958_s4 + $0x18] sm:$0xff] }
  0xf8   : > { %v1173_v15 = vpack.c.bf16 %v1137_v53, %v1136_v31  ;;  %v3320_v58 = vpack.c.bf16 %v1135_v50, %v1134_v12  ;;  %v902_v31 = vld [vmem:[%s3958_s4 + $0x8] sm:$0xff]  ;;  %v822_v50 = vmul.f32 %v806_v59, %v3161_v2  ;;  %v813_v53 = vld [vmem:[%s3957_s3 + $0x40] sm:$0xff]  ;;  %v808_v12 = vld [vmem:[%s3957_s3 + $0x18] sm:$0xff] }
  0xf9   : > { %v909_v2 = vld [vmem:[%s3958_s4 + $0x40] sm:$0xff]  ;;  %v829_v52 = vmul.f32 %v813_v53, %v3167_v4 }
  0xfa   : > { %1180 = vmatpush.bf16.xpose.msra.mxu0 %v3237_v27  ;;  %2582 = vmatpush.bf16.xpose.msra.mxu2 %v3237_v27  ;;  %v828_v27 = vmul.f32 %v812_v18, %v3152_v1  ;;  %v1099_v1 = vld [vmem:[%s3960_s6 + $0x8] sm:$0xff]  ;;  %v870_v39 = vpop.permute.xlu2 %869 }
  0xfb   : > { %v1057_v19 = vpop.permute.xlu1 %1056  ;;  %v1055_v21 = vpop.permute.xlu0 %1054  ;;  %v814_v18 = vld [vmem:[%s3957_s3 + $0x48] sm:$0xff] }
  0xfc   : > { %v1117_v24 = vmul.f32 %v1101_v16, %v1057_v19  ;;  %v1116_v25 = vmul.f32 %v1100_v17, %v1055_v21  ;;  %v940_v38 = vadd.f32 %v924_v30, %v828_v27  ;;  %v807_v19 = vld [vmem:[%s3957_s3 + $0x10] sm:$0xff]  ;;  %v830_v27 = vmul.f32 %v814_v18, %v3176_v5 }
  0xfd   : > { %v823_v4 = vmul.f32 %v807_v19, %v3179_v6  ;;  %v815_v6 = vld [vmem:[%s3957_s3 + $0x50] sm:$0xff]  ;;  %v818_v19 = vld [vmem:[%s3957_s3 + $0x68] sm:$0xff] }
  0xfe   : > { %v1133_v26 = vadd.f32 %v1117_v24, %v1021_v48  ;;  %v1132_v29 = vadd.f32 %v1116_v25, %v1020_v51  ;;  %v3362_v46 = vmul.f32 0.088388346, %v940_v38  ;;  %v925_v24 = vmul.f32 %v909_v2, %v870_v39  ;;  %v816_v38 = vld [vmem:[%s3957_s3 + $0x58] sm:$0xff] }
 0x100   : > { %v3352_v34 = vpack.c.bf16 %v1133_v26, %v1132_v29  ;;  %v903_v26 = vld [vmem:[%s3958_s4 + $0x10] sm:$0xff]  ;;  %v941_v29 = vadd.f32 %v925_v24, %v829_v52 }
 0x102   : > { %1181 = vmatpush.bf16.xpose.msra.mxu0 %v1174_v40  ;;  %2583 = vmatpush.bf16.xpose.msra.mxu2 %v1174_v40  ;;  %v860_v57 = vpop.permute.xlu2 %859 }
 0x103   : > { %v1053_v62 = vpop.permute.xlu0 %1052  ;;  %v866_v41 = vpop.permute.xlu1 %865  ;;  %v920_v25 = vmul.f32 %v904_v3, %v860_v57 }
 0x104   : > { %v1115_v43 = vmul.f32 %v1099_v1, %v1053_v62  ;;  %v923_v44 = vmul.f32 %v907_v35, %v866_v41  ;;  %v957_v1 = vmul.f32 0.088388346, %v941_v29  ;;  %v831_v62 = vmul.f32 %v815_v6, %v3191_v8  ;;  %v911_v41 = vld [vmem:[%s3958_s4 + $0x50] sm:$0xff]  ;;  %v809_v8 = vld [vmem:[%s3957_s3 + $0x20] sm:$0xff]  ;;  %v820_v29 = vld [vmem:[%s3957_s3 + $0x78] sm:$0xff] }
 0x106   : > { %v1131_v45 = vadd.f32 %v1115_v43, %v1019_v36  ;;  %v939_v56 = vadd.f32 %v923_v44, %v827_v37  ;;  %v832_v43 = vmul.f32 %v816_v38, %v3194_v9  ;;  %v905_v9 = vld [vmem:[%s3958_s4 + $0x20] sm:$0xff] }
 0x108   : > { %v3370_v0 = vmul.f32 0.088388346, %v939_v56  ;;  %v3372_v40 = vpack.c.bf16 %v1131_v45, %v1130_v42  ;;  %v912_v42 = vld [vmem:[%s3958_s4 + $0x58] sm:$0xff] }
 0x10a   : > { %1182 = vmatpush.bf16.xpose.msra.mxu0 %v1173_v15  ;;  %2584 = vmatpush.bf16.xpose.msra.mxu2 %v1173_v15  ;;  %v1165_v14 = vpack.c.bf16 %v3362_v46, %v3370_v0  ;;  %v824_v15 = vmul.f32 %v808_v12, %v3182_v7  ;;  %v910_v7 = vld [vmem:[%s3958_s4 + $0x48] sm:$0xff]  ;;  %v862_v57 = vpop.permute.xlu2 %861 }
 0x10b   : > { %v856_v16 = vpop.permute.xlu1 %855  ;;  %v854_v17 = vpop.permute.xlu0 %853 }
 0x10c   : > { %v918_v48 = vmul.f32 %v902_v31, %v856_v16  ;;  %v917_v51 = vmul.f32 %v901_v47, %v854_v17  ;;  %v936_v32 = vadd.f32 %v920_v25, %v824_v15  ;;  %v921_v16 = vmul.f32 %v905_v9, %v862_v57  ;;  %v906_v17 = vld [vmem:[%s3958_s4 + $0x28] sm:$0xff] }
 0x10e   : > { %v934_v21 = vadd.f32 %v918_v48, %v822_v50  ;;  %v933_v23 = vadd.f32 %v917_v51, %v821_v49  ;;  %v952_v36 = vmul.f32 0.088388346, %v936_v32  ;;  %v825_v49 = vmul.f32 %v809_v8, %v3211_v13  ;;  %v915_v32 = vld [vmem:[%s3958_s4 + $0x70] sm:$0xff] }
 0x110   : > { %v950_v60 = vmul.f32 0.088388346, %v934_v21  ;;  %v949_v61 = vmul.f32 0.088388346, %v933_v23  ;;  %v937_v3 = vadd.f32 %v921_v16, %v825_v49  ;;  %v817_v21 = vld [vmem:[%s3957_s3 + $0x60] sm:$0xff]  ;;  %v834_v23 = vmul.f32 %v818_v19, %v3240_v28  ;;  %v819_v28 = vld [vmem:[%s3957_s3 + $0x70] sm:$0xff] }
 0x111   : > { %v833_v46 = vmul.f32 %v817_v21, %v3206_v11  ;;  %v916_v11 = vld [vmem:[%s3958_s4 + $0x78] sm:$0xff] }
 0x112   : > { %1183 = vmatpush.bf16.xpose.msra.mxu0 %v3320_v58  ;;  %2585 = vmatpush.bf16.xpose.msra.mxu2 %v3320_v58  ;;  %v1162_v30 = vpack.c.bf16 %v950_v60, %v949_v61  ;;  %v953_v15 = vmul.f32 0.088388346, %v937_v3  ;;  %v880_v24 = vpop.permute.xlu2 %879  ;;  %v913_v60 = vld [vmem:[%s3958_s4 + $0x60] sm:$0xff] }
 0x113   : > { %v872_v54 = vpop.permute.xlu0 %871  ;;  %v858_v55 = vpop.permute.xlu1 %857 }
 0x114   : > { %v926_v5 = vmul.f32 %v910_v7, %v872_v54  ;;  %v919_v33 = vmul.f32 %v903_v26, %v858_v55  ;;  %v835_v54 = vmul.f32 %v819_v28, %v3233_v22 }
 0x116   : > { %v942_v35 = vadd.f32 %v926_v5, %v830_v27  ;;  %v935_v37 = vadd.f32 %v919_v33, %v823_v4 }
 0x118   : > { %v958_v58 = vmul.f32 0.088388346, %v942_v35  ;;  %v951_v39 = vmul.f32 0.088388346, %v935_v37 }
 0x11a   : > { %1184 = vmatpush.bf16.xpose.msra.mxu0 %v3352_v34  ;;  %2586 = vmatpush.bf16.xpose.msra.mxu2 %v3352_v34  ;;  %v1163_v44 = vpack.c.bf16 %v952_v36, %v951_v39  ;;  %v1166_v45 = vpack.c.bf16 %v958_v58, %v957_v1  ;;  %v810_v34 = vld [vmem:[%s3957_s3 + $0x28] sm:$0xff] }
 0x11b   : > { %v874_v56 = vpop.permute.xlu0 %873  ;;  %v876_v59 = vpop.permute.xlu1 %875  ;;  %v826_v2 = vmul.f32 %v810_v34, %v3201_v10 }
 0x11c   : > { %v927_v63 = vmul.f32 %v911_v41, %v874_v56  ;;  %v928_v31 = vmul.f32 %v912_v42, %v876_v59 }
 0x11e   : > { %v943_v47 = vadd.f32 %v927_v63, %v831_v62  ;;  %v944_v50 = vadd.f32 %v928_v31, %v832_v43 }
 0x120   : > { %v959_v53 = vmul.f32 0.088388346, %v943_v47  ;;  %v960_v12 = vmul.f32 0.088388346, %v944_v50 }
 0x122   : > { %1185 = vmatpush.bf16.xpose.msra.mxu0 %v3372_v40  ;;  %2587 = vmatpush.bf16.xpose.msra.mxu2 %v3372_v40  ;;  %v1167_v52 = vpack.c.bf16 %v960_v12, %v959_v53  ;;  %v914_v40 = vld [vmem:[%s3958_s4 + $0x68] sm:$0xff] }
 0x123   : > { %v864_v48 = vpop.permute.xlu0 %863  ;;  %v930_v25 = vmul.f32 %v914_v40, %v880_v24 }
 0x124   : > { %v922_v51 = vmul.f32 %v906_v17, %v864_v48 }
 0x125   : > { %v946_v0 = vadd.f32 %v930_v25, %v834_v23  ;;  %v2844_v25 = vmov -inf  }
 0x126   : > { %v938_v13 = vadd.f32 %v922_v51, %v826_v2  ;;  %741 = vst.msk [vmem:[#allocation2] sm:$0xff] %vm740_vm12, %v2844_v25 }
 0x127   : > { %v962_v27 = vmul.f32 0.088388346, %v946_v0  ;;  %742 = vst.msk [vmem:[#allocation2 + $0x8] sm:$0xff] %vm740_vm12, %v2844_v25 }
 0x128   : > { %v954_v18 = vmul.f32 0.088388346, %v938_v13  ;;  %743 = vst.msk [vmem:[#allocation2 + $0x10] sm:$0xff] %vm740_vm12, %v2844_v25 }
 0x129   : > { %1186 = vmatmul.bf16.vlgmr.msra.gmra.mxu0 %v1162_v30  ;;  %1201 = vmatmul.bf16.vlgmr.msra.gmra.mxu2 %v1165_v14  ;;  %v878_v14 = vpop.permute.xlu1 %877  ;;  %v836_v30 = vmul.f32 %v820_v29, %v3228_v20  ;;  %v1227_v20 = vlaneseq  ;;  %744 = vst.msk [vmem:[#allocation2 + $0x18] sm:$0xff] %vm740_vm12, %v2844_v25 }
 0x12a   : > { %v1164_v10 = vpack.c.bf16 %v954_v18, %v953_v15  ;;  %v929_v61 = vmul.f32 %v913_v60, %v878_v14  ;;  %745 = vst.msk [vmem:[#allocation2 + $0x20] sm:$0xff] %vm740_vm12, %v2844_v25 }
 0x12b   : > { %v882_v33 = vpop.permute.xlu0 %881  ;;  %v3477_v58 = vshrl.u32 %v1227_v20, 7  ;;  %v3479_v39 = vand.u32 127, %v1227_v20  ;;  %746 = vst.msk [vmem:[#allocation2 + $0x28] sm:$0xff] %vm740_vm12, %v2844_v25 }
 0x12c   : > { %v945_v4 = vadd.f32 %v929_v61, %v833_v46  ;;  %v931_v6 = vmul.f32 %v915_v32, %v882_v33  ;;  %747 = vst.msk [vmem:[#allocation2 + $0x30] sm:$0xff] %vm740_vm12, %v2844_v25 }
 0x12d   : > { %vm1265_vm0 = vcmp.le.s32.totalorder %v3479_v39, %v3477_v58  ;;  %v1234_v62 = vadd.s32 48, %v3477_v58  ;;  %v1229_v42 = vadd.s32 8, %v3477_v58  ;;  %v1235_v56 = vadd.s32 56, %v3477_v58  ;;  %748 = vst.msk [vmem:[#allocation2 + $0x38] sm:$0xff] %vm740_vm12, %v2844_v25  ;;  %v1297_v32 = vld [vmem:[#allocation2] sm:$0xff] }
 0x12e   : > { %v961_v7 = vmul.f32 0.088388346, %v945_v4  ;;  %v947_v35 = vadd.f32 %v931_v6, %v835_v54  ;;  %v1230_v8 = vadd.s32 16, %v3477_v58  ;;  %v1236_v50 = vadd.s32 64, %v3477_v58  ;;  %749 = vst.msk [vmem:[#allocation2 + $0x40] sm:$0xff] %vm740_vm12, %v2844_v25 }
 0x12f   : > { %vm1271_vm1 = vcmp.le.s32.totalorder %v3479_v39, %v1234_v62  ;;  %vm1266_vm2 = vcmp.le.s32.totalorder %v3479_v39, %v1229_v42  ;;  %vm1272_vm3 = vcmp.le.s32.totalorder %v3479_v39, %v1235_v56  ;;  %v1231_v34 = vadd.s32 24, %v3477_v58  ;;  %750 = vst.msk [vmem:[#allocation2 + $0x48] sm:$0xff] %vm740_vm12, %v2844_v25 }
 0x130   : > { %v1168_v26 = vpack.c.bf16 %v962_v27, %v961_v7  ;;  %v963_v37 = vmul.f32 0.088388346, %v947_v35  ;;  %vm1267_vm4 = vcmp.le.s32.totalorder %v3479_v39, %v1230_v8  ;;  %vm1273_vm5 = vcmp.le.s32.totalorder %v3479_v39, %v1236_v50  ;;  %751 = vst.msk [vmem:[#allocation2 + $0x50] sm:$0xff] %vm740_vm12, %v2844_v25  ;;  %v1300_v50 = vld [vmem:[#allocation2 + $0x18] sm:$0xff] }
 0x131   : > { %v884_v55 = vpop.permute.xlu1 %883  ;;  %vm1268_vm6 = vcmp.le.s32.totalorder %v3479_v39, %v1231_v34  ;;  %v1237_v57 = vadd.s32 72, %v3477_v58  ;;  %v1232_v17 = vadd.s32 32, %v3477_v58  ;;  %v1233_v15 = vadd.s32 40, %v3477_v58  ;;  %752 = vst.msk [vmem:[#allocation2 + $0x58] sm:$0xff] %vm740_vm12, %v2844_v25 }
 0x132   : > { %v932_v5 = vmul.f32 %v916_v11, %v884_v55  ;;  %v1239_v40 = vadd.s32 88, %v3477_v58  ;;  %v1240_v23 = vadd.s32 96, %v3477_v58  ;;  %v1241_v0 = vadd.s32 104, %v3477_v58  ;;  %753 = vst.msk [vmem:[#allocation2 + $0x60] sm:$0xff] %vm740_vm12, %v2844_v25 }
 0x133   : > { %vm1274_vm7 = vcmp.le.s32.totalorder %v3479_v39, %v1237_v57  ;;  %vm1269_vm8 = vcmp.le.s32.totalorder %v3479_v39, %v1232_v17  ;;  %vm1270_vm10 = vcmp.le.s32.totalorder %v3479_v39, %v1233_v15  ;;  %754 = vst.msk [vmem:[#allocation2 + $0x68] sm:$0xff] %vm740_vm12, %v2844_v25  ;;  %v1242_v27 = vadd.s32 112, %v3477_v58  ;;  %v3594_v33 = vld [vmem:[#allocation2 + $0x30] sm:$0xff] }
 0x134   : > { %v948_v1 = vadd.f32 %v932_v5, %v836_v30  ;;  %vm1276_vm11 = vcmp.le.s32.totalorder %v3479_v39, %v1239_v40  ;;  %vm1277_vm13 = vcmp.le.s32.totalorder %v3479_v39, %v1240_v23  ;;  %vm1278_vm14 = vcmp.le.s32.totalorder %v3479_v39, %v1241_v0  ;;  %755 = vst.msk [vmem:[#allocation2 + $0x70] sm:$0xff] %vm740_vm12, %v2844_v25 }
 0x135   : > { %756 = vst.msk [vmem:[#allocation2 + $0x78] sm:$0xff] %vm740_vm12, %v2844_v25  ;;  %vm1279_vm15 = vcmp.le.s32.totalorder %v3479_v39, %v1242_v27  ;;  %v2845_v11 = vmov 0   ;;  %v2846_v30 = vmov 0.0  }
 0x136   : > { %v964_v36 = vmul.f32 0.088388346, %v948_v1  ;;  %2672 = vset.pattern.permute.xlu2 %v2845_v11  ;;  %2673 = vset.pattern.permute.xlu1 %v2845_v11  ;;  %757 = vst.msk [vmem:[#allocation3] sm:$0xff] %vm740_vm12, %v2846_v30  ;;  %v1298_v1 = vld [vmem:[#allocation2 + $0x8] sm:$0xff] }
 0x137   : > { %2674 = vset.pattern.permute.xlu0 %v2845_v11  ;;  %758 = vst.msk [vmem:[#allocation3 + $0x8] sm:$0xff] %vm740_vm12, %v2846_v30  ;;  %v1307_v25 = vld [vmem:[#allocation2 + $0x50] sm:$0xff] }
 0x138   : > { %v1169_v38 = vpack.c.bf16 %v964_v36, %v963_v37  ;;  %759 = vst.msk [vmem:[#allocation3 + $0x10] sm:$0xff] %vm740_vm12, %v2846_v30 }
 0x139   : > { %1191 = vmatmul.bf16.gmra.mxu0 %v1163_v44  ;;  %1206 = vmatmul.bf16.gmra.mxu2 %v1166_v45  ;;  %760 = vst.msk [vmem:[#allocation3 + $0x18] sm:$0xff] %vm740_vm12, %v2846_v30 }
 0x13a   : > { %761 = vst.msk [vmem:[#allocation3 + $0x20] sm:$0xff] %vm740_vm12, %v2846_v30 }
 0x13b   : > { %762 = vst.msk [vmem:[#allocation3 + $0x28] sm:$0xff] %vm740_vm12, %v2846_v30 }
 0x13c   : > { %763 = vst.msk [vmem:[#allocation3 + $0x30] sm:$0xff] %vm740_vm12, %v2846_v30 }
 0x13d   : > { %764 = vst.msk [vmem:[#allocation3 + $0x38] sm:$0xff] %vm740_vm12, %v2846_v30 }
 0x13e   : > { %765 = vst.msk [vmem:[#allocation3 + $0x40] sm:$0xff] %vm740_vm12, %v2846_v30 }
 0x13f   : > { %766 = vst.msk [vmem:[#allocation3 + $0x48] sm:$0xff] %vm740_vm12, %v2846_v30 }
 0x140   : > { %767 = vst.msk [vmem:[#allocation3 + $0x50] sm:$0xff] %vm740_vm12, %v2846_v30 }
 0x141   : > { %768 = vst.msk [vmem:[#allocation3 + $0x58] sm:$0xff] %vm740_vm12, %v2846_v30 }
 0x142   : > { %769 = vst.msk [vmem:[#allocation3 + $0x60] sm:$0xff] %vm740_vm12, %v2846_v30 }
 0x143   : > { %770 = vst.msk [vmem:[#allocation3 + $0x68] sm:$0xff] %vm740_vm12, %v2846_v30 }
 0x144   : > { %771 = vst.msk [vmem:[#allocation3 + $0x70] sm:$0xff] %vm740_vm12, %v2846_v30 }
 0x145   : > { %772 = vst.msk [vmem:[#allocation3 + $0x78] sm:$0xff] %vm740_vm12, %v2846_v30  ;;  %v3622_v30 = vld [vmem:[#allocation2 + $0x58] sm:$0xff] }
 0x149   : > { %1196 = vmatmul.bf16.gmra.mxu0 %v1164_v10  ;;  %1211 = vmatmul.bf16.gmra.mxu2 %v1167_v52  ;;  %v1238_v52 = vadd.s32 80, %v3477_v58 }
 0x14b   : > { %vm1275_vm9 = vcmp.le.s32.totalorder %v3479_v39, %v1238_v52  ;;  %v1301_v52 = vld [vmem:[#allocation2 + $0x20] sm:$0xff] }
 0x159   : > { %1216 = vmatmul.bf16.gmra.mxu2 %v1168_v26  ;;  %v1243_v26 = vadd.s32 120, %v3477_v58  ;;  %v1304_v58 = vld [vmem:[#allocation2 + $0x38] sm:$0xff] }
 0x169   : > { %1221 = vmatmul.bf16.gmra.mxu2 %v1169_v38 }
 0x1a6   : > { %v1187_v22 = vpop.f32.mrf.mxu0 }
 0x1a7   : > { %v3484_v41 = vsel %vm1265_vm0, %v1187_v22, -1e+30  ;;  %vm1280_vm0 = vcmp.le.s32.totalorder %v3479_v39, %v1243_v26  ;;  %v1299_v22 = vld [vmem:[#allocation2 + $0x10] sm:$0xff] }
 0x1a8   : > { %1313 = vmax.xlane.f32.xlu2 %v3484_v41 }
 0x1ac   : > { %v1202_v43 = vpop.f32.mrf.mxu2 }
 0x1ad   : > { %v3490_v44 = vsel %vm1271_vm1, %v1202_v43, -1e+30 }
 0x1ae   : > { %1325 = vmax.xlane.f32.xlu1 %v3490_v44  ;;  %v1189_v45 = vpop.f32.mrf.mxu0 }
 0x1af   : > { %v3494_v59 = vsel %vm1266_vm2, %v1189_v45, -1e+30 }
 0x1b0   : > { %1315 = vmax.xlane.f32.xlu0 %v3494_v59 }
 0x1b4   : > { %v1204_v63 = vpop.f32.mrf.mxu2 }
 0x1b5   : > { %v3500_v31 = vsel %vm1272_vm3, %v1204_v63, -1e+30  ;;  %v1305_v63 = vld [vmem:[#allocation2 + $0x40] sm:$0xff] }
 0x1b6   : > { %1327 = vmax.xlane.f32.xlu2 %v3500_v31  ;;  %v1192_v47 = vpop.f32.mrf.mxu0 }
 0x1b7   : > { %v3504_v9 = vsel %vm1267_vm4, %v1192_v47, -1e+30 }
 0x1b8   : > { %1317 = vmax.xlane.f32.xlu1 %v3504_v9 }
 0x1bc   : > { %v1207_v49 = vpop.f32.mrf.mxu2 }
 0x1bd   : > { %v3510_v53 = vsel %vm1273_vm5, %v1207_v49, -1e+30 }
 0x1be   : > { %1329 = vmax.xlane.f32.xlu0 %v3510_v53  ;;  %v1194_v12 = vpop.f32.mrf.mxu0 }
 0x1bf   : > { %v3514_v16 = vsel %vm1268_vm6, %v1194_v12, -1e+30 }
 0x1c0   : > { %1319 = vmax.xlane.f32.xlu2 %v3514_v16 }
 0x1c4   : > { %v1209_v2 = vpop.f32.mrf.mxu2 }
 0x1c5   : > { %v3520_v3 = vsel %vm1274_vm7, %v1209_v2, -1e+30  ;;  %v1306_v2 = vld [vmem:[#allocation2 + $0x48] sm:$0xff] }
 0x1c6   : > { %1331 = vmax.xlane.f32.xlu1 %v3520_v3  ;;  %v1197_v48 = vpop.f32.mrf.mxu0 }
 0x1c7   : > { %v3523_v51 = vsel %vm1269_vm8, %v1197_v48, -1e+30 }
 0x1c8   : > { %1321 = vmax.xlane.f32.xlu2 %v3523_v51 }
 0x1cc   : > { %v1212_v13 = vpop.f32.mrf.mxu2 }
 0x1cd   : > { %v3530_v19 = vsel %vm1275_vm9, %v1212_v13, -1e+30 }
 0x1ce   : > { %v1199_v18 = vpop.f32.mrf.mxu0 }
 0x1cf   : > { %v3532_v10 = vsel %vm1270_vm10, %v1199_v18, -1e+30 }
 0x1d0   : > { %1333 = vmax.xlane.f32.xlu2 %v3530_v19  ;;  %1323 = vmax.xlane.f32.xlu0 %v3532_v10 }
 0x1d4   : > { %v1214_v21 = vpop.f32.mrf.mxu2 }
 0x1d5   : > { %v3539_v24 = vsel %vm1276_vm11, %v1214_v21, -1e+30 }
 0x1d8   : > { %1335 = vmax.xlane.f32.xlu0 %v3539_v24 }
 0x1dc   : > { %v1217_v60 = vpop.f32.mrf.mxu2 }
 0x1dd   : > { %v3549_v46 = vsel %vm1277_vm13, %v1217_v60, -1e+30  ;;  %v1302_v60 = vld [vmem:[#allocation2 + $0x28] sm:$0xff] }
 0x1de   : > { %1337 = vmax.xlane.f32.xlu1 %v3549_v46 }
 0x1e4   : > { %v1219_v14 = vpop.f32.mrf.mxu2 }
 0x1e5   : > { %v3562_v61 = vsel %vm1278_vm14, %v1219_v14, -1e+30 }
 0x1e6   : > { %1339 = vmax.xlane.f32.xlu2 %v3562_v61 }
 0x1ec   : > { %v1222_v4 = vpop.f32.mrf.mxu2 }
 0x1ed   : > { %v3569_v7 = vsel %vm1279_vm15, %v1222_v4, -1e+30 }
 0x1ee   : > { %1341 = vmax.xlane.f32.xlu0 %v3569_v7 }
 0x1f4   : > { %v1224_v29 = vpop.f32.mrf.mxu2 }
 0x1f5   : > { %v3574_v28 = vsel %vm1280_vm0, %v1224_v29, -1e+30 }
 0x1f6   : > { %1343 = vmax.xlane.f32.xlu1 %v3574_v28 }
 0x21b   : > { %v1314_v54 = vpop.xlane.xlu2 %1313 }
 0x21c   : > { %v1345_v55 = vmax.f32 %v1297_v32, %v1314_v54 }
 0x21e   : > { %1859 = vst.msk [vmem:[#allocation2] sm:$0xff] %vm740_vm12, %v1345_v55  ;;  %1411 = vperm.xlu2 %2672, %v1345_v55   ;;  %v1361_v5 = vsub.f32 %v1297_v32, %v1345_v55 }
 0x220   : > { %v1377_v36 = vmul.f32 1.442695, %v1361_v5 }
 0x221   : > { %v1326_v6 = vpop.xlane.xlu1 %1325 }
 0x222   : > { %v3597_v35 = vmax.f32 %v3594_v33, %v1326_v6  ;;  %2675 = vpow2.f32 %v1377_v36 }
 0x223   : > { %v1316_v37 = vpop.xlane.xlu0 %1315 }
 0x224   : > { %1865 = vst.msk [vmem:[#allocation2 + $0x30] sm:$0xff] %vm740_vm12, %v3597_v35  ;;  %v1346_v38 = vmax.f32 %v1298_v1, %v1316_v37  ;;  %1441 = vperm.xlu1 %2673, %v3597_v35   ;;  %v1367_v26 = vsub.f32 %v3594_v33, %v3597_v35  ;;  %v1309_v33 = vld [vmem:[#allocation2 + $0x60] sm:$0xff] }
 0x226   : > { %1860 = vst.msk [vmem:[#allocation2 + $0x8] sm:$0xff] %vm740_vm12, %v1346_v38  ;;  %1416 = vperm.xlu0 %2674, %v1346_v38   ;;  %v1362_v20 = vsub.f32 %v1298_v1, %v1346_v38  ;;  %v1389_v32 = vmul.f32 1.442695, %v1367_v26  ;;  %v1767_v26 = vld [vmem:[%s3653_s24 + $0x68] sm:$0xff] }
 0x228   : > { %v1379_v42 = vmul.f32 1.442695, %v1362_v20  ;;  %v3604_v56 = vpop.eup %2675 }
 0x229   : > { %v1328_v39 = vpop.xlane.xlu2 %1327 }
 0x22a   : > { %v1352_v62 = vmax.f32 %v1304_v58, %v1328_v39  ;;  %2677 = vpow2.f32 %v1379_v42  ;;  %v1310_v42 = vld [vmem:[#allocation2 + $0x68] sm:$0xff] }
 0x22b   : > { %v1318_v43 = vpop.xlane.xlu1 %1317 }
 0x22c   : > { %1866 = vst.msk [vmem:[#allocation2 + $0x38] sm:$0xff] %vm740_vm12, %v1352_v62  ;;  %v1347_v45 = vmax.f32 %v1299_v22, %v1318_v43  ;;  %1446 = vperm.xlu2 %2672, %v1352_v62   ;;  %v1368_v29 = vsub.f32 %v1304_v58, %v1352_v62 }
 0x22e   : > { %1861 = vst.msk [vmem:[#allocation2 + $0x10] sm:$0xff] %vm740_vm12, %v1347_v45  ;;  %1421 = vperm.xlu1 %2673, %v1347_v45   ;;  %1652 = vperm.xlu0 %2674, %v3604_v56   ;;  %v1363_v8 = vsub.f32 %v1299_v22, %v1347_v45  ;;  %v1391_v55 = vmul.f32 1.442695, %v1368_v29 }
 0x230   : > { %v1381_v49 = vmul.f32 1.442695, %v1363_v8  ;;  %v3609_v17 = vpop.eup %2677 }
 0x231   : > { %v1330_v47 = vpop.xlane.xlu0 %1329 }
 0x232   : > { %v1353_v34 = vmax.f32 %v1305_v63, %v1330_v47  ;;  %2679 = vpow2.f32 %v1381_v49 }
 0x233   : > { %v1320_v12 = vpop.xlane.xlu2 %1319 }
 0x234   : > { %1867 = vst.msk [vmem:[#allocation2 + $0x40] sm:$0xff] %vm740_vm12, %v1353_v34  ;;  %v1348_v57 = vmax.f32 %v1300_v50, %v1320_v12  ;;  %v1369_v35 = vsub.f32 %v1305_v63, %v1353_v34 }
 0x236   : > { %1862 = vst.msk [vmem:[#allocation2 + $0x18] sm:$0xff] %vm740_vm12, %v1348_v57  ;;  %1657 = vperm.xlu1 %2673, %v3609_v17   ;;  %1426 = vperm.xlu2 %2672, %v1348_v57   ;;  %v1364_v11 = vsub.f32 %v1300_v50, %v1348_v57  ;;  %v1393_v20 = vmul.f32 1.442695, %v1369_v35  ;;  %v1311_v57 = vld [vmem:[#allocation2 + $0x70] sm:$0xff] }
 0x237   : > { %1451 = vperm.xlu0 %2674, %v1353_v34  }
 0x238   : > { %v3614_v40 = vpop.eup %2679  ;;  %v1383_v6 = vmul.f32 1.442695, %v1364_v11 }
 0x239   : > { %v1332_v48 = vpop.xlane.xlu1 %1331 }
 0x23a   : > { %v1354_v15 = vmax.f32 %v1306_v2, %v1332_v48 }
 0x23b   : > { %v1322_v13 = vpop.xlane.xlu2 %1321 }
 0x23c   : > { %1868 = vst.msk [vmem:[#allocation2 + $0x48] sm:$0xff] %vm740_vm12, %v1354_v15  ;;  %v1349_v18 = vmax.f32 %v1301_v52, %v1322_v13  ;;  %v1370_v22 = vsub.f32 %v1306_v2, %v1354_v15 }
 0x23e   : > { %v1365_v21 = vsub.f32 %v1301_v52, %v1349_v18  ;;  %1863 = vst.msk [vmem:[#allocation2 + $0x20] sm:$0xff] %vm740_vm12, %v1349_v18  ;;  %1456 = vperm.xlu1 %2673, %v1354_v15   ;;  %1662 = vperm.xlu2 %2672, %v3614_v40   ;;  %v1395_v8 = vmul.f32 1.442695, %v1370_v22 }
 0x240   : > { %v1385_v23 = vmul.f32 1.442695, %v1365_v21  ;;  %v1768_v21 = vld [vmem:[%s3653_s24 + $0x70] sm:$0xff] }
 0x242   : > { %2681 = vpow2.f32 %v1385_v23  ;;  %v1769_v23 = vld [vmem:[%s3653_s24 + $0x78] sm:$0xff] }
 0x243   : > { %v1334_v0 = vpop.xlane.xlu2 %1333  ;;  %v1324_v14 = vpop.xlane.xlu0 %1323  ;;  %2683 = vpow2.f32 %v1389_v32 }
 0x244   : > { %v1355_v27 = vmax.f32 %v1307_v25, %v1334_v0  ;;  %v1350_v4 = vmax.f32 %v1302_v60, %v1324_v14  ;;  %2685 = vpow2.f32 %v1391_v55  ;;  %v1312_v14 = vld [vmem:[#allocation2 + $0x78] sm:$0xff]  ;;  %v1764_v55 = vld [vmem:[%s3653_s24 + $0x50] sm:$0xff] }
 0x245   : > { %2687 = vpow2.f32 %v1383_v6 }
 0x246   : > { %1869 = vst.msk [vmem:[#allocation2 + $0x50] sm:$0xff] %vm740_vm12, %v1355_v27  ;;  %1431 = vperm.xlu1 %2673, %v1349_v18   ;;  %1461 = vperm.xlu2 %2672, %v1355_v27   ;;  %v1371_v62 = vsub.f32 %v1307_v25, %v1355_v27  ;;  %2689 = vpow2.f32 %v1393_v20  ;;  %v1366_v43 = vsub.f32 %v1302_v60, %v1350_v4  ;;  %v1763_v20 = vld [vmem:[%s3653_s24 + $0x48] sm:$0xff] }
 0x247   : > { %1864 = vst.msk [vmem:[#allocation2 + $0x28] sm:$0xff] %vm740_vm12, %v1350_v4  ;;  %2691 = vpow2.f32 %v1395_v8  ;;  %v1777_v60 = vpack.c.bf16 %v1769_v23, %v1768_v21  ;;  %v1755_v21 = vld [vmem:[%s3653_s24 + $0x8] sm:$0xff] }
 0x248   : > { %v3624_v54 = vpop.eup %2681  ;;  %v1397_v47 = vmul.f32 1.442695, %v1371_v62  ;;  %v1387_v50 = vmul.f32 1.442695, %v1366_v43  ;;  %v1760_v43 = vld [vmem:[%s3653_s24 + $0x30] sm:$0xff] }
 0x249   : > { %v3633_v38 = vpop.eup %2683  ;;  %1778 = vmatpush.bf16.msra.mxu1 %v1777_v60  ;;  %2588 = vmatpush.bf16.msra.mxu3 %v1777_v60 }
 0x24a   : > { %v3636_v58 = vpop.eup %2685  ;;  %2693 = vpow2.f32 %v1397_v47  ;;  %v1758_v47 = vld [vmem:[%s3653_s24 + $0x20] sm:$0xff] }
 0x24b   : > { %v1336_v5 = vpop.xlane.xlu0 %1335  ;;  %v3638_v39 = vpop.eup %2687  ;;  %2695 = vpow2.f32 %v1387_v50  ;;  %v1759_v50 = vld [vmem:[%s3653_s24 + $0x28] sm:$0xff] }
 0x24c   : > { %v3627_v1 = vmax.f32 %v3622_v30, %v1336_v5  ;;  %v3645_v34 = vpop.eup %2689  ;;  %v1765_v5 = vld [vmem:[%s3653_s24 + $0x58] sm:$0xff] }
 0x24d   : > { %v3648_v13 = vpop.eup %2691 }
 0x24e   : > { %1870 = vst.msk [vmem:[#allocation2 + $0x58] sm:$0xff] %vm740_vm12, %v3627_v1  ;;  %1672 = vperm.xlu1 %2673, %v3624_v54   ;;  %1436 = vperm.xlu2 %2672, %v1350_v4   ;;  %v1372_v0 = vsub.f32 %v3622_v30, %v3627_v1  ;;  %v1766_v4 = vld [vmem:[%s3653_s24 + $0x60] sm:$0xff]  ;;  %v1775_v30 = vpack.c.bf16 %v1765_v5, %v1764_v55 }
 0x24f   : > { %1466 = vperm.xlu0 %2674, %v3627_v1   ;;  %v1776_v11 = vpack.c.bf16 %v1767_v26, %v1766_v4 }
 0x250   : > { %v3651_v18 = vpop.eup %2693  ;;  %v1399_v32 = vmul.f32 1.442695, %v1372_v0 }
 0x251   : > { %v1338_v36 = vpop.xlane.xlu1 %1337  ;;  %v3657_v25 = vpop.eup %2695  ;;  %1779 = vmatpush.bf16.msra.mxu1 %v1776_v11  ;;  %2589 = vmatpush.bf16.msra.mxu3 %v1776_v11 }
 0x252   : > { %v1357_v37 = vmax.f32 %v1309_v33, %v1338_v36 }
 0x254   : > { %1871 = vst.msk [vmem:[#allocation2 + $0x60] sm:$0xff] %vm740_vm12, %v1357_v37  ;;  %v1373_v49 = vsub.f32 %v1309_v33, %v1357_v37 }
 0x255   : > { %1780 = vmatpush.bf16.msra.mxu1 %v1775_v30  ;;  %2590 = vmatpush.bf16.msra.mxu3 %v1775_v30 }
 0x256   : > { %1687 = vperm.xlu1 %2673, %v3636_v58   ;;  %1682 = vperm.xlu2 %2672, %v3633_v38   ;;  %v1401_v48 = vmul.f32 1.442695, %v1373_v49  ;;  %v1772_v49 = vpack.c.bf16 %v1759_v50, %v1758_v47 }
 0x257   : > { %1667 = vperm.xlu0 %2674, %v3638_v39  }
 0x258   : > { %2697 = vpow2.f32 %v1401_v48 }
 0x259   : > { %v1340_v45 = vpop.xlane.xlu2 %1339 }
 0x25a   : > { %v1358_v63 = vmax.f32 %v1310_v42, %v1340_v45  ;;  %v1761_v45 = vld [vmem:[%s3653_s24 + $0x38] sm:$0xff] }
 0x25c   : > { %1872 = vst.msk [vmem:[#allocation2 + $0x68] sm:$0xff] %vm740_vm12, %v1358_v63  ;;  %v1374_v12 = vsub.f32 %v1310_v42, %v1358_v63 }
 0x25e   : > { %1471 = vperm.xlu1 %2673, %v1357_v37   ;;  %1476 = vperm.xlu2 %2672, %v1358_v63   ;;  %v1403_v15 = vmul.f32 1.442695, %v1374_v12  ;;  %v3668_v6 = vpop.eup %2697  ;;  %v1762_v37 = vld [vmem:[%s3653_s24 + $0x40] sm:$0xff]  ;;  %v1773_v63 = vpack.c.bf16 %v1761_v45, %v1760_v43  ;;  %v1756_v12 = vld [vmem:[%s3653_s24 + $0x10] sm:$0xff] }
 0x25f   : > { %1692 = vperm.xlu0 %2674, %v3645_v34   ;;  %v1774_v22 = vpack.c.bf16 %v1763_v20, %v1762_v37 }
 0x260   : > { %2699 = vpow2.f32 %v1403_v15  ;;  %v1754_v15 = vld [vmem:[%s3653_s24] sm:$0xff] }
 0x261   : > { %v1342_v2 = vpop.xlane.xlu0 %1341  ;;  %2701 = vpow2.f32 %v1399_v32  ;;  %1781 = vmatpush.bf16.msra.mxu1 %v1774_v22  ;;  %2591 = vmatpush.bf16.msra.mxu3 %v1774_v22  ;;  %v1770_v23 = vpack.c.bf16 %v1755_v21, %v1754_v15 }
 0x262   : > { %v1359_v52 = vmax.f32 %v1311_v57, %v1342_v2 }
 0x264   : > { %1873 = vst.msk [vmem:[#allocation2 + $0x70] sm:$0xff] %vm740_vm12, %v1359_v52  ;;  %v1375_v36 = vsub.f32 %v1311_v57, %v1359_v52  ;;  %v1757_v57 = vld [vmem:[%s3653_s24 + $0x18] sm:$0xff] }
 0x265   : > { %1782 = vmatpush.bf16.msra.mxu1 %v1773_v63  ;;  %2592 = vmatpush.bf16.msra.mxu3 %v1773_v63  ;;  %v1771_v48 = vpack.c.bf16 %v1757_v57, %v1756_v12 }
 0x266   : > { %1702 = vperm.xlu1 %2673, %v3651_v18   ;;  %1697 = vperm.xlu2 %2672, %v3648_v13   ;;  %v3671_v1 = vpop.eup %2699  ;;  %v1405_v62 = vmul.f32 1.442695, %v1375_v36 }
 0x267   : > { %1677 = vperm.xlu0 %2674, %v3657_v25   ;;  %v3677_v42 = vpop.eup %2701 }
 0x269   : > { %v1344_v27 = vpop.xlane.xlu1 %1343  ;;  %1783 = vmatpush.bf16.msra.mxu1 %v1772_v49  ;;  %2593 = vmatpush.bf16.msra.mxu3 %v1772_v49 }
 0x26a   : > { %v1360_v29 = vmax.f32 %v1312_v14, %v1344_v27 }
 0x26c   : > { %v1376_v33 = vsub.f32 %v1312_v14, %v1360_v29  ;;  %1874 = vst.msk [vmem:[#allocation2 + $0x78] sm:$0xff] %vm740_vm12, %v1360_v29 }
 0x26d   : > { %1784 = vmatpush.bf16.msra.mxu1 %v1771_v48  ;;  %2594 = vmatpush.bf16.msra.mxu3 %v1771_v48 }
 0x26e   : > { %v1407_v35 = vmul.f32 1.442695, %v1376_v33  ;;  %1717 = vperm.xlu1 %2673, %v3671_v1   ;;  %1712 = vperm.xlu2 %2672, %v3668_v6  }
 0x26f   : > { %1481 = vperm.xlu0 %2674, %v1359_v52  }
 0x270   : > { %2703 = vpow2.f32 %v1407_v35 }
 0x271   : > { %2705 = vpow2.f32 %v1405_v62  ;;  %1785 = vmatpush.bf16.msra.mxu1 %v1770_v23  ;;  %2595 = vmatpush.bf16.msra.mxu3 %v1770_v23 }
 0x276   : > { %v3681_v8 = vpop.eup %2703  ;;  %1486 = vperm.xlu1 %2673, %v1360_v29  }
 0x277   : > { %1707 = vperm.xlu0 %2674, %v3677_v42   ;;  %1727 = vperm.xlu2 %2672, %v3681_v8   ;;  %v3689_v2 = vpop.eup %2705 }
 0x278   : > { %v1412_v52 = vpop.permute.xlu2 %1411 }
 0x279   : > { %v1489_v14 = vsub.f32 %v3484_v41, %v1412_v52 }
 0x27b   : > { %v1505_v27 = vmul.f32 1.442695, %v1489_v14 }
 0x27d   : > { %2707 = vpow2.f32 %v1505_v27 }
 0x27f   : > { %1722 = vperm.xlu0 %2674, %v3689_v2  }
 0x283   : > { %v2708_v33 = vpop.eup %2707 }
 0x286   : > { %v1447_v60 = vpop.permute.xlu2 %1446 }
 0x287   : > { %v1496_v20 = vsub.f32 %v3500_v31, %v1447_v60 }
 0x289   : > { %v1519_v43 = vmul.f32 1.442695, %v1496_v20 }
 0x290   : > { %v1427_v0 = vpop.permute.xlu2 %1426 }
 0x291   : > { %v1492_v35 = vsub.f32 %v3514_v16, %v1427_v0 }
 0x296   : > { %v1442_v4 = vpop.permute.xlu1 %1441 }
 0x297   : > { %v1495_v11 = vsub.f32 %v3490_v44, %v1442_v4 }
 0x298   : > { %v3695_v26 = vpop.permute.xlu2 %1662  ;;  %v1417_v29 = vpop.permute.xlu0 %1416 }
 0x299   : > { %v1490_v32 = vsub.f32 %v3494_v59, %v1417_v29  ;;  %v1517_v5 = vmul.f32 1.442695, %v1495_v11  ;;  %v1511_v59 = vmul.f32 1.442695, %v1492_v35 }
 0x29b   : > { %v1507_v55 = vmul.f32 1.442695, %v1490_v32 }
 0x29d   : > { %2709 = vpow2.f32 %v1507_v55 }
 0x29e   : > { %2711 = vpow2.f32 %v1517_v5 }
 0x2a0   : > { %v1422_v30 = vpop.permute.xlu1 %1421  ;;  %1569 = vadd.xlane.f32.xlu2 %v2708_v33  ;;  %v1462_v36 = vpop.permute.xlu2 %1461 }
 0x2a1   : > { %v1491_v41 = vsub.f32 %v3504_v9, %v1422_v30  ;;  %v3701_v37 = vpop.permute.xlu0 %1652 }
 0x2a3   : > { %v2710_v22 = vpop.eup %2709  ;;  %v1509_v44 = vmul.f32 1.442695, %v1491_v41 }
 0x2a4   : > { %v1746_v62 = vpack.c.bf16 %v2710_v22, %v2708_v33  ;;  %v3704_v45 = vpop.eup %2711 }
 0x2a5   : > { %2713 = vpow2.f32 %v1509_v44 }
 0x2a6   : > { %1786 = vmatmul.bf16.vlgmr.msra.gmra.mxu1 %v1746_v62  ;;  %2715 = vpow2.f32 %v1511_v59 }
 0x2a7   : > { %2717 = vpow2.f32 %v1519_v43 }
 0x2a8   : > { %v3706_v63 = vpop.permute.xlu1 %1657  ;;  %1581 = vadd.xlane.f32.xlu2 %v3704_v45  ;;  %v1437_v47 = vpop.permute.xlu2 %1436 }
 0x2a9   : > { %1571 = vadd.xlane.f32.xlu0 %v2710_v22  ;;  %v1452_v9 = vpop.permute.xlu0 %1451  ;;  %v1494_v49 = vsub.f32 %v3532_v10, %v1437_v47 }
 0x2aa   : > { %v1497_v16 = vsub.f32 %v3510_v53, %v1452_v9 }
 0x2ab   : > { %v2714_v31 = vpop.eup %2713  ;;  %v1515_v15 = vmul.f32 1.442695, %v1494_v49 }
 0x2ac   : > { %v1521_v50 = vmul.f32 1.442695, %v1497_v16  ;;  %1573 = vadd.xlane.f32.xlu1 %v2714_v31  ;;  %v2716_v12 = vpop.eup %2715 }
 0x2ad   : > { %v2718_v57 = vpop.eup %2717  ;;  %v1747_v60 = vpack.c.bf16 %v2716_v12, %v2714_v31 }
 0x2ae   : > { %2719 = vpow2.f32 %v1521_v50  ;;  %v1749_v9 = vpack.c.bf16 %v2718_v57, %v3704_v45 }
 0x2b0   : > { %v1457_v48 = vpop.permute.xlu1 %1456  ;;  %1575 = vadd.xlane.f32.xlu2 %v2716_v12  ;;  %v3712_v53 = vpop.permute.xlu2 %1682 }
 0x2b1   : > { %v1498_v52 = vsub.f32 %v3520_v3, %v1457_v48  ;;  %1583 = vadd.xlane.f32.xlu0 %v2718_v57  ;;  %v1499_v3 = vsub.f32 %v3530_v19, %v1462_v36 }
 0x2b3   : > { %v1523_v21 = vmul.f32 1.442695, %v1498_v52  ;;  %v1525_v11 = vmul.f32 1.442695, %v1499_v3 }
 0x2b4   : > { %v2720_v23 = vpop.eup %2719 }
 0x2b5   : > { %2721 = vpow2.f32 %v1523_v21  ;;  %1585 = vadd.xlane.f32.xlu1 %v2720_v23 }
 0x2b6   : > { %2723 = vpow2.f32 %v1515_v15  ;;  %1791 = vmatmul.bf16.gmra.mxu1 %v1747_v60 }
 0x2b8   : > { %v1432_v0 = vpop.permute.xlu1 %1431  ;;  %v1477_v55 = vpop.permute.xlu2 %1476 }
 0x2b9   : > { %v1493_v10 = vsub.f32 %v3523_v51, %v1432_v0  ;;  %v1502_v51 = vsub.f32 %v3562_v61, %v1477_v55  ;;  %v1538_v55 = vld [vmem:[#allocation3 + $0x8] sm:$0xff] }
 0x2bb   : > { %v2722_v14 = vpop.eup %2721  ;;  %v1513_v27 = vmul.f32 1.442695, %v1493_v10  ;;  %v1531_v19 = vmul.f32 1.442695, %v1502_v51 }
 0x2bc   : > { %v2724_v4 = vpop.eup %2723  ;;  %1587 = vadd.xlane.f32.xlu2 %v2722_v14  ;;  %v1750_v52 = vpack.c.bf16 %v2722_v14, %v2720_v23  ;;  %v1537_v14 = vld [vmem:[#allocation3] sm:$0xff] }
 0x2bd   : > { %2725 = vpow2.f32 %v1513_v27  ;;  %1579 = vadd.xlane.f32.xlu1 %v2724_v4 }
 0x2be   : > { %2727 = vpow2.f32 %v1525_v11 }
 0x2c0   : > { %v3716_v29 = vpop.permute.xlu1 %1672  ;;  %v3736_v10 = vpop.permute.xlu2 %1697 }
 0x2c1   : > { %v1467_v32 = vpop.permute.xlu0 %1466 }
 0x2c2   : > { %v1500_v5 = vsub.f32 %v3539_v24, %v1467_v32  ;;  %v1543_v32 = vld [vmem:[#allocation3 + $0x30] sm:$0xff] }
 0x2c3   : > { %v2726_v33 = vpop.eup %2725 }
 0x2c4   : > { %v1527_v30 = vmul.f32 1.442695, %v1500_v5  ;;  %1577 = vadd.xlane.f32.xlu0 %v2726_v33  ;;  %v1748_v35 = vpack.c.bf16 %v2724_v4, %v2726_v33  ;;  %v2728_v20 = vpop.eup %2727  ;;  %v1553_v4 = vmul.f32 %v3604_v56, %v1537_v14  ;;  %v1559_v5 = vmul.f32 %v3633_v38, %v1543_v32  ;;  %v1542_v14 = vld [vmem:[#allocation3 + $0x28] sm:$0xff] }
 0x2c5   : > { %v1730_v38 = vmul.f32 0.0, %v3701_v37  ;;  %v1558_v32 = vmul.f32 %v3657_v25, %v1542_v14  ;;  %v1552_v14 = vld [vmem:[#allocation3 + $0x78] sm:$0xff] }
 0x2c6   : > { %2729 = vpow2.f32 %v1527_v30  ;;  %1796 = vmatmul.bf16.gmra.mxu1 %v1748_v35  ;;  %v1554_v30 = vmul.f32 %v3609_v17, %v1538_v55  ;;  %v1539_v35 = vld [vmem:[#allocation3 + $0x10] sm:$0xff] }
 0x2c7   : > { %2731 = vpow2.f32 %v1531_v19  ;;  %v1555_v56 = vmul.f32 %v3614_v40, %v1539_v35  ;;  %v1541_v35 = vld [vmem:[#allocation3 + $0x20] sm:$0xff] }
 0x2c8   : > { %v3720_v41 = vpop.permute.xlu1 %1687  ;;  %v3738_v27 = vpop.permute.xlu2 %1712 }
 0x2c9   : > { %v3722_v36 = vpop.permute.xlu0 %1667 }
 0x2cc   : > { %v2730_v22 = vpop.eup %2729  ;;  %1589 = vadd.xlane.f32.xlu0 %v2728_v20 }
 0x2cd   : > { %1591 = vadd.xlane.f32.xlu1 %v2730_v22  ;;  %v1751_v24 = vpack.c.bf16 %v2730_v22, %v2728_v20  ;;  %v2732_v61 = vpop.eup %2731 }
 0x2cf   : > { %1811 = vmatmul.bf16.vlgmr.msra.gmra.mxu3 %v1751_v24 }
 0x2d0   : > { %v1472_v44 = vpop.permute.xlu1 %1471 }
 0x2d1   : > { %v1501_v62 = vsub.f32 %v3549_v46, %v1472_v44  ;;  %v3725_v59 = vpop.permute.xlu0 %1692  ;;  %v3742_v23 = vpop.permute.xlu2 %1727  ;;  %v1540_v44 = vld [vmem:[#allocation3 + $0x18] sm:$0xff] }
 0x2d2   : > { %v1556_v17 = vmul.f32 %v3638_v39, %v1540_v44 }
 0x2d3   : > { %v1529_v43 = vmul.f32 1.442695, %v1501_v62 }
 0x2d4   : > { %1595 = vadd.xlane.f32.xlu0 %v2732_v61 }
 0x2d5   : > { %2733 = vpow2.f32 %v1529_v43 }
 0x2d6   : > { %1801 = vmatmul.bf16.gmra.mxu1 %v1749_v9 }
 0x2d8   : > { %v3728_v16 = vpop.permute.xlu1 %1702 }
 0x2d9   : > { %v3730_v31 = vpop.permute.xlu0 %1677 }
 0x2db   : > { %v2734_v47 = vpop.eup %2733 }
 0x2dc   : > { %1593 = vadd.xlane.f32.xlu2 %v2734_v47  ;;  %v1752_v50 = vpack.c.bf16 %v2732_v61, %v2734_v47  ;;  %v1544_v61 = vld [vmem:[#allocation3 + $0x38] sm:$0xff] }
 0x2dd   : > { %v1560_v47 = vmul.f32 %v3636_v58, %v1544_v61  ;;  %v1731_v58 = vmul.f32 0.0, %v3706_v63 }
 0x2df   : > { %1816 = vmatmul.bf16.gmra.mxu3 %v1752_v50 }
 0x2e0   : > { %v3732_v49 = vpop.permute.xlu1 %1717 }
 0x2e1   : > { %v1482_v46 = vpop.permute.xlu0 %1481 }
 0x2e2   : > { %v1503_v12 = vsub.f32 %v3569_v7, %v1482_v46 }
 0x2e4   : > { %v1533_v48 = vmul.f32 1.442695, %v1503_v12  ;;  %v1545_v12 = vld [vmem:[#allocation3 + $0x40] sm:$0xff] }
 0x2e5   : > { %v1561_v39 = vmul.f32 %v3645_v34, %v1545_v12 }
 0x2e6   : > { %2735 = vpow2.f32 %v1533_v48  ;;  %1806 = vmatmul.bf16.gmra.mxu1 %v1750_v52 }
 0x2e8   : > { %v1487_v45 = vpop.permute.xlu1 %1486 }
 0x2e9   : > { %v1504_v57 = vsub.f32 %v3574_v28, %v1487_v45  ;;  %v3740_v7 = vpop.permute.xlu0 %1707 }
 0x2eb   : > { %v1535_v15 = vmul.f32 1.442695, %v1504_v57 }
 0x2ec   : > { %v2736_v21 = vpop.eup %2735 }
 0x2ed   : > { %2737 = vpow2.f32 %v1535_v15  ;;  %1597 = vadd.xlane.f32.xlu1 %v2736_v21 }
 0x2f1   : > { %v3745_v3 = vpop.permute.xlu0 %1722 }
 0x2f3   : > { %v2738_v60 = vpop.eup %2737 }
 0x2f4   : > { %1599 = vadd.xlane.f32.xlu2 %v2738_v60  ;;  %v1753_v0 = vpack.c.bf16 %v2738_v60, %v2736_v21  ;;  %v1546_v60 = vld [vmem:[#allocation3 + $0x48] sm:$0xff] }
 0x2f6   : > { %1821 = vmatmul.bf16.gmra.mxu3 %v1753_v0 }
 0x313   : > { %v1570_v28 = vpop.xlane.xlu2 %1569 }
 0x314   : > { %v1601_v11 = vadd.f32 %v1570_v28, %v1553_v4 }
 0x316   : > { %1618 = vst.msk [vmem:[#allocation3] sm:$0xff] %vm740_vm12, %v1601_v11  ;;  %v1562_v11 = vmul.f32 %v3648_v13, %v1546_v60 }
 0x31b   : > { %v1582_v33 = vpop.xlane.xlu2 %1581 }
 0x31c   : > { %v1607_v51 = vadd.f32 %v1582_v33, %v1559_v5  ;;  %v1572_v19 = vpop.xlane.xlu0 %1571 }
 0x31d   : > { %v1602_v20 = vadd.f32 %v1572_v19, %v1554_v30  ;;  %v1894_v22 = vld [vmem:[#allocation3] sm:$0xff] }
 0x31e   : > { %1624 = vst.msk [vmem:[#allocation3 + $0x30] sm:$0xff] %vm740_vm12, %v1607_v51  ;;  %1912 = vperm.xlu1 %2673, %v1894_v22   ;;  %v1557_v51 = vmul.f32 %v3624_v54, %v1541_v35 }
 0x31f   : > { %1619 = vst.msk [vmem:[#allocation3 + $0x8] sm:$0xff] %vm740_vm12, %v1602_v20  ;;  %v1574_v24 = vpop.xlane.xlu1 %1573 }
 0x320   : > { %v1603_v62 = vadd.f32 %v1574_v24, %v1555_v56  ;;  %v1547_v56 = vld [vmem:[#allocation3 + $0x50] sm:$0xff]  ;;  %v1548_v24 = vld [vmem:[#allocation3 + $0x58] sm:$0xff] }
 0x321   : > { %v1563_v44 = vmul.f32 %v3651_v18, %v1547_v56 }
 0x322   : > { %1620 = vst.msk [vmem:[#allocation3 + $0x10] sm:$0xff] %vm740_vm12, %v1603_v62  ;;  %v1564_v62 = vmul.f32 %v3677_v42, %v1548_v24 }
 0x323   : > { %v1576_v43 = vpop.xlane.xlu2 %1575  ;;  %v1787_v9 = vpop.f32.mrf.mxu1 }
 0x324   : > { %v1604_v50 = vadd.f32 %v1576_v43, %v1556_v17  ;;  %v3757_v46 = vadd.f32 %v1787_v9, %v1730_v38  ;;  %v1584_v40 = vpop.xlane.xlu0 %1583  ;;  %v1734_v9 = vmul.f32 0.0, %v3716_v29  ;;  %v1549_v29 = vld [vmem:[#allocation3 + $0x60] sm:$0xff] }
 0x325   : > { %v1608_v48 = vadd.f32 %v1584_v40, %v1560_v47  ;;  %v1900_v52 = vld [vmem:[#allocation3 + $0x30] sm:$0xff] }
 0x326   : > { %1621 = vst.msk [vmem:[#allocation3 + $0x18] sm:$0xff] %vm740_vm12, %v1604_v50  ;;  %1942 = vperm.xlu1 %2673, %v1900_v52   ;;  %v1895_v45 = vld [vmem:[#allocation3 + $0x8] sm:$0xff] }
 0x327   : > { %1625 = vst.msk [vmem:[#allocation3 + $0x38] sm:$0xff] %vm740_vm12, %v1608_v48  ;;  %1917 = vperm.xlu0 %2674, %v1895_v45   ;;  %v1550_v50 = vld [vmem:[#allocation3 + $0x68] sm:$0xff]  ;;  %v1565_v45 = vmul.f32 %v3668_v6, %v1549_v29 }
 0x328   : > { %v1586_v37 = vpop.xlane.xlu1 %1585  ;;  %v1566_v18 = vmul.f32 %v3671_v1, %v1550_v50  ;;  %v1551_v1 = vld [vmem:[#allocation3 + $0x70] sm:$0xff]  ;;  %v1735_v50 = vmul.f32 0.0, %v3730_v31 }
 0x329   : > { %v1609_v57 = vadd.f32 %v1586_v37, %v1561_v39  ;;  %v1896_v15 = vld [vmem:[#allocation3 + $0x10] sm:$0xff] }
 0x32a   : > { %1922 = vperm.xlu2 %2672, %v1896_v15  }
 0x32b   : > { %1626 = vst.msk [vmem:[#allocation3 + $0x40] sm:$0xff] %vm740_vm12, %v1609_v57  ;;  %v1789_v21 = vpop.f32.mrf.mxu1 }
 0x32c   : > { %v3764_v0 = vadd.f32 %v1789_v21, %v1731_v58  ;;  %v1567_v58 = vmul.f32 %v3689_v2, %v1551_v1 }
 0x32d   : > { %v1897_v4 = vld [vmem:[#allocation3 + $0x18] sm:$0xff] }
 0x32e   : > { %1927 = vperm.xlu1 %2673, %v1897_v4   ;;  %v1901_v28 = vld [vmem:[#allocation3 + $0x38] sm:$0xff]  ;;  %v1568_v4 = vmul.f32 %v3681_v8, %v1552_v14 }
 0x32f   : > { %1947 = vperm.xlu0 %2674, %v1901_v28   ;;  %v1588_v34 = vpop.xlane.xlu2 %1587 }
 0x330   : > { %v1610_v55 = vadd.f32 %v1588_v34, %v1562_v11  ;;  %v1580_v5 = vpop.xlane.xlu1 %1579 }
 0x331   : > { %v1606_v63 = vadd.f32 %v1580_v5, %v1558_v32 }
 0x332   : > { %1627 = vst.msk [vmem:[#allocation3 + $0x48] sm:$0xff] %vm740_vm12, %v1610_v55  ;;  %v1902_v33 = vld [vmem:[#allocation3 + $0x40] sm:$0xff] }
 0x333   : > { %1623 = vst.msk [vmem:[#allocation3 + $0x28] sm:$0xff] %vm740_vm12, %v1606_v63  ;;  %1952 = vperm.xlu2 %2672, %v1902_v33   ;;  %v3770_v30 = vpop.f32.mrf.mxu1 }
 0x337   : > { %v1578_v19 = vpop.xlane.xlu0 %1577 }
 0x338   : > { %v1605_v13 = vadd.f32 %v1578_v19, %v1557_v51 }
 0x339   : > { %v1903_v20 = vld [vmem:[#allocation3 + $0x48] sm:$0xff] }
 0x33a   : > { %1622 = vst.msk [vmem:[#allocation3 + $0x20] sm:$0xff] %vm740_vm12, %v1605_v13  ;;  %v1899_v25 = vld [vmem:[#allocation3 + $0x28] sm:$0xff]  ;;  %1957 = vperm.xlu1 %2673, %v1903_v20  }
 0x33b   : > { %1937 = vperm.xlu2 %2672, %v1899_v25   ;;  %v3774_v22 = vpop.f32.mrf.mxu1  ;;  %v1732_v25 = vmul.f32 0.0, %v3695_v26  ;;  %v3801_v26 = vmul.f32 0.0, %v3712_v53  ;;  %v1738_v53 = vmul.f32 0.0, %v3725_v59 }
 0x33f   : > { %v1590_v61 = vpop.xlane.xlu0 %1589 }
 0x340   : > { %v1592_v38 = vpop.xlane.xlu1 %1591  ;;  %v1611_v17 = vadd.f32 %v1590_v61, %v1563_v44 }
 0x341   : > { %v1612_v54 = vadd.f32 %v1592_v38, %v1564_v62  ;;  %v1898_v43 = vld [vmem:[#allocation3 + $0x20] sm:$0xff]  ;;  %v1829_v62 = vadd.f32 %v3770_v30, %v1732_v25 }
 0x342   : > { %1628 = vst.msk [vmem:[#allocation3 + $0x50] sm:$0xff] %vm740_vm12, %v1611_v17  ;;  %1932 = vperm.xlu0 %2674, %v1898_v43  }
 0x343   : > { %1629 = vst.msk [vmem:[#allocation3 + $0x58] sm:$0xff] %vm740_vm12, %v1612_v54  ;;  %v1797_v47 = vpop.f32.mrf.mxu1 }
 0x344   : > { %v3781_v40 = vadd.f32 %v1797_v47, %v1734_v9 }
 0x347   : > { %v1596_v12 = vpop.xlane.xlu0 %1595 }
 0x348   : > { %v1614_v42 = vadd.f32 %v1596_v12, %v1566_v18 }
 0x349   : > { %v1904_v48 = vld [vmem:[#allocation3 + $0x50] sm:$0xff] }
 0x34a   : > { %1631 = vst.msk [vmem:[#allocation3 + $0x68] sm:$0xff] %vm740_vm12, %v1614_v42  ;;  %v1905_v52 = vld [vmem:[#allocation3 + $0x58] sm:$0xff]  ;;  %1962 = vperm.xlu0 %2674, %v1904_v48  }
 0x34b   : > { %1967 = vperm.xlu2 %2672, %v1905_v52   ;;  %v1799_v32 = vpop.f32.mrf.mxu1 }
 0x34c   : > { %v3814_v29 = vadd.f32 %v1799_v32, %v1735_v50 }
 0x34f   : > { %v1594_v39 = vpop.xlane.xlu2 %1593 }
 0x350   : > { %v1613_v37 = vadd.f32 %v1594_v39, %v1565_v45 }
 0x351   : > { %v1907_v57 = vld [vmem:[#allocation3 + $0x68] sm:$0xff] }
 0x352   : > { %1630 = vst.msk [vmem:[#allocation3 + $0x60] sm:$0xff] %vm740_vm12, %v1613_v37  ;;  %1977 = vperm.xlu0 %2674, %v1907_v57  }
 0x353   : > { %v3791_v5 = vpop.f32.mrf.mxu1 }
 0x359   : > { %v1906_v15 = vld [vmem:[#allocation3 + $0x60] sm:$0xff] }
 0x35a   : > { %1972 = vperm.xlu1 %2673, %v1906_v15  }
 0x35b   : > { %v3793_v8 = vpop.f32.mrf.mxu1 }
 0x360   : > { %v1598_v21 = vpop.xlane.xlu1 %1597 }
 0x361   : > { %v1615_v60 = vadd.f32 %v1598_v21, %v1567_v58 }
 0x363   : > { %1632 = vst.msk [vmem:[#allocation3 + $0x70] sm:$0xff] %vm740_vm12, %v1615_v60  ;;  %v1807_v31 = vpop.f32.mrf.mxu1 }
 0x364   : > { %v1835_v60 = vadd.f32 %v1807_v31, %v1738_v53 }
 0x367   : > { %v1600_v28 = vpop.xlane.xlu2 %1599 }
 0x368   : > { %v1616_v6 = vadd.f32 %v1600_v28, %v1568_v4 }
 0x36a   : > { %1633 = vst.msk [vmem:[#allocation3 + $0x78] sm:$0xff] %vm740_vm12, %v1616_v6  ;;  %v1908_v11 = vld [vmem:[#allocation3 + $0x70] sm:$0xff] }
 0x36b   : > { %1982 = vperm.xlu2 %2672, %v1908_v11  }
 0x371   : > { %v1909_v34 = vld [vmem:[#allocation3 + $0x78] sm:$0xff] }
 0x372   : > { %1987 = vperm.xlu1 %2673, %v1909_v34  }
 0x384   : > { %v1923_v55 = vpop.permute.xlu2 %1922 }
 0x385   : > { %2739 = vrcp.f32 %v1923_v55  ;;  %v2031_v51 = vand.u32 2147483648, %v1923_v55  ;;  %v2029_v13 = vand.u32 2147483647, %v1923_v55  ;;  %vm2025_vm2 = vweird.f32 %v1923_v55 }
 0x387   : > { %v2032_v24 = vor.u32 1.1754944e-38, %v2031_v51  ;;  %vm2030_vm4 = vcmp.eq.f32.partialorder %v2029_v13, 8.507059e+37 }
 0x38b   : > { %v2740_v2 = vpop.eup %2739 }
 0x38c   : > { %v2021_v63 = vmul.f32 %v2740_v2, %v1923_v55  ;;  %vm2026_vm1 = vweird.f32 %v2740_v2 }
 0x38d   : > { %v1953_v33 = vpop.permute.xlu2 %1952  ;;  %vm2027_vm3 = vmor %vm2025_vm2, %vm2026_vm1 }
 0x38e   : > { %v2022_v35 = vsub.f32 1.0, %v2021_v63  ;;  %2741 = vrcp.f32 %v1953_v33  ;;  %v2121_v30 = vand.u32 2147483648, %v1953_v33  ;;  %v2119_v48 = vand.u32 2147483647, %v1953_v33 }
 0x38f   : > { %vm2115_vm6 = vweird.f32 %v1953_v33 }
 0x390   : > { %v2023_v19 = vmul.f32 %v2740_v2, %v2022_v35  ;;  %v1913_v20 = vpop.permute.xlu1 %1912  ;;  %v2122_v1 = vor.u32 1.1754944e-38, %v2121_v30  ;;  %vm2120_vm9 = vcmp.eq.f32.partialorder %v2119_v48, 8.507059e+37 }
 0x391   : > { %2743 = vrcp.f32 %v1913_v20  ;;  %v1999_v37 = vand.u32 2147483647, %v1913_v20  ;;  %v2001_v57 = vand.u32 2147483648, %v1913_v20  ;;  %vm1995_vm10 = vweird.f32 %v1913_v20 }
 0x392   : > { %v2024_v56 = vadd.f32 %v2740_v2, %v2023_v19 }
 0x393   : > { %vm2000_vm12 = vcmp.eq.f32.partialorder %v1999_v37, 8.507059e+37  ;;  %v2002_v32 = vor.u32 1.1754944e-38, %v2001_v57 }
 0x394   : > { %v2742_v44 = vpop.eup %2741  ;;  %v2028_v61 = vsel %vm2027_vm3, %v2740_v2, %v2024_v56 }
 0x395   : > { %v2033_v38 = vsel %vm2030_vm4, %v2032_v24, %v2028_v61  ;;  %v2111_v17 = vmul.f32 %v2742_v44, %v1953_v33  ;;  %v3797_v54 = vpop.permute.xlu2 %1937  ;;  %vm2116_vm5 = vweird.f32 %v2742_v44 }
 0x396   : > { %v2034_v43 = vmul.f32 %v2033_v38, %v1829_v62  ;;  %2745 = vrcp.f32 %v3797_v54  ;;  %vm2117_vm7 = vmor %vm2115_vm6, %vm2116_vm5  ;;  %v2074_v21 = vand.u32 2147483647, %v3797_v54  ;;  %v2076_v6 = vand.u32 2147483648, %v3797_v54 }
 0x397   : > { %v2744_v9 = vpop.eup %2743  ;;  %v2112_v47 = vsub.f32 1.0, %v2111_v17  ;;  %vm2070_vm13 = vweird.f32 %v3797_v54 }
 0x398   : > { %2232 = vst [vmem:[%s3805_s10 + $0x10] sm:$0xff] %v2034_v43  ;;  %v1991_v18 = vmul.f32 %v2744_v9, %v1913_v20  ;;  %v3808_v12 = vpop.permute.xlu1 %1942  ;;  %vm1996_vm8 = vweird.f32 %v2744_v9  ;;  %vm3821_vm14 = vcmp.eq.f32.partialorder %v2074_v21, 8.507059e+37  ;;  %v2077_v24 = vor.u32 1.1754944e-38, %v2076_v6 }
 0x399   : > { %v2113_v42 = vmul.f32 %v2742_v44, %v2112_v47  ;;  %2747 = vrcp.f32 %v3808_v12  ;;  %v3811_v52 = vpop.permute.xlu0 %1917  ;;  %vm1997_vm11 = vmor %vm1995_vm10, %vm1996_vm8  ;;  %v2089_v61 = vand.u32 2147483647, %v3808_v12  ;;  %v2091_v38 = vand.u32 2147483648, %v3808_v12 }
 0x39a   : > { %v1992_v45 = vsub.f32 1.0, %v1991_v18  ;;  %2749 = vrcp.f32 %v3811_v52  ;;  %v2014_v50 = vand.u32 2147483647, %v3811_v52  ;;  %vm2085_vm3 = vweird.f32 %v3808_v12 }
 0x39b   : > { %v2114_v39 = vadd.f32 %v2742_v44, %v2113_v42  ;;  %vm2010_vm4 = vweird.f32 %v3811_v52  ;;  %v2092_v48 = vor.u32 1.1754944e-38, %v2091_v38  ;;  %vm2090_vm6 = vcmp.eq.f32.partialorder %v2089_v61, 8.507059e+37 }
 0x39c   : > { %v2746_v15 = vpop.eup %2745  ;;  %v1993_v58 = vmul.f32 %v2744_v9, %v1992_v45  ;;  %v1833_v45 = vadd.f32 %v3791_v5, %v3801_v26  ;;  %vm2015_vm8 = vcmp.eq.f32.partialorder %v2014_v50, 8.507059e+37  ;;  %v1737_v5 = vmul.f32 0.0, %v3720_v41 }
 0x39d   : > { %v2118_v14 = vsel %vm2117_vm7, %v2742_v44, %v2114_v39  ;;  %v2066_v59 = vmul.f32 %v2746_v15, %v3797_v54  ;;  %vm2071_vm15 = vweird.f32 %v2746_v15 }
 0x39e   : > { %v2123_v4 = vsel %vm2120_vm9, %v2122_v1, %v2118_v14  ;;  %v1994_v28 = vadd.f32 %v2744_v9, %v1993_v58  ;;  %vm2072_vm0 = vmor %vm2070_vm13, %vm2071_vm15  ;;  %v1733_v14 = vmul.f32 0.0, %v3722_v36 }
 0x39f   : > { %v2748_v11 = vpop.eup %2747  ;;  %v2124_v34 = vmul.f32 %v2123_v4, %v1835_v60  ;;  %v2067_v55 = vsub.f32 1.0, %v2066_v59 }
 0x3a0   : > { %v2750_v2 = vpop.eup %2749  ;;  %v1998_v63 = vsel %vm1997_vm11, %v2744_v9, %v1994_v28  ;;  %v2081_v35 = vmul.f32 %v2748_v11, %v3808_v12  ;;  %v3826_v51 = vpop.permute.xlu1 %1927  ;;  %vm2086_vm1 = vweird.f32 %v2748_v11  ;;  %v2016_v9 = vand.u32 2147483648, %v3811_v52 }
 0x3a1   : > { %2238 = vst [vmem:[%s3805_s10 + $0x40] sm:$0xff] %v2124_v34  ;;  %v2003_v19 = vsel %vm2000_vm12, %v2002_v32, %v1998_v63  ;;  %v2068_v13 = vmul.f32 %v2746_v15, %v2067_v55  ;;  %v2006_v20 = vmul.f32 %v2750_v2, %v3811_v52  ;;  %v3830_v25 = vpop.permute.xlu0 %1947  ;;  %2751 = vrcp.f32 %v3826_v51  ;;  %vm2087_vm5 = vmor %vm2085_vm3, %vm2086_vm1  ;;  %v3853_v12 = vpop.f32.mrf.mxu3 }
 0x3a2   : > { %v2004_v56 = vmul.f32 %v2003_v19, %v3757_v46  ;;  %v2082_v44 = vsub.f32 1.0, %v2081_v35  ;;  %2753 = vrcp.f32 %v3830_v25  ;;  %vm2011_vm2 = vweird.f32 %v2750_v2 }
 0x3a3   : > { %v2069_v62 = vadd.f32 %v2746_v15, %v2068_v13  ;;  %v2007_v17 = vsub.f32 1.0, %v2006_v20  ;;  %vm2012_vm7 = vmor %vm2010_vm4, %vm2011_vm2  ;;  %v2017_v37 = vor.u32 1.1754944e-38, %v2016_v9  ;;  %v2044_v59 = vand.u32 2147483647, %v3826_v51 }
 0x3a4   : > { %2230 = vst [vmem:[%s3805_s10] sm:$0xff] %v2004_v56  ;;  %v2083_v43 = vmul.f32 %v2748_v11, %v2082_v44  ;;  %v2046_v4 = vand.u32 2147483648, %v3826_v51  ;;  %v2106_v28 = vand.u32 2147483648, %v3830_v25  ;;  %v1830_v36 = vadd.f32 %v3774_v22, %v1733_v14 }
 0x3a5   : > { %v2073_v46 = vsel %vm2072_vm0, %v2746_v15, %v2069_v62  ;;  %v2008_v47 = vmul.f32 %v2750_v2, %v2007_v17  ;;  %v3842_v30 = vpop.permute.xlu2 %1967  ;;  %vm2040_vm10 = vweird.f32 %v3826_v51  ;;  %v2104_v63 = vand.u32 2147483647, %v3830_v25 }
 0x3a6   : > { %v2078_v18 = vsel %vm3821_vm14, %v2077_v24, %v2073_v46  ;;  %v2084_v42 = vadd.f32 %v2748_v11, %v2083_v43  ;;  %2755 = vrcp.f32 %v3842_v30  ;;  %vm2045_vm13 = vcmp.eq.f32.partialorder %v2044_v59, 8.507059e+37 }
 0x3a7   : > { %v2079_v54 = vmul.f32 %v2078_v18, %v3814_v29  ;;  %v2009_v53 = vadd.f32 %v2750_v2, %v2008_v47  ;;  %v2752_v31 = vpop.eup %2751  ;;  %v2047_v33 = vor.u32 1.1754944e-38, %v2046_v4  ;;  %vm2100_vm14 = vweird.f32 %v3830_v25 }
 0x3a8   : > { %v2088_v39 = vsel %vm2087_vm5, %v2748_v11, %v2084_v42  ;;  %v2036_v57 = vmul.f32 %v2752_v31, %v3826_v51  ;;  %v2754_v15 = vpop.eup %2753  ;;  %vm2041_vm9 = vweird.f32 %v2752_v31  ;;  %v2166_v22 = vand.u32 2147483648, %v3842_v30 }
 0x3a9   : > { %2235 = vst [vmem:[%s3805_s10 + $0x28] sm:$0xff] %v2079_v54  ;;  %v2093_v52 = vsel %vm2090_vm6, %v2092_v48, %v2088_v39  ;;  %v2013_v29 = vsel %vm2012_vm7, %v2750_v2, %v2009_v53  ;;  %v2096_v60 = vmul.f32 %v2754_v15, %v3830_v25  ;;  %vm2101_vm11 = vweird.f32 %v2754_v15  ;;  %vm2042_vm12 = vmor %vm2040_vm10, %vm2041_vm9  ;;  %v1814_v44 = vpop.f32.mrf.mxu3 }
 0x3aa   : > { %v2094_v1 = vmul.f32 %v2093_v52, %v1833_v45  ;;  %v2018_v58 = vsel %vm2015_vm8, %v2017_v37, %v2013_v29  ;;  %v2037_v21 = vsub.f32 1.0, %v2036_v57  ;;  %vm2102_vm15 = vmor %vm2100_vm14, %vm2101_vm11  ;;  %v2164_v56 = vand.u32 2147483647, %v3842_v30 }
 0x3ab   : > { %v2019_v26 = vmul.f32 %v2018_v58, %v3764_v0  ;;  %v2097_v41 = vsub.f32 1.0, %v2096_v60  ;;  %v1741_v0 = vmul.f32 0.0, %v3740_v7  ;;  %v2107_v7 = vor.u32 1.1754944e-38, %v2106_v28 }
 0x3ac   : > { %2236 = vst [vmem:[%s3805_s10 + $0x30] sm:$0xff] %v2094_v1  ;;  %v3865_v6 = vpop.permute.xlu1 %1957  ;;  %v2756_v11 = vpop.eup %2755  ;;  %v2038_v34 = vmul.f32 %v2752_v31, %v2037_v21  ;;  %v1834_v62 = vadd.f32 %v3793_v8, %v1737_v5  ;;  %vm2105_vm1 = vcmp.eq.f32.partialorder %v2104_v63, 8.507059e+37  ;;  %vm2160_vm2 = vweird.f32 %v3842_v30 }
 0x3ad   : > { %2231 = vst [vmem:[%s3805_s10 + $0x8] sm:$0xff] %v2019_v26  ;;  %2757 = vrcp.f32 %v3865_v6  ;;  %v2156_v32 = vmul.f32 %v2756_v11, %v3842_v30  ;;  %v2098_v2 = vmul.f32 %v2754_v15, %v2097_v41  ;;  %vm2161_vm0 = vweird.f32 %v2756_v11 }
 0x3ae   : > { %v2039_v55 = vadd.f32 %v2752_v31, %v2038_v34  ;;  %vm2162_vm3 = vmor %vm2160_vm2, %vm2161_vm0  ;;  %v2167_v47 = vor.u32 1.1754944e-38, %v2166_v22  ;;  %v1838_v50 = vadd.f32 %v1814_v44, %v1741_v0  ;;  %vm2165_vm4 = vcmp.eq.f32.partialorder %v2164_v56, 8.507059e+37 }
 0x3af   : > { %v2157_v35 = vsub.f32 1.0, %v2156_v32  ;;  %v2099_v13 = vadd.f32 %v2754_v15, %v2098_v2  ;;  %v2136_v54 = vand.u32 2147483648, %v3865_v6  ;;  %v2134_v53 = vand.u32 2147483647, %v3865_v6 }
 0x3b0   : > { %v2043_v19 = vsel %vm2042_vm12, %v2752_v31, %v2039_v55  ;;  %v1809_v31 = vpop.f32.mrf.mxu1  ;;  %v1739_v45 = vmul.f32 0.0, %v3736_v10  ;;  %vm2130_vm6 = vweird.f32 %v3865_v6 }
 0x3b1   : > { %v2048_v20 = vsel %vm2045_vm13, %v2047_v33, %v2043_v19  ;;  %v2158_v51 = vmul.f32 %v2756_v11, %v2157_v35  ;;  %v2103_v38 = vsel %vm2102_vm15, %v2754_v15, %v2099_v13  ;;  %v2137_v52 = vor.u32 1.1754944e-38, %v2136_v54  ;;  %v3888_v60 = vpop.f32.mrf.mxu3 }
 0x3b2   : > { %v2049_v61 = vmul.f32 %v2048_v20, %v1830_v36  ;;  %v2108_v25 = vsel %vm2105_vm1, %v2107_v7, %v2103_v38  ;;  %v1836_v29 = vadd.f32 %v1809_v31, %v1739_v45  ;;  %vm2135_vm8 = vcmp.eq.f32.partialorder %v2134_v53, 8.507059e+37 }
 0x3b3   : > { %v2758_v24 = vpop.eup %2757  ;;  %v2159_v17 = vadd.f32 %v2756_v11, %v2158_v51  ;;  %v2109_v46 = vmul.f32 %v2108_v25, %v1834_v62  ;;  %v1740_v33 = vmul.f32 0.0, %v3728_v16 }
 0x3b4   : > { %v2126_v43 = vmul.f32 %v2758_v24, %v3865_v6  ;;  %v1933_v9 = vpop.permute.xlu0 %1932  ;;  %2233 = vst [vmem:[%s3805_s10 + $0x18] sm:$0xff] %v2049_v61  ;;  %vm2131_vm5 = vweird.f32 %v2758_v24 }
 0x3b5   : > { %2759 = vrcp.f32 %v1933_v9  ;;  %v2163_v8 = vsel %vm2162_vm3, %v2756_v11, %v2159_v17  ;;  %2237 = vst [vmem:[%s3805_s10 + $0x38] sm:$0xff] %v2109_v46  ;;  %vm2132_vm7 = vmor %vm2130_vm6, %vm2131_vm5  ;;  %v2061_v21 = vand.u32 2147483648, %v1933_v9  ;;  %v2059_v14 = vand.u32 2147483647, %v1933_v9 }
 0x3b6   : > { %v2127_v18 = vsub.f32 1.0, %v2126_v43  ;;  %v2168_v42 = vsel %vm2165_vm4, %v2167_v47, %v2163_v8  ;;  %vm2055_vm10 = vweird.f32 %v1933_v9  ;;  %v1837_v20 = vadd.f32 %v3853_v12, %v1740_v33 }
 0x3b7   : > { %v2169_v48 = vmul.f32 %v2168_v42, %v1838_v50  ;;  %v2062_v28 = vor.u32 1.1754944e-38, %v2061_v21  ;;  %vm2060_vm12 = vcmp.eq.f32.partialorder %v2059_v14, 8.507059e+37  ;;  %v1744_v47 = vmul.f32 0.0, %v3745_v3 }
 0x3b8   : > { %v2128_v30 = vmul.f32 %v2758_v24, %v2127_v18 }
 0x3b9   : > { %2241 = vst [vmem:[%s3805_s10 + $0x58] sm:$0xff] %v2169_v48  ;;  %v1819_v35 = vpop.f32.mrf.mxu3 }
 0x3ba   : > { %v2129_v39 = vadd.f32 %v2758_v24, %v2128_v30 }
 0x3bb   : > { %v2760_v37 = vpop.eup %2759 }
 0x3bc   : > { %v2133_v57 = vsel %vm2132_vm7, %v2758_v24, %v2129_v39  ;;  %v2051_v15 = vmul.f32 %v2760_v37, %v1933_v9  ;;  %v1963_v1 = vpop.permute.xlu0 %1962  ;;  %vm2056_vm9 = vweird.f32 %v2760_v37  ;;  %v1743_v9 = vmul.f32 0.0, %v3732_v49 }
 0x3bd   : > { %v2138_v58 = vsel %vm2135_vm8, %v2137_v52, %v2133_v57  ;;  %2761 = vrcp.f32 %v1963_v1  ;;  %vm2057_vm11 = vmor %vm2055_vm10, %vm2056_vm9  ;;  %v2151_v55 = vand.u32 2147483648, %v1963_v1  ;;  %v2149_v63 = vand.u32 2147483647, %v1963_v1 }
 0x3be   : > { %v2139_v5 = vmul.f32 %v2138_v58, %v1836_v29  ;;  %v2052_v26 = vsub.f32 1.0, %v2051_v15  ;;  %vm2145_vm14 = vweird.f32 %v1963_v1  ;;  %v1840_v42 = vadd.f32 %v1819_v35, %v1743_v9  ;;  %v2318_v35 = vld [vmem:[%s3805_s10 + $0x8] sm:$0xff] (%p2985_p12) }
 0x3bf   : > { %v2152_v7 = vor.u32 1.1754944e-38, %v2151_v55  ;;  %vm2150_vm0 = vcmp.eq.f32.partialorder %v2149_v63, 8.507059e+37  ;;  %v1742_v58 = vmul.f32 0.0, %v3738_v27  ;;  %2319 = vst [vmem:[%s2257_s12 + $0x10] sm:$0xff] (%p2985_p12), %v2318_v35 }
 0x3c0   : > { %2239 = vst [vmem:[%s3805_s10 + $0x48] sm:$0xff] %v2139_v5  ;;  %v2053_v10 = vmul.f32 %v2760_v37, %v2052_v26 }
 0x3c1   : > { %v1822_v50 = vpop.f32.mrf.mxu3  ;;  %v1839_v21 = vadd.f32 %v3888_v60, %v1742_v58 }
 0x3c2   : > { %v2054_v59 = vadd.f32 %v2760_v37, %v2053_v10  ;;  %v1841_v31 = vadd.f32 %v1822_v50, %v1744_v47 }
 0x3c3   : > { %v2762_v4 = vpop.eup %2761 }
 0x3c4   : > { %v2058_v6 = vsel %vm2057_vm11, %v2760_v37, %v2054_v59  ;;  %v2141_v11 = vmul.f32 %v2762_v4, %v1963_v1  ;;  %v1978_v34 = vpop.permute.xlu0 %1977  ;;  %vm2146_vm13 = vweird.f32 %v2762_v4 }
 0x3c5   : > { %v2063_v41 = vsel %vm2060_vm12, %v2062_v28, %v2058_v6  ;;  %v1983_v0 = vpop.permute.xlu2 %1982  ;;  %2763 = vrcp.f32 %v1978_v34  ;;  %vm2147_vm15 = vmor %vm2145_vm14, %vm2146_vm13  ;;  %v2196_v38 = vand.u32 2147483648, %v1978_v34  ;;  %v2194_v43 = vand.u32 2147483647, %v1978_v34 }
 0x3c6   : > { %v2064_v36 = vmul.f32 %v2063_v41, %v3781_v40  ;;  %v2142_v32 = vsub.f32 1.0, %v2141_v11  ;;  %2765 = vrcp.f32 %v1983_v0  ;;  %v2211_v25 = vand.u32 2147483648, %v1983_v0 }
 0x3c7   : > { %v2209_v12 = vand.u32 2147483647, %v1983_v0  ;;  %vm2190_vm3 = vweird.f32 %v1978_v34  ;;  %vm2205_vm4 = vweird.f32 %v1983_v0  ;;  %v2197_v48 = vor.u32 1.1754944e-38, %v2196_v38 }
 0x3c8   : > { %2234 = vst [vmem:[%s3805_s10 + $0x20] sm:$0xff] %v2064_v36  ;;  %v2143_v2 = vmul.f32 %v2762_v4, %v2142_v32  ;;  %v2212_v30 = vor.u32 1.1754944e-38, %v2211_v25  ;;  %vm2195_vm7 = vcmp.eq.f32.partialorder %v2194_v43, 8.507059e+37  ;;  %v1745_v36 = vmul.f32 0.0, %v3742_v23  ;;  %v2316_v23 = vld [vmem:[%s3805_s10] sm:$0xff] (%p2985_p12) }
 0x3c9   : > { %vm2210_vm8 = vcmp.eq.f32.partialorder %v2209_v12, 8.507059e+37  ;;  %2317 = vst [vmem:[%s2257_s12] sm:$0xff] (%p2985_p12), %v2316_v23 }
 0x3ca   : > { %v2144_v19 = vadd.f32 %v2762_v4, %v2143_v2 }
 0x3cb   : > { %v2764_v13 = vpop.eup %2763 }
 0x3cc   : > { %v2766_v22 = vpop.eup %2765  ;;  %v2148_v40 = vsel %vm2147_vm15, %v2762_v4, %v2144_v19  ;;  %v2186_v51 = vmul.f32 %v2764_v13, %v1978_v34  ;;  %v1973_v56 = vpop.permute.xlu1 %1972  ;;  %vm2191_vm1 = vweird.f32 %v2764_v13  ;;  %v2320_v19 = vld [vmem:[%s3805_s10 + $0x10] sm:$0xff] (%p2985_p12) }
 0x3cd   : > { %v2153_v24 = vsel %vm2150_vm0, %v2152_v7, %v2148_v40  ;;  %v2201_v44 = vmul.f32 %v2766_v22, %v1983_v0  ;;  %2767 = vrcp.f32 %v1973_v56  ;;  %vm2206_vm2 = vweird.f32 %v2766_v22  ;;  %vm2192_vm5 = vmor %vm2190_vm3, %vm2191_vm1  ;;  %v1824_v0 = vpop.f32.mrf.mxu3  ;;  %2321 = vst [vmem:[%s2257_s12 + $0x20] sm:$0xff] (%p2985_p12), %v2320_v19  ;;  %v2330_v40 = vld [vmem:[%s3805_s10 + $0x38] sm:$0xff] (%p2985_p12) }
 0x3ce   : > { %v2154_v62 = vmul.f32 %v2153_v24, %v1837_v20  ;;  %v2187_v61 = vsub.f32 1.0, %v2186_v51  ;;  %vm2207_vm6 = vmor %vm2205_vm4, %vm2206_vm2  ;;  %v2181_v57 = vand.u32 2147483648, %v1973_v56  ;;  %v2179_v1 = vand.u32 2147483647, %v1973_v56  ;;  %v2328_v20 = vld [vmem:[%s3805_s10 + $0x30] sm:$0xff] (%p2985_p12)  ;;  %v2332_v51 = vld [vmem:[%s3805_s10 + $0x40] sm:$0xff] (%p2985_p12) }
 0x3cf   : > { %v2202_v16 = vsub.f32 1.0, %v2201_v44  ;;  %vm2175_vm10 = vweird.f32 %v1973_v56  ;;  %v1842_v55 = vadd.f32 %v1824_v0, %v1745_v36  ;;  %v2324_v7 = vld [vmem:[%s3805_s10 + $0x20] sm:$0xff] (%p2985_p12)  ;;  %2329 = vst [vmem:[%s2257_s12 + $0x60] sm:$0xff] (%p2985_p12), %v2328_v20  ;;  %v2338_v44 = vld [vmem:[%s3805_s10 + $0x58] sm:$0xff] (%p2985_p12) }
 0x3d0   : > { %2240 = vst [vmem:[%s3805_s10 + $0x50] sm:$0xff] %v2154_v62  ;;  %v2188_v17 = vmul.f32 %v2764_v13, %v2187_v61  ;;  %v2182_v26 = vor.u32 1.1754944e-38, %v2181_v57  ;;  %vm2180_vm12 = vcmp.eq.f32.partialorder %v2179_v1, 8.507059e+37 }
 0x3d1   : > { %v2203_v46 = vmul.f32 %v2766_v22, %v2202_v16  ;;  %2325 = vst [vmem:[%s2257_s12 + $0x40] sm:$0xff] (%p2985_p12), %v2324_v7 }
 0x3d2   : > { %v2189_v8 = vadd.f32 %v2764_v13, %v2188_v17  ;;  %2331 = vst [vmem:[%s2257_s12 + $0x70] sm:$0xff] (%p2985_p12), %v2330_v40 }
 0x3d3   : > { %v2768_v18 = vpop.eup %2767  ;;  %v2204_v54 = vadd.f32 %v2766_v22, %v2203_v46  ;;  %2333 = vst [vmem:[%s2257_s12 + $0x80] sm:$0xff] (%p2985_p12), %v2332_v51 }
 0x3d4   : > { %v2193_v53 = vsel %vm2192_vm5, %v2764_v13, %v2189_v8  ;;  %v2171_v49 = vmul.f32 %v2768_v18, %v1973_v56  ;;  %vm2176_vm9 = vweird.f32 %v2768_v18  ;;  %v2322_v13 = vld [vmem:[%s3805_s10 + $0x18] sm:$0xff] (%p2985_p12)  ;;  %v2334_v56 = vld [vmem:[%s3805_s10 + $0x48] sm:$0xff] (%p2985_p12)  ;;  %2339 = vst [vmem:[%s2257_s12 + $0xb0] sm:$0xff] (%p2985_p12), %v2338_v44 }
 0x3d5   : > { %v2208_v45 = vsel %vm2207_vm6, %v2766_v22, %v2204_v54  ;;  %v2198_v3 = vsel %vm2195_vm7, %v2197_v48, %v2193_v53  ;;  %vm2177_vm11 = vmor %vm2175_vm10, %vm2176_vm9  ;;  %v2326_v22 = vld [vmem:[%s3805_s10 + $0x28] sm:$0xff] (%p2985_p12)  ;;  %2323 = vst [vmem:[%s2257_s12 + $0x30] sm:$0xff] (%p2985_p12), %v2322_v13 }
 0x3d6   : > { %v2213_v39 = vsel %vm2210_vm8, %v2212_v30, %v2208_v45  ;;  %v2199_v37 = vmul.f32 %v2198_v3, %v1840_v42  ;;  %v2172_v52 = vsub.f32 1.0, %v2171_v49  ;;  %2327 = vst [vmem:[%s2257_s12 + $0x50] sm:$0xff] (%p2985_p12), %v2326_v22 }
 0x3d7   : > { %v2214_v29 = vmul.f32 %v2213_v39, %v1841_v31  ;;  %v2336_v24 = vld [vmem:[%s3805_s10 + $0x50] sm:$0xff] (%p2985_p12)  ;;  %2335 = vst [vmem:[%s2257_s12 + $0x90] sm:$0xff] (%p2985_p12), %v2334_v56 }
 0x3d8   : > { %2243 = vst [vmem:[%s3805_s10 + $0x68] sm:$0xff] %v2199_v37  ;;  %v2173_v15 = vmul.f32 %v2768_v18, %v2172_v52 }
 0x3d9   : > { %2244 = vst [vmem:[%s3805_s10 + $0x70] sm:$0xff] %v2214_v29 }
 0x3da   : > { %v2174_v5 = vadd.f32 %v2768_v18, %v2173_v15  ;;  %2337 = vst [vmem:[%s2257_s12 + $0xa0] sm:$0xff] (%p2985_p12), %v2336_v24 }
 0x3dc   : > { %v2178_v10 = vsel %vm2177_vm11, %v2768_v18, %v2174_v5 }
 0x3dd   : > { %v2183_v14 = vsel %vm2180_vm12, %v2182_v26, %v2178_v10 }
 0x3de   : > { %v2184_v59 = vmul.f32 %v2183_v14, %v1839_v21 }
 0x3df   : > { %v2342_v61 = vld [vmem:[%s3805_s10 + $0x68] sm:$0xff] (%p2985_p12) }
 0x3e0   : > { %2242 = vst [vmem:[%s3805_s10 + $0x60] sm:$0xff] %v2184_v59  ;;  %v2344_v16 = vld [vmem:[%s3805_s10 + $0x70] sm:$0xff] (%p2985_p12) }
 0x3e1   : > { %2343 = vst [vmem:[%s2257_s12 + $0xd0] sm:$0xff] (%p2985_p12), %v2342_v61 }
 0x3e2   : > { %2345 = vst [vmem:[%s2257_s12 + $0xe0] sm:$0xff] (%p2985_p12), %v2344_v16 }
 0x3e4   : > { %v1988_v4 = vpop.permute.xlu1 %1987 }
 0x3e5   : > { %2769 = vrcp.f32 %v1988_v4  ;;  %v2226_v34 = vand.u32 2147483648, %v1988_v4  ;;  %v2224_v27 = vand.u32 2147483647, %v1988_v4  ;;  %vm2220_vm14 = vweird.f32 %v1988_v4 }
 0x3e7   : > { %v2227_v60 = vor.u32 1.1754944e-38, %v2226_v34  ;;  %vm2225_vm0 = vcmp.eq.f32.partialorder %v2224_v27, 8.507059e+37  ;;  %v2340_v62 = vld [vmem:[%s3805_s10 + $0x60] sm:$0xff] (%p2985_p12) }
 0x3e8   : > { %2341 = vst [vmem:[%s2257_s12 + $0xc0] sm:$0xff] (%p2985_p12), %v2340_v62 }
 0x3eb   : > { %v2770_v28 = vpop.eup %2769 }
 0x3ec   : > { %v2216_v6 = vmul.f32 %v2770_v28, %v1988_v4  ;;  %vm2221_vm13 = vweird.f32 %v2770_v28 }
 0x3ed   : > { %vm2222_vm15 = vmor %vm2220_vm14, %vm2221_vm13 }
 0x3ee   : > { %v2217_v11 = vsub.f32 1.0, %v2216_v6 }
 0x3f0   : > { %v2218_v41 = vmul.f32 %v2770_v28, %v2217_v11 }
 0x3f2   : > { %v2219_v32 = vadd.f32 %v2770_v28, %v2218_v41 }
 0x3f4   : > { %v2223_v2 = vsel %vm2222_vm15, %v2770_v28, %v2219_v32  ;;  %2252 = sbr.rel (!%p2985_p12) target bundleno = 1025 (0x401), region = 178 }
 0x3f5   : > { %v2228_v63 = vsel %vm2225_vm0, %v2227_v60, %v2223_v2 }
 0x3f6   : > { %v2229_v33 = vmul.f32 %v2228_v63, %v1842_v55 }
 0x3f8   : > { %2245 = vst [vmem:[%s3805_s10 + $0x78] sm:$0xff] %v2229_v33 }
 0x3ff   : > { %v2346_v38 = vld [vmem:[%s3805_s10 + $0x78] sm:$0xff] }
 0x400   : > { %2347 = vst [vmem:[%s2257_s12 + $0xf0] sm:$0xff] %v2346_v38 }
 0x401 PF: > { %s17_s9 = sadd.s32 1, %s2841_s9   ;;  %s3972_s24 = smov %s2813_s25 }
 0x402   : > { %p14_p3 = scmp.ge.s32.totalorder %s17_s9, 4   ;;  %s3973_s25 = smov %s2974_s14 }
 0x403   : > { %s3974_s26 = smov %s2821_s27  ;;  %s3975_s27 = smov %s2958_s20 }
 0x404   : > { %s3976_s28 = smov %s2829_s29  ;;  %s3977_s29 = smov %s2955_s19 }
 0x405   : > { %s3978_s30 = smov %s2837_s8  ;;  %s3979_s8 = smov %s3981_s11 }
 0x406   :  { %16 = sbr.rel (!%p14_p3) target bundleno = 8 (0x8), region = 275 }

// kernel: _lambda_.29
= control target key start
LH: loop header
LB: loop body
LE: loop exit
PB: predicated region body
PF: predicated region fallthrough
CT: control target
= control target key end

     0   :  { %s1332_s0 = inlined_call_operand.vmem [shape: f32[128,256], index: 0, kind: input, shape index: {}]   ;;  %s1333_s1 = inlined_call_operand.vmem [shape: f32[128,256], index: 1, kind: input, shape index: {}, may-alias: {1,4}]   ;;  %s1334_s2 = inlined_call_operand.vmem [shape: f32[1,256], index: 2, kind: input, shape index: {}]   ;;  %s1335_s3 = inlined_call_operand.hbm [shape: f32[128,256], index: 3, kind: output, shape index: {0}]   ;;  %s1336_s4 = inlined_call_operand.vmem [shape: f32[128,256], index: 4, kind: output, shape index: {1}, may-alias: {1,4}]  }
   0x1   :  { %v25_v0 = vld [vmem:[%s1332_s0 + $0x40] sm:$0xff]  ;;  %v26_v1 = vld [vmem:[%s1332_s0 + $0x48] sm:$0xff]  ;;  %v27_v20 = vld [vmem:[%s1332_s0 + $0x50] sm:$0xff] }
   0x2   :  { %v57_v2 = vld [vmem:[%s1333_s1 + $0x40] sm:$0xff]  ;;  %v58_v3 = vld [vmem:[%s1333_s1 + $0x48] sm:$0xff]  ;;  %v28_v21 = vld [vmem:[%s1332_s0 + $0x58] sm:$0xff] }
   0x3   :  { %v653_v4 = vadd.f32 %v57_v2, %v25_v0  ;;  %v21_v5 = vld [vmem:[%s1332_s0 + $0x20] sm:$0xff]  ;;  %v22_v6 = vld [vmem:[%s1332_s0 + $0x28] sm:$0xff]  ;;  %v661_v7 = vadd.f32 %v58_v3, %v26_v1  ;;  %v23_v27 = vld [vmem:[%s1332_s0 + $0x30] sm:$0xff] }
   0x4   :  { %v53_v8 = vld [vmem:[%s1333_s1 + $0x20] sm:$0xff]  ;;  %v54_v9 = vld [vmem:[%s1333_s1 + $0x28] sm:$0xff]  ;;  %v24_v28 = vld [vmem:[%s1332_s0 + $0x38] sm:$0xff] }
   0x5   :  { %v17_v10 = vld [vmem:[%s1332_s0] sm:$0xff]  ;;  %v153_v11 = vmul.f32 %v653_v4, %v653_v4  ;;  %121 = vst [vmem:[%s1336_s4 + $0x40] sm:$0xff] %v653_v4  ;;  %v678_v12 = vadd.f32 %v53_v8, %v21_v5  ;;  %v680_v13 = vadd.f32 %v54_v9, %v22_v6  ;;  %v18_v14 = vld [vmem:[%s1332_s0 + $0x8] sm:$0xff]  ;;  %v154_v17 = vmul.f32 %v661_v7, %v661_v7  ;;  %v19_v35 = vld [vmem:[%s1332_s0 + $0x10] sm:$0xff] }
   0x6   :  { %v20_v40 = vld [vmem:[%s1332_s0 + $0x18] sm:$0xff]  ;;  %v33_v46 = vld [vmem:[%s1332_s0 + $0x80] sm:$0xff]  ;;  %v34_v47 = vld [vmem:[%s1332_s0 + $0x88] sm:$0xff] }
   0x7   :  { %v149_v23 = vmul.f32 %v678_v12, %v678_v12  ;;  %v150_v24 = vmul.f32 %v680_v13, %v680_v13  ;;  %v189_v29 = vadd.f32 %v154_v17, %v153_v11  ;;  %v31_v53 = vld [vmem:[%s1332_s0 + $0x70] sm:$0xff]  ;;  %v32_v54 = vld [vmem:[%s1332_s0 + $0x78] sm:$0xff]  ;;  %v29_v58 = vld [vmem:[%s1332_s0 + $0x60] sm:$0xff] }
   0x8   :  { %v30_v60 = vld [vmem:[%s1332_s0 + $0x68] sm:$0xff] }
   0x9   :  { %v183_v36 = vadd.f32 %v150_v24, %v149_v23  ;;  %190 = vadd.xlane.f32.xlu2 %v189_v29  ;;  %v38_v23 = vld [vmem:[%s1332_s0 + $0xa8] sm:$0xff]  ;;  %v35_v29 = vld [vmem:[%s1332_s0 + $0x90] sm:$0xff] }
   0xb   :  { %184 = vadd.xlane.f32.xlu1 %v183_v36 }
   0xc   :  { %v49_v15 = vld [vmem:[%s1333_s1] sm:$0xff]  ;;  %v50_v16 = vld [vmem:[%s1333_s1 + $0x8] sm:$0xff] }
   0xd   :  { %122 = vst [vmem:[%s1336_s4 + $0x48] sm:$0xff] %v661_v7  ;;  %v697_v18 = vadd.f32 %v49_v15, %v17_v10  ;;  %v699_v19 = vadd.f32 %v50_v16, %v18_v14  ;;  %v39_v14 = vld [vmem:[%s1332_s0 + $0xb0] sm:$0xff]  ;;  %v40_v15 = vld [vmem:[%s1332_s0 + $0xb8] sm:$0xff] }
   0xf   :  { %v145_v30 = vmul.f32 %v697_v18, %v697_v18  ;;  %v146_v31 = vmul.f32 %v699_v19, %v699_v19 }
  0x11   :  { %v177_v43 = vadd.f32 %v146_v31, %v145_v30  ;;  %v36_v31 = vld [vmem:[%s1332_s0 + $0x98] sm:$0xff] }
  0x13   :  { %178 = vadd.xlane.f32.xlu0 %v177_v43 }
  0x14   :  { %v59_v22 = vld [vmem:[%s1333_s1 + $0x50] sm:$0xff] }
  0x15   :  { %118 = vst [vmem:[%s1336_s4 + $0x28] sm:$0xff] %v680_v13  ;;  %v721_v26 = vadd.f32 %v59_v22, %v27_v20  ;;  %v37_v22 = vld [vmem:[%s1332_s0 + $0xa0] sm:$0xff] }
  0x17   :  { %v155_v37 = vmul.f32 %v721_v26, %v721_v26 }
  0x1c   :  { %v60_v25 = vld [vmem:[%s1333_s1 + $0x58] sm:$0xff] }
  0x1d   :  { %117 = vst [vmem:[%s1336_s4 + $0x20] sm:$0xff] %v678_v12  ;;  %v737_v32 = vadd.f32 %v60_v25, %v28_v21 }
  0x1f   :  { %v156_v44 = vmul.f32 %v737_v32, %v737_v32 }
  0x21   :  { %v192_v63 = vadd.f32 %v156_v44, %v155_v37 }
  0x23   :  { %193 = vadd.xlane.f32.xlu2 %v192_v63 }
  0x24   :  { %v55_v33 = vld [vmem:[%s1333_s1 + $0x30] sm:$0xff]  ;;  %v56_v34 = vld [vmem:[%s1333_s1 + $0x38] sm:$0xff] }
  0x25   :  { %114 = vst [vmem:[%s1336_s4 + $0x8] sm:$0xff] %v699_v19  ;;  %v754_v38 = vadd.f32 %v55_v33, %v23_v27  ;;  %v756_v39 = vadd.f32 %v56_v34, %v24_v28 }
  0x27   :  { %v151_v49 = vmul.f32 %v754_v38, %v754_v38  ;;  %v152_v50 = vmul.f32 %v756_v39, %v756_v39 }
  0x29   :  { %v186_v2 = vadd.f32 %v152_v50, %v151_v49 }
  0x2b   :  { %187 = vadd.xlane.f32.xlu1 %v186_v2 }
  0x2c   :  { %v51_v41 = vld [vmem:[%s1333_s1 + $0x10] sm:$0xff]  ;;  %v52_v42 = vld [vmem:[%s1333_s1 + $0x18] sm:$0xff] }
  0x2d   :  { %113 = vst [vmem:[%s1336_s4] sm:$0xff] %v697_v18  ;;  %v773_v45 = vadd.f32 %v51_v41, %v19_v35  ;;  %v792_v51 = vadd.f32 %v52_v42, %v20_v40 }
  0x2f   :  { %v147_v55 = vmul.f32 %v773_v45, %v773_v45  ;;  %v148_v59 = vmul.f32 %v792_v51, %v792_v51 }
  0x31   :  { %v180_v6 = vadd.f32 %v148_v59, %v147_v55 }
  0x33   :  { %181 = vadd.xlane.f32.xlu0 %v180_v6 }
  0x34   :  { %v65_v48 = vld [vmem:[%s1333_s1 + $0x80] sm:$0xff] }
  0x35   :  { %123 = vst [vmem:[%s1336_s4 + $0x50] sm:$0xff] %v721_v26  ;;  %v837_v0 = vadd.f32 %v65_v48, %v33_v46 }
  0x37   :  { %v161_v10 = vmul.f32 %v837_v0, %v837_v0 }
  0x3c   :  { %v66_v52 = vld [vmem:[%s1333_s1 + $0x88] sm:$0xff] }
  0x3d   :  { %124 = vst [vmem:[%s1336_s4 + $0x58] sm:$0xff] %v737_v32  ;;  %v839_v1 = vadd.f32 %v66_v52, %v34_v47 }
  0x3f   :  { %v162_v11 = vmul.f32 %v839_v1, %v839_v1 }
  0x41   :  { %v201_v35 = vadd.f32 %v162_v11, %v161_v10 }
  0x44   :  { %v63_v56 = vld [vmem:[%s1333_s1 + $0x70] sm:$0xff]  ;;  %v64_v57 = vld [vmem:[%s1333_s1 + $0x78] sm:$0xff] }
  0x45   :  { %119 = vst [vmem:[%s1336_s4 + $0x30] sm:$0xff] %v754_v38  ;;  %v845_v3 = vadd.f32 %v63_v56, %v31_v53  ;;  %v847_v5 = vadd.f32 %v64_v57, %v32_v54 }
  0x47   :  { %v159_v17 = vmul.f32 %v845_v3, %v845_v3  ;;  %v160_v20 = vmul.f32 %v847_v5, %v847_v5 }
  0x49   :  { %v198_v37 = vadd.f32 %v160_v20, %v159_v17 }
  0x4c   :  { %v61_v61 = vld [vmem:[%s1333_s1 + $0x60] sm:$0xff]  ;;  %v62_v62 = vld [vmem:[%s1333_s1 + $0x68] sm:$0xff] }
  0x4d   :  { %120 = vst [vmem:[%s1336_s4 + $0x38] sm:$0xff] %v756_v39  ;;  %v853_v8 = vadd.f32 %v61_v61, %v29_v58  ;;  %v855_v9 = vadd.f32 %v62_v62, %v30_v60 }
  0x4e   :  { %115 = vst [vmem:[%s1336_s4 + $0x10] sm:$0xff] %v773_v45 }
  0x4f   :  { %116 = vst [vmem:[%s1336_s4 + $0x18] sm:$0xff] %v792_v51  ;;  %v157_v24 = vmul.f32 %v853_v8, %v853_v8  ;;  %v158_v25 = vmul.f32 %v855_v9, %v855_v9 }
  0x50   :  { %129 = vst [vmem:[%s1336_s4 + $0x80] sm:$0xff] %v837_v0 }
  0x51   :  { %130 = vst [vmem:[%s1336_s4 + $0x88] sm:$0xff] %v839_v1 }
  0x58   :  { %v71_v16 = vld [vmem:[%s1333_s1 + $0xb0] sm:$0xff] }
  0x59   :  { %127 = vst [vmem:[%s1336_s4 + $0x70] sm:$0xff] %v845_v3  ;;  %v916_v30 = vadd.f32 %v71_v16, %v39_v14 }
  0x60   :  { %v72_v21 = vld [vmem:[%s1333_s1 + $0xb8] sm:$0xff] }
  0x61   :  { %128 = vst [vmem:[%s1336_s4 + $0x78] sm:$0xff] %v847_v5  ;;  %v931_v36 = vadd.f32 %v72_v21, %v40_v15 }
  0x68   :  { %v69_v27 = vld [vmem:[%s1333_s1 + $0xa0] sm:$0xff]  ;;  %v70_v28 = vld [vmem:[%s1333_s1 + $0xa8] sm:$0xff] }
  0x69   :  { %125 = vst [vmem:[%s1336_s4 + $0x60] sm:$0xff] %v853_v8  ;;  %v937_v40 = vadd.f32 %v69_v27, %v37_v22  ;;  %v939_v41 = vadd.f32 %v70_v28, %v38_v23 }
  0x70   :  { %v67_v33 = vld [vmem:[%s1333_s1 + $0x90] sm:$0xff]  ;;  %v68_v34 = vld [vmem:[%s1333_s1 + $0x98] sm:$0xff] }
  0x71   :  { %126 = vst [vmem:[%s1336_s4 + $0x68] sm:$0xff] %v855_v9 }
  0x72   :  { %135 = vst [vmem:[%s1336_s4 + $0xb0] sm:$0xff] %v916_v30 }
  0x73   :  { %10 = vsyncpa [#allocation3], 0  ;;  %v195_v42 = vadd.f32 %v158_v25, %v157_v24  ;;  %136 = vst [vmem:[%s1336_s4 + $0xb8] sm:$0xff] %v931_v36  ;;  %v945_v43 = vadd.f32 %v67_v33, %v35_v29  ;;  %v947_v44 = vadd.f32 %v68_v34, %v36_v31  ;;  %v45_v46 = vld [vmem:[%s1332_s0 + $0xe0] sm:$0xff]  ;;  %v46_v48 = vld [vmem:[%s1332_s0 + $0xe8] sm:$0xff]  ;;  %202 = vadd.xlane.f32.xlu2 %v201_v35  ;;  %s532_s27 = sshll.u32 %s1335_s3, 4  ;;  %s533_s27 = int_to_ptr.hbm [resolvable:$true] %s532_s27 }
  0x74   :  { %v167_v50 = vmul.f32 %v916_v30, %v916_v30  ;;  %v168_v52 = vmul.f32 %v931_v36, %v931_v36  ;;  %v43_v53 = vld [vmem:[%s1332_s0 + $0xd0] sm:$0xff]  ;;  %199 = vadd.xlane.f32.xlu1 %v198_v37  ;;  %v165_v55 = vmul.f32 %v937_v40, %v937_v40  ;;  %v166_v56 = vmul.f32 %v939_v41, %v939_v41  ;;  %v44_v58 = vld [vmem:[%s1332_s0 + $0xd8] sm:$0xff]  ;;  %v41_v63 = vld [vmem:[%s1332_s0 + $0xc0] sm:$0xff]  ;;  %s614_s28 = smov 256   ;;  %s615_s29 = smov 16  }
  0x75   :  { %196 = vadd.xlane.f32.xlu0 %v195_v42  ;;  %v163_v60 = vmul.f32 %v945_v43, %v945_v43  ;;  %v164_v61 = vmul.f32 %v947_v44, %v947_v44  ;;  %v42_v10 = vld [vmem:[%s1332_s0 + $0xc8] sm:$0xff]  ;;  %v47_v16 = vld [vmem:[%s1332_s0 + $0xf0] sm:$0xff]  ;;  %v48_v22 = vld [vmem:[%s1332_s0 + $0xf8] sm:$0xff] }
  0x76   :  { %v210_v14 = vadd.f32 %v168_v52, %v167_v50  ;;  %v207_v20 = vadd.f32 %v166_v56, %v165_v55  ;;  %v612_v52 = vmov 256.0  }
  0x77   :  { %v204_v24 = vadd.f32 %v164_v61, %v163_v60  ;;  %552 = vrcp.f32 %v612_v52 }
  0x7a   :  { %v77_v47 = vld [vmem:[%s1333_s1 + $0xe0] sm:$0xff] }
  0x7b   :  { %133 = vst [vmem:[%s1336_s4 + $0xa0] sm:$0xff] %v937_v40  ;;  %v987_v57 = vadd.f32 %v77_v47, %v45_v46  ;;  %211 = vadd.xlane.f32.xlu2 %v210_v14 }
  0x7c   :  { %208 = vadd.xlane.f32.xlu1 %v207_v20  ;;  %v191_v60 = vpop.xlane.xlu2 %190 }
  0x7d   :  { %v173_v28 = vmul.f32 %v987_v57, %v987_v57  ;;  %205 = vadd.xlane.f32.xlu0 %v204_v24 }
  0x82   :  { %v78_v49 = vld [vmem:[%s1333_s1 + $0xe8] sm:$0xff] }
  0x83   :  { %134 = vst [vmem:[%s1336_s4 + $0xa8] sm:$0xff] %v939_v41  ;;  %v1003_v62 = vadd.f32 %v78_v49, %v46_v48 }
  0x85   :  { %v174_v29 = vmul.f32 %v1003_v62, %v1003_v62 }
  0x87   :  { %v219_v42 = vadd.f32 %v174_v29, %v173_v28 }
  0x89   :  { %220 = vadd.xlane.f32.xlu2 %v219_v42 }
  0x8a   :  { %v75_v54 = vld [vmem:[%s1333_s1 + $0xd0] sm:$0xff] }
  0x8b   :  { %131 = vst [vmem:[%s1336_s4 + $0x90] sm:$0xff] %v945_v43  ;;  %v1015_v6 = vadd.f32 %v75_v54, %v43_v53  ;;  %v553_v53 = vpop.eup %552 }
  0x8c   :  { %v226_v54 = vmul.f32 256.0, %v553_v53  ;;  %vm230_vm0 = vweird.f32 %v553_v53 }
  0x8d   :  { %v171_v33 = vmul.f32 %v1015_v6, %v1015_v6 }
  0x8e   :  { %v227_v55 = vsub.f32 1.0, %v226_v54 }
  0x90   :  { %v228_v56 = vmul.f32 %v553_v53, %v227_v55 }
  0x92   :  { %v76_v59 = vld [vmem:[%s1333_s1 + $0xd8] sm:$0xff] }
  0x93   :  { %132 = vst [vmem:[%s1336_s4 + $0x98] sm:$0xff] %v947_v44  ;;  %v1027_v15 = vadd.f32 %v76_v59, %v44_v58  ;;  %v229_v58 = vadd.f32 %v553_v53, %v228_v56 }
  0x95   :  { %v172_v34 = vmul.f32 %v1027_v15, %v1027_v15  ;;  %v1089_v59 = vsel %vm230_vm0, %v553_v53, %v229_v58 }
  0x96   :  { %v236_v61 = vmul.f32 %v1089_v59, %v191_v60  ;;  %v194_v20 = vpop.xlane.xlu2 %193 }
  0x97   :  { %v216_v46 = vadd.f32 %v172_v34, %v171_v33 }
  0x99   :  { %217 = vadd.xlane.f32.xlu1 %v216_v46 }
  0x9a   :  { %v73_v2 = vld [vmem:[%s1333_s1 + $0xc0] sm:$0xff] }
  0x9b   :  { %141 = vst [vmem:[%s1336_s4 + $0xe0] sm:$0xff] %v987_v57  ;;  %v1039_v21 = vadd.f32 %v73_v2, %v41_v63  ;;  %v185_v63 = vpop.xlane.xlu1 %184 }
  0x9c   :  { %v234_v2 = vmul.f32 %v1089_v59, %v185_v63 }
  0x9d   :  { %v169_v35 = vmul.f32 %v1039_v21, %v1039_v21 }
  0xa2   :  { %v74_v11 = vld [vmem:[%s1333_s1 + $0xc8] sm:$0xff] }
  0xa3   :  { %142 = vst [vmem:[%s1336_s4 + $0xe8] sm:$0xff] %v1003_v62  ;;  %v1051_v25 = vadd.f32 %v74_v11, %v42_v10  ;;  %v179_v10 = vpop.xlane.xlu0 %178  ;;  %v252_v11 = vadd.f32 1e-06, %v236_v61 }
  0xa4   :  { %v232_v14 = vmul.f32 %v1089_v59, %v179_v10 }
  0xa5   :  { %v170_v37 = vmul.f32 %v1051_v25, %v1051_v25  ;;  %554 = vrsqrt.f32 %v252_v11  ;;  %vm310_vm1 = vweird.f32 %v252_v11 }
  0xa7   :  { %v213_v47 = vadd.f32 %v170_v37, %v169_v35  ;;  %v456_v37 = vld [vmem:[%s1334_s2] sm:$0x3]  ;;  %s613_s2 = smov [#allocation2]  }
  0xa8   :  { %v1110_v52 = vperm.slane %v456_v37, 0  ;;  %v1112_v53 = vperm.slane %v456_v37, 1  ;;  %s530_s24 = sshll.u32 %s613_s2, 4  ;;  %s531_s24 = int_to_ptr.vmem [resolvable:$true] %s530_s24 }
  0xa9   :  { %214 = vadd.xlane.f32.xlu0 %v213_v47 }
  0xaa   :  { %v79_v17 = vld [vmem:[%s1333_s1 + $0xf0] sm:$0xff] }
  0xab   :  { %139 = vst [vmem:[%s1336_s4 + $0xd0] sm:$0xff] %v1015_v6  ;;  %v1057_v27 = vadd.f32 %v79_v17, %v47_v16  ;;  %v250_v16 = vadd.f32 1e-06, %v234_v2  ;;  %v1094_v17 = vadd.f32 1e-06, %v232_v14  ;;  %v182_v28 = vpop.xlane.xlu0 %181  ;;  %v555_v29 = vpop.eup %554 }
  0xac   :  { %v233_v34 = vmul.f32 %v1089_v59, %v182_v28  ;;  %v305_v42 = vmul.f32 %v555_v29, %v252_v11  ;;  %vm311_vm3 = vweird.f32 %v555_v29 }
  0xad   :  { %v175_v48 = vmul.f32 %v1057_v27, %v1057_v27  ;;  %556 = vrsqrt.f32 %v250_v16  ;;  %vm290_vm2 = vweird.f32 %v250_v16  ;;  %vm270_vm4 = vweird.f32 %v1094_v17  ;;  %vm312_vm9 = vmor %vm310_vm1, %vm311_vm3 }
  0xae   :  { %558 = vrsqrt.f32 %v1094_v17  ;;  %v1114_v55 = vadd.f32 1e-06, %v233_v34 }
  0xb0   :  { %vm280_vm14 = vweird.f32 %v1114_v55 }
  0xb2   :  { %v80_v23 = vld [vmem:[%s1333_s1 + $0xf8] sm:$0xff] }
  0xb3   :  { %140 = vst [vmem:[%s1336_s4 + $0xd8] sm:$0xff] %v1027_v15  ;;  %v1067_v31 = vadd.f32 %v80_v23, %v48_v22  ;;  %v237_v22 = vmul.f32 %v1089_v59, %v194_v20  ;;  %v188_v23 = vpop.xlane.xlu1 %187  ;;  %v557_v35 = vpop.eup %556 }
  0xb4   :  { %137 = vst [vmem:[%s1336_s4 + $0xc0] sm:$0xff] %v1039_v21  ;;  %v235_v24 = vmul.f32 %v1089_v59, %v188_v23  ;;  %v559_v47 = vpop.eup %558  ;;  %vm291_vm5 = vweird.f32 %v557_v35 }
  0xb5   :  { %138 = vst [vmem:[%s1336_s4 + $0xc8] sm:$0xff] %v1051_v25  ;;  %v176_v49 = vmul.f32 %v1067_v31, %v1067_v31  ;;  %v1099_v33 = vadd.f32 1e-06, %v237_v22  ;;  %vm271_vm6 = vweird.f32 %v559_v47  ;;  %vm292_vm10 = vmor %vm290_vm2, %vm291_vm5 }
  0xb6   :  { %143 = vst [vmem:[%s1336_s4 + $0xf0] sm:$0xff] %v1057_v27  ;;  %v1105_v46 = vadd.f32 1e-06, %v235_v24  ;;  %vm272_vm12 = vmor %vm270_vm4, %vm271_vm6 }
  0xb7   :  { %144 = vst [vmem:[%s1336_s4 + $0xf8] sm:$0xff] %v1067_v31  ;;  %v222_v50 = vadd.f32 %v176_v49, %v175_v48  ;;  %v285_v48 = vmul.f32 %v557_v35, %v250_v16  ;;  %560 = vrsqrt.f32 %v1099_v33  ;;  %v306_v49 = vmul.f32 %v555_v29, %v305_v42 }
  0xb8   :  { %562 = vrsqrt.f32 %v1105_v46  ;;  %vm320_vm7 = vweird.f32 %v1099_v33  ;;  %vm300_vm8 = vweird.f32 %v1105_v46 }
  0xb9   :  { %223 = vadd.xlane.f32.xlu0 %v222_v50  ;;  %v265_v50 = vmul.f32 %v559_v47, %v1094_v17  ;;  %v286_v54 = vmul.f32 %v557_v35, %v285_v48  ;;  %v307_v56 = vmul.f32 0.5, %v306_v49  ;;  %564 = vrsqrt.f32 %v1114_v55 }
  0xbb   :  { %v266_v58 = vmul.f32 %v559_v47, %v265_v50  ;;  %v287_v61 = vmul.f32 0.5, %v286_v54  ;;  %v308_v10 = vsub.f32 1.5, %v307_v56 }
  0xbd   :  { %v267_v14 = vmul.f32 0.5, %v266_v58  ;;  %v561_v22 = vpop.eup %560  ;;  %v288_v23 = vsub.f32 1.5, %v287_v61  ;;  %v309_v34 = vmul.f32 %v555_v29, %v308_v10 }
  0xbe   :  { %v1122_v28 = vpop.eup %562  ;;  %v315_v42 = vmul.f32 %v561_v22, %v1099_v33  ;;  %vm321_vm11 = vweird.f32 %v561_v22 }
  0xbf   :  { %v268_v37 = vsub.f32 1.5, %v267_v14  ;;  %v289_v49 = vmul.f32 %v557_v35, %v288_v23  ;;  %v295_v50 = vmul.f32 %v1122_v28, %v1105_v46  ;;  %v313_v56 = vsel %vm312_vm9, %v555_v29, %v309_v34  ;;  %v1141_v10 = vpop.eup %564  ;;  %vm322_vm0 = vmor %vm320_vm7, %vm321_vm11 }
  0xc0   :  { %v432_v61 = vmul.f32 %v313_v56, %v653_v4  ;;  %v433_v11 = vmul.f32 %v313_v56, %v661_v7  ;;  %vm301_vm13 = vweird.f32 %v1122_v28  ;;  %vm281_vm2 = vweird.f32 %v1141_v10 }
  0xc1   :  { %v269_v58 = vmul.f32 %v559_v47, %v268_v37  ;;  %vm302_vm1 = vmor %vm300_vm8, %vm301_vm13 }
  0xc2   :  { %v470_v23 = vmul.f32 %v1110_v52, %v432_v61  ;;  %v471_v4 = vmul.f32 %v1112_v53, %v433_v11  ;;  %vm282_vm4 = vmor %vm280_vm14, %vm281_vm2 }
  0xc3   :  { %v273_v14 = vsel %vm272_vm12, %v559_v47, %v269_v58  ;;  %v275_v47 = vmul.f32 %v1141_v10, %v1114_v55 }
  0xc4   :  { %v424_v7 = vmul.f32 %v273_v14, %v697_v18  ;;  %502 = vst [vmem:[#allocation2 + $0x40] sm:$0xff] %v470_v23 }
  0xc5   :  { %503 = vst [vmem:[#allocation2 + $0x48] sm:$0xff] %v471_v4 }
  0xe6   :  { %v203_v60 = vpop.xlane.xlu2 %202 }
  0xe7   :  { %v240_v63 = vmul.f32 %v1089_v59, %v203_v60  ;;  %v200_v2 = vpop.xlane.xlu1 %199  ;;  %v316_v60 = vmul.f32 %v561_v22, %v315_v42 }
  0xe8   :  { %v197_v20 = vpop.xlane.xlu0 %196  ;;  %v239_v48 = vmul.f32 %v1089_v59, %v200_v2  ;;  %v296_v2 = vmul.f32 %v1122_v28, %v295_v50 }
  0xe9   :  { %v1120_v24 = vadd.f32 1e-06, %v240_v63  ;;  %v238_v54 = vmul.f32 %v1089_v59, %v197_v20  ;;  %v293_v63 = vsel %vm292_vm10, %v557_v35, %v289_v49  ;;  %v317_v20 = vmul.f32 0.5, %v316_v60 }
  0xea   :  { %v428_v29 = vmul.f32 %v293_v63, %v678_v12  ;;  %v429_v16 = vmul.f32 %v293_v63, %v680_v13  ;;  %v425_v35 = vmul.f32 %v273_v14, %v699_v19  ;;  %v297_v49 = vmul.f32 0.5, %v296_v2 }
  0xeb   :  { %566 = vrsqrt.f32 %v1120_v24  ;;  %v318_v42 = vsub.f32 1.5, %v317_v20  ;;  %v462_v13 = vmul.f32 %v1110_v52, %v424_v7  ;;  %vm350_vm15 = vweird.f32 %v1120_v24 }
  0xec   :  { %v466_v34 = vmul.f32 %v1110_v52, %v428_v29  ;;  %v467_v37 = vmul.f32 %v1112_v53, %v429_v16  ;;  %v463_v19 = vmul.f32 %v1112_v53, %v425_v35  ;;  %v298_v56 = vsub.f32 1.5, %v297_v49 }
  0xed   :  { %v319_v50 = vmul.f32 %v561_v22, %v318_v42  ;;  %v276_v60 = vmul.f32 %v1141_v10, %v275_v47  ;;  %v1166_v61 = vadd.f32 1e-06, %v239_v48  ;;  %v1168_v11 = vadd.f32 1e-06, %v238_v54  ;;  %494 = vst [vmem:[#allocation2] sm:$0xff] %v462_v13 }
  0xee   :  { %v212_v17 = vpop.xlane.xlu2 %211  ;;  %498 = vst [vmem:[#allocation2 + $0x20] sm:$0xff] %v466_v34  ;;  %v299_v29 = vmul.f32 %v1122_v28, %v298_v56 }
  0xef   :  { %v209_v18 = vpop.xlane.xlu1 %208  ;;  %v243_v63 = vmul.f32 %v1089_v59, %v212_v17  ;;  %499 = vst [vmem:[#allocation2 + $0x28] sm:$0xff] %v467_v37  ;;  %v323_v2 = vsel %vm322_vm0, %v561_v22, %v319_v50  ;;  %v277_v48 = vmul.f32 0.5, %v276_v60  ;;  %568 = vrsqrt.f32 %v1166_v61 }
  0xf0   :  { %v242_v14 = vmul.f32 %v1089_v59, %v209_v18  ;;  %v206_v20 = vpop.xlane.xlu0 %205  ;;  %v434_v33 = vmul.f32 %v323_v2, %v721_v26  ;;  %v435_v23 = vmul.f32 %v323_v2, %v737_v32  ;;  %495 = vst [vmem:[#allocation2 + $0x8] sm:$0xff] %v463_v19  ;;  %v303_v22 = vsel %vm302_vm1, %v1122_v28, %v299_v29 }
  0xf1   :  { %v1151_v12 = vpop.eup %566  ;;  %570 = vrsqrt.f32 %v1168_v11  ;;  %v430_v4 = vmul.f32 %v303_v22, %v754_v38  ;;  %v431_v46 = vmul.f32 %v303_v22, %v756_v39  ;;  %v278_v7 = vsub.f32 1.5, %v277_v48 }
  0xf2   :  { %v345_v58 = vmul.f32 %v1151_v12, %v1120_v24  ;;  %v472_v26 = vmul.f32 %v1110_v52, %v434_v33  ;;  %v473_v32 = vmul.f32 %v1112_v53, %v435_v23  ;;  %vm351_vm3 = vweird.f32 %v1151_v12 }
  0xf3   :  { %v1189_v17 = vadd.f32 1e-06, %v243_v63  ;;  %v468_v28 = vmul.f32 %v1110_v52, %v430_v4  ;;  %v469_v34 = vmul.f32 %v1112_v53, %v431_v46  ;;  %v1193_v37 = vadd.f32 1e-06, %v242_v14  ;;  %vm352_vm5 = vmor %vm350_vm15, %vm351_vm3 }
  0xf4   :  { %v346_v16 = vmul.f32 %v1151_v12, %v345_v58  ;;  %504 = vst [vmem:[#allocation2 + $0x50] sm:$0xff] %v472_v26  ;;  %v241_v42 = vmul.f32 %v1089_v59, %v206_v20  ;;  %v279_v38 = vmul.f32 %v1141_v10, %v278_v7  ;;  %vm340_vm6 = vweird.f32 %v1166_v61 }
  0xf5   :  { %505 = vst [vmem:[#allocation2 + $0x58] sm:$0xff] %v473_v32  ;;  %572 = vrsqrt.f32 %v1189_v17  ;;  %v569_v13 = vpop.eup %568  ;;  %vm330_vm7 = vweird.f32 %v1168_v11  ;;  %vm380_vm8 = vweird.f32 %v1189_v17  ;;  %vm370_vm9 = vweird.f32 %v1193_v37 }
  0xf6   :  { %v347_v54 = vmul.f32 0.5, %v346_v16  ;;  %500 = vst [vmem:[#allocation2 + $0x30] sm:$0xff] %v468_v28  ;;  %574 = vrsqrt.f32 %v1193_v37  ;;  %v1209_v47 = vadd.f32 1e-06, %v241_v42  ;;  %v283_v55 = vsel %vm282_vm4, %v1141_v10, %v279_v38 }
  0xf7   :  { %v1211_v18 = vpop.eup %570  ;;  %501 = vst [vmem:[#allocation2 + $0x38] sm:$0xff] %v469_v34  ;;  %v335_v50 = vmul.f32 %v569_v13, %v1166_v61  ;;  %v426_v24 = vmul.f32 %v283_v55, %v773_v45  ;;  %v427_v58 = vmul.f32 %v283_v55, %v792_v51  ;;  %vm341_vm10 = vweird.f32 %v569_v13 }
  0xf8   :  { %v348_v35 = vsub.f32 1.5, %v347_v54  ;;  %v325_v29 = vmul.f32 %v1211_v18, %v1168_v11  ;;  %576 = vrsqrt.f32 %v1209_v47  ;;  %vm331_vm11 = vweird.f32 %v1211_v18  ;;  %vm342_vm12 = vmor %vm340_vm6, %vm341_vm10 }
  0xf9   :  { %v336_v2 = vmul.f32 %v569_v13, %v335_v50  ;;  %v464_v16 = vmul.f32 %v1110_v52, %v426_v24  ;;  %v465_v45 = vmul.f32 %v1112_v53, %v427_v58  ;;  %vm360_vm15 = vweird.f32 %v1209_v47  ;;  %vm332_vm0 = vmor %vm330_vm7, %vm331_vm11 }
  0xfa   :  { %v349_v39 = vmul.f32 %v1151_v12, %v348_v35  ;;  %v326_v20 = vmul.f32 %v1211_v18, %v325_v29 }
  0xfb   :  { %v337_v14 = vmul.f32 0.5, %v336_v2  ;;  %496 = vst [vmem:[#allocation2 + $0x10] sm:$0xff] %v464_v16 }
  0xfc   :  { %v221_v49 = vpop.xlane.xlu2 %220  ;;  %v353_v19 = vsel %vm352_vm5, %v1151_v12, %v349_v39  ;;  %497 = vst [vmem:[#allocation2 + $0x18] sm:$0xff] %v465_v45  ;;  %v327_v32 = vmul.f32 0.5, %v326_v20 }
  0xfd   :  { %v246_v56 = vmul.f32 %v1089_v59, %v221_v49  ;;  %v440_v60 = vmul.f32 %v353_v19, %v837_v0  ;;  %v441_v63 = vmul.f32 %v353_v19, %v839_v1  ;;  %v1229_v0 = vpop.eup %572  ;;  %v338_v26 = vsub.f32 1.5, %v337_v14 }
  0xfe   :  { %v575_v23 = vpop.eup %574  ;;  %v375_v48 = vmul.f32 %v1229_v0, %v1189_v17  ;;  %v328_v34 = vsub.f32 1.5, %v327_v32  ;;  %vm381_vm13 = vweird.f32 %v1229_v0 }
  0xff   :  { %v478_v51 = vmul.f32 %v1110_v52, %v440_v60  ;;  %v479_v1 = vmul.f32 %v1112_v53, %v441_v63  ;;  %v1233_v33 = vadd.f32 1e-06, %v246_v56  ;;  %v365_v4 = vmul.f32 %v575_v23, %v1193_v37  ;;  %v1246_v35 = vpop.eup %576  ;;  %vm382_vm2 = vmor %vm380_vm8, %vm381_vm13 }
 0x100   :  { %v376_v46 = vmul.f32 %v1229_v0, %v375_v48  ;;  %v339_v28 = vmul.f32 %v569_v13, %v338_v26  ;;  %v355_v39 = vmul.f32 %v1246_v35, %v1209_v47  ;;  %v329_v19 = vmul.f32 %v1211_v18, %v328_v34 }
 0x101   :  { %510 = vst [vmem:[#allocation2 + $0x80] sm:$0xff] %v478_v51  ;;  %578 = vrsqrt.f32 %v1233_v33  ;;  %v366_v42 = vmul.f32 %v575_v23, %v365_v4  ;;  %vm371_vm14 = vweird.f32 %v575_v23  ;;  %vm410_vm1 = vweird.f32 %v1233_v33 }
 0x102   :  { %511 = vst [vmem:[#allocation2 + $0x88] sm:$0xff] %v479_v1  ;;  %v377_v38 = vmul.f32 0.5, %v376_v46  ;;  %v343_v55 = vsel %vm342_vm12, %v569_v13, %v339_v28  ;;  %v356_v58 = vmul.f32 %v1246_v35, %v355_v39  ;;  %v333_v13 = vsel %vm332_vm0, %v1211_v18, %v329_v19  ;;  %vm372_vm3 = vmor %vm370_vm9, %vm371_vm14 }
 0x103   :  { %v367_v50 = vmul.f32 0.5, %v366_v42  ;;  %v438_v56 = vmul.f32 %v343_v55, %v845_v3  ;;  %v439_v61 = vmul.f32 %v343_v55, %v847_v5  ;;  %v436_v29 = vmul.f32 %v333_v13, %v853_v8 }
 0x104   :  { %v378_v24 = vsub.f32 1.5, %v377_v38  ;;  %v437_v11 = vmul.f32 %v333_v13, %v855_v9  ;;  %vm361_vm4 = vweird.f32 %v1246_v35 }
 0x105   :  { %v368_v60 = vsub.f32 1.5, %v367_v50  ;;  %v476_v3 = vmul.f32 %v1110_v52, %v438_v56  ;;  %v477_v5 = vmul.f32 %v1112_v53, %v439_v61  ;;  %v474_v51 = vmul.f32 %v1110_v52, %v436_v29  ;;  %vm362_vm6 = vmor %vm360_vm15, %vm361_vm4 }
 0x106   :  { %v475_v1 = vmul.f32 %v1112_v53, %v437_v11 }
 0x107   :  { %v579_v2 = vpop.eup %578  ;;  %v369_v18 = vmul.f32 %v575_v23, %v368_v60  ;;  %508 = vst [vmem:[#allocation2 + $0x70] sm:$0xff] %v476_v3 }
 0x108   :  { %v405_v16 = vmul.f32 %v579_v2, %v1233_v33  ;;  %509 = vst [vmem:[#allocation2 + $0x78] sm:$0xff] %v477_v5  ;;  %vm411_vm5 = vweird.f32 %v579_v2 }
 0x109   :  { %v373_v17 = vsel %vm372_vm3, %v575_v23, %v369_v18  ;;  %506 = vst [vmem:[#allocation2 + $0x60] sm:$0xff] %v474_v51  ;;  %vm412_vm7 = vmor %vm410_vm1, %vm411_vm5 }
 0x10a   :  { %v406_v20 = vmul.f32 %v579_v2, %v405_v16  ;;  %v445_v37 = vmul.f32 %v373_v17, %v939_v41  ;;  %507 = vst [vmem:[#allocation2 + $0x68] sm:$0xff] %v475_v1 }
 0x10c   :  { %v218_v10 = vpop.xlane.xlu1 %217 }
 0x10d   :  { %v245_v22 = vmul.f32 %v1089_v59, %v218_v10  ;;  %v379_v10 = vmul.f32 %v1229_v0, %v378_v24 }
 0x10f   :  { %v1244_v7 = vadd.f32 1e-06, %v245_v22  ;;  %v383_v9 = vsel %vm382_vm2, %v1229_v0, %v379_v10 }
 0x110   :  { %v446_v48 = vmul.f32 %v383_v9, %v916_v30  ;;  %v447_v22 = vmul.f32 %v383_v9, %v931_v36  ;;  %v483_v36 = vmul.f32 %v1112_v53, %v445_v37 }
 0x111   :  { %580 = vrsqrt.f32 %v1244_v7  ;;  %vm400_vm8 = vweird.f32 %v1244_v7 }
 0x112   :  { %v484_v23 = vmul.f32 %v1110_v52, %v446_v48  ;;  %v485_v4 = vmul.f32 %v1112_v53, %v447_v22  ;;  %515 = vst [vmem:[#allocation2 + $0xa8] sm:$0xff] %v483_v36 }
 0x114   :  { %516 = vst [vmem:[#allocation2 + $0xb0] sm:$0xff] %v484_v23 }
 0x115   :  { %517 = vst [vmem:[#allocation2 + $0xb8] sm:$0xff] %v485_v4 }
 0x117   :  { %v581_v45 = vpop.eup %580 }
 0x118   :  { %v395_v0 = vmul.f32 %v581_v45, %v1244_v7  ;;  %vm401_vm9 = vweird.f32 %v581_v45 }
 0x119   :  { %vm402_vm11 = vmor %vm400_vm8, %vm401_vm9 }
 0x11a   :  { %v396_v46 = vmul.f32 %v581_v45, %v395_v0 }
 0x11c   :  { %v215_v12 = vpop.xlane.xlu0 %214  ;;  %v397_v55 = vmul.f32 0.5, %v396_v46 }
 0x11d   :  { %v244_v54 = vmul.f32 %v1089_v59, %v215_v12  ;;  %v357_v12 = vmul.f32 0.5, %v356_v58 }
 0x11f   :  { %v1248_v49 = vadd.f32 1e-06, %v244_v54  ;;  %v358_v14 = vsub.f32 1.5, %v357_v12  ;;  %v444_v54 = vmul.f32 %v373_v17, %v937_v40 }
 0x121   :  { %582 = vrsqrt.f32 %v1248_v49  ;;  %v359_v32 = vmul.f32 %v1246_v35, %v358_v14  ;;  %v482_v30 = vmul.f32 %v1110_v52, %v444_v54  ;;  %vm390_vm12 = vweird.f32 %v1248_v49 }
 0x123   :  { %v363_v40 = vsel %vm362_vm6, %v1246_v35, %v359_v32  ;;  %514 = vst [vmem:[#allocation2 + $0xa0] sm:$0xff] %v482_v30 }
 0x124   :  { %v442_v34 = vmul.f32 %v363_v40, %v945_v43  ;;  %v443_v42 = vmul.f32 %v363_v40, %v947_v44  ;;  %v398_v44 = vsub.f32 1.5, %v397_v55 }
 0x126   :  { %v480_v47 = vmul.f32 %v1110_v52, %v442_v34  ;;  %v481_v50 = vmul.f32 %v1112_v53, %v443_v42  ;;  %v399_v24 = vmul.f32 %v581_v45, %v398_v44 }
 0x127   :  { %v583_v26 = vpop.eup %582 }
 0x128   :  { %v385_v28 = vmul.f32 %v583_v26, %v1248_v49  ;;  %512 = vst [vmem:[#allocation2 + $0x90] sm:$0xff] %v480_v47  ;;  %vm391_vm10 = vweird.f32 %v583_v26  ;;  %v403_v60 = vsel %vm402_vm11, %v581_v45, %v399_v24 }
 0x129   :  { %513 = vst [vmem:[#allocation2 + $0x98] sm:$0xff] %v481_v50  ;;  %vm392_vm13 = vmor %vm390_vm12, %vm391_vm10 }
 0x12a   :  { %v386_v19 = vmul.f32 %v583_v26, %v385_v28 }
 0x12c   :  { %v224_v63 = vpop.xlane.xlu0 %223  ;;  %v387_v35 = vmul.f32 0.5, %v386_v19 }
 0x12d   :  { %v247_v8 = vmul.f32 %v1089_v59, %v224_v63  ;;  %v407_v59 = vmul.f32 0.5, %v406_v20 }
 0x12e   :  { %v388_v58 = vsub.f32 1.5, %v387_v35 }
 0x12f   :  { %v408_v41 = vsub.f32 1.5, %v407_v59  ;;  %v263_v38 = vadd.f32 1e-06, %v247_v8 }
 0x130   :  { %v389_v63 = vmul.f32 %v583_v26, %v388_v58 }
 0x131   :  { %v409_v39 = vmul.f32 %v579_v2, %v408_v41  ;;  %584 = vrsqrt.f32 %v263_v38  ;;  %vm420_vm15 = vweird.f32 %v263_v38 }
 0x132   :  { %v393_v3 = vsel %vm392_vm13, %v583_v26, %v389_v63 }
 0x133   :  { %v413_v43 = vsel %vm412_vm7, %v579_v2, %v409_v39  ;;  %v448_v7 = vmul.f32 %v393_v3, %v1039_v21  ;;  %v449_v10 = vmul.f32 %v393_v3, %v1051_v25 }
 0x134   :  { %v452_v56 = vmul.f32 %v413_v43, %v987_v57  ;;  %v453_v61 = vmul.f32 %v413_v43, %v1003_v62  ;;  %v450_v57 = vmul.f32 %v403_v60, %v1015_v6  ;;  %v451_v62 = vmul.f32 %v403_v60, %v1027_v15 }
 0x135   :  { %v486_v49 = vmul.f32 %v1110_v52, %v448_v7  ;;  %v487_v6 = vmul.f32 %v1112_v53, %v449_v10 }
 0x136   :  { %v490_v33 = vmul.f32 %v1110_v52, %v452_v56  ;;  %v491_v13 = vmul.f32 %v1112_v53, %v453_v61  ;;  %v488_v29 = vmul.f32 %v1110_v52, %v450_v57  ;;  %v489_v11 = vmul.f32 %v1112_v53, %v451_v62 }
 0x137   :  { %v585_v2 = vpop.eup %584  ;;  %518 = vst [vmem:[#allocation2 + $0xc0] sm:$0xff] %v486_v49 }
 0x138   :  { %522 = vst [vmem:[#allocation2 + $0xe0] sm:$0xff] %v490_v33  ;;  %v415_v5 = vmul.f32 %v585_v2, %v263_v38  ;;  %vm421_vm14 = vweird.f32 %v585_v2 }
 0x139   :  { %523 = vst [vmem:[#allocation2 + $0xe8] sm:$0xff] %v491_v13  ;;  %vm422_vm0 = vmor %vm420_vm15, %vm421_vm14 }
 0x13a   :  { %v416_v18 = vmul.f32 %v585_v2, %v415_v5  ;;  %520 = vst [vmem:[#allocation2 + $0xd0] sm:$0xff] %v488_v29 }
 0x13b   :  { %521 = vst [vmem:[#allocation2 + $0xd8] sm:$0xff] %v489_v11 }
 0x13c   :  { %v417_v15 = vmul.f32 0.5, %v416_v18  ;;  %519 = vst [vmem:[#allocation2 + $0xc8] sm:$0xff] %v487_v6 }
 0x13e   :  { %v418_v12 = vsub.f32 1.5, %v417_v15 }
 0x140   :  { %v419_v16 = vmul.f32 %v585_v2, %v418_v12 }
 0x142   :  { %v423_v45 = vsel %vm422_vm0, %v585_v2, %v419_v16 }
 0x143   :  { %v454_v21 = vmul.f32 %v423_v45, %v1057_v27  ;;  %v455_v25 = vmul.f32 %v423_v45, %v1067_v31 }
 0x145   :  { %v492_v51 = vmul.f32 %v1110_v52, %v454_v21  ;;  %v493_v1 = vmul.f32 %v1112_v53, %v455_v25 }
 0x147   :  { %524 = vst [vmem:[#allocation2 + $0xf0] sm:$0xff] %v492_v51 }
 0x148   :  { %525 = vst [vmem:[#allocation2 + $0xf8] sm:$0xff] %v493_v1 }
 0x149   :  { %538 = dma.vmem_to_hbm [thread:$0]  %s531_s24, 4096, %s533_s27, [#allocation3], %s614_s28, %s614_s28, %s615_s29  }
 0x14a   :  { %610 = dma.done.wait [#allocation3], 4096  }
 0x14b   :  { %611 = vsyncadd [#allocation3], 4294963200 }
 0x14c   :  { %547 = vsyncpa [#allocation3], 1 }

// kernel: _lambda_.20
= control target key start
LH: loop header
LB: loop body
LE: loop exit
PB: predicated region body
PF: predicated region fallthrough
CT: control target
= control target key end

     0   :  { %s4135_s1 = inlined_call_operand.vmem [shape: bf16[256,256], index: 1, kind: input, shape index: {}]   ;;  %s4136_s0 = inlined_call_operand.vmem [shape: f32[128,256], index: 0, kind: input, shape index: {}]   ;;  %s4137_s2 = inlined_call_operand.vmem [shape: bf16[256,256], index: 2, kind: input, shape index: {}]   ;;  %s4138_s3 = inlined_call_operand.vmem [shape: f32[128,256], index: 3, kind: output, shape index: {}]  }
   0x1   :  { %v1931_v0 = vld [vmem:[%s4135_s1 + $0x70] sm:$0xf]  ;;  %v2176_v1 = vld [vmem:[%s4135_s1 + $0x74] sm:$0xf0]  ;;  %v2175_v5 = vld [vmem:[%s4135_s1 + $0x74] sm:$0xf] }
   0x2   :  { %v1995_v2 = vld [vmem:[%s4135_s1 + $0xf0] sm:$0xf]  ;;  %v1932_v3 = vor.u32 %v2176_v1, %v1931_v0  ;;  %v2192_v4 = vld [vmem:[%s4135_s1 + $0xf4] sm:$0xf0]  ;;  %v1933_v6 = vld [vmem:[%s4135_s1 + $0x78] sm:$0xf0] }
   0x3   :  { %v1996_v7 = vor.u32 %v2192_v4, %v1995_v2  ;;  %v1936_v8 = vor.u32 %v2175_v5, %v1933_v6  ;;  %v2191_v9 = vld [vmem:[%s4135_s1 + $0xf4] sm:$0xf]  ;;  %v1997_v10 = vld [vmem:[%s4135_s1 + $0xf8] sm:$0xf0]  ;;  %v1923_v11 = vld [vmem:[%s4135_s1 + $0x60] sm:$0xf] }
   0x4   :  { %354 = vmatpush.bf16.msra.mxu0 %v1932_v3  ;;  %v2000_v12 = vor.u32 %v2191_v9, %v1997_v10  ;;  %v2174_v13 = vld [vmem:[%s4135_s1 + $0x64] sm:$0xf0]  ;;  %v1987_v14 = vld [vmem:[%s4135_s1 + $0xe0] sm:$0xf]  ;;  %v2173_v18 = vld [vmem:[%s4135_s1 + $0x64] sm:$0xf] }
   0x5   :  { %v2190_v15 = vld [vmem:[%s4135_s1 + $0xe4] sm:$0xf0]  ;;  %403 = vmatpush.bf16.msra.mxu1 %v1996_v7  ;;  %452 = vmatpush.bf16.msra.mxu2 %v1936_v8  ;;  %v1924_v16 = vor.u32 %v2174_v13, %v1923_v11  ;;  %v1925_v19 = vld [vmem:[%s4135_s1 + $0x68] sm:$0xf0]  ;;  %v2189_v20 = vld [vmem:[%s4135_s1 + $0xe4] sm:$0xf] }
   0x6   :  { %v1988_v17 = vor.u32 %v2190_v15, %v1987_v14  ;;  %501 = vmatpush.bf16.msra.mxu3 %v2000_v12  ;;  %v1928_v21 = vor.u32 %v2173_v18, %v1925_v19  ;;  %v1989_v22 = vld [vmem:[%s4135_s1 + $0xe8] sm:$0xf0]  ;;  %v1915_v23 = vld [vmem:[%s4135_s1 + $0x50] sm:$0xf]  ;;  %v2172_v24 = vld [vmem:[%s4135_s1 + $0x54] sm:$0xf0] }
   0x7   :  { %v1992_v25 = vor.u32 %v2189_v20, %v1989_v22  ;;  %v1979_v26 = vld [vmem:[%s4135_s1 + $0xd0] sm:$0xf]  ;;  %v2188_v27 = vld [vmem:[%s4135_s1 + $0xd4] sm:$0xf0]  ;;  %v2171_v28 = vld [vmem:[%s4135_s1 + $0x54] sm:$0xf]  ;;  %v1916_v29 = vor.u32 %v2172_v24, %v1915_v23 }
   0x8   :  { %355 = vmatpush.bf16.msra.mxu0 %v1924_v16  ;;  %v1917_v30 = vld [vmem:[%s4135_s1 + $0x58] sm:$0xf0]  ;;  %v2187_v31 = vld [vmem:[%s4135_s1 + $0xd4] sm:$0xf]  ;;  %v1980_v33 = vor.u32 %v2188_v27, %v1979_v26  ;;  %v1907_v35 = vld [vmem:[%s4135_s1 + $0x40] sm:$0xf] }
   0x9   :  { %v1981_v32 = vld [vmem:[%s4135_s1 + $0xd8] sm:$0xf0]  ;;  %404 = vmatpush.bf16.msra.mxu1 %v1988_v17  ;;  %453 = vmatpush.bf16.msra.mxu2 %v1928_v21  ;;  %v1920_v34 = vor.u32 %v2171_v28, %v1917_v30  ;;  %v2170_v36 = vld [vmem:[%s4135_s1 + $0x44] sm:$0xf0]  ;;  %v1971_v37 = vld [vmem:[%s4135_s1 + $0xc0] sm:$0xf] }
   0xa   :  { %502 = vmatpush.bf16.msra.mxu3 %v1992_v25  ;;  %v1984_v38 = vor.u32 %v2187_v31, %v1981_v32  ;;  %v2186_v39 = vld [vmem:[%s4135_s1 + $0xc4] sm:$0xf0]  ;;  %v2169_v40 = vld [vmem:[%s4135_s1 + $0x44] sm:$0xf]  ;;  %v1909_v41 = vld [vmem:[%s4135_s1 + $0x48] sm:$0xf0]  ;;  %v1908_v44 = vor.u32 %v2170_v36, %v1907_v35 }
   0xb   :  { %v2185_v42 = vld [vmem:[%s4135_s1 + $0xc4] sm:$0xf]  ;;  %v1973_v43 = vld [vmem:[%s4135_s1 + $0xc8] sm:$0xf0]  ;;  %v1972_v45 = vor.u32 %v2186_v39, %v1971_v37  ;;  %v1912_v46 = vor.u32 %v2169_v40, %v1909_v41  ;;  %v1899_v47 = vld [vmem:[%s4135_s1 + $0x30] sm:$0xf] }
   0xc   :  { %356 = vmatpush.bf16.msra.mxu0 %v1916_v29  ;;  %v2168_v48 = vld [vmem:[%s4135_s1 + $0x34] sm:$0xf0]  ;;  %v1963_v49 = vld [vmem:[%s4135_s1 + $0xb0] sm:$0xf]  ;;  %v1976_v50 = vor.u32 %v2185_v42, %v1973_v43  ;;  %v2167_v52 = vld [vmem:[%s4135_s1 + $0x34] sm:$0xf] }
   0xd   :  { %405 = vmatpush.bf16.msra.mxu1 %v1980_v33  ;;  %454 = vmatpush.bf16.msra.mxu2 %v1920_v34  ;;  %v2184_v51 = vld [vmem:[%s4135_s1 + $0xb4] sm:$0xf0]  ;;  %v1901_v53 = vld [vmem:[%s4135_s1 + $0x38] sm:$0xf0]  ;;  %v2183_v54 = vld [vmem:[%s4135_s1 + $0xb4] sm:$0xf]  ;;  %v1900_v56 = vor.u32 %v2168_v48, %v1899_v47 }
   0xe   :  { %503 = vmatpush.bf16.msra.mxu3 %v1984_v38  ;;  %v1965_v55 = vld [vmem:[%s4135_s1 + $0xb8] sm:$0xf0]  ;;  %v1964_v57 = vor.u32 %v2184_v51, %v1963_v49  ;;  %v1904_v58 = vor.u32 %v2167_v52, %v1901_v53  ;;  %v1891_v59 = vld [vmem:[%s4135_s1 + $0x20] sm:$0xf]  ;;  %v2166_v60 = vld [vmem:[%s4135_s1 + $0x24] sm:$0xf0] }
   0xf   :  { %v1955_v61 = vld [vmem:[%s4135_s1 + $0xa0] sm:$0xf]  ;;  %v1968_v62 = vor.u32 %v2183_v54, %v1965_v55  ;;  %v2182_v63 = vld [vmem:[%s4135_s1 + $0xa4] sm:$0xf0]  ;;  %v2165_v0 = vld [vmem:[%s4135_s1 + $0x24] sm:$0xf]  ;;  %v1892_v4 = vor.u32 %v2166_v60, %v1891_v59 }
  0x10   :  { %357 = vmatpush.bf16.msra.mxu0 %v1908_v44  ;;  %v1893_v1 = vld [vmem:[%s4135_s1 + $0x28] sm:$0xf0]  ;;  %v2181_v2 = vld [vmem:[%s4135_s1 + $0xa4] sm:$0xf]  ;;  %v1956_v5 = vor.u32 %v2182_v63, %v1955_v61  ;;  %v1883_v7 = vld [vmem:[%s4135_s1 + $0x10] sm:$0xf] }
  0x11   :  { %406 = vmatpush.bf16.msra.mxu1 %v1972_v45  ;;  %455 = vmatpush.bf16.msra.mxu2 %v1912_v46  ;;  %v1957_v3 = vld [vmem:[%s4135_s1 + $0xa8] sm:$0xf0]  ;;  %v1896_v6 = vor.u32 %v2165_v0, %v1893_v1  ;;  %v2164_v8 = vld [vmem:[%s4135_s1 + $0x14] sm:$0xf0]  ;;  %v1947_v9 = vld [vmem:[%s4135_s1 + $0x90] sm:$0xf] }
  0x12   :  { %504 = vmatpush.bf16.msra.mxu3 %v1976_v50  ;;  %v1960_v10 = vor.u32 %v2181_v2, %v1957_v3  ;;  %v2180_v11 = vld [vmem:[%s4135_s1 + $0x94] sm:$0xf0]  ;;  %v2163_v12 = vld [vmem:[%s4135_s1 + $0x14] sm:$0xf]  ;;  %v1885_v13 = vld [vmem:[%s4135_s1 + $0x18] sm:$0xf0]  ;;  %v1884_v16 = vor.u32 %v2164_v8, %v1883_v7 }
  0x13   :  { %v2179_v14 = vld [vmem:[%s4135_s1 + $0x94] sm:$0xf]  ;;  %v1949_v15 = vld [vmem:[%s4135_s1 + $0x98] sm:$0xf0]  ;;  %v1875_v17 = vld [vmem:[%s4135_s1] sm:$0xf]  ;;  %v1948_v19 = vor.u32 %v2180_v11, %v1947_v9  ;;  %v1888_v20 = vor.u32 %v2163_v12, %v1885_v13 }
  0x14   :  { %358 = vmatpush.bf16.msra.mxu0 %v1900_v56  ;;  %v2162_v18 = vld [vmem:[%s4135_s1 + $0x4] sm:$0xf0]  ;;  %v1939_v21 = vld [vmem:[%s4135_s1 + $0x80] sm:$0xf]  ;;  %v2161_v23 = vld [vmem:[%s4135_s1 + $0x4] sm:$0xf]  ;;  %v1952_v24 = vor.u32 %v2179_v14, %v1949_v15 }
  0x15   :  { %407 = vmatpush.bf16.msra.mxu1 %v1964_v57  ;;  %456 = vmatpush.bf16.msra.mxu2 %v1904_v58  ;;  %v2178_v22 = vld [vmem:[%s4135_s1 + $0x84] sm:$0xf0]  ;;  %v1877_v25 = vld [vmem:[%s4135_s1 + $0x8] sm:$0xf0]  ;;  %v2177_v26 = vld [vmem:[%s4135_s1 + $0x84] sm:$0xf]  ;;  %v1876_v31 = vor.u32 %v2162_v18, %v1875_v17 }
  0x16   :  { %505 = vmatpush.bf16.msra.mxu3 %v1968_v62  ;;  %v1941_v27 = vld [vmem:[%s4135_s1 + $0x88] sm:$0xf0]  ;;  %v82_v28 = vld [vmem:[%s4136_s0] sm:$0xff]  ;;  %v2207_v29 = vld [vmem:[%s4137_s2 + $0x74] sm:$0xf]  ;;  %v1940_v35 = vor.u32 %v2178_v22, %v1939_v21  ;;  %v1880_v36 = vor.u32 %v2161_v23, %v1877_v25 }
  0x17   :  { %v2061_v30 = vld [vmem:[%s4137_s2 + $0x78] sm:$0xf0]  ;;  %v84_v32 = vld [vmem:[%s4136_s0 + $0x10] sm:$0xff]  ;;  %v83_v37 = vld [vmem:[%s4136_s0 + $0x8] sm:$0xff]  ;;  %v1944_v39 = vor.u32 %v2177_v26, %v1941_v27 }
  0x18   :  { %359 = vmatpush.bf16.msra.mxu0 %v1892_v4  ;;  %v2223_v33 = vld [vmem:[%s4137_s2 + $0xf4] sm:$0xf]  ;;  %v2125_v34 = vld [vmem:[%s4137_s2 + $0xf8] sm:$0xf0]  ;;  %v2064_v40 = vor.u32 %v2207_v29, %v2061_v30  ;;  %v2059_v41 = vld [vmem:[%s4137_s2 + $0x70] sm:$0xf]  ;;  %v2598_v44 = vpack.c.bf16 %v84_v32, %v82_v28 }
  0x19   :  { %408 = vmatpush.bf16.msra.mxu1 %v1956_v5  ;;  %457 = vmatpush.bf16.msra.mxu2 %v1896_v6  ;;  %v85_v38 = vld [vmem:[%s4136_s0 + $0x18] sm:$0xff]  ;;  %v2123_v43 = vld [vmem:[%s4137_s2 + $0xf0] sm:$0xf]  ;;  %v2128_v45 = vor.u32 %v2223_v33, %v2125_v34  ;;  %v2205_v47 = vld [vmem:[%s4137_s2 + $0x64] sm:$0xf] }
  0x1a   :  { %506 = vmatpush.bf16.msra.mxu3 %v1960_v10  ;;  %v2208_v42 = vld [vmem:[%s4137_s2 + $0x74] sm:$0xf0]  ;;  %v2053_v48 = vld [vmem:[%s4137_s2 + $0x68] sm:$0xf0]  ;;  %v2609_v49 = vpack.c.bf16 %v85_v38, %v83_v37  ;;  %v2221_v50 = vld [vmem:[%s4137_s2 + $0xe4] sm:$0xf] }
  0x1b   :  { %v2224_v46 = vld [vmem:[%s4137_s2 + $0xf4] sm:$0xf0]  ;;  %v2117_v51 = vld [vmem:[%s4137_s2 + $0xe8] sm:$0xf0]  ;;  %v2060_v52 = vor.u32 %v2208_v42, %v2059_v41  ;;  %v2056_v54 = vor.u32 %v2205_v47, %v2053_v48  ;;  %v2051_v55 = vld [vmem:[%s4137_s2 + $0x60] sm:$0xf] }
  0x1c   :  { %360 = vmatpush.bf16.msra.mxu0 %v1884_v16  ;;  %v2124_v53 = vor.u32 %v2224_v46, %v2123_v43  ;;  %v2206_v56 = vld [vmem:[%s4137_s2 + $0x64] sm:$0xf0]  ;;  %v2120_v57 = vor.u32 %v2221_v50, %v2117_v51  ;;  %v2115_v58 = vld [vmem:[%s4137_s2 + $0xe0] sm:$0xf]  ;;  %v2203_v61 = vld [vmem:[%s4137_s2 + $0x54] sm:$0xf] }
  0x1d   :  { %409 = vmatpush.bf16.msra.mxu1 %v1948_v19  ;;  %458 = vmatpush.bf16.msra.mxu2 %v1888_v20  ;;  %v2222_v59 = vld [vmem:[%s4137_s2 + $0xe4] sm:$0xf0]  ;;  %v2052_v60 = vor.u32 %v2206_v56, %v2051_v55  ;;  %v2045_v62 = vld [vmem:[%s4137_s2 + $0x58] sm:$0xf0]  ;;  %v2219_v63 = vld [vmem:[%s4137_s2 + $0xd4] sm:$0xf] }
  0x1e   :  { %507 = vmatpush.bf16.msra.mxu3 %v1952_v24  ;;  %v2116_v0 = vor.u32 %v2222_v59, %v2115_v58  ;;  %v2048_v1 = vor.u32 %v2203_v61, %v2045_v62  ;;  %v2109_v2 = vld [vmem:[%s4137_s2 + $0xd8] sm:$0xf0]  ;;  %v2043_v3 = vld [vmem:[%s4137_s2 + $0x50] sm:$0xf]  ;;  %v2204_v4 = vld [vmem:[%s4137_s2 + $0x54] sm:$0xf0] }
  0x1f   :  { %v2112_v5 = vor.u32 %v2219_v63, %v2109_v2  ;;  %v2107_v6 = vld [vmem:[%s4137_s2 + $0xd0] sm:$0xf]  ;;  %v2220_v7 = vld [vmem:[%s4137_s2 + $0xd4] sm:$0xf0]  ;;  %v2044_v8 = vor.u32 %v2204_v4, %v2043_v3  ;;  %v86_v10 = vld [vmem:[%s4136_s0 + $0x20] sm:$0xff] }
  0x20   :  { %361 = vmatpush.bf16.msra.mxu0 %v1876_v31  ;;  %v2108_v9 = vor.u32 %v2220_v7, %v2107_v6  ;;  %v88_v11 = vld [vmem:[%s4136_s0 + $0x30] sm:$0xff]  ;;  %v87_v12 = vld [vmem:[%s4136_s0 + $0x28] sm:$0xff]  ;;  %v89_v13 = vld [vmem:[%s4136_s0 + $0x38] sm:$0xff] }
  0x21   :  { %410 = vmatpush.bf16.msra.mxu1 %v1940_v35  ;;  %459 = vmatpush.bf16.msra.mxu2 %v1880_v36  ;;  %v2669_v14 = vpack.c.bf16 %v88_v11, %v86_v10  ;;  %v2671_v15 = vpack.c.bf16 %v89_v13, %v87_v12  ;;  %v2201_v16 = vld [vmem:[%s4137_s2 + $0x44] sm:$0xf]  ;;  %v2037_v17 = vld [vmem:[%s4137_s2 + $0x48] sm:$0xf0]  ;;  %v2035_v21 = vld [vmem:[%s4137_s2 + $0x40] sm:$0xf] }
  0x22   :  { %508 = vmatpush.bf16.msra.mxu3 %v1944_v39  ;;  %v2217_v18 = vld [vmem:[%s4137_s2 + $0xc4] sm:$0xf]  ;;  %v2040_v19 = vor.u32 %v2201_v16, %v2037_v17  ;;  %v2101_v20 = vld [vmem:[%s4137_s2 + $0xc8] sm:$0xf0]  ;;  %v2202_v22 = vld [vmem:[%s4137_s2 + $0x44] sm:$0xf0] }
  0x23   :  { %362 = vmatmul.bf16.vlgmr.msra.gmra.mxu0 %v2598_v44  ;;  %v2104_v23 = vor.u32 %v2217_v18, %v2101_v20  ;;  %v2036_v24 = vor.u32 %v2202_v22, %v2035_v21  ;;  %v2099_v25 = vld [vmem:[%s4137_s2 + $0xc0] sm:$0xf]  ;;  %v2218_v26 = vld [vmem:[%s4137_s2 + $0xc4] sm:$0xf0]  ;;  %v92_v29 = vld [vmem:[%s4136_s0 + $0x50] sm:$0xff] }
  0x24   :  { %411 = vmatmul.bf16.vlgmr.msra.gmra.mxu1 %v2609_v49  ;;  %460 = vmatmul.bf16.vlgmr.msra.gmra.mxu2 %v2598_v44  ;;  %v2100_v27 = vor.u32 %v2218_v26, %v2099_v25  ;;  %v90_v28 = vld [vmem:[%s4136_s0 + $0x40] sm:$0xff]  ;;  %v91_v30 = vld [vmem:[%s4136_s0 + $0x48] sm:$0xff]  ;;  %v93_v31 = vld [vmem:[%s4136_s0 + $0x58] sm:$0xff] }
  0x25   :  { %936 = vmatpush.bf16.msrb.mxu2 %v2064_v40  ;;  %509 = vmatmul.bf16.vlgmr.msra.gmra.mxu3 %v2609_v49  ;;  %v2713_v32 = vpack.c.bf16 %v92_v29, %v90_v28  ;;  %v2715_v33 = vpack.c.bf16 %v93_v31, %v91_v30  ;;  %v2199_v34 = vld [vmem:[%s4137_s2 + $0x34] sm:$0xf]  ;;  %v2029_v35 = vld [vmem:[%s4137_s2 + $0x38] sm:$0xf0]  ;;  %v2027_v39 = vld [vmem:[%s4137_s2 + $0x30] sm:$0xf] }
  0x26   :  { %985 = vmatpush.bf16.msrb.mxu3 %v2128_v45  ;;  %838 = vmatpush.bf16.msrb.mxu0 %v2060_v52  ;;  %v2215_v36 = vld [vmem:[%s4137_s2 + $0xb4] sm:$0xf]  ;;  %v2032_v37 = vor.u32 %v2199_v34, %v2029_v35  ;;  %v2093_v38 = vld [vmem:[%s4137_s2 + $0xb8] sm:$0xf0]  ;;  %v2200_v40 = vld [vmem:[%s4137_s2 + $0x34] sm:$0xf0] }
  0x27   :  { %887 = vmatpush.bf16.msrb.mxu1 %v2124_v53  ;;  %v2096_v41 = vor.u32 %v2215_v36, %v2093_v38  ;;  %v2028_v42 = vor.u32 %v2200_v40, %v2027_v39  ;;  %v2091_v43 = vld [vmem:[%s4137_s2 + $0xb0] sm:$0xf]  ;;  %v2216_v45 = vld [vmem:[%s4137_s2 + $0xb4] sm:$0xf0]  ;;  %v94_v47 = vld [vmem:[%s4136_s0 + $0x60] sm:$0xff] }
  0x28   :  { %v2092_v46 = vor.u32 %v2216_v45, %v2091_v43  ;;  %v96_v48 = vld [vmem:[%s4136_s0 + $0x70] sm:$0xff]  ;;  %v95_v50 = vld [vmem:[%s4136_s0 + $0x68] sm:$0xff]  ;;  %v97_v51 = vld [vmem:[%s4136_s0 + $0x78] sm:$0xff] }
  0x29   :  { %937 = vmatpush.bf16.msrb.mxu2 %v2056_v54  ;;  %v2757_v52 = vpack.c.bf16 %v96_v48, %v94_v47  ;;  %v2759_v53 = vpack.c.bf16 %v97_v51, %v95_v50  ;;  %v2197_v54 = vld [vmem:[%s4137_s2 + $0x24] sm:$0xf]  ;;  %v2021_v55 = vld [vmem:[%s4137_s2 + $0x28] sm:$0xf0]  ;;  %v2019_v59 = vld [vmem:[%s4137_s2 + $0x20] sm:$0xf] }
  0x2a   :  { %986 = vmatpush.bf16.msrb.mxu3 %v2120_v57  ;;  %839 = vmatpush.bf16.msrb.mxu0 %v2052_v60  ;;  %v2213_v56 = vld [vmem:[%s4137_s2 + $0xa4] sm:$0xf]  ;;  %v2024_v57 = vor.u32 %v2197_v54, %v2021_v55  ;;  %v2085_v58 = vld [vmem:[%s4137_s2 + $0xa8] sm:$0xf0]  ;;  %v2198_v60 = vld [vmem:[%s4137_s2 + $0x24] sm:$0xf0] }
  0x2b   :  { %888 = vmatpush.bf16.msrb.mxu1 %v2116_v0  ;;  %v2088_v61 = vor.u32 %v2213_v56, %v2085_v58  ;;  %v2020_v62 = vor.u32 %v2198_v60, %v2019_v59  ;;  %v2083_v63 = vld [vmem:[%s4137_s2 + $0xa0] sm:$0xf]  ;;  %v2214_v0 = vld [vmem:[%s4137_s2 + $0xa4] sm:$0xf0]  ;;  %v100_v3 = vld [vmem:[%s4136_s0 + $0x90] sm:$0xff] }
  0x2c   :  { %v98_v2 = vld [vmem:[%s4136_s0 + $0x80] sm:$0xff]  ;;  %v99_v4 = vld [vmem:[%s4136_s0 + $0x88] sm:$0xff]  ;;  %v2211_v10 = vld [vmem:[%s4137_s2 + $0x94] sm:$0xf] }
  0x2d   :  { %938 = vmatpush.bf16.msrb.mxu2 %v2048_v1  ;;  %v2084_v1 = vor.u32 %v2214_v0, %v2083_v63  ;;  %v2801_v6 = vpack.c.bf16 %v100_v3, %v98_v2  ;;  %v2077_v12 = vld [vmem:[%s4137_s2 + $0x98] sm:$0xf0]  ;;  %v2011_v13 = vld [vmem:[%s4137_s2 + $0x10] sm:$0xf]  ;;  %v2196_v16 = vld [vmem:[%s4137_s2 + $0x14] sm:$0xf0] }
  0x2e   :  { %987 = vmatpush.bf16.msrb.mxu3 %v2112_v5  ;;  %840 = vmatpush.bf16.msrb.mxu0 %v2044_v8  ;;  %v101_v5 = vld [vmem:[%s4136_s0 + $0x98] sm:$0xff]  ;;  %v2195_v8 = vld [vmem:[%s4137_s2 + $0x14] sm:$0xf]  ;;  %v2080_v17 = vor.u32 %v2211_v10, %v2077_v12  ;;  %v2012_v18 = vor.u32 %v2196_v16, %v2011_v13  ;;  %v102_v22 = vld [vmem:[%s4136_s0 + $0xa0] sm:$0xff] }
  0x2f   :  { %889 = vmatpush.bf16.msrb.mxu1 %v2108_v9  ;;  %v2803_v7 = vpack.c.bf16 %v101_v5, %v99_v4  ;;  %v2013_v9 = vld [vmem:[%s4137_s2 + $0x18] sm:$0xf0]  ;;  %v2212_v20 = vld [vmem:[%s4137_s2 + $0x94] sm:$0xf0]  ;;  %v2193_v28 = vld [vmem:[%s4137_s2 + $0x4] sm:$0xf] }
  0x30   :  { %v2016_v11 = vor.u32 %v2195_v8, %v2013_v9  ;;  %v105_v25 = vld [vmem:[%s4136_s0 + $0xb8] sm:$0xff]  ;;  %v2005_v29 = vld [vmem:[%s4137_s2 + $0x8] sm:$0xf0]  ;;  %v2209_v30 = vld [vmem:[%s4137_s2 + $0x84] sm:$0xf] }
  0x31   :  { %939 = vmatpush.bf16.msrb.mxu2 %v2040_v19  ;;  %v2075_v19 = vld [vmem:[%s4137_s2 + $0x90] sm:$0xf]  ;;  %v2008_v31 = vor.u32 %v2193_v28, %v2005_v29  ;;  %v2069_v34 = vld [vmem:[%s4137_s2 + $0x88] sm:$0xf0]  ;;  %v2003_v35 = vld [vmem:[%s4137_s2] sm:$0xf] }
  0x32   :  { %988 = vmatpush.bf16.msrb.mxu3 %v2104_v23  ;;  %841 = vmatpush.bf16.msrb.mxu0 %v2036_v24  ;;  %v2076_v21 = vor.u32 %v2212_v20, %v2075_v19  ;;  %v104_v23 = vld [vmem:[%s4136_s0 + $0xb0] sm:$0xff]  ;;  %v103_v24 = vld [vmem:[%s4136_s0 + $0xa8] sm:$0xff]  ;;  %v2067_v39 = vld [vmem:[%s4137_s2 + $0x80] sm:$0xf] }
  0x33   :  { %367 = vmatmul.bf16.gmra.mxu0 %v2669_v14  ;;  %890 = vmatpush.bf16.msrb.mxu1 %v2100_v27  ;;  %v2845_v26 = vpack.c.bf16 %v104_v23, %v102_v22  ;;  %v2847_v27 = vpack.c.bf16 %v105_v25, %v103_v24  ;;  %v2194_v36 = vld [vmem:[%s4137_s2 + $0x4] sm:$0xf0]  ;;  %v108_v43 = vld [vmem:[%s4136_s0 + $0xd0] sm:$0xff]  ;;  %v110_v50 = vld [vmem:[%s4136_s0 + $0xe0] sm:$0xff] }
  0x34   :  { %416 = vmatmul.bf16.gmra.mxu1 %v2671_v15  ;;  %465 = vmatmul.bf16.gmra.mxu2 %v2669_v14  ;;  %v2004_v38 = vor.u32 %v2194_v36, %v2003_v35  ;;  %v2210_v40 = vld [vmem:[%s4137_s2 + $0x84] sm:$0xf0]  ;;  %v112_v51 = vld [vmem:[%s4136_s0 + $0xf0] sm:$0xff]  ;;  %v113_v55 = vld [vmem:[%s4136_s0 + $0xf8] sm:$0xff] }
  0x35   :  { %514 = vmatmul.bf16.gmra.mxu3 %v2671_v15  ;;  %940 = vmatpush.bf16.msrb.mxu2 %v2032_v37  ;;  %v2072_v37 = vor.u32 %v2209_v30, %v2069_v34  ;;  %v107_v45 = vld [vmem:[%s4136_s0 + $0xc8] sm:$0xff]  ;;  %v2909_v56 = vpack.c.bf16 %v112_v51, %v110_v50 }
  0x36   :  { %989 = vmatpush.bf16.msrb.mxu3 %v2096_v41  ;;  %842 = vmatpush.bf16.msrb.mxu0 %v2028_v42  ;;  %v2068_v41 = vor.u32 %v2210_v40, %v2067_v39  ;;  %v106_v42 = vld [vmem:[%s4136_s0 + $0xc0] sm:$0xff]  ;;  %v111_v54 = vld [vmem:[%s4136_s0 + $0xe8] sm:$0xff] }
  0x37   :  { %891 = vmatpush.bf16.msrb.mxu1 %v2092_v46  ;;  %v109_v46 = vld [vmem:[%s4136_s0 + $0xd8] sm:$0xff]  ;;  %v2889_v47 = vpack.c.bf16 %v108_v43, %v106_v42 }
  0x38   :  { %v2891_v48 = vpack.c.bf16 %v109_v46, %v107_v45 }
  0x39   :  { %941 = vmatpush.bf16.msrb.mxu2 %v2024_v57  ;;  %v2911_v57 = vpack.c.bf16 %v113_v55, %v111_v54 }
  0x3a   :  { %990 = vmatpush.bf16.msrb.mxu3 %v2088_v61  ;;  %843 = vmatpush.bf16.msrb.mxu0 %v2020_v62 }
  0x3b   :  { %892 = vmatpush.bf16.msrb.mxu1 %v2084_v1 }
  0x3d   :  { %942 = vmatpush.bf16.msrb.mxu2 %v2016_v11 }
  0x3e   :  { %991 = vmatpush.bf16.msrb.mxu3 %v2080_v17  ;;  %844 = vmatpush.bf16.msrb.mxu0 %v2012_v18 }
  0x3f   :  { %893 = vmatpush.bf16.msrb.mxu1 %v2076_v21 }
  0x41   :  { %943 = vmatpush.bf16.msrb.mxu2 %v2008_v31 }
  0x42   :  { %992 = vmatpush.bf16.msrb.mxu3 %v2072_v37  ;;  %845 = vmatpush.bf16.msrb.mxu0 %v2004_v38 }
  0x43   :  { %372 = vmatmul.bf16.gmra.mxu0 %v2713_v32  ;;  %894 = vmatpush.bf16.msrb.mxu1 %v2068_v41 }
  0x44   :  { %421 = vmatmul.bf16.gmra.mxu1 %v2715_v33  ;;  %470 = vmatmul.bf16.gmra.mxu2 %v2713_v32 }
  0x45   :  { %519 = vmatmul.bf16.gmra.mxu3 %v2715_v33 }
  0x53   :  { %377 = vmatmul.bf16.gmra.mxu0 %v2757_v52 }
  0x54   :  { %426 = vmatmul.bf16.gmra.mxu1 %v2759_v53  ;;  %475 = vmatmul.bf16.gmra.mxu2 %v2757_v52 }
  0x55   :  { %524 = vmatmul.bf16.gmra.mxu3 %v2759_v53 }
  0x63   :  { %382 = vmatmul.bf16.gmra.mxu0 %v2801_v6 }
  0x64   :  { %431 = vmatmul.bf16.gmra.mxu1 %v2803_v7  ;;  %480 = vmatmul.bf16.gmra.mxu2 %v2801_v6 }
  0x65   :  { %529 = vmatmul.bf16.gmra.mxu3 %v2803_v7 }
  0x73   :  { %387 = vmatmul.bf16.gmra.mxu0 %v2845_v26 }
  0x74   :  { %436 = vmatmul.bf16.gmra.mxu1 %v2847_v27  ;;  %485 = vmatmul.bf16.gmra.mxu2 %v2845_v26 }
  0x75   :  { %534 = vmatmul.bf16.gmra.mxu3 %v2847_v27 }
  0x83   :  { %392 = vmatmul.bf16.gmra.mxu0 %v2889_v47 }
  0x84   :  { %441 = vmatmul.bf16.gmra.mxu1 %v2891_v48  ;;  %490 = vmatmul.bf16.gmra.mxu2 %v2889_v47 }
  0x85   :  { %539 = vmatmul.bf16.gmra.mxu3 %v2891_v48 }
  0x93   :  { %397 = vmatmul.bf16.gmra.mxu0 %v2909_v56 }
  0x94   :  { %446 = vmatmul.bf16.gmra.mxu1 %v2911_v57  ;;  %495 = vmatmul.bf16.gmra.mxu2 %v2909_v56 }
  0x95   :  { %544 = vmatmul.bf16.gmra.mxu3 %v2911_v57 }
  0xa0   :  { %v363_v58 = vpop.f32.mrf.mxu0 }
  0xa1   :  { %v412_v59 = vpop.f32.mrf.mxu1 }
  0xa2   :  { %v2917_v60 = vadd.f32 %v412_v59, %v363_v58 }
  0xa3   :  { %846 = vmatmul.bf16.vlgmr.msrb.gmra.mxu0 %v2598_v44 }
  0xa4   :  { %895 = vmatmul.bf16.vlgmr.msrb.gmra.mxu1 %v2609_v49  ;;  %944 = vmatmul.bf16.vlgmr.msrb.gmra.mxu2 %v2598_v44  ;;  %v2129_v46 = vmul.f32 -1.442695, %v2917_v60 }
  0xa5   :  { %993 = vmatmul.bf16.vlgmr.msrb.gmra.mxu3 %v2609_v49 }
  0xa6   :  { %2225 = vpow2.f32 %v2129_v46 }
  0xa7   :  { %v461_v61 = vpop.f32.mrf.mxu2 }
  0xa8   :  { %v510_v62 = vpop.f32.mrf.mxu3  ;;  %v365_v63 = vpop.f32.mrf.mxu0 }
  0xa9   :  { %v2923_v0 = vadd.f32 %v510_v62, %v461_v61  ;;  %v414_v1 = vpop.f32.mrf.mxu1 }
  0xaa   :  { %v2925_v2 = vadd.f32 %v414_v1, %v365_v63 }
  0xab   :  { %v2130_v58 = vmul.f32 -1.442695, %v2923_v0 }
  0xac   :  { %v2131_v59 = vmul.f32 -1.442695, %v2925_v2  ;;  %v2226_v61 = vpop.eup %2225 }
  0xad   :  { %2227 = vpow2.f32 %v2130_v58 }
  0xae   :  { %2229 = vpow2.f32 %v2131_v59 }
  0xaf   :  { %v463_v3 = vpop.f32.mrf.mxu2 }
  0xb0   :  { %v512_v4 = vpop.f32.mrf.mxu3  ;;  %v368_v5 = vpop.f32.mrf.mxu0 }
  0xb1   :  { %v2927_v8 = vadd.f32 %v512_v4, %v463_v3  ;;  %v417_v9 = vpop.f32.mrf.mxu1  ;;  %v2976_v3 = vadd.f32 1.0, %v2226_v61 }
  0xb2   :  { %v2929_v10 = vadd.f32 %v417_v9, %v368_v5 }
  0xb3   :  { %851 = vmatmul.bf16.gmra.mxu0 %v2669_v14  ;;  %v2132_v9 = vmul.f32 -1.442695, %v2927_v8  ;;  %2231 = vrcp.f32 %v2976_v3  ;;  %vm1266_vm0 = vweird.f32 %v2976_v3 }
  0xb4   :  { %900 = vmatmul.bf16.gmra.mxu1 %v2671_v15  ;;  %949 = vmatmul.bf16.gmra.mxu2 %v2669_v14 }
  0xb5   :  { %998 = vmatmul.bf16.gmra.mxu3 %v2671_v15  ;;  %2233 = vpow2.f32 %v2132_v9 }
  0xb7   :  { %v466_v44 = vpop.f32.mrf.mxu2 }
  0xb8   :  { %v515_v49 = vpop.f32.mrf.mxu3  ;;  %v370_v11 = vpop.f32.mrf.mxu0 }
  0xb9   :  { %v2935_v12 = vadd.f32 %v515_v49, %v466_v44  ;;  %v419_v13 = vpop.f32.mrf.mxu1  ;;  %v2228_v49 = vpop.eup %2227 }
  0xba   :  { %v2937_v16 = vadd.f32 %v419_v13, %v370_v11  ;;  %v2230_v11 = vpop.eup %2229 }
  0xbf   :  { %v468_v17 = vpop.f32.mrf.mxu2 }
  0xc0   :  { %v517_v18 = vpop.f32.mrf.mxu3  ;;  %v373_v19 = vpop.f32.mrf.mxu0 }
  0xc1   :  { %v2939_v20 = vadd.f32 %v517_v18, %v468_v17  ;;  %v422_v21 = vpop.f32.mrf.mxu1  ;;  %v2133_v17 = vmul.f32 -1.442695, %v2929_v10 }
  0xc2   :  { %v2942_v22 = vadd.f32 %v422_v21, %v373_v19  ;;  %v2991_v21 = vadd.f32 1.0, %v2228_v49 }
  0xc3   :  { %856 = vmatmul.bf16.gmra.mxu0 %v2713_v32  ;;  %2235 = vpow2.f32 %v2133_v17  ;;  %v2136_v46 = vmul.f32 -1.442695, %v2939_v20 }
  0xc4   :  { %905 = vmatmul.bf16.gmra.mxu1 %v2715_v33  ;;  %954 = vmatmul.bf16.gmra.mxu2 %v2713_v32  ;;  %2237 = vrcp.f32 %v2991_v21  ;;  %v2137_v59 = vmul.f32 -1.442695, %v2942_v22  ;;  %vm1281_vm4 = vweird.f32 %v2991_v21 }
  0xc5   :  { %1003 = vmatmul.bf16.gmra.mxu3 %v2715_v33 }
  0xc7   :  { %v471_v14 = vpop.f32.mrf.mxu2 }
  0xc8   :  { %v520_v15 = vpop.f32.mrf.mxu3  ;;  %v375_v23 = vpop.f32.mrf.mxu0 }
  0xc9   :  { %v424_v24 = vpop.f32.mrf.mxu1  ;;  %v2947_v25 = vadd.f32 %v520_v15, %v471_v14  ;;  %v2993_v15 = vadd.f32 1.0, %v2230_v11 }
  0xca   :  { %v2949_v28 = vadd.f32 %v424_v24, %v375_v23  ;;  %v2134_v24 = vmul.f32 -1.442695, %v2935_v12 }
  0xcb   :  { %4154 = vst [vmem:[#allocation4_spill] sm:$0xff] %v2947_v25  ;;  %2239 = vrcp.f32 %v2993_v15  ;;  %vm1296_vm5 = vweird.f32 %v2993_v15 }
  0xcc   :  { %4155 = vst [vmem:[#allocation5_spill] sm:$0xff] %v2949_v28  ;;  %2241 = vpow2.f32 %v2134_v24 }
  0xcf   :  { %v473_v29 = vpop.f32.mrf.mxu2 }
  0xd0   :  { %v522_v30 = vpop.f32.mrf.mxu3  ;;  %v378_v31 = vpop.f32.mrf.mxu0 }
  0xd1   :  { %v427_v34 = vpop.f32.mrf.mxu1  ;;  %v2952_v35 = vadd.f32 %v522_v30, %v473_v29  ;;  %v2135_v30 = vmul.f32 -1.442695, %v2937_v16 }
  0xd2   :  { %v2954_v36 = vadd.f32 %v427_v34, %v378_v31 }
  0xd3   :  { %861 = vmatmul.bf16.gmra.mxu0 %v2757_v52  ;;  %2243 = vpow2.f32 %v2135_v30 }
  0xd4   :  { %910 = vmatmul.bf16.gmra.mxu1 %v2759_v53  ;;  %959 = vmatmul.bf16.gmra.mxu2 %v2757_v52 }
  0xd5   :  { %1008 = vmatmul.bf16.gmra.mxu3 %v2759_v53 }
  0xd7   :  { %v476_v32 = vpop.f32.mrf.mxu2 }
  0xd8   :  { %v525_v33 = vpop.f32.mrf.mxu3  ;;  %v380_v37 = vpop.f32.mrf.mxu0 }
  0xd9   :  { %v429_v38 = vpop.f32.mrf.mxu1  ;;  %v2959_v39 = vadd.f32 %v525_v33, %v476_v32 }
  0xda   :  { %v2961_v40 = vadd.f32 %v429_v38, %v380_v37 }
  0xdf   :  { %v478_v41 = vpop.f32.mrf.mxu2 }
  0xe0   :  { %v527_v42 = vpop.f32.mrf.mxu3  ;;  %v383_v43 = vpop.f32.mrf.mxu0 }
  0xe1   :  { %v432_v45 = vpop.f32.mrf.mxu1  ;;  %v2967_v52 = vadd.f32 %v527_v42, %v478_v41 }
  0xe2   :  { %v2970_v53 = vadd.f32 %v432_v45, %v383_v43 }
  0xe3   :  { %866 = vmatmul.bf16.gmra.mxu0 %v2801_v6  ;;  %4156 = vst [vmem:[#allocation6_spill] sm:$0xff] %v2967_v52 }
  0xe4   :  { %915 = vmatmul.bf16.gmra.mxu1 %v2803_v7  ;;  %964 = vmatmul.bf16.gmra.mxu2 %v2801_v6  ;;  %4157 = vst [vmem:[#allocation7_spill] sm:$0xff] %v2970_v53 }
  0xe5   :  { %1013 = vmatmul.bf16.gmra.mxu3 %v2803_v7 }
  0xe7   :  { %v481_v50 = vpop.f32.mrf.mxu2 }
  0xe8   :  { %v530_v51 = vpop.f32.mrf.mxu3  ;;  %v385_v54 = vpop.f32.mrf.mxu0 }
  0xe9   :  { %v434_v55 = vpop.f32.mrf.mxu1  ;;  %v2974_v63 = vadd.f32 %v530_v51, %v481_v50 }
  0xea   :  { %v2978_v4 = vadd.f32 %v434_v55, %v385_v54 }
  0xeb   :  { %4158 = vst [vmem:[#allocation8_spill] sm:$0xff] %v2974_v63 }
  0xec   :  { %4159 = vst [vmem:[#allocation9_spill] sm:$0xff] %v2978_v4 }
  0xef   :  { %v483_v62 = vpop.f32.mrf.mxu2 }
  0xf0   :  { %v532_v6 = vpop.f32.mrf.mxu3  ;;  %v388_v1 = vpop.f32.mrf.mxu0 }
  0xf1   :  { %v437_v7 = vpop.f32.mrf.mxu1  ;;  %v2980_v5 = vadd.f32 %v532_v6, %v483_v62 }
  0xf2   :  { %v2984_v44 = vadd.f32 %v437_v7, %v388_v1  ;;  %v1272_v7 = vand.u32 2147483648, %v2976_v3 }
  0xf3   :  { %871 = vmatmul.bf16.gmra.mxu0 %v2845_v26 }
  0xf4   :  { %920 = vmatmul.bf16.gmra.mxu1 %v2847_v27  ;;  %969 = vmatmul.bf16.gmra.mxu2 %v2845_v26  ;;  %v2997_v26 = vpop.eup %2231 }
  0xf5   :  { %1018 = vmatmul.bf16.gmra.mxu3 %v2847_v27  ;;  %v2234_v27 = vpop.eup %2233  ;;  %v1262_v29 = vmul.f32 %v2997_v26, %v2976_v3  ;;  %vm1267_vm1 = vweird.f32 %v2997_v26 }
  0xf6   :  { %v3009_v37 = vadd.f32 1.0, %v2234_v27  ;;  %v2236_v41 = vpop.eup %2235  ;;  %vm3051_vm2 = vmor %vm1266_vm0, %vm1267_vm1  ;;  %v1285_v27 = vand.u32 2147483647, %v2991_v21 }
  0xf7   :  { %v486_v13 = vpop.f32.mrf.mxu2  ;;  %v1263_v42 = vsub.f32 1.0, %v1262_v29  ;;  %v3013_v43 = vpop.eup %2237  ;;  %v3022_v51 = vadd.f32 1.0, %v2236_v41 }
  0xf8   :  { %v535_v18 = vpop.f32.mrf.mxu3  ;;  %v390_v19 = vpop.f32.mrf.mxu0  ;;  %2245 = vrcp.f32 %v3009_v37  ;;  %v1277_v55 = vmul.f32 %v3013_v43, %v2991_v21  ;;  %vm1282_vm6 = vweird.f32 %v3013_v43  ;;  %vm3087_vm7 = vcmp.eq.f32.partialorder %v1285_v27, 8.507059e+37 }
  0xf9   :  { %v439_v14 = vpop.f32.mrf.mxu1  ;;  %v2995_v23 = vadd.f32 %v535_v18, %v486_v13  ;;  %v3016_v45 = vpop.eup %2239  ;;  %v1264_v54 = vmul.f32 %v2997_v26, %v1263_v42  ;;  %2247 = vpow2.f32 %v2136_v46  ;;  %v2138_v46 = vmul.f32 -1.442695, %v2947_v25  ;;  %vm3121_vm10 = vmor %vm1281_vm4, %vm1282_vm6 }
  0xfa   :  { %v3005_v31 = vadd.f32 %v439_v14, %v390_v19  ;;  %v2242_v50 = vpop.eup %2241  ;;  %v1292_v58 = vmul.f32 %v3016_v45, %v2993_v15  ;;  %2249 = vrcp.f32 %v3022_v51  ;;  %v1278_v13 = vsub.f32 1.0, %v1277_v55 }
  0xfb   :  { %v3033_v62 = vadd.f32 1.0, %v2242_v50  ;;  %v1265_v49 = vadd.f32 %v2997_v26, %v1264_v54  ;;  %2251 = vpow2.f32 %v2137_v59  ;;  %v1287_v19 = vand.u32 2147483648, %v2991_v21 }
  0xfc   :  { %4160 = vst [vmem:[#allocation10_spill] sm:$0xff] %v3005_v31  ;;  %v1293_v17 = vsub.f32 1.0, %v1292_v58  ;;  %v1279_v54 = vmul.f32 %v3013_v43, %v1278_v13  ;;  %v1302_v58 = vand.u32 2147483648, %v2993_v15  ;;  %v2139_v59 = vmul.f32 -1.442695, %v2949_v28 }
  0xfd   :  { %2253 = vrcp.f32 %v3033_v62  ;;  %v1269_v41 = vsel %vm3051_vm2, %v2997_v26, %v1265_v49  ;;  %v1288_v26 = vor.u32 1.1754944e-38, %v1287_v19  ;;  %vm1297_vm8 = vweird.f32 %v3016_v45 }
  0xfe   :  { %v1294_v55 = vmul.f32 %v3016_v45, %v1293_v17  ;;  %v1317_v31 = vand.u32 2147483648, %v3009_v37  ;;  %v1303_v28 = vor.u32 1.1754944e-38, %v1302_v58  ;;  %vm3143_vm11 = vmor %vm1296_vm5, %vm1297_vm8  ;;  %vm1311_vm12 = vweird.f32 %v3009_v37 }
  0xff   :  { %v488_v34 = vpop.f32.mrf.mxu2  ;;  %vm1326_vm14 = vweird.f32 %v3022_v51  ;;  %vm1341_vm2 = vweird.f32 %v3033_v62 }
 0x100   :  { %v537_v32 = vpop.f32.mrf.mxu3  ;;  %v3007_v33 = vpop.f32.mrf.mxu0  ;;  %v1295_v27 = vadd.f32 %v3016_v45, %v1294_v55 }
 0x101   :  { %v3011_v38 = vpop.f32.mrf.mxu1  ;;  %v3060_v29 = vadd.f32 %v537_v32, %v488_v34  ;;  %v1300_v32 = vand.u32 2147483647, %v2993_v15  ;;  %v3156_v15 = vor.u32 1.1754944e-38, %v1317_v31  ;;  %v1332_v31 = vand.u32 2147483648, %v3022_v51 }
 0x103   :  { %876 = vmatmul.bf16.gmra.mxu0 %v2889_v47  ;;  %4165 = vst [vmem:[#allocation11_spill] sm:$0xff] %v3060_v29  ;;  %vm3107_vm9 = vcmp.eq.f32.partialorder %v1300_v32, 8.507059e+37 }
 0x104   :  { %925 = vmatmul.bf16.gmra.mxu1 %v2891_v48  ;;  %974 = vmatmul.bf16.gmra.mxu2 %v2889_v47  ;;  %v2244_v47 = vpop.eup %2243 }
 0x105   :  { %1023 = vmatmul.bf16.gmra.mxu3 %v2891_v48  ;;  %v1270_v48 = vand.u32 2147483647, %v2976_v3  ;;  %v3045_v11 = vpop.eup %2245  ;;  %v3047_v18 = vadd.f32 1.0, %v2244_v47  ;;  %v1273_v3 = vor.u32 1.1754944e-38, %v1272_v7 }
 0x106   :  { %v2248_v30 = vpop.eup %2247  ;;  %v1307_v42 = vmul.f32 %v3045_v11, %v3009_v37  ;;  %vm1312_vm13 = vweird.f32 %v3045_v11 }
 0x107   :  { %v3031_v61 = vpop.f32.mrf.mxu2  ;;  %vm3055_vm3 = vcmp.eq.f32.partialorder %v1270_v48, 8.507059e+37  ;;  %v3069_v50 = vpop.eup %2249  ;;  %2255 = vrcp.f32 %v3047_v18  ;;  %v3092_v17 = vadd.f32 1.0, %v2248_v30  ;;  %v3104_v30 = vadd.f32 %v3011_v38, %v3007_v33 }
 0x108   :  { %v3035_v6 = vpop.f32.mrf.mxu3  ;;  %v3037_v1 = vpop.f32.mrf.mxu0  ;;  %v1274_v49 = vsel %vm3055_vm3, %v1273_v3, %v1269_v41  ;;  %v1308_v29 = vsub.f32 1.0, %v1307_v42  ;;  %v1322_v24 = vmul.f32 %v3069_v50, %v3022_v51  ;;  %2257 = vpow2.f32 %v2138_v46  ;;  %vm3216_vm3 = vmor %vm1311_vm12, %vm1312_vm13 }
 0x109   :  { %v444_v9 = vpop.f32.mrf.mxu1  ;;  %v2252_v7 = vpop.eup %2251  ;;  %v1280_v3 = vadd.f32 %v3013_v43, %v1279_v54  ;;  %v2140_v41 = vmul.f32 -1.442695, %v2952_v35  ;;  %2259 = vpow2.f32 %v2139_v59  ;;  %v3130_v54 = vadd.f32 %v3035_v6, %v3031_v61 }
 0x10a   :  { %v3094_v14 = vpop.eup %2253  ;;  %v3111_v25 = vadd.f32 1.0, %v2252_v7  ;;  %2261 = vrcp.f32 %v3092_v17  ;;  %v3137_v21 = vmul.f32 %v1274_v49, %v2917_v60  ;;  %v1309_v32 = vmul.f32 %v3045_v11, %v1308_v29 }
 0x10b   :  { %v1337_v38 = vmul.f32 %v3094_v14, %v3033_v62  ;;  %4172 = vst [vmem:[#allocation12_spill] sm:$0xff] %v3130_v54  ;;  %v1315_v61 = vand.u32 2147483647, %v3009_v37  ;;  %v1323_v6 = vsub.f32 1.0, %v1322_v24  ;;  %v1299_v60 = vsel %vm3143_vm11, %v3016_v45, %v1295_v27 }
 0x10c   :  { %2263 = vpow2.f32 %v2140_v41  ;;  %v1330_v29 = vand.u32 2147483647, %v3022_v51  ;;  %v2141_v59 = vmul.f32 -1.442695, %v2954_v36  ;;  %v1304_v27 = vsel %vm3107_vm9, %v1303_v28, %v1299_v60 }
 0x10d   :  { %v3115_v46 = vpop.eup %2255  ;;  %2265 = vrcp.f32 %v3111_v25  ;;  %v1338_v45 = vsub.f32 1.0, %v1337_v38  ;;  %v1310_v41 = vadd.f32 %v3045_v11, %v1309_v32  ;;  %vm3171_vm15 = vcmp.eq.f32.partialorder %v1315_v61, 8.507059e+37 }
 0x10e   :  { %v1352_v58 = vmul.f32 %v3115_v46, %v3047_v18  ;;  %v1324_v55 = vmul.f32 %v3069_v50, %v1323_v6  ;;  %vm3189_vm0 = vcmp.eq.f32.partialorder %v1330_v29, 8.507059e+37  ;;  %2267 = vpow2.f32 %v2141_v59 }
 0x10f   :  { %v3075_v34 = vpop.f32.mrf.mxu2  ;;  %v2142_v32 = vmul.f32 -1.442695, %v2959_v39  ;;  %vm1327_vm1 = vweird.f32 %v3069_v50  ;;  %v1345_v29 = vand.u32 2147483647, %v3033_v62  ;;  %vm1342_vm5 = vweird.f32 %v3094_v14 }
 0x110   :  { %v3080_v47 = vpop.f32.mrf.mxu3  ;;  %v3082_v48 = vpop.f32.mrf.mxu0  ;;  %v1353_v42 = vsub.f32 1.0, %v1352_v58  ;;  %v1325_v60 = vadd.f32 %v3069_v50, %v1324_v55  ;;  %v1347_v58 = vand.u32 2147483648, %v3033_v62  ;;  %vm3235_vm4 = vmor %vm1326_vm14, %vm1327_vm1  ;;  %vm1357_vm9 = vweird.f32 %v3115_v46 }
 0x111   :  { %v447_v19 = vpop.f32.mrf.mxu1  ;;  %v3182_v38 = vadd.f32 %v3080_v47, %v3075_v34  ;;  %v1333_v34 = vor.u32 1.1754944e-38, %v1332_v31  ;;  %v1339_v47 = vmul.f32 %v3094_v14, %v1338_v45  ;;  %vm3254_vm6 = vcmp.eq.f32.partialorder %v1345_v29, 8.507059e+37  ;;  %vm3261_vm8 = vmor %vm1341_vm2, %vm1342_vm5 }
 0x112   :  { %v1329_v51 = vsel %vm3235_vm4, %v3069_v50, %v1325_v60  ;;  %vm1371_vm12 = vweird.f32 %v3092_v17  ;;  %v1377_v45 = vand.u32 2147483648, %v3092_v17 }
 0x113   :  { %881 = vmatmul.bf16.gmra.mxu0 %v2909_v56  ;;  %4178 = vst [vmem:[#allocation14_spill] sm:$0xff] %v3182_v38  ;;  %v1334_v60 = vsel %vm3189_vm0, %v1333_v34, %v1329_v51  ;;  %v1375_v34 = vand.u32 2147483647, %v3092_v17 }
 0x114   :  { %930 = vmatmul.bf16.gmra.mxu1 %v2911_v57  ;;  %979 = vmatmul.bf16.gmra.mxu2 %v2909_v56  ;;  %v3133_v56 = vadd.f32 %v444_v9, %v3037_v1  ;;  %v2258_v9 = vpop.eup %2257 }
 0x115   :  { %1028 = vmatmul.bf16.gmra.mxu3 %v2911_v57  ;;  %v1284_v57 = vsel %vm3121_vm10, %v3013_v43, %v1280_v3  ;;  %v2260_v24 = vpop.eup %2259  ;;  %v3178_v54 = vadd.f32 1.0, %v2258_v9  ;;  %v3210_v9 = vmul.f32 %v1304_v27, %v2925_v2  ;;  %v1314_v2 = vsel %vm3216_vm3, %v3045_v11, %v1310_v41 }
 0x116   :  { %4173 = vst [vmem:[#allocation13_spill] sm:$0xff] %v3133_v56  ;;  %v1289_v3 = vsel %vm3087_vm7, %v1288_v26, %v1284_v57  ;;  %v3176_v56 = vpop.eup %2261  ;;  %v3185_v26 = vadd.f32 %v447_v19, %v3082_v48  ;;  %v3200_v48 = vadd.f32 1.0, %v2260_v24  ;;  %v1360_v27 = vand.u32 2147483647, %v3047_v18 }
 0x117   :  { %v496_v1 = vpop.f32.mrf.mxu2  ;;  %v2264_v6 = vpop.eup %2263  ;;  %v3197_v57 = vmul.f32 %v1289_v3, %v2923_v0  ;;  %2269 = vrcp.f32 %v3178_v54  ;;  %v1362_v41 = vand.u32 2147483648, %v3047_v18  ;;  %vm1356_vm7 = vweird.f32 %v3047_v18 }
 0x118   :  { %v545_v7 = vpop.f32.mrf.mxu3  ;;  %v400_v43 = vpop.f32.mrf.mxu0  ;;  %4179 = vst [vmem:[#allocation15_spill] sm:$0xff] %v3185_v26  ;;  %2271 = vpow2.f32 %v2142_v32  ;;  %vm3279_vm10 = vcmp.eq.f32.partialorder %v1360_v27, 8.507059e+37  ;;  %vm3294_vm11 = vmor %vm1356_vm7, %vm1357_vm9  ;;  %vm1372_vm13 = vweird.f32 %v3176_v56  ;;  %vm3330_vm14 = vcmp.eq.f32.partialorder %v1375_v34, 8.507059e+37 }
 0x119   :  { %v449_v49 = vpop.f32.mrf.mxu1  ;;  %v3187_v28 = vadd.f32 %v545_v7, %v496_v1  ;;  %v3202_v19 = vpop.eup %2265  ;;  %v1367_v1 = vmul.f32 %v3176_v56, %v3092_v17  ;;  %v1354_v7 = vmul.f32 %v3115_v46, %v1353_v42  ;;  %2273 = vrcp.f32 %v3200_v48  ;;  %vm3347_vm0 = vmor %vm1371_vm12, %vm1372_vm13 }
 0x11a   :  { %v3194_v61 = vadd.f32 %v449_v49, %v400_v43  ;;  %v3227_v43 = vadd.f32 1.0, %v2264_v6  ;;  %v1340_v49 = vadd.f32 %v3094_v14, %v1339_v47  ;;  %v1382_v11 = vmul.f32 %v3202_v19, %v3111_v25  ;;  %v2268_v3 = vpop.eup %2267 }
 0x11b   :  { %4180 = vst [vmem:[#allocation16_spill] sm:$0xff] %v3187_v28  ;;  %v1368_v55 = vsub.f32 1.0, %v1367_v1  ;;  %v1319_v42 = vsel %vm3171_vm15, %v3156_v15, %v1314_v2  ;;  %v1348_v6 = vor.u32 1.1754944e-38, %v1347_v58  ;;  %v1355_v47 = vadd.f32 %v3115_v46, %v1354_v7 }
 0x11c   :  { %4183 = vst [vmem:[#allocation17_spill] sm:$0xff] %v3194_v61  ;;  %2275 = vrcp.f32 %v3227_v43  ;;  %v1344_v62 = vsel %vm3261_vm8, %v3094_v14, %v1340_v49  ;;  %v1383_v1 = vsub.f32 1.0, %v1382_v11  ;;  %v3277_v0 = vadd.f32 1.0, %v2268_v3 }
 0x11d   :  { %v3270_v33 = vpop.eup %2269  ;;  %v1363_v2 = vor.u32 1.1754944e-38, %v1362_v41  ;;  %v2143_v7 = vmul.f32 -1.442695, %v2961_v40  ;;  %v3288_v13 = vmul.f32 %v1319_v42, %v2927_v8  ;;  %v3304_v11 = vmul.f32 %v1334_v60, %v2929_v10 }
 0x11e   :  { %v2272_v29 = vpop.eup %2271  ;;  %v1349_v8 = vsel %vm3254_vm6, %v1348_v6, %v1344_v62  ;;  %v1359_v18 = vsel %vm3294_vm11, %v3115_v46, %v1355_v47  ;;  %v1390_v3 = vand.u32 2147483647, %v3111_v25  ;;  %v1384_v41 = vmul.f32 %v3202_v19, %v1383_v1 }
 0x11f   :  { %v498_v59 = vpop.f32.mrf.mxu2  ;;  %v1397_v10 = vmul.f32 %v3270_v33, %v3178_v54  ;;  %2277 = vrcp.f32 %v3277_v0  ;;  %v3328_v6 = vadd.f32 1.0, %v2272_v29  ;;  %v1378_v47 = vor.u32 1.1754944e-38, %v1377_v45 }
 0x120   :  { %v547_v37 = vpop.f32.mrf.mxu3  ;;  %v3229_v31 = vpop.f32.mrf.mxu0  ;;  %2279 = vpow2.f32 %v2143_v7  ;;  %v1392_v60 = vand.u32 2147483648, %v3111_v25  ;;  %v2144_v62 = vmul.f32 -1.442695, %v2967_v52  ;;  %v3337_v1 = vmul.f32 %v1349_v8, %v2935_v12 }
 0x121   :  { %v3244_v24 = vpop.f32.mrf.mxu1  ;;  %v3268_v15 = vadd.f32 %v547_v37, %v498_v59  ;;  %v1369_v59 = vmul.f32 %v3176_v56, %v1368_v55  ;;  %v3285_v37 = vpop.eup %2273  ;;  %vm1386_vm15 = vweird.f32 %v3111_v25  ;;  %v1407_v29 = vand.u32 2147483648, %v3178_v54 }
 0x122   :  { %v3323_v42 = vpop.eup %2275  ;;  %v1412_v32 = vmul.f32 %v3285_v37, %v3200_v48  ;;  %v1385_v14 = vadd.f32 %v3202_v19, %v1384_v41  ;;  %vm1387_vm1 = vweird.f32 %v3202_v19  ;;  %v1398_v12 = vsub.f32 1.0, %v1397_v10 }
 0x123   :  { %4192 = vst [vmem:[#allocation18_spill] sm:$0xff] %v3268_v15  ;;  %v1370_v46 = vadd.f32 %v3176_v56, %v1369_v59  ;;  %v1364_v59 = vsel %vm3279_vm10, %v1363_v2, %v1359_v18  ;;  %v1427_v58 = vmul.f32 %v3323_v42, %v3227_v43  ;;  %vm3358_vm2 = vcmp.eq.f32.partialorder %v1390_v3, 8.507059e+37  ;;  %vm3376_vm3 = vmor %vm1386_vm15, %vm1387_vm1 }
 0x124   :  { %v1413_v17 = vsub.f32 1.0, %v1412_v32  ;;  %2281 = vrcp.f32 %v3328_v6  ;;  %v1393_v8 = vor.u32 1.1754944e-38, %v1392_v60  ;;  %v1405_v18 = vand.u32 2147483647, %v3178_v54 }
 0x125   :  { %v1374_v2 = vsel %vm3347_vm0, %v3176_v56, %v1370_v46  ;;  %v3363_v45 = vpop.eup %2277  ;;  %2283 = vpow2.f32 %v2144_v62  ;;  %v2145_v41 = vmul.f32 -1.442695, %v2970_v53  ;;  %v3370_v56 = vmul.f32 %v1364_v59, %v2937_v16 }
 0x126   :  { %v2280_v15 = vpop.eup %2279  ;;  %vm1401_vm4 = vweird.f32 %v3178_v54  ;;  %v1408_v46 = vor.u32 1.1754944e-38, %v1407_v29  ;;  %v1420_v32 = vand.u32 2147483647, %v3200_v48  ;;  %v1379_v16 = vsel %vm3330_vm14, %v1378_v47, %v1374_v2 }
 0x127   :  { %v3301_v49 = vpop.f32.mrf.mxu2  ;;  %v1389_v25 = vsel %vm3376_vm3, %v3202_v19, %v1385_v14  ;;  %v1399_v59 = vmul.f32 %v3270_v33, %v1398_v12  ;;  %v1428_v7 = vsub.f32 1.0, %v1427_v58  ;;  %v1414_v29 = vmul.f32 %v3285_v37, %v1413_v17 }
 0x128   :  { %v3312_v51 = vpop.f32.mrf.mxu3  ;;  %v3314_v27 = vpop.f32.mrf.mxu0  ;;  %vm1416_vm5 = vweird.f32 %v3200_v48  ;;  %v1422_v28 = vand.u32 2147483648, %v3200_v48  ;;  %v1442_v26 = vmul.f32 %v3363_v45, %v3277_v0  ;;  %vm3399_vm6 = vcmp.eq.f32.partialorder %v1405_v18, 8.507059e+37 }
 0x129   :  { %v3321_v55 = vpop.f32.mrf.mxu1  ;;  %vm1431_vm7 = vweird.f32 %v3227_v43  ;;  %v1437_v19 = vand.u32 2147483648, %v3227_v43  ;;  %v3405_v47 = vadd.f32 1.0, %v2280_v15  ;;  %2285 = vpow2.f32 %v2145_v41 }
 0x12a   :  { %v3407_v14 = vpop.eup %2281  ;;  %v3410_v12 = vmul.f32 %v1379_v16, %v2939_v20  ;;  %v1394_v58 = vsel %vm3358_vm2, %v1393_v8, %v1389_v25  ;;  %v1435_v2 = vand.u32 2147483647, %v3227_v43  ;;  %v2146_v17 = vmul.f32 -1.442695, %v2974_v63 }
 0x12b   :  { %v2284_v18 = vpop.eup %2283  ;;  %v1400_v3 = vadd.f32 %v3270_v33, %v1399_v59  ;;  %vm1402_vm8 = vweird.f32 %v3270_v33  ;;  %vm3418_vm9 = vcmp.eq.f32.partialorder %v1420_v32, 8.507059e+37  ;;  %v1429_v41 = vmul.f32 %v3323_v42, %v1428_v7 }
 0x12c   :  { %v1415_v20 = vadd.f32 %v3285_v37, %v1414_v29  ;;  %vm1417_vm10 = vweird.f32 %v3285_v37  ;;  %v1423_v34 = vor.u32 1.1754944e-38, %v1422_v28  ;;  %v1443_v8 = vsub.f32 1.0, %v1442_v26  ;;  %vm3433_vm11 = vmor %vm1401_vm4, %vm1402_vm8 }
 0x12d   :  { %v3426_v16 = vmul.f32 %v1394_v58, %v2942_v22  ;;  %v1438_v25 = vor.u32 1.1754944e-38, %v1437_v19  ;;  %v1457_v59 = vmul.f32 %v3407_v14, %v3328_v6  ;;  %2287 = vrcp.f32 %v3405_v47  ;;  %vm3452_vm15 = vmor %vm1416_vm5, %vm1417_vm10 }
 0x12e   :  { %vm1432_vm12 = vweird.f32 %v3323_v42  ;;  %vm3438_vm13 = vcmp.eq.f32.partialorder %v1435_v2, 8.507059e+37  ;;  %vm1446_vm14 = vweird.f32 %v3277_v0  ;;  %v3443_v22 = vadd.f32 1.0, %v2284_v18 }
 0x12f   :  { %v3367_v10 = vpop.f32.mrf.mxu2  ;;  %2289 = vpow2.f32 %v2146_v17  ;;  %v2286_v19 = vpop.eup %2285  ;;  %v1404_v54 = vsel %vm3433_vm11, %v3270_v33, %v1400_v3  ;;  %v1430_v2 = vadd.f32 %v3323_v42, %v1429_v41  ;;  %v1450_v18 = vand.u32 2147483647, %v3277_v0  ;;  %vm3476_vm0 = vmor %vm1431_vm7, %vm1432_vm12 }
 0x130   :  { %v3382_v60 = vpop.f32.mrf.mxu3  ;;  %v3384_v62 = vpop.f32.mrf.mxu0  ;;  %v2147_v17 = vmul.f32 -1.442695, %v2978_v4  ;;  %v1419_v7 = vsel %vm3452_vm15, %v3285_v37, %v1415_v20  ;;  %v1444_v33 = vmul.f32 %v3363_v45, %v1443_v8  ;;  %v897_v48 = vadd.f32 %v3244_v24, %v3229_v31 }
 0x131   :  { %v3392_v61 = vpop.f32.mrf.mxu1  ;;  %v995_v3 = vadd.f32 %v3312_v51, %v3301_v49  ;;  %v1452_v38 = vand.u32 2147483648, %v3277_v0  ;;  %v1458_v41 = vsub.f32 1.0, %v1457_v59  ;;  %v1465_v53 = vand.u32 2147483647, %v3328_v6 }
 0x132   :  { %v1467_v4 = vand.u32 2147483648, %v3328_v6  ;;  %v1409_v52 = vsel %vm3399_vm6, %v1408_v46, %v1404_v54  ;;  %vm1447_vm1 = vweird.f32 %v3363_v45  ;;  %2291 = vrcp.f32 %v3443_v22 }
 0x133   :  { %v3482_v31 = vadd.f32 1.0, %v2286_v19  ;;  %v3484_v24 = vpop.eup %2287  ;;  %v1424_v49 = vsel %vm3418_vm9, %v1423_v34, %v1419_v7  ;;  %v1434_v51 = vsel %vm3476_vm0, %v3323_v42, %v1430_v2  ;;  %2293 = vpow2.f32 %v2147_v17  ;;  %vm3532_vm4 = vmor %vm1446_vm14, %vm1447_vm1 }
 0x134   :  { %v1805_v43 = vmul.f32 %v3137_v21, %v897_v48  ;;  %v3493_v50 = vadd.f32 %v3363_v45, %v1444_v33  ;;  %vm1461_vm2 = vweird.f32 %v3328_v6  ;;  %v2148_v20 = vmul.f32 -1.442695, %v2980_v5 }
 0x135   :  { %v2290_v46 = vpop.eup %2289  ;;  %v1806_v8 = vmul.f32 %v3197_v57, %v995_v3  ;;  %v899_v15 = vadd.f32 %v3321_v55, %v3314_v27  ;;  %vm3500_vm3 = vcmp.eq.f32.partialorder %v1450_v18, 8.507059e+37  ;;  %v1459_v42 = vmul.f32 %v3407_v14, %v1458_v41  ;;  %v4221_v41 = vld [vmem:[#allocation4_spill] sm:$0xff] }
 0x136   :  { %1837 = vst [vmem:[%s4138_s3] sm:$0xff] %v1805_v43  ;;  %v997_v21 = vadd.f32 %v3382_v60, %v3367_v10  ;;  %v902_v59 = vadd.f32 %v3392_v61, %v3384_v62  ;;  %v1472_v27 = vmul.f32 %v3484_v24, %v3405_v47  ;;  %2295 = vrcp.f32 %v3482_v31 }
 0x137   :  { %v950_v32 = vpop.f32.mrf.mxu2  ;;  %v2149_v55 = vmul.f32 -1.442695, %v2984_v44  ;;  %1838 = vst [vmem:[%s4138_s3 + $0x8] sm:$0xff] %v1806_v8  ;;  %v1807_v54 = vmul.f32 %v3210_v9, %v899_v15  ;;  %v1439_v61 = vsel %vm3438_vm13, %v1438_v25, %v1434_v51  ;;  %v3522_v60 = vadd.f32 1.0, %v2290_v46 }
 0x138   :  { %v999_v28 = vpop.f32.mrf.mxu3  ;;  %v854_v29 = vpop.f32.mrf.mxu0  ;;  %v1808_v62 = vmul.f32 %v3288_v13, %v997_v21  ;;  %vm1462_vm5 = vweird.f32 %v3407_v14  ;;  %2297 = vpow2.f32 %v2148_v20  ;;  %v1449_v26 = vsel %vm3532_vm4, %v3363_v45, %v3493_v50 }
 0x139   :  { %v903_v63 = vpop.f32.mrf.mxu1  ;;  %v1000_v57 = vadd.f32 %v999_v28, %v950_v32  ;;  %v1809_v32 = vmul.f32 %v3304_v11, %v902_v59  ;;  %v3526_v2 = vpop.eup %2291  ;;  %1839 = vst [vmem:[%s4138_s3 + $0x10] sm:$0xff] %v1807_v54  ;;  %v1460_v18 = vadd.f32 %v3407_v14, %v1459_v42  ;;  %v1473_v33 = vsub.f32 1.0, %v1472_v27  ;;  %vm3586_vm7 = vmor %vm1461_vm2, %vm1462_vm5 }
 0x13a   :  { %v904_v11 = vadd.f32 %v903_v63, %v854_v29  ;;  %v2294_v25 = vpop.eup %2293  ;;  %1840 = vst [vmem:[%s4138_s3 + $0x18] sm:$0xff] %v1808_v62  ;;  %2299 = vpow2.f32 %v2149_v55  ;;  %v2150_v48 = vmul.f32 -1.442695, %v2995_v23  ;;  %v1750_v37 = vmul.f32 %v1409_v52, %v4221_v41 }
 0x13b   :  { %v1810_v13 = vmul.f32 %v3337_v1, %v1000_v57  ;;  %1841 = vst [vmem:[%s4138_s3 + $0x20] sm:$0xff] %v1809_v32  ;;  %v1487_v1 = vmul.f32 %v3526_v2, %v3443_v22  ;;  %2301 = vrcp.f32 %v3522_v60  ;;  %vm3569_vm6 = vcmp.eq.f32.partialorder %v1465_v53, 8.507059e+37 }
 0x13c   :  { %v1811_v63 = vmul.f32 %v3370_v56, %v904_v11  ;;  %v3562_v3 = vpop.eup %2295  ;;  %v1453_v56 = vor.u32 1.1754944e-38, %v1452_v38  ;;  %v3573_v43 = vadd.f32 1.0, %v2294_v25  ;;  %v3580_v46 = vmul.f32 %v1439_v61, %v2952_v35 }
 0x13d   :  { %1842 = vst [vmem:[%s4138_s3 + $0x28] sm:$0xff] %v1810_v13  ;;  %v1468_v53 = vor.u32 1.1754944e-38, %v1467_v4  ;;  %v1480_v38 = vand.u32 2147483647, %v3405_v47  ;;  %v1464_v50 = vsel %vm3586_vm7, %v3407_v14, %v1460_v18  ;;  %v1474_v20 = vmul.f32 %v3484_v24, %v1473_v33  ;;  %v4227_v14 = vld [vmem:[#allocation10_spill] sm:$0xff] }
 0x13e   :  { %1843 = vst [vmem:[%s4138_s3 + $0x30] sm:$0xff] %v1811_v63  ;;  %v2298_v35 = vpop.eup %2297  ;;  %v1482_v6 = vand.u32 2147483648, %v3405_v47  ;;  %v1488_v15 = vsub.f32 1.0, %v1487_v1  ;;  %v1502_v42 = vmul.f32 %v3562_v3, %v3482_v31  ;;  %2303 = vpow2.f32 %v2150_v48 }
 0x13f   :  { %v952_v19 = vpop.f32.mrf.mxu2  ;;  %vm1476_vm8 = vweird.f32 %v3405_v47  ;;  %2305 = vrcp.f32 %v3573_v43  ;;  %v2151_v57 = vmul.f32 -1.442695, %v4227_v14  ;;  %v1497_v54 = vand.u32 2147483648, %v3443_v22 }
 0x140   :  { %v1001_v58 = vpop.f32.mrf.mxu3  ;;  %v857_v10 = vpop.f32.mrf.mxu0  ;;  %v1469_v61 = vsel %vm3569_vm6, %v1468_v53, %v1464_v50  ;;  %vm3619_vm9 = vcmp.eq.f32.partialorder %v1480_v38, 8.507059e+37  ;;  %v1483_v32 = vor.u32 1.1754944e-38, %v1482_v6  ;;  %v1475_v13 = vadd.f32 %v3484_v24, %v1474_v20 }
 0x141   :  { %v906_v28 = vpop.f32.mrf.mxu1  ;;  %v1002_v17 = vadd.f32 %v1001_v58, %v952_v19  ;;  %v2300_v59 = vpop.eup %2299  ;;  %v3615_v58 = vadd.f32 1.0, %v2298_v35  ;;  %vm1477_vm10 = vweird.f32 %v3484_v24  ;;  %v1503_v11 = vsub.f32 1.0, %v1502_v42 }
 0x142   :  { %v907_v7 = vadd.f32 %v906_v28, %v857_v10  ;;  %v3611_v27 = vpop.eup %2301  ;;  %v1495_v28 = vand.u32 2147483647, %v3443_v22  ;;  %vm1491_vm11 = vweird.f32 %v3443_v22  ;;  %2307 = vpow2.f32 %v2151_v57  ;;  %vm3649_vm13 = vmor %vm1476_vm8, %vm1477_vm10 }
 0x143   :  { %v1812_v45 = vmul.f32 %v3410_v12, %v1002_v17  ;;  %v4224_v12 = vld [vmem:[#allocation5_spill] sm:$0xff]  ;;  %v1517_v25 = vmul.f32 %v3611_v27, %v3522_v60  ;;  %v3639_v17 = vmul.f32 %v1469_v61, %v2959_v39  ;;  %vm1506_vm12 = vweird.f32 %v3482_v31 }
 0x144   :  { %v1813_v29 = vmul.f32 %v3426_v16, %v907_v7  ;;  %v1751_v16 = vmul.f32 %v1424_v49, %v4224_v12  ;;  %v1454_v49 = vsel %vm3500_vm3, %v1453_v56, %v1449_v26  ;;  %v3633_v26 = vadd.f32 1.0, %v2300_v59  ;;  %v2304_v18 = vpop.eup %2303  ;;  %v4244_v39 = vld [vmem:[#allocation13_spill] sm:$0xff] }
 0x145   :  { %1844 = vst [vmem:[%s4138_s3 + $0x38] sm:$0xff] %v1812_v45  ;;  %v1753_v55 = vmul.f32 %v1454_v49, %v2954_v36  ;;  %v1489_v36 = vmul.f32 %v3526_v2, %v1488_v15  ;;  %v1498_v7 = vor.u32 1.1754944e-38, %v1497_v54  ;;  %2309 = vrcp.f32 %v3615_v58  ;;  %v3643_v48 = vpop.eup %2305 }
 0x146   :  { %1845 = vst [vmem:[%s4138_s3 + $0x40] sm:$0xff] %v1813_v29  ;;  %vm1492_vm14 = vweird.f32 %v3526_v2  ;;  %vm3654_vm15 = vcmp.eq.f32.partialorder %v1495_v28, 8.507059e+37  ;;  %v1510_v1 = vand.u32 2147483647, %v3482_v31  ;;  %v1512_v45 = vand.u32 2147483648, %v3482_v31  ;;  %v4234_v29 = vld [vmem:[#allocation11_spill] sm:$0xff] }
 0x147   :  { %v955_v0 = vpop.f32.mrf.mxu2  ;;  %v2152_v41 = vmul.f32 -1.442695, %v4234_v29  ;;  %v1479_v47 = vsel %vm3649_vm13, %v3484_v24, %v1475_v13  ;;  %v1490_v51 = vadd.f32 %v3526_v2, %v1489_v36  ;;  %v1504_v12 = vmul.f32 %v3562_v3, %v1503_v11  ;;  %vm3686_vm1 = vmor %vm1491_vm11, %vm1492_vm14  ;;  %v4243_v11 = vld [vmem:[#allocation12_spill] sm:$0xff]  ;;  %v4256_v36 = vld [vmem:[#allocation15_spill] sm:$0xff] }
 0x148   :  { %v1004_v4 = vpop.f32.mrf.mxu3  ;;  %v859_v8 = vpop.f32.mrf.mxu0  ;;  %v1518_v53 = vsub.f32 1.0, %v1517_v25  ;;  %2311 = vrcp.f32 %v3633_v26  ;;  %v2153_v38 = vmul.f32 -1.442695, %v3104_v30  ;;  %v1527_v35 = vand.u32 2147483648, %v3522_v60 }
 0x149   :  { %v1005_v34 = vadd.f32 %v1004_v4, %v955_v0  ;;  %v908_v21 = vpop.f32.mrf.mxu1  ;;  %v1532_v49 = vmul.f32 %v3643_v48, %v3573_v43  ;;  %v3671_v50 = vadd.f32 1.0, %v2304_v18  ;;  %v2308_v20 = vpop.eup %2307  ;;  %vm3674_vm0 = vcmp.eq.f32.partialorder %v1510_v1, 8.507059e+37 }
 0x14a   :  { %v909_v19 = vadd.f32 %v908_v21, %v859_v8  ;;  %v1513_v4 = vor.u32 1.1754944e-38, %v1512_v45  ;;  %2313 = vpow2.f32 %v2152_v41  ;;  %v1484_v42 = vsel %vm3619_vm9, %v1483_v32, %v1479_v47 }
 0x14b   :  { %v1814_v10 = vmul.f32 %v1750_v37, %v1005_v34  ;;  %v3678_v15 = vpop.eup %2309  ;;  %vm1507_vm2 = vweird.f32 %v3562_v3  ;;  %vm1521_vm3 = vweird.f32 %v3522_v60  ;;  %v1494_v21 = vsel %vm3686_vm1, %v3526_v2, %v1490_v51 }
 0x14c   :  { %v1815_v9 = vmul.f32 %v1751_v16, %v909_v19  ;;  %v1505_v22 = vadd.f32 %v3562_v3, %v1504_v12  ;;  %v1519_v59 = vmul.f32 %v3611_v27, %v1518_v53  ;;  %2315 = vpow2.f32 %v2153_v38  ;;  %vm3722_vm4 = vmor %vm1506_vm12, %vm1507_vm2 }
 0x14d   :  { %1846 = vst [vmem:[%s4138_s3 + $0x48] sm:$0xff] %v1814_v10  ;;  %v3704_v57 = vor.u32 1.1754944e-38, %v1527_v35  ;;  %v1533_v19 = vsub.f32 1.0, %v1532_v49  ;;  %2317 = vrcp.f32 %v3671_v50  ;;  %v1755_v2 = vmul.f32 %v1484_v42, %v2961_v40  ;;  %v4250_v42 = vld [vmem:[#allocation7_spill] sm:$0xff] }
 0x14e   :  { %1847 = vst [vmem:[%s4138_s3 + $0x50] sm:$0xff] %v1815_v9  ;;  %v3709_v10 = vpop.eup %2311  ;;  %v1540_v61 = vand.u32 2147483647, %v3573_v43  ;;  %v1542_v62 = vand.u32 2147483648, %v3573_v43  ;;  %v1547_v32 = vmul.f32 %v3678_v15, %v3615_v58  ;;  %v1499_v13 = vsel %vm3654_vm15, %v1498_v7, %v1494_v21 }
 0x14f   :  { %v957_v33 = vpop.f32.mrf.mxu2  ;;  %vm1522_vm5 = vweird.f32 %v3611_v27  ;;  %v2154_v25 = vmul.f32 -1.442695, %v4243_v11  ;;  %v1509_v7 = vsel %vm3722_vm4, %v3562_v3, %v1505_v22  ;;  %v1520_v31 = vadd.f32 %v3611_v27, %v1519_v59 }
 0x150   :  { %v1006_v37 = vpop.f32.mrf.mxu3  ;;  %v862_v56 = vpop.f32.mrf.mxu0  ;;  %v2155_v1 = vmul.f32 -1.442695, %v4244_v39  ;;  %v1534_v41 = vmul.f32 %v3643_v48, %v1533_v19  ;;  %vm1536_vm7 = vweird.f32 %v3573_v43  ;;  %v1543_v51 = vor.u32 1.1754944e-38, %v1542_v62  ;;  %vm3761_vm9 = vmor %vm1521_vm3, %vm1522_vm5 }
 0x151   :  { %v1007_v16 = vadd.f32 %v1006_v37, %v957_v33  ;;  %v911_v52 = vpop.f32.mrf.mxu1  ;;  %v2314_v63 = vpop.eup %2313  ;;  %v1562_v37 = vmul.f32 %v3709_v10, %v3633_v26  ;;  %v1548_v12 = vsub.f32 1.0, %v1547_v32  ;;  %v1514_v38 = vsel %vm3674_vm0, %v1513_v4, %v1509_v7 }
 0x152   :  { %v912_v0 = vadd.f32 %v911_v52, %v862_v56  ;;  %v2316_v47 = vpop.eup %2315  ;;  %v4245_v52 = vld [vmem:[#allocation6_spill] sm:$0xff]  ;;  %vm3748_vm8 = vcmp.eq.f32.partialorder %v1540_v61, 8.507059e+37  ;;  %v3752_v35 = vadd.f32 1.0, %v2314_v63  ;;  %vm1537_vm10 = vweird.f32 %v3643_v48 }
 0x153   :  { %v1816_v24 = vmul.f32 %v3580_v46, %v1007_v16  ;;  %v1525_v46 = vand.u32 2147483647, %v3522_v60  ;;  %v3743_v16 = vpop.eup %2317  ;;  %v1756_v53 = vmul.f32 %v1499_v13, %v4245_v52  ;;  %vm1551_vm11 = vweird.f32 %v3615_v58  ;;  %vm3795_vm12 = vmor %vm1536_vm7, %vm1537_vm10 }
 0x154   :  { %v1817_v8 = vmul.f32 %v1753_v55, %v912_v0  ;;  %v3707_v55 = vadd.f32 1.0, %v2308_v20  ;;  %v1555_v49 = vand.u32 2147483647, %v3615_v58  ;;  %v1524_v60 = vsel %vm3761_vm9, %v3611_v27, %v1520_v31 }
 0x155   :  { %1848 = vst [vmem:[%s4138_s3 + $0x58] sm:$0xff] %v1816_v24  ;;  %vm3727_vm6 = vcmp.eq.f32.partialorder %v1525_v46, 8.507059e+37  ;;  %v1557_v24 = vand.u32 2147483648, %v3615_v58  ;;  %v1535_v20 = vadd.f32 %v3643_v48, %v1534_v41  ;;  %v1563_v6 = vsub.f32 1.0, %v1562_v37 }
 0x156   :  { %1849 = vst [vmem:[%s4138_s3 + $0x60] sm:$0xff] %v1817_v8  ;;  %2319 = vrcp.f32 %v3707_v55  ;;  %v3776_v4 = vadd.f32 1.0, %v2316_v47  ;;  %v1757_v34 = vmul.f32 %v1514_v38, %v4250_v42  ;;  %v1549_v46 = vmul.f32 %v3678_v15, %v1548_v12  ;;  %v4262_v42 = vld [vmem:[#allocation9_spill] sm:$0xff] }
 0x157   :  { %v960_v54 = vpop.f32.mrf.mxu2  ;;  %2321 = vpow2.f32 %v2154_v25  ;;  %v1570_v21 = vand.u32 2147483647, %v3633_v26  ;;  %v1577_v22 = vmul.f32 %v3743_v16, %v3671_v50  ;;  %v1572_v27 = vand.u32 2147483648, %v3633_v26 }
 0x158   :  { %v1009_v28 = vpop.f32.mrf.mxu3  ;;  %v864_v9 = vpop.f32.mrf.mxu0  ;;  %2323 = vpow2.f32 %v2155_v1  ;;  %vm1552_vm13 = vweird.f32 %v3678_v15  ;;  %vm3800_vm14 = vcmp.eq.f32.partialorder %v1555_v49, 8.507059e+37  ;;  %v2157_v25 = vmul.f32 -1.442695, %v4256_v36 }
 0x159   :  { %v1010_v18 = vadd.f32 %v1009_v28, %v960_v54  ;;  %v913_v33 = vpop.f32.mrf.mxu1  ;;  %2325 = vrcp.f32 %v3752_v35  ;;  %v1529_v28 = vsel %vm3727_vm6, %v3704_v57, %v1524_v60  ;;  %v1539_v57 = vsel %vm3795_vm12, %v3643_v48, %v1535_v20  ;;  %v4257_v48 = vld [vmem:[#allocation8_spill] sm:$0xff]  ;;  %vm3835_vm1 = vmor %vm1551_vm11, %vm1552_vm13 }
 0x15a   :  { %v914_v45 = vadd.f32 %v913_v33, %v864_v9  ;;  %v1564_v43 = vmul.f32 %v3709_v10, %v1563_v6  ;;  %2327 = vrcp.f32 %v3776_v4  ;;  %v1550_v7 = vadd.f32 %v3678_v15, %v1549_v46  ;;  %v4263_v46 = vld [vmem:[#allocation16_spill] sm:$0xff] }
 0x15b   :  { %v1818_v56 = vmul.f32 %v3639_v17, %v1010_v18  ;;  %v1578_v31 = vsub.f32 1.0, %v1577_v22  ;;  %v1558_v41 = vor.u32 1.1754944e-38, %v1557_v24  ;;  %vm1566_vm15 = vweird.f32 %v3633_v26 }
 0x15c   :  { %v1819_v3 = vmul.f32 %v1755_v2, %v914_v45  ;;  %v3783_v54 = vpop.eup %2319  ;;  %v4251_v2 = vld [vmem:[#allocation14_spill] sm:$0xff]  ;;  %v1573_v37 = vor.u32 1.1754944e-38, %v1572_v27  ;;  %v1544_v47 = vsel %vm3748_vm8, %v1543_v51, %v1539_v57  ;;  %vm3820_vm0 = vcmp.eq.f32.partialorder %v1570_v21, 8.507059e+37  ;;  %v4266_v27 = vld [vmem:[#allocation17_spill] sm:$0xff] }
 0x15d   :  { %1850 = vst [vmem:[%s4138_s3 + $0x68] sm:$0xff] %v1818_v56  ;;  %v2156_v61 = vmul.f32 -1.442695, %v4251_v2  ;;  %v2322_v33 = vpop.eup %2321  ;;  %v1592_v1 = vmul.f32 %v3783_v54, %v3707_v55  ;;  %v1758_v56 = vmul.f32 %v1529_v28, %v4257_v48  ;;  %v1565_v51 = vadd.f32 %v3709_v10, %v1564_v43 }
 0x15e   :  { %1851 = vst [vmem:[%s4138_s3 + $0x70] sm:$0xff] %v1819_v3  ;;  %v2324_v63 = vpop.eup %2323  ;;  %v3824_v3 = vadd.f32 1.0, %v2322_v33  ;;  %vm1567_vm2 = vweird.f32 %v3709_v10  ;;  %v1585_v38 = vand.u32 2147483647, %v3671_v50  ;;  %v1554_v49 = vsel %vm3835_vm1, %v3678_v15, %v1550_v7 }
 0x15f   :  { %v962_v8 = vpop.f32.mrf.mxu2  ;;  %2329 = vpow2.f32 %v2156_v61  ;;  %v3829_v52 = vpop.eup %2325  ;;  %v3842_v0 = vadd.f32 1.0, %v2324_v63  ;;  %v1579_v24 = vmul.f32 %v3743_v16, %v1578_v31  ;;  %v1587_v58 = vand.u32 2147483648, %v3671_v50  ;;  %vm3858_vm4 = vmor %vm1566_vm15, %vm1567_vm2 }
 0x160   :  { %v1011_v59 = vpop.f32.mrf.mxu3  ;;  %v867_v19 = vpop.f32.mrf.mxu0  ;;  %2331 = vpow2.f32 %v2157_v25  ;;  %v1593_v60 = vsub.f32 1.0, %v1592_v1  ;;  %vm1582_vm3 = vweird.f32 %v3743_v16  ;;  %v2158_v21 = vmul.f32 -1.442695, %v4263_v46 }
 0x161   :  { %v1012_v62 = vadd.f32 %v1011_v59, %v962_v8  ;;  %v916_v32 = vpop.f32.mrf.mxu1  ;;  %v3849_v8 = vpop.eup %2327  ;;  %2333 = vrcp.f32 %v3824_v3  ;;  %v2159_v61 = vmul.f32 -1.442695, %v4266_v27  ;;  %v1559_v28 = vsel %vm3800_vm14, %v1558_v41, %v1554_v49 }
 0x162   :  { %v917_v18 = vadd.f32 %v916_v32, %v867_v19  ;;  %v1607_v19 = vmul.f32 %v3829_v52, %v3752_v35  ;;  %v1569_v26 = vsel %vm3858_vm4, %v3709_v10, %v1565_v51  ;;  %2335 = vrcp.f32 %v3842_v0 }
 0x163   :  { %v1820_v40 = vmul.f32 %v1756_v53, %v1012_v62  ;;  %v1594_v33 = vmul.f32 %v3783_v54, %v1593_v60  ;;  %v1622_v57 = vmul.f32 %v3849_v8, %v3776_v4  ;;  %vm1581_vm5 = vweird.f32 %v3671_v50 }
 0x164   :  { %v1821_v45 = vmul.f32 %v1757_v34, %v917_v18  ;;  %v1759_v34 = vmul.f32 %v1544_v47, %v4262_v42  ;;  %v1580_v18 = vadd.f32 %v3743_v16, %v1579_v24  ;;  %vm3877_vm6 = vcmp.eq.f32.partialorder %v1585_v38, 8.507059e+37  ;;  %vm3895_vm7 = vmor %vm1581_vm5, %vm1582_vm3 }
 0x165   :  { %1852 = vst [vmem:[%s4138_s3 + $0x78] sm:$0xff] %v1820_v40  ;;  %v2330_v32 = vpop.eup %2329  ;;  %v1600_v10 = vand.u32 2147483647, %v3707_v55  ;;  %2337 = vpow2.f32 %v2158_v21  ;;  %v1588_v40 = vor.u32 1.1754944e-38, %v1587_v58  ;;  %v1608_v63 = vsub.f32 1.0, %v1607_v19 }
 0x166   :  { %1853 = vst [vmem:[%s4138_s3 + $0x80] sm:$0xff] %v1821_v45  ;;  %v2332_v25 = vpop.eup %2331  ;;  %v3885_v7 = vadd.f32 1.0, %v2330_v32  ;;  %2339 = vpow2.f32 %v2159_v61  ;;  %v1760_v50 = vmul.f32 %v1559_v28, %v2980_v5  ;;  %v1574_v31 = vsel %vm3820_vm0, %v1573_v37, %v1569_v26 }
 0x167   :  { %v965_v17 = vpop.f32.mrf.mxu2  ;;  %vm1596_vm8 = vweird.f32 %v3707_v55  ;;  %v3900_v45 = vadd.f32 1.0, %v2332_v25  ;;  %v3902_v48 = vpop.eup %2333  ;;  %v1584_v5 = vsel %vm3895_vm7, %v3743_v16, %v1580_v18  ;;  %vm1597_vm9 = vweird.f32 %v3783_v54 }
 0x168   :  { %v1014_v20 = vpop.f32.mrf.mxu3  ;;  %v869_v6 = vpop.f32.mrf.mxu0  ;;  %v1623_v37 = vsub.f32 1.0, %v1622_v57  ;;  %vm3911_vm10 = vcmp.eq.f32.partialorder %v1600_v10, 8.507059e+37  ;;  %v1602_v38 = vand.u32 2147483648, %v3707_v55  ;;  %v1761_v16 = vmul.f32 %v1574_v31, %v2984_v44  ;;  %vm3926_vm11 = vmor %vm1596_vm8, %vm1597_vm9 }
 0x169   :  { %v1015_v22 = vadd.f32 %v1014_v20, %v965_v17  ;;  %v918_v59 = vpop.f32.mrf.mxu1  ;;  %v3909_v53 = vpop.eup %2335  ;;  %v4273_v17 = vld [vmem:[#allocation18_spill] sm:$0xff]  ;;  %v1609_v60 = vmul.f32 %v3829_v52, %v1608_v63  ;;  %2341 = vrcp.f32 %v3885_v7  ;;  %v1589_v42 = vsel %vm3877_vm6, %v1588_v40, %v1584_v5 }
 0x16a   :  { %v919_v62 = vadd.f32 %v918_v59, %v869_v6  ;;  %v2160_v49 = vmul.f32 -1.442695, %v4273_v17  ;;  %v1637_v44 = vmul.f32 %v3902_v48, %v3824_v3  ;;  %2343 = vrcp.f32 %v3900_v45 }
 0x16b   :  { %v1822_v9 = vmul.f32 %v1758_v56, %v1015_v22  ;;  %v1595_v56 = vadd.f32 %v3783_v54, %v1594_v33  ;;  %v2338_v6 = vpop.eup %2337  ;;  %v1624_v15 = vmul.f32 %v3849_v8, %v1623_v37  ;;  %v1652_v55 = vmul.f32 %v3909_v53, %v3842_v0 }
 0x16c   :  { %v1823_v43 = vmul.f32 %v1759_v34, %v919_v62  ;;  %v2340_v22 = vpop.eup %2339  ;;  %v1603_v61 = vor.u32 1.1754944e-38, %v1602_v38  ;;  %vm1611_vm12 = vweird.f32 %v3752_v35  ;;  %v1617_v62 = vand.u32 2147483648, %v3752_v35 }
 0x16d   :  { %1854 = vst [vmem:[%s4138_s3 + $0x88] sm:$0xff] %v1822_v9  ;;  %v1599_v59 = vsel %vm3926_vm11, %v3783_v54, %v1595_v56  ;;  %2345 = vpow2.f32 %v2160_v49  ;;  %v1610_v32 = vadd.f32 %v3829_v52, %v1609_v60  ;;  %vm1612_vm13 = vweird.f32 %v3829_v52 }
 0x16e   :  { %1855 = vst [vmem:[%s4138_s3 + $0x90] sm:$0xff] %v1823_v43  ;;  %v1615_v54 = vand.u32 2147483647, %v3752_v35  ;;  %v3947_v28 = vadd.f32 1.0, %v2338_v6  ;;  %v1762_v26 = vmul.f32 %v1589_v42, %v2995_v23  ;;  %v1604_v9 = vsel %vm3911_vm10, %v1603_v61, %v1599_v59  ;;  %vm3968_vm0 = vmor %vm1611_vm12, %vm1612_vm13 }
 0x16f   :  { %v967_v41 = vpop.f32.mrf.mxu2  ;;  %v1638_v25 = vsub.f32 1.0, %v1637_v44  ;;  %v3955_v18 = vadd.f32 1.0, %v2340_v22  ;;  %v3957_v57 = vpop.eup %2341  ;;  %v1625_v43 = vadd.f32 %v3849_v8, %v1624_v15  ;;  %vm1626_vm14 = vweird.f32 %v3776_v4 }
 0x170   :  { %v1016_v47 = vpop.f32.mrf.mxu3  ;;  %v872_v12 = vpop.f32.mrf.mxu0  ;;  %vm1627_vm15 = vweird.f32 %v3849_v8  ;;  %v1653_v13 = vsub.f32 1.0, %v1652_v55  ;;  %v1630_v31 = vand.u32 2147483647, %v3776_v4  ;;  %v1632_v1 = vand.u32 2147483648, %v3776_v4 }
 0x171   :  { %v1017_v24 = vadd.f32 %v1016_v47, %v967_v41  ;;  %v921_v58 = vpop.f32.mrf.mxu1  ;;  %v3962_v63 = vpop.eup %2343  ;;  %v1763_v56 = vmul.f32 %v1604_v9, %v4227_v14  ;;  %v1614_v37 = vsel %vm3968_vm0, %v3829_v52, %v1610_v32  ;;  %2347 = vrcp.f32 %v3947_v28  ;;  %vm3983_vm1 = vmor %vm1626_vm14, %vm1627_vm15 }
 0x172   :  { %v922_v20 = vadd.f32 %v921_v58, %v872_v12  ;;  %v1639_v51 = vmul.f32 %v3902_v48, %v1638_v25  ;;  %v1667_v14 = vmul.f32 %v3957_v57, %v3885_v7  ;;  %2349 = vrcp.f32 %v3955_v18 }
 0x173   :  { %v1824_v21 = vmul.f32 %v1760_v50, %v1017_v24  ;;  %v1618_v50 = vor.u32 1.1754944e-38, %v1617_v62  ;;  %v2346_v47 = vpop.eup %2345  ;;  %v1629_v38 = vsel %vm3983_vm1, %v3849_v8, %v1625_v43  ;;  %v1654_v49 = vmul.f32 %v3909_v53, %v1653_v13 }
 0x174   :  { %v1825_v19 = vmul.f32 %v1761_v16, %v922_v20  ;;  %v1682_v4 = vmul.f32 %v3962_v63, %v3900_v45  ;;  %vm1616_vm2 = vcmp.eq.f32.partialorder %v1615_v54, 8.507059e+37  ;;  %vm1631_vm3 = vcmp.eq.f32.partialorder %v1630_v31, 8.507059e+37 }
 0x175   :  { %1856 = vst [vmem:[%s4138_s3 + $0x98] sm:$0xff] %v1824_v21  ;;  %v1633_v58 = vor.u32 1.1754944e-38, %v1632_v1  ;;  %v1647_v16 = vand.u32 2147483648, %v3824_v3  ;;  %v1619_v60 = vsel %vm1616_vm2, %v1618_v50, %v1614_v37  ;;  %vm1641_vm4 = vweird.f32 %v3824_v3 }
 0x176   :  { %1857 = vst [vmem:[%s4138_s3 + $0xa0] sm:$0xff] %v1825_v19  ;;  %v1645_v8 = vand.u32 2147483647, %v3824_v3  ;;  %v4003_v20 = vadd.f32 1.0, %v2346_v47  ;;  %v1640_v42 = vadd.f32 %v3902_v48, %v1639_v51  ;;  %vm1642_vm5 = vweird.f32 %v3902_v48 }
 0x177   :  { %v970_v33 = vpop.f32.mrf.mxu2  ;;  %v1634_v6 = vsel %vm1631_vm3, %v1633_v58, %v1629_v38  ;;  %v1668_v34 = vsub.f32 1.0, %v1667_v14  ;;  %v4010_v21 = vpop.eup %2347  ;;  %v1655_v22 = vadd.f32 %v3909_v53, %v1654_v49  ;;  %vm1656_vm6 = vweird.f32 %v3842_v0  ;;  %vm4024_vm8 = vmor %vm1641_vm4, %vm1642_vm5 }
 0x178   :  { %v1019_v10 = vpop.f32.mrf.mxu3  ;;  %v874_v40 = vpop.f32.mrf.mxu0  ;;  %vm1657_vm7 = vweird.f32 %v3909_v53  ;;  %v1683_v59 = vsub.f32 1.0, %v1682_v4  ;;  %v1764_v61 = vmul.f32 %v1619_v60, %v4234_v29  ;;  %v1648_v62 = vor.u32 1.1754944e-38, %v1647_v16 }
 0x179   :  { %v1020_v41 = vadd.f32 %v1019_v10, %v970_v33  ;;  %v923_v5 = vpop.f32.mrf.mxu1  ;;  %v4015_v19 = vpop.eup %2349  ;;  %v1662_v32 = vand.u32 2147483648, %v3842_v0  ;;  %v1765_v9 = vmul.f32 %v1634_v6, %v3104_v30  ;;  %v1660_v33 = vand.u32 2147483647, %v3842_v0  ;;  %vm4037_vm9 = vmor %vm1656_vm6, %vm1657_vm7 }
 0x17a   :  { %v924_v35 = vadd.f32 %v923_v5, %v874_v40  ;;  %2351 = vrcp.f32 %v4003_v20  ;;  %v1644_v43 = vsel %vm4024_vm8, %v3902_v48, %v1640_v42  ;;  %v1669_v3 = vmul.f32 %v3957_v57, %v1668_v34 }
 0x17b   :  { %v1826_v52 = vmul.f32 %v1762_v26, %v1020_v41  ;;  %v1697_v13 = vmul.f32 %v4010_v21, %v3947_v28  ;;  %v1659_v40 = vsel %vm4037_vm9, %v3909_v53, %v1655_v22  ;;  %v1684_v48 = vmul.f32 %v3962_v63, %v1683_v59 }
 0x17c   :  { %v1827_v24 = vmul.f32 %v1763_v56, %v924_v35  ;;  %v1712_v23 = vmul.f32 %v4015_v19, %v3955_v18  ;;  %vm1646_vm10 = vcmp.eq.f32.partialorder %v1645_v8, 8.507059e+37  ;;  %v1663_v50 = vor.u32 1.1754944e-38, %v1662_v32 }
 0x17d   :  { %1858 = vst [vmem:[%s4138_s3 + $0xa8] sm:$0xff] %v1826_v52  ;;  %v1649_v31 = vsel %vm1646_vm10, %v1648_v62, %v1644_v43  ;;  %vm1661_vm11 = vcmp.eq.f32.partialorder %v1660_v33, 8.507059e+37  ;;  %vm1671_vm12 = vweird.f32 %v3885_v7  ;;  %v1677_v1 = vand.u32 2147483648, %v3885_v7 }
 0x17e   :  { %1859 = vst [vmem:[%s4138_s3 + $0xb0] sm:$0xff] %v1827_v24  ;;  %v1664_v53 = vsel %vm1661_vm11, %v1663_v50, %v1659_v40  ;;  %v1670_v41 = vadd.f32 %v3957_v57, %v1669_v3  ;;  %vm1672_vm13 = vweird.f32 %v3957_v57  ;;  %v1698_v5 = vsub.f32 1.0, %v1697_v13 }
 0x17f   :  { %v972_v44 = vpop.f32.mrf.mxu2  ;;  %v1685_v35 = vadd.f32 %v3962_v63, %v1684_v48  ;;  %vm1686_vm14 = vweird.f32 %v3900_v45  ;;  %vm1687_vm15 = vweird.f32 %v3962_v63  ;;  %v1713_v47 = vsub.f32 1.0, %v1712_v23  ;;  %vm4073_vm0 = vmor %vm1671_vm12, %vm1672_vm13 }
 0x180   :  { %v1021_v15 = vpop.f32.mrf.mxu3  ;;  %v877_v55 = vpop.f32.mrf.mxu0  ;;  %v1766_v14 = vmul.f32 %v1649_v31, %v4243_v11  ;;  %v1675_v52 = vand.u32 2147483647, %v3885_v7  ;;  %v1692_v38 = vand.u32 2147483648, %v3900_v45  ;;  %v1767_v24 = vmul.f32 %v1664_v53, %v4244_v39  ;;  %vm1688_vm1 = vmor %vm1686_vm14, %vm1687_vm15 }
 0x181   :  { %v1022_v54 = vadd.f32 %v1021_v15, %v972_v44  ;;  %v926_v26 = vpop.f32.mrf.mxu1  ;;  %v4060_v37 = vpop.eup %2351  ;;  %v1690_v16 = vand.u32 2147483647, %v3900_v45  ;;  %v1674_v11 = vsel %vm4073_vm0, %v3957_v57, %v1670_v41  ;;  %v1699_v39 = vmul.f32 %v4010_v21, %v1698_v5 }
 0x182   :  { %v927_v29 = vadd.f32 %v926_v26, %v877_v55  ;;  %v1727_v8 = vmul.f32 %v4060_v37, %v4003_v20  ;;  %v1678_v6 = vor.u32 1.1754944e-38, %v1677_v1  ;;  %v1689_v42 = vsel %vm1688_vm1, %v3962_v63, %v1685_v35 }
 0x183   :  { %v1828_v10 = vmul.f32 %v1764_v61, %v1022_v54  ;;  %v1714_v34 = vmul.f32 %v4015_v19, %v1713_v47  ;;  %vm1676_vm2 = vcmp.eq.f32.partialorder %v1675_v52, 8.507059e+37  ;;  %v1693_v22 = vor.u32 1.1754944e-38, %v1692_v38 }
 0x184   :  { %v1829_v0 = vmul.f32 %v1765_v9, %v927_v29  ;;  %v1679_v45 = vsel %vm1676_vm2, %v1678_v6, %v1674_v11  ;;  %vm1691_vm3 = vcmp.eq.f32.partialorder %v1690_v16, 8.507059e+37  ;;  %v1700_v59 = vadd.f32 %v4010_v21, %v1699_v39 }
 0x185   :  { %1860 = vst [vmem:[%s4138_s3 + $0xb8] sm:$0xff] %v1828_v10  ;;  %v1694_v57 = vsel %vm1691_vm3, %v1693_v22, %v1689_v42  ;;  %vm1702_vm4 = vweird.f32 %v4010_v21  ;;  %v1728_v63 = vsub.f32 1.0, %v1727_v8  ;;  %vm1701_vm5 = vweird.f32 %v3947_v28 }
 0x186   :  { %1861 = vst [vmem:[%s4138_s3 + $0xc0] sm:$0xff] %v1829_v0  ;;  %v1707_v55 = vand.u32 2147483648, %v3947_v28  ;;  %v1715_v61 = vadd.f32 %v4015_v19, %v1714_v34  ;;  %vm1717_vm6 = vweird.f32 %v4015_v19  ;;  %v1768_v54 = vmul.f32 %v1679_v45, %v4251_v2  ;;  %vm1703_vm7 = vmor %vm1701_vm5, %vm1702_vm4 }
 0x187   :  { %v975_v56 = vpop.f32.mrf.mxu2  ;;  %v1705_v26 = vand.u32 2147483647, %v3947_v28  ;;  %v1722_v9 = vand.u32 2147483648, %v3955_v18  ;;  %v1769_v29 = vmul.f32 %v1694_v57, %v4256_v36  ;;  %vm1716_vm8 = vweird.f32 %v3955_v18 }
 0x188   :  { %v1024_v12 = vpop.f32.mrf.mxu3  ;;  %v879_v51 = vpop.f32.mrf.mxu0  ;;  %v1720_v43 = vand.u32 2147483647, %v3955_v18  ;;  %v1704_v3 = vsel %vm1703_vm7, %v4010_v21, %v1700_v59  ;;  %vm1718_vm9 = vmor %vm1716_vm8, %vm1717_vm6  ;;  %v1729_v2 = vmul.f32 %v4060_v37, %v1728_v63  ;;  %v1708_v13 = vor.u32 1.1754944e-38, %v1707_v55 }
 0x189   :  { %v1025_v49 = vadd.f32 %v1024_v12, %v975_v56  ;;  %v928_v4 = vpop.f32.mrf.mxu1  ;;  %v1719_v10 = vsel %vm1718_vm9, %v4015_v19, %v1715_v61  ;;  %vm1706_vm10 = vcmp.eq.f32.partialorder %v1705_v26, 8.507059e+37  ;;  %v1723_v36 = vor.u32 1.1754944e-38, %v1722_v9 }
 0x18a   :  { %v929_v60 = vadd.f32 %v928_v4, %v879_v51  ;;  %v1709_v48 = vsel %vm1706_vm10, %v1708_v13, %v1704_v3  ;;  %vm1721_vm11 = vcmp.eq.f32.partialorder %v1720_v43, 8.507059e+37  ;;  %v1730_v21 = vadd.f32 %v4060_v37, %v1729_v2 }
 0x18b   :  { %v1830_v7 = vmul.f32 %v1766_v14, %v1025_v49  ;;  %v1724_v18 = vsel %vm1721_vm11, %v1723_v36, %v1719_v10  ;;  %vm1732_vm12 = vweird.f32 %v4060_v37  ;;  %v1737_v19 = vand.u32 2147483648, %v4003_v20 }
 0x18c   :  { %v1831_v44 = vmul.f32 %v1767_v24, %v929_v60  ;;  %v1770_v31 = vmul.f32 %v1709_v48, %v4263_v46  ;;  %vm1731_vm13 = vweird.f32 %v4003_v20  ;;  %v1735_v1 = vand.u32 2147483647, %v4003_v20 }
 0x18d   :  { %1862 = vst [vmem:[%s4138_s3 + $0xc8] sm:$0xff] %v1830_v7  ;;  %v1771_v5 = vmul.f32 %v1724_v18, %v4266_v27  ;;  %vm1733_vm14 = vmor %vm1731_vm13, %vm1732_vm12  ;;  %v1738_v12 = vor.u32 1.1754944e-38, %v1737_v19 }
 0x18e   :  { %1863 = vst [vmem:[%s4138_s3 + $0xd0] sm:$0xff] %v1831_v44  ;;  %v1734_v35 = vsel %vm1733_vm14, %v4060_v37, %v1730_v21  ;;  %vm1736_vm15 = vcmp.eq.f32.partialorder %v1735_v1, 8.507059e+37 }
 0x18f   :  { %v977_v15 = vpop.f32.mrf.mxu2  ;;  %v1739_v46 = vsel %vm1736_vm15, %v1738_v12, %v1734_v35 }
 0x190   :  { %v1026_v62 = vpop.f32.mrf.mxu3  ;;  %v882_v32 = vpop.f32.mrf.mxu0  ;;  %v1772_v27 = vmul.f32 %v1739_v46, %v4273_v17 }
 0x191   :  { %v1027_v25 = vadd.f32 %v1026_v62, %v977_v15  ;;  %v931_v33 = vpop.f32.mrf.mxu1 }
 0x192   :  { %v932_v30 = vadd.f32 %v931_v33, %v882_v32 }
 0x193   :  { %v1832_v28 = vmul.f32 %v1768_v54, %v1027_v25 }
 0x194   :  { %v1833_v40 = vmul.f32 %v1769_v29, %v932_v30 }
 0x195   :  { %1864 = vst [vmem:[%s4138_s3 + $0xd8] sm:$0xff] %v1832_v28 }
 0x196   :  { %1865 = vst [vmem:[%s4138_s3 + $0xe0] sm:$0xff] %v1833_v40 }
 0x197   :  { %v980_v23 = vpop.f32.mrf.mxu2 }
 0x198   :  { %v1029_v0 = vpop.f32.mrf.mxu3  ;;  %v884_v50 = vpop.f32.mrf.mxu0 }
 0x199   :  { %v1030_v53 = vadd.f32 %v1029_v0, %v980_v23  ;;  %v933_v41 = vpop.f32.mrf.mxu1 }
 0x19a   :  { %v934_v56 = vadd.f32 %v933_v41, %v884_v50 }
 0x19b   :  { %v1834_v47 = vmul.f32 %v1770_v31, %v1030_v53 }
 0x19c   :  { %v1835_v51 = vmul.f32 %v1771_v5, %v934_v56 }
 0x19d   :  { %1866 = vst [vmem:[%s4138_s3 + $0xe8] sm:$0xff] %v1834_v47 }
 0x19e   :  { %1867 = vst [vmem:[%s4138_s3 + $0xf0] sm:$0xff] %v1835_v51 }
 0x19f   :  { %v982_v20 = vpop.f32.mrf.mxu2 }
 0x1a0   :  { %v1031_v14 = vpop.f32.mrf.mxu3 }
 0x1a1   :  { %v1032_v52 = vadd.f32 %v1031_v14, %v982_v20 }
 0x1a3   :  { %v1836_v38 = vmul.f32 %v1772_v27, %v1032_v52 }
 0x1a5   :  { %1868 = vst [vmem:[%s4138_s3 + $0xf8] sm:$0xff] %v1836_v38 }

</bundles_post_ra>
